<compile_context>
chip_gen: v7x
topology: tpu7x:2x2x1
jax: 0.10.0
libtpu: 0.0.40
codegen_flags: <defaults>
</compile_context>

<pallas_src>
import jax
import jax.numpy as jnp
from jax.experimental import pallas as pl
from jax.experimental.pallas import tpu as pltpu


def _round_up(x, m):
    return (x + m - 1) // m * m


# Static (non-traced) layer configuration for the conv-transpose stack:
#   (Cin, Cout, kernel, stride, padding, has_bn, activation)
_CONV_CFG = (
    (256, 128, 3, 2, 1, True, "leaky"),
    (128, 64, 3, 2, 1, True, "leaky"),
    (64, 32, 5, 2, 2, True, "leaky"),
    (32, 3, 6, 2, 2, False, "sigmoid"),
)
_BN_EPS = 1e-5
_LEAKY_SLOPE = 0.01  # nn.LeakyReLU() default


# ----------------------------------------------------------------------------
# Pallas kernel 1: fused Linear -> LeakyReLU (x3) stack.
# Grid axis j tiles the columns of the last (1024, 4096) weight; the first two
# tiny Linears are recomputed per step (negligible FLOPs).
# ----------------------------------------------------------------------------
def _lin_stack_kernel(x_ref, w1_ref, b1_ref, w2_ref, b2_ref, w3_ref, b3_ref,
                      o_ref):
    def leaky(v):
        return jnp.where(v >= 0, v, _LEAKY_SLOPE * v)

    h = jnp.dot(x_ref[...], w1_ref[...], preferred_element_type=jnp.float32)
    h = leaky(h + b1_ref[...]).astype(jnp.bfloat16)
    h = jnp.dot(h, w2_ref[...], preferred_element_type=jnp.float32)
    h = leaky(h + b2_ref[...]).astype(jnp.bfloat16)
    h = jnp.dot(h, w3_ref[...], preferred_element_type=jnp.float32)
    o_ref[...] = leaky(h + b3_ref[...])


def linear_stack(x, w1, b1, w2, b2, w3, b3, *, tn=1024):
    B, k1 = x.shape
    n1 = w1.shape[1]
    n2 = w2.shape[1]
    n3 = w3.shape[1]
    return pl.pallas_call(
        _lin_stack_kernel,
        out_shape=jax.ShapeDtypeStruct((B, n3), jnp.float32),
        grid=(n3 // tn,),
        in_specs=[
            pl.BlockSpec((B, k1), lambda j: (0, 0)),
            pl.BlockSpec((k1, n1), lambda j: (0, 0)),
            pl.BlockSpec((1, n1), lambda j: (0, 0)),
            pl.BlockSpec((n1, n2), lambda j: (0, 0)),
            pl.BlockSpec((1, n2), lambda j: (0, 0)),
            pl.BlockSpec((n2, tn), lambda j: (0, j)),
            pl.BlockSpec((1, tn), lambda j: (0, j)),
        ],
        out_specs=pl.BlockSpec((B, tn), lambda j: (0, j)),
        compiler_params=pltpu.CompilerParams(
            dimension_semantics=("parallel",)),
    )(x, w1, b1, w2, b2, w3, b3)


# ----------------------------------------------------------------------------
# Pallas kernel 2: plain bf16 matmul with fp32 accumulation (conv-transpose
# core).  Everything fits VMEM at these sizes, so a single grid step.
# ----------------------------------------------------------------------------
def _matmul_kernel(x_ref, w_ref, o_ref):
    o_ref[...] = jnp.dot(x_ref[...], w_ref[...],
                         preferred_element_type=jnp.float32)


def pallas_matmul(x, w):
    M, K = x.shape
    _, N = w.shape
    return pl.pallas_call(
        _matmul_kernel,
        out_shape=jax.ShapeDtypeStruct((M, N), jnp.float32),
        grid=(1,),
        in_specs=[pl.BlockSpec((M, K), lambda i: (0, 0)),
                  pl.BlockSpec((K, N), lambda i: (0, 0))],
        out_specs=pl.BlockSpec((M, N), lambda i: (0, 0)),
    )(x, w)


# ----------------------------------------------------------------------------
# ConvTranspose2d: native matmul formulation + col2im overlap-add.
# ----------------------------------------------------------------------------
def conv_transpose_layer(x_nhwc, w_mat, shift, cfg):
    cin, cout, k, stride, pad, has_bn, act = cfg
    B, H, W, _ = x_nhwc.shape
    x_mat = x_nhwc.reshape(B * H * W, cin).astype(jnp.bfloat16)
    y = pallas_matmul(x_mat, w_mat)                      # (B*H*W, Npad) fp32
    y = y[:, :cout * k * k].reshape(B, H, W, cout, k, k)

    oh_full = (H - 1) * stride + k
    ow_full = (W - 1) * stride + k
    out = jnp.zeros((B, oh_full, ow_full, cout), jnp.float32)
    # col2im overlap-add (tiny tensors; strided scatter-add in XLA glue).
    for a in range(k):
        for b in range(k):
            out = out.at[:, a:a + stride * (H - 1) + 1:stride,
                         b:b + stride * (W - 1) + 1:stride, :].add(
                             y[:, :, :, :, a, b])
    out = out[:, pad:oh_full - pad, pad:ow_full - pad, :] + shift
    if act == "leaky":
        return jnp.where(out >= 0, out, _LEAKY_SLOPE * out)
    return jax.nn.sigmoid(out)


# ----------------------------------------------------------------------------
# Deterministic parameter construction (shapes from Decoder.__init__).
# BN scale is folded into the conv weights here; the params pytree contains
# ONLY jax arrays (fixes the jit "str argument" error).
# ----------------------------------------------------------------------------
def _linear_params(key, fan_in, fan_out):
    kw_, kb_ = jax.random.split(key)
    bound = 1.0 / float(fan_in) ** 0.5
    w = jax.random.uniform(kw_, (fan_in, fan_out), jnp.float32, -bound, bound)
    b = jax.random.uniform(kb_, (fan_out,), jnp.float32, -bound, bound)
    return w, b


def _convt_params(key, cin, cout, k):
    kw_, kb_ = jax.random.split(key)
    bound = 1.0 / float(cin * k * k) ** 0.5
    w = jax.random.uniform(kw_, (cin, cout, k, k), jnp.float32, -bound, bound)
    b = jax.random.uniform(kb_, (cout,), jnp.float32, -bound, bound)
    return w, b


def _bn_params(key, c):
    k1, k2, k3, k4 = jax.random.split(key, 4)
    gamma = jax.random.uniform(k1, (c,), jnp.float32, 0.9, 1.1)
    beta = jax.random.normal(k2, (c,), jnp.float32) * 0.05
    mean = jax.random.normal(k3, (c,), jnp.float32) * 0.05
    var = jax.random.uniform(k4, (c,), jnp.float32, 0.9, 1.1)
    return gamma, beta, mean, var


def make_decoder_params(latent_size, key):
    keys = jax.random.split(key, 10)
    w1, b1 = _linear_params(keys[0], latent_size, 256)
    w2, b2 = _linear_params(keys[1], 256, 1024)
    w3, b3 = _linear_params(keys[2], 1024, 4096)
    lin = (w1.astype(jnp.bfloat16), b1.reshape(1, -1),
           w2.astype(jnp.bfloat16), b2.reshape(1, -1),
           w3.astype(jnp.bfloat16), b3.reshape(1, -1))

    conv_keys = keys[3:7]
    bn_keys = keys[7:10]
    conv = []
    for li, (cin, cout, k, stride, pad, has_bn, act) in enumerate(_CONV_CFG):
        w, b = _convt_params(conv_keys[li], cin, cout, k)
        if has_bn:
            gamma, beta, mean, var = _bn_params(bn_keys[li], cout)
            scale = gamma / jnp.sqrt(var + _BN_EPS)
            shift = (b - mean) * scale + beta
        else:
            scale = jnp.ones((cout,), jnp.float32)
            shift = b
        # Fold BN scale into the weight, flatten to the native ConvT matmul
        # layout (Cin, Cout*kh*kw), pad columns to a multiple of 128 for
        # lane-dense output, cast to bf16.
        ncols = cout * k * k
        w_mat = (w * scale[None, :, None, None]).reshape(cin, ncols)
        npad = _round_up(ncols, 128)
        w_mat = jnp.pad(w_mat, ((0, 0), (0, npad - ncols)))
        conv.append((w_mat.astype(jnp.bfloat16), shift.astype(jnp.float32)))
    return {"lin": lin, "conv": tuple(conv)}


# ----------------------------------------------------------------------------
# Decoder forward
# ----------------------------------------------------------------------------
def decoder_forward(params, x):
    # TODO(synk): Dropout(p=0.2) uses eval-mode semantics (identity); BatchNorm
    # uses folded running statistics (eval mode).
    w1, b1, w2, b2, w3, b3 = params["lin"]
    h = linear_stack(x.astype(jnp.bfloat16), w1, b1, w2, b2, w3, b3)  # (B,4096)
    B = h.shape[0]
    # nn.Unflatten(1, (256, 4, 4)) is NCHW; work channel-last internally.
    h = h.reshape(B, 256, 4, 4).transpose(0, 2, 3, 1)
    for (w_mat, shift), cfg in zip(params["conv"], _CONV_CFG):
        h = conv_transpose_layer(h, w_mat, shift, cfg)
    return h.transpose(0, 3, 1, 2)  # back to NCHW to match PyTorch


if __name__ == "__main__":
    batch = 2
    latent_size = 32
    output_size = (batch, 3, 50, 50)  # implied by the ConvT stack from 4x4

    root = jax.random.PRNGKey(0)
    k_params, k_input = jax.random.split(root)
    params = make_decoder_params(latent_size, k_params)
    x = jax.random.normal(k_input, (batch, latent_size), jnp.float32)

    fwd = jax.jit(decoder_forward)
    y = jax.block_until_ready(fwd(params, x))

    assert y.shape == output_size, y.shape
    assert y.dtype == jnp.float32
    assert bool(jnp.all(jnp.isfinite(y)))
    assert bool(jnp.all((y >= 0.0) & (y <= 1.0)))  # sigmoid output range
    print("KERNEL_OK")
</pallas_src>

<mosaic_0001>
module attributes {stable_mosaic.version = 11 : i64} {
  func.func @_lin_stack_kernel(%arg0: i32, %arg1: memref<2x32xbf16, #tpu.memory_space<vmem>>, %arg2: memref<32x256xbf16, #tpu.memory_space<vmem>>, %arg3: memref<1x256xf32, #tpu.memory_space<vmem>>, %arg4: memref<256x1024xbf16, #tpu.memory_space<vmem>>, %arg5: memref<1x1024xf32, #tpu.memory_space<vmem>>, %arg6: memref<1024x1024xbf16, #tpu.memory_space<vmem>>, %arg7: memref<1x1024xf32, #tpu.memory_space<vmem>>, %arg8: memref<2x1024xf32, #tpu.memory_space<vmem>>) attributes {dimension_semantics = [#tpu.dimension_semantics<parallel>], iteration_bounds = array<i64: 4>, scalar_prefetch = 0 : i64, scratch_operands = 0 : i64, tpu.core_type = #tpu.core_type<tc>, window_params = [{pipeline_mode = #tpu.pipeline_mode<synchronous>, transform_indices = @transform_0, window_bounds = array<i64: 2, 32>}, {pipeline_mode = #tpu.pipeline_mode<synchronous>, transform_indices = @transform_1, window_bounds = array<i64: 32, 256>}, {pipeline_mode = #tpu.pipeline_mode<synchronous>, transform_indices = @transform_2, window_bounds = array<i64: 1, 256>}, {pipeline_mode = #tpu.pipeline_mode<synchronous>, transform_indices = @transform_3, window_bounds = array<i64: 256, 1024>}, {pipeline_mode = #tpu.pipeline_mode<synchronous>, transform_indices = @transform_4, window_bounds = array<i64: 1, 1024>}, {transform_indices = @transform_5, window_bounds = array<i64: 1024, 1024>}, {transform_indices = @transform_6, window_bounds = array<i64: 1, 1024>}, {transform_indices = @transform_7, window_bounds = array<i64: 2, 1024>}]} {
    %c0 = arith.constant 0 : index
    %c0_0 = arith.constant 0 : index
    %0 = vector.load %arg1[%c0, %c0_0] : memref<2x32xbf16, #tpu.memory_space<vmem>>, vector<2x32xbf16>
    %c0_1 = arith.constant 0 : index
    %c0_2 = arith.constant 0 : index
    %1 = vector.load %arg2[%c0_1, %c0_2] : memref<32x256xbf16, #tpu.memory_space<vmem>>, vector<32x256xbf16>
    %cst = arith.constant dense<0.000000e+00> : vector<2x256xf32>
    %2 = tpu.matmul %0, %1, %cst {dimension_numbers = #tpu.dot_dimension_numbers<[1], [0], [0], [1], [0, 0, 1, 1], [], []>} : vector<2x32xbf16>, vector<32x256xbf16>, vector<2x256xf32> -> vector<2x256xf32>
    %c0_3 = arith.constant 0 : index
    %c0_4 = arith.constant 0 : index
    %3 = vector.load %arg3[%c0_3, %c0_4] : memref<1x256xf32, #tpu.memory_space<vmem>>, vector<1x256xf32>
    %4 = vector.broadcast %3 : vector<1x256xf32> to vector<2x256xf32>
    %5 = arith.addf %2, %4 : vector<2x256xf32>
    %cst_5 = arith.constant 0.000000e+00 : f32
    %6 = vector.broadcast %cst_5 : f32 to vector<2x256xf32>
    %7 = arith.cmpf oge, %5, %6 : vector<2x256xf32>
    %cst_6 = arith.constant 0.00999999977 : f32
    %8 = vector.broadcast %cst_6 : f32 to vector<2x256xf32>
    %9 = arith.mulf %8, %5 : vector<2x256xf32>
    %10 = arith.select %7, %5, %9 : vector<2x256xi1>, vector<2x256xf32>
    %11 = arith.truncf %10 : vector<2x256xf32> to vector<2x256xbf16>
    %c0_7 = arith.constant 0 : index
    %c0_8 = arith.constant 0 : index
    %12 = vector.load %arg4[%c0_7, %c0_8] : memref<256x1024xbf16, #tpu.memory_space<vmem>>, vector<256x1024xbf16>
    %cst_9 = arith.constant dense<0.000000e+00> : vector<2x1024xf32>
    %13 = tpu.matmul %11, %12, %cst_9 {dimension_numbers = #tpu.dot_dimension_numbers<[1], [0], [0], [1], [0, 0, 1, 1], [], []>} : vector<2x256xbf16>, vector<256x1024xbf16>, vector<2x1024xf32> -> vector<2x1024xf32>
    %c0_10 = arith.constant 0 : index
    %c0_11 = arith.constant 0 : index
    %14 = vector.load %arg5[%c0_10, %c0_11] : memref<1x1024xf32, #tpu.memory_space<vmem>>, vector<1x1024xf32>
    %15 = vector.broadcast %14 : vector<1x1024xf32> to vector<2x1024xf32>
    %16 = arith.addf %13, %15 : vector<2x1024xf32>
    %cst_12 = arith.constant 0.000000e+00 : f32
    %17 = vector.broadcast %cst_12 : f32 to vector<2x1024xf32>
    %18 = arith.cmpf oge, %16, %17 : vector<2x1024xf32>
    %cst_13 = arith.constant 0.00999999977 : f32
    %19 = vector.broadcast %cst_13 : f32 to vector<2x1024xf32>
    %20 = arith.mulf %19, %16 : vector<2x1024xf32>
    %21 = arith.select %18, %16, %20 : vector<2x1024xi1>, vector<2x1024xf32>
    %22 = arith.truncf %21 : vector<2x1024xf32> to vector<2x1024xbf16>
    %c0_14 = arith.constant 0 : index
    %c0_15 = arith.constant 0 : index
    %23 = vector.load %arg6[%c0_14, %c0_15] : memref<1024x1024xbf16, #tpu.memory_space<vmem>>, vector<1024x1024xbf16>
    %cst_16 = arith.constant dense<0.000000e+00> : vector<2x1024xf32>
    %24 = tpu.matmul %22, %23, %cst_16 {dimension_numbers = #tpu.dot_dimension_numbers<[1], [0], [0], [1], [0, 0, 1, 1], [], []>} : vector<2x1024xbf16>, vector<1024x1024xbf16>, vector<2x1024xf32> -> vector<2x1024xf32>
    %c0_17 = arith.constant 0 : index
    %c0_18 = arith.constant 0 : index
    %25 = vector.load %arg7[%c0_17, %c0_18] : memref<1x1024xf32, #tpu.memory_space<vmem>>, vector<1x1024xf32>
    %26 = vector.broadcast %25 : vector<1x1024xf32> to vector<2x1024xf32>
    %27 = arith.addf %24, %26 : vector<2x1024xf32>
    %cst_19 = arith.constant 0.000000e+00 : f32
    %28 = vector.broadcast %cst_19 : f32 to vector<2x1024xf32>
    %29 = arith.cmpf oge, %27, %28 : vector<2x1024xf32>
    %cst_20 = arith.constant 0.00999999977 : f32
    %30 = vector.broadcast %cst_20 : f32 to vector<2x1024xf32>
    %31 = arith.mulf %30, %27 : vector<2x1024xf32>
    %32 = arith.select %29, %27, %31 : vector<2x1024xi1>, vector<2x1024xf32>
    %c0_21 = arith.constant 0 : index
    %c0_22 = arith.constant 0 : index
    %33 = vector.load %arg8[%c0_21, %c0_22] : memref<2x1024xf32, #tpu.memory_space<vmem>>, vector<2x1024xf32>
    tpu.vector_store %arg8[%c0_21, %c0_22], %32 {strides = array<i32>} : memref<2x1024xf32, #tpu.memory_space<vmem>>, vector<2x1024xf32>,
    return
  }
  func.func @transform_0(%arg0: i32) -> (i32, i32) {
    %c0_i32 = arith.constant 0 : i32
    %c0_i32_0 = arith.constant 0 : i32
    %c0_i32_1 = arith.constant 0 : i32
    return %c0_i32, %c0_i32_0 : i32, i32
  }
  func.func @transform_1(%arg0: i32) -> (i32, i32) {
    %c0_i32 = arith.constant 0 : i32
    %c0_i32_0 = arith.constant 0 : i32
    %c0_i32_1 = arith.constant 0 : i32
    return %c0_i32, %c0_i32_0 : i32, i32
  }
  func.func @transform_2(%arg0: i32) -> (i32, i32) {
    %c0_i32 = arith.constant 0 : i32
    %c0_i32_0 = arith.constant 0 : i32
    %c0_i32_1 = arith.constant 0 : i32
    return %c0_i32, %c0_i32_0 : i32, i32
  }
  func.func @transform_3(%arg0: i32) -> (i32, i32) {
    %c0_i32 = arith.constant 0 : i32
    %c0_i32_0 = arith.constant 0 : i32
    %c0_i32_1 = arith.constant 0 : i32
    return %c0_i32, %c0_i32_0 : i32, i32
  }
  func.func @transform_4(%arg0: i32) -> (i32, i32) {
    %c0_i32 = arith.constant 0 : i32
    %c0_i32_0 = arith.constant 0 : i32
    %c0_i32_1 = arith.constant 0 : i32
    return %c0_i32, %c0_i32_0 : i32, i32
  }
  func.func @transform_5(%arg0: i32) -> (i32, i32) {
    %c0_i32 = arith.constant 0 : i32
    %c0_i32_0 = arith.constant 0 : i32
    return %c0_i32, %arg0 : i32, i32
  }
  func.func @transform_6(%arg0: i32) -> (i32, i32) {
    %c0_i32 = arith.constant 0 : i32
    %c0_i32_0 = arith.constant 0 : i32
    return %c0_i32, %arg0 : i32, i32
  }
  func.func @transform_7(%arg0: i32) -> (i32, i32) {
    %c0_i32 = arith.constant 0 : i32
    %c0_i32_0 = arith.constant 0 : i32
    return %c0_i32, %arg0 : i32, i32
  }
}

module attributes {stable_mosaic.version = 11 : i64} {
  func.func @_matmul_kernel(%arg0: i32, %arg1: memref<32x256xbf16, #tpu.memory_space<vmem>>, %arg2: memref<256x1152xbf16, #tpu.memory_space<vmem>>, %arg3: memref<32x1152xf32, #tpu.memory_space<vmem>>) attributes {dimension_semantics = [#tpu.dimension_semantics<arbitrary>], iteration_bounds = array<i64: 1>, scalar_prefetch = 0 : i64, scratch_operands = 0 : i64, tpu.core_type = #tpu.core_type<tc>, window_params = [{pipeline_mode = #tpu.pipeline_mode<synchronous>, transform_indices = @transform_0, window_bounds = array<i64: 32, 256>}, {pipeline_mode = #tpu.pipeline_mode<synchronous>, transform_indices = @transform_1, window_bounds = array<i64: 256, 1152>}, {pipeline_mode = #tpu.pipeline_mode<synchronous>, transform_indices = @transform_2, window_bounds = array<i64: 32, 1152>}]} {
    %c0 = arith.constant 0 : index
    %c0_0 = arith.constant 0 : index
    %0 = vector.load %arg1[%c0, %c0_0] : memref<32x256xbf16, #tpu.memory_space<vmem>>, vector<32x256xbf16>
    %c0_1 = arith.constant 0 : index
    %c0_2 = arith.constant 0 : index
    %1 = vector.load %arg2[%c0_1, %c0_2] : memref<256x1152xbf16, #tpu.memory_space<vmem>>, vector<256x1152xbf16>
    %cst = arith.constant dense<0.000000e+00> : vector<32x1152xf32>
    %2 = tpu.matmul %0, %1, %cst {dimension_numbers = #tpu.dot_dimension_numbers<[1], [0], [0], [1], [0, 0, 1, 1], [], []>} : vector<32x256xbf16>, vector<256x1152xbf16>, vector<32x1152xf32> -> vector<32x1152xf32>
    %c0_3 = arith.constant 0 : index
    %c0_4 = arith.constant 0 : index
    %3 = vector.load %arg3[%c0_3, %c0_4] : memref<32x1152xf32, #tpu.memory_space<vmem>>, vector<32x1152xf32>
    tpu.vector_store %arg3[%c0_3, %c0_4], %2 {strides = array<i32>} : memref<32x1152xf32, #tpu.memory_space<vmem>>, vector<32x1152xf32>,
    return
  }
  func.func @transform_0(%arg0: i32) -> (i32, i32) {
    %c0_i32 = arith.constant 0 : i32
    %c0_i32_0 = arith.constant 0 : i32
    %c0_i32_1 = arith.constant 0 : i32
    return %c0_i32, %c0_i32_0 : i32, i32
  }
  func.func @transform_1(%arg0: i32) -> (i32, i32) {
    %c0_i32 = arith.constant 0 : i32
    %c0_i32_0 = arith.constant 0 : i32
    %c0_i32_1 = arith.constant 0 : i32
    return %c0_i32, %c0_i32_0 : i32, i32
  }
  func.func @transform_2(%arg0: i32) -> (i32, i32) {
    %c0_i32 = arith.constant 0 : i32
    %c0_i32_0 = arith.constant 0 : i32
    %c0_i32_1 = arith.constant 0 : i32
    return %c0_i32, %c0_i32_0 : i32, i32
  }
}

module attributes {stable_mosaic.version = 11 : i64} {
  func.func @_matmul_kernel(%arg0: i32, %arg1: memref<98x128xbf16, #tpu.memory_space<vmem>>, %arg2: memref<128x640xbf16, #tpu.memory_space<vmem>>, %arg3: memref<98x640xf32, #tpu.memory_space<vmem>>) attributes {dimension_semantics = [#tpu.dimension_semantics<arbitrary>], iteration_bounds = array<i64: 1>, scalar_prefetch = 0 : i64, scratch_operands = 0 : i64, tpu.core_type = #tpu.core_type<tc>, window_params = [{pipeline_mode = #tpu.pipeline_mode<synchronous>, transform_indices = @transform_0, window_bounds = array<i64: 98, 128>}, {pipeline_mode = #tpu.pipeline_mode<synchronous>, transform_indices = @transform_1, window_bounds = array<i64: 128, 640>}, {pipeline_mode = #tpu.pipeline_mode<synchronous>, transform_indices = @transform_2, window_bounds = array<i64: 98, 640>}]} {
    %c0 = arith.constant 0 : index
    %c0_0 = arith.constant 0 : index
    %0 = vector.load %arg1[%c0, %c0_0] : memref<98x128xbf16, #tpu.memory_space<vmem>>, vector<98x128xbf16>
    %c0_1 = arith.constant 0 : index
    %c0_2 = arith.constant 0 : index
    %1 = vector.load %arg2[%c0_1, %c0_2] : memref<128x640xbf16, #tpu.memory_space<vmem>>, vector<128x640xbf16>
    %cst = arith.constant dense<0.000000e+00> : vector<98x640xf32>
    %2 = tpu.matmul %0, %1, %cst {dimension_numbers = #tpu.dot_dimension_numbers<[1], [0], [0], [1], [0, 0, 1, 1], [], []>} : vector<98x128xbf16>, vector<128x640xbf16>, vector<98x640xf32> -> vector<98x640xf32>
    %c0_3 = arith.constant 0 : index
    %c0_4 = arith.constant 0 : index
    %3 = vector.load %arg3[%c0_3, %c0_4] : memref<98x640xf32, #tpu.memory_space<vmem>>, vector<98x640xf32>
    tpu.vector_store %arg3[%c0_3, %c0_4], %2 {strides = array<i32>} : memref<98x640xf32, #tpu.memory_space<vmem>>, vector<98x640xf32>,
    return
  }
  func.func @transform_0(%arg0: i32) -> (i32, i32) {
    %c0_i32 = arith.constant 0 : i32
    %c0_i32_0 = arith.constant 0 : i32
    %c0_i32_1 = arith.constant 0 : i32
    return %c0_i32, %c0_i32_0 : i32, i32
  }
  func.func @transform_1(%arg0: i32) -> (i32, i32) {
    %c0_i32 = arith.constant 0 : i32
    %c0_i32_0 = arith.constant 0 : i32
    %c0_i32_1 = arith.constant 0 : i32
    return %c0_i32, %c0_i32_0 : i32, i32
  }
  func.func @transform_2(%arg0: i32) -> (i32, i32) {
    %c0_i32 = arith.constant 0 : i32
    %c0_i32_0 = arith.constant 0 : i32
    %c0_i32_1 = arith.constant 0 : i32
    return %c0_i32, %c0_i32_0 : i32, i32
  }
}

module attributes {stable_mosaic.version = 11 : i64} {
  func.func @_matmul_kernel(%arg0: i32, %arg1: memref<338x64xbf16, #tpu.memory_space<vmem>>, %arg2: memref<64x896xbf16, #tpu.memory_space<vmem>>, %arg3: memref<338x896xf32, #tpu.memory_space<vmem>>) attributes {dimension_semantics = [#tpu.dimension_semantics<arbitrary>], iteration_bounds = array<i64: 1>, scalar_prefetch = 0 : i64, scratch_operands = 0 : i64, tpu.core_type = #tpu.core_type<tc>, window_params = [{pipeline_mode = #tpu.pipeline_mode<synchronous>, transform_indices = @transform_0, window_bounds = array<i64: 338, 64>}, {pipeline_mode = #tpu.pipeline_mode<synchronous>, transform_indices = @transform_1, window_bounds = array<i64: 64, 896>}, {pipeline_mode = #tpu.pipeline_mode<synchronous>, transform_indices = @transform_2, window_bounds = array<i64: 338, 896>}]} {
    %c0 = arith.constant 0 : index
    %c0_0 = arith.constant 0 : index
    %0 = vector.load %arg1[%c0, %c0_0] : memref<338x64xbf16, #tpu.memory_space<vmem>>, vector<338x64xbf16>
    %c0_1 = arith.constant 0 : index
    %c0_2 = arith.constant 0 : index
    %1 = vector.load %arg2[%c0_1, %c0_2] : memref<64x896xbf16, #tpu.memory_space<vmem>>, vector<64x896xbf16>
    %cst = arith.constant dense<0.000000e+00> : vector<338x896xf32>
    %2 = tpu.matmul %0, %1, %cst {dimension_numbers = #tpu.dot_dimension_numbers<[1], [0], [0], [1], [0, 0, 1, 1], [], []>} : vector<338x64xbf16>, vector<64x896xbf16>, vector<338x896xf32> -> vector<338x896xf32>
    %c0_3 = arith.constant 0 : index
    %c0_4 = arith.constant 0 : index
    %3 = vector.load %arg3[%c0_3, %c0_4] : memref<338x896xf32, #tpu.memory_space<vmem>>, vector<338x896xf32>
    tpu.vector_store %arg3[%c0_3, %c0_4], %2 {strides = array<i32>} : memref<338x896xf32, #tpu.memory_space<vmem>>, vector<338x896xf32>,
    return
  }
  func.func @transform_0(%arg0: i32) -> (i32, i32) {
    %c0_i32 = arith.constant 0 : i32
    %c0_i32_0 = arith.constant 0 : i32
    %c0_i32_1 = arith.constant 0 : i32
    return %c0_i32, %c0_i32_0 : i32, i32
  }
  func.func @transform_1(%arg0: i32) -> (i32, i32) {
    %c0_i32 = arith.constant 0 : i32
    %c0_i32_0 = arith.constant 0 : i32
    %c0_i32_1 = arith.constant 0 : i32
    return %c0_i32, %c0_i32_0 : i32, i32
  }
  func.func @transform_2(%arg0: i32) -> (i32, i32) {
    %c0_i32 = arith.constant 0 : i32
    %c0_i32_0 = arith.constant 0 : i32
    %c0_i32_1 = arith.constant 0 : i32
    return %c0_i32, %c0_i32_0 : i32, i32
  }
}

module attributes {stable_mosaic.version = 11 : i64} {
  func.func @_matmul_kernel(%arg0: i32, %arg1: memref<1250x32xbf16, #tpu.memory_space<vmem>>, %arg2: memref<32x128xbf16, #tpu.memory_space<vmem>>, %arg3: memref<1250x128xf32, #tpu.memory_space<vmem>>) attributes {dimension_semantics = [#tpu.dimension_semantics<arbitrary>], iteration_bounds = array<i64: 1>, scalar_prefetch = 0 : i64, scratch_operands = 0 : i64, tpu.core_type = #tpu.core_type<tc>, window_params = [{pipeline_mode = #tpu.pipeline_mode<synchronous>, transform_indices = @transform_0, window_bounds = array<i64: 1250, 32>}, {pipeline_mode = #tpu.pipeline_mode<synchronous>, transform_indices = @transform_1, window_bounds = array<i64: 32, 128>}, {pipeline_mode = #tpu.pipeline_mode<synchronous>, transform_indices = @transform_2, window_bounds = array<i64: 1250, 128>}]} {
    %c0 = arith.constant 0 : index
    %c0_0 = arith.constant 0 : index
    %0 = vector.load %arg1[%c0, %c0_0] : memref<1250x32xbf16, #tpu.memory_space<vmem>>, vector<1250x32xbf16>
    %c0_1 = arith.constant 0 : index
    %c0_2 = arith.constant 0 : index
    %1 = vector.load %arg2[%c0_1, %c0_2] : memref<32x128xbf16, #tpu.memory_space<vmem>>, vector<32x128xbf16>
    %cst = arith.constant dense<0.000000e+00> : vector<1250x128xf32>
    %2 = tpu.matmul %0, %1, %cst {dimension_numbers = #tpu.dot_dimension_numbers<[1], [0], [0], [1], [0, 0, 1, 1], [], []>} : vector<1250x32xbf16>, vector<32x128xbf16>, vector<1250x128xf32> -> vector<1250x128xf32>
    %c0_3 = arith.constant 0 : index
    %c0_4 = arith.constant 0 : index
    %3 = vector.load %arg3[%c0_3, %c0_4] : memref<1250x128xf32, #tpu.memory_space<vmem>>, vector<1250x128xf32>
    tpu.vector_store %arg3[%c0_3, %c0_4], %2 {strides = array<i32>} : memref<1250x128xf32, #tpu.memory_space<vmem>>, vector<1250x128xf32>,
    return
  }
  func.func @transform_0(%arg0: i32) -> (i32, i32) {
    %c0_i32 = arith.constant 0 : i32
    %c0_i32_0 = arith.constant 0 : i32
    %c0_i32_1 = arith.constant 0 : i32
    return %c0_i32, %c0_i32_0 : i32, i32
  }
  func.func @transform_1(%arg0: i32) -> (i32, i32) {
    %c0_i32 = arith.constant 0 : i32
    %c0_i32_0 = arith.constant 0 : i32
    %c0_i32_1 = arith.constant 0 : i32
    return %c0_i32, %c0_i32_0 : i32, i32
  }
  func.func @transform_2(%arg0: i32) -> (i32, i32) {
    %c0_i32 = arith.constant 0 : i32
    %c0_i32_0 = arith.constant 0 : i32
    %c0_i32_1 = arith.constant 0 : i32
    return %c0_i32, %c0_i32_0 : i32, i32
  }
}

</mosaic_0001>

<bundles_post_ra>
// kernel: decoder_forward.6
= control target key start
LH: loop header
LB: loop body
LE: loop exit
PB: predicated region body
PF: predicated region fallthrough
CT: control target
= control target key end

     0   :  { %s2234_s1 = inlined_call_operand.vmem [shape: bf16[256,1152], index: 1, kind: input, shape index: {}]   ;;  %s2235_s0 = inlined_call_operand.vmem [shape: bf16[32,256], index: 0, kind: input, shape index: {}]   ;;  %s2236_s2 = inlined_call_operand.vmem [shape: f32[32,1152], index: 2, kind: output, shape index: {}]  }
   0x1   :  { %v1425_v0 = vld [vmem:[%s2234_s1 + $0x4] ss:$36 sps:$4 sm:$0xff]   ;;  %v1427_v1 = vld [vmem:[%s2234_s1 + $0xc] ss:$36 sps:$4 sm:$0xff]   ;;  %v1433_v5 = vld [vmem:[%s2234_s1 + $0x54] ss:$36 sps:$4 sm:$0xff]  }
   0x2   :  { %932 = vmatprep.subr.bf16.mxu0 %v1425_v0  ;;  %v1429_v2 = vld [vmem:[%s2234_s1] ss:$36 sps:$4 sm:$0xff]   ;;  %v1430_v3 = vld [vmem:[%s2234_s1 + $0x8] ss:$36 sps:$4 sm:$0xff]   ;;  %985 = vmatprep.subr.bf16.mxu1 %v1427_v1  ;;  %v1436_v7 = vld [vmem:[%s2234_s1 + $0x50] ss:$36 sps:$4 sm:$0xff]  }
   0x3   :  { %v1431_v4 = vld [vmem:[%s2234_s1 + $0x4c] ss:$36 sps:$4 sm:$0xff]   ;;  %933 = vmatpush1.bf16.msra.mxu0 %v1429_v2  ;;  %986 = vmatpush1.bf16.msra.mxu1 %v1430_v3  ;;  %v1437_v8 = vld [vmem:[%s2234_s1 + $0x94] ss:$36 sps:$4 sm:$0xff]   ;;  %v1439_v9 = vld [vmem:[%s2234_s1 + $0x9c] ss:$36 sps:$4 sm:$0xff]  }
   0x4   :  { %v1435_v6 = vld [vmem:[%s2234_s1 + $0x48] ss:$36 sps:$4 sm:$0xff]   ;;  %934 = vmatprep.subr.bf16.mxu0 %v1431_v4  ;;  %987 = vmatprep.subr.bf16.mxu1 %v1433_v5  ;;  %v1441_v10 = vld [vmem:[%s2234_s1 + $0x90] ss:$36 sps:$4 sm:$0xff]   ;;  %v1442_v11 = vld [vmem:[%s2234_s1 + $0x98] ss:$36 sps:$4 sm:$0xff]  }
   0x5   :  { %v1443_v12 = vld [vmem:[%s2234_s1 + $0xdc] ss:$36 sps:$4 sm:$0xff]   ;;  %v1445_v13 = vld [vmem:[%s2234_s1 + $0xe4] ss:$36 sps:$4 sm:$0xff]   ;;  %v1451_v17 = vld [vmem:[%s2234_s1 + $0x12c] ss:$36 sps:$4 sm:$0xff]  }
   0x6   :  { %v1447_v14 = vld [vmem:[%s2234_s1 + $0xd8] ss:$36 sps:$4 sm:$0xff]   ;;  %v1448_v15 = vld [vmem:[%s2234_s1 + $0xe0] ss:$36 sps:$4 sm:$0xff]   ;;  %v1454_v19 = vld [vmem:[%s2234_s1 + $0x128] ss:$36 sps:$4 sm:$0xff]  }
   0x7   :  { %935 = vmatpush1.bf16.msra.mxu0 %v1435_v6  ;;  %988 = vmatpush1.bf16.msra.mxu1 %v1436_v7  ;;  %v1449_v16 = vld [vmem:[%s2234_s1 + $0x124] ss:$36 sps:$4 sm:$0xff]   ;;  %v1455_v20 = vld [vmem:[%s2234_s1 + $0x16c] ss:$36 sps:$4 sm:$0xff]   ;;  %v1457_v21 = vld [vmem:[%s2234_s1 + $0x174] ss:$36 sps:$4 sm:$0xff]  }
   0x8   :  { %936 = vmatprep.subr.bf16.mxu0 %v1437_v8  ;;  %989 = vmatprep.subr.bf16.mxu1 %v1439_v9  ;;  %v1453_v18 = vld [vmem:[%s2234_s1 + $0x120] ss:$36 sps:$4 sm:$0xff]   ;;  %v1459_v22 = vld [vmem:[%s2234_s1 + $0x168] ss:$36 sps:$4 sm:$0xff]   ;;  %v1460_v23 = vld [vmem:[%s2234_s1 + $0x170] ss:$36 sps:$4 sm:$0xff]  }
   0x9   :  { %v1461_v24 = vld [vmem:[%s2234_s1 + $0x1b4] ss:$36 sps:$4 sm:$0xff]   ;;  %v1463_v25 = vld [vmem:[%s2234_s1 + $0x1bc] ss:$36 sps:$4 sm:$0xff]   ;;  %v1469_v29 = vld [vmem:[%s2234_s1 + $0x204] ss:$36 sps:$4 sm:$0xff]  }
   0xa   :  { %v1465_v26 = vld [vmem:[%s2234_s1 + $0x1b0] ss:$36 sps:$4 sm:$0xff]   ;;  %v1466_v27 = vld [vmem:[%s2234_s1 + $0x1b8] ss:$36 sps:$4 sm:$0xff]   ;;  %v1472_v31 = vld [vmem:[%s2234_s1 + $0x200] ss:$36 sps:$4 sm:$0xff]  }
   0xb   :  { %937 = vmatpush1.bf16.msra.mxu0 %v1441_v10  ;;  %990 = vmatpush1.bf16.msra.mxu1 %v1442_v11  ;;  %v1467_v28 = vld [vmem:[%s2234_s1 + $0x1fc] ss:$36 sps:$4 sm:$0xff]   ;;  %v1473_v32 = vld [vmem:[%s2234_s1 + $0x244] ss:$36 sps:$4 sm:$0xff]   ;;  %v1475_v33 = vld [vmem:[%s2234_s1 + $0x24c] ss:$36 sps:$4 sm:$0xff]  }
   0xc   :  { %938 = vmatprep.subr.bf16.mxu0 %v1443_v12  ;;  %991 = vmatprep.subr.bf16.mxu1 %v1445_v13  ;;  %v1471_v30 = vld [vmem:[%s2234_s1 + $0x1f8] ss:$36 sps:$4 sm:$0xff]   ;;  %v1477_v34 = vld [vmem:[%s2234_s1 + $0x240] ss:$36 sps:$4 sm:$0xff]   ;;  %v1478_v35 = vld [vmem:[%s2234_s1 + $0x248] ss:$36 sps:$4 sm:$0xff]  }
   0xd   :  { %v1479_v36 = vld [vmem:[%s2234_s1 + $0x28c] ss:$36 sps:$4 sm:$0xff]   ;;  %v1481_v37 = vld [vmem:[%s2234_s1 + $0x294] ss:$36 sps:$4 sm:$0xff]   ;;  %v1487_v41 = vld [vmem:[%s2234_s1 + $0x2dc] ss:$36 sps:$4 sm:$0xff]  }
   0xe   :  { %v1483_v38 = vld [vmem:[%s2234_s1 + $0x288] ss:$36 sps:$4 sm:$0xff]   ;;  %v1484_v39 = vld [vmem:[%s2234_s1 + $0x290] ss:$36 sps:$4 sm:$0xff]   ;;  %v1490_v43 = vld [vmem:[%s2234_s1 + $0x2d8] ss:$36 sps:$4 sm:$0xff]  }
   0xf   :  { %939 = vmatpush1.bf16.msra.mxu0 %v1447_v14  ;;  %992 = vmatpush1.bf16.msra.mxu1 %v1448_v15  ;;  %v1485_v40 = vld [vmem:[%s2234_s1 + $0x2d4] ss:$36 sps:$4 sm:$0xff]   ;;  %v1491_v44 = vld [vmem:[%s2234_s1 + $0x31c] ss:$36 sps:$4 sm:$0xff]   ;;  %v1493_v45 = vld [vmem:[%s2234_s1 + $0x324] ss:$36 sps:$4 sm:$0xff]  }
  0x10   :  { %940 = vmatprep.subr.bf16.mxu0 %v1449_v16  ;;  %993 = vmatprep.subr.bf16.mxu1 %v1451_v17  ;;  %v1489_v42 = vld [vmem:[%s2234_s1 + $0x2d0] ss:$36 sps:$4 sm:$0xff]   ;;  %v1495_v46 = vld [vmem:[%s2234_s1 + $0x318] ss:$36 sps:$4 sm:$0xff]   ;;  %v1496_v47 = vld [vmem:[%s2234_s1 + $0x320] ss:$36 sps:$4 sm:$0xff]  }
  0x11   :  { %v1801_v48 = vld [vmem:[%s2235_s0 + $0x4] ss:$8 sps:$4 sm:$0xff]   ;;  %v1505_v54 = vld [vmem:[%s2234_s1 + $0x3b4] ss:$36 sps:$4 sm:$0xff]   ;;  %v1511_v58 = vld [vmem:[%s2234_s1 + $0x3fc] ss:$36 sps:$4 sm:$0xff]  }
  0x12   :  { %v1497_v49 = vld [vmem:[%s2234_s1 + $0x364] ss:$36 sps:$4 sm:$0xff]   ;;  %v1499_v50 = vld [vmem:[%s2234_s1 + $0x36c] ss:$36 sps:$4 sm:$0xff]   ;;  %964 = vmatprep.mubr.bf16.mxu0 %v1801_v48  ;;  %1017 = vmatprep.mubr.bf16.mxu1 %v1801_v48  ;;  %v1509_v57 = vld [vmem:[%s2234_s1 + $0x3f4] ss:$36 sps:$4 sm:$0xff]  }
  0x13   :  { %941 = vmatpush1.bf16.msra.mxu0 %v1453_v18  ;;  %994 = vmatpush1.bf16.msra.mxu1 %v1454_v19  ;;  %v1501_v51 = vld [vmem:[%s2234_s1 + $0x360] ss:$36 sps:$4 sm:$0xff]   ;;  %v1502_v52 = vld [vmem:[%s2234_s1 + $0x368] ss:$36 sps:$4 sm:$0xff]   ;;  %v1508_v56 = vld [vmem:[%s2234_s1 + $0x3b0] ss:$36 sps:$4 sm:$0xff]  }
  0x14   :  { %942 = vmatprep.subr.bf16.mxu0 %v1455_v20  ;;  %995 = vmatprep.subr.bf16.mxu1 %v1457_v21  ;;  %v1503_v53 = vld [vmem:[%s2234_s1 + $0x3ac] ss:$36 sps:$4 sm:$0xff]   ;;  %v1514_v60 = vld [vmem:[%s2234_s1 + $0x3f8] ss:$36 sps:$4 sm:$0xff]   ;;  %v1517_v62 = vld [vmem:[%s2234_s1 + $0x444] ss:$36 sps:$4 sm:$0xff]  }
  0x15   :  { %v1507_v55 = vld [vmem:[%s2234_s1 + $0x3a8] ss:$36 sps:$4 sm:$0xff]   ;;  %v1513_v59 = vld [vmem:[%s2234_s1 + $0x3f0] ss:$36 sps:$4 sm:$0xff]   ;;  %v1515_v61 = vld [vmem:[%s2234_s1 + $0x43c] ss:$36 sps:$4 sm:$0xff]  }
  0x16   :  { %v1519_v63 = vld [vmem:[%s2234_s1 + $0x438] ss:$36 sps:$4 sm:$0xff]   ;;  %v1520_v0 = vld [vmem:[%s2234_s1 + $0x440] ss:$36 sps:$4 sm:$0xff]   ;;  %v1524_v4 = vld [vmem:[%s2234_s1 + $0x10] ss:$36 sps:$4 sm:$0xff]  }
  0x17   :  { %943 = vmatpush1.bf16.msra.mxu0 %v1459_v22  ;;  %996 = vmatpush1.bf16.msra.mxu1 %v1460_v23  ;;  %v1526_v1 = vld [vmem:[%s2234_s1 + $0x14] ss:$36 sps:$4 sm:$0xff]   ;;  %v1529_v2 = vld [vmem:[%s2234_s1 + $0x1c] ss:$36 sps:$4 sm:$0xff]   ;;  %v1535_v7 = vld [vmem:[%s2234_s1 + $0x64] ss:$36 sps:$4 sm:$0xff]  }
  0x18   :  { %944 = vmatprep.subr.bf16.mxu0 %v1461_v24  ;;  %997 = vmatprep.subr.bf16.mxu1 %v1463_v25  ;;  %v1862_v3 = vld [vmem:[%s2235_s0] ss:$8 sps:$4 sm:$0xff]   ;;  %v1527_v5 = vld [vmem:[%s2234_s1 + $0x18] ss:$36 sps:$4 sm:$0xff]   ;;  %v1541_v11 = vld [vmem:[%s2234_s1 + $0xac] ss:$36 sps:$4 sm:$0xff]  }
  0x19   :  { %v1532_v6 = vld [vmem:[%s2234_s1 + $0x5c] ss:$36 sps:$4 sm:$0xff]   ;;  %v1538_v10 = vld [vmem:[%s2234_s1 + $0xa4] ss:$36 sps:$4 sm:$0xff]   ;;  %v1544_v14 = vld [vmem:[%s2234_s1 + $0xec] ss:$36 sps:$4 sm:$0xff]  }
  0x1a   :  { %v1530_v8 = vld [vmem:[%s2234_s1 + $0x58] ss:$36 sps:$4 sm:$0xff]   ;;  %v1533_v9 = vld [vmem:[%s2234_s1 + $0x60] ss:$36 sps:$4 sm:$0xff]   ;;  %v1539_v13 = vld [vmem:[%s2234_s1 + $0xa8] ss:$36 sps:$4 sm:$0xff]  }
  0x1b   :  { %945 = vmatpush1.bf16.msra.mxu0 %v1465_v26  ;;  %998 = vmatpush1.bf16.msra.mxu1 %v1466_v27  ;;  %v1536_v12 = vld [vmem:[%s2234_s1 + $0xa0] ss:$36 sps:$4 sm:$0xff]   ;;  %v1547_v15 = vld [vmem:[%s2234_s1 + $0xf4] ss:$36 sps:$4 sm:$0xff]   ;;  %v1542_v16 = vld [vmem:[%s2234_s1 + $0xe8] ss:$36 sps:$4 sm:$0xff]  }
  0x1c   :  { %946 = vmatprep.subr.bf16.mxu0 %v1467_v28  ;;  %999 = vmatprep.subr.bf16.mxu1 %v1469_v29  ;;  %v1545_v17 = vld [vmem:[%s2234_s1 + $0xf0] ss:$36 sps:$4 sm:$0xff]   ;;  %v1553_v19 = vld [vmem:[%s2234_s1 + $0x13c] ss:$36 sps:$4 sm:$0xff]   ;;  %v1559_v23 = vld [vmem:[%s2234_s1 + $0x184] ss:$36 sps:$4 sm:$0xff]  }
  0x1d   :  { %v1550_v18 = vld [vmem:[%s2234_s1 + $0x134] ss:$36 sps:$4 sm:$0xff]   ;;  %v1556_v22 = vld [vmem:[%s2234_s1 + $0x17c] ss:$36 sps:$4 sm:$0xff]   ;;  %v1562_v28 = vld [vmem:[%s2234_s1 + $0x1c4] ss:$36 sps:$4 sm:$0xff]  }
  0x1e   :  { %v1548_v20 = vld [vmem:[%s2234_s1 + $0x130] ss:$36 sps:$4 sm:$0xff]   ;;  %v1551_v21 = vld [vmem:[%s2234_s1 + $0x138] ss:$36 sps:$4 sm:$0xff]   ;;  %v1557_v26 = vld [vmem:[%s2234_s1 + $0x180] ss:$36 sps:$4 sm:$0xff]  }
  0x1f   :  { %947 = vmatpush1.bf16.msra.mxu0 %v1471_v30  ;;  %1000 = vmatpush1.bf16.msra.mxu1 %v1472_v31  ;;  %v1554_v24 = vld [vmem:[%s2234_s1 + $0x178] ss:$36 sps:$4 sm:$0xff]   ;;  %v1565_v29 = vld [vmem:[%s2234_s1 + $0x1cc] ss:$36 sps:$4 sm:$0xff]   ;;  %v1560_v30 = vld [vmem:[%s2234_s1 + $0x1c0] ss:$36 sps:$4 sm:$0xff]  }
  0x20   :  { %948 = vmatprep.subr.bf16.mxu0 %v1473_v32  ;;  %1001 = vmatprep.subr.bf16.mxu1 %v1475_v33  ;;  %v1932_v25 = vld [vmem:[%s2235_s0 + $0x14] ss:$8 sps:$4 sm:$0xff]   ;;  %v1940_v27 = vld [vmem:[%s2235_s0 + $0x10] ss:$8 sps:$4 sm:$0xff]   ;;  %v1563_v31 = vld [vmem:[%s2234_s1 + $0x1c8] ss:$36 sps:$4 sm:$0xff]  }
  0x21   :  { %v1568_v32 = vld [vmem:[%s2234_s1 + $0x20c] ss:$36 sps:$4 sm:$0xff]   ;;  %v1571_v33 = vld [vmem:[%s2234_s1 + $0x214] ss:$36 sps:$4 sm:$0xff]  }
  0x23   :  { %949 = vmatpush1.bf16.msra.mxu0 %v1477_v34  ;;  %1002 = vmatpush1.bf16.msra.mxu1 %v1478_v35  ;;  %v1566_v34 = vld [vmem:[%s2234_s1 + $0x208] ss:$36 sps:$4 sm:$0xff]   ;;  %v1569_v35 = vld [vmem:[%s2234_s1 + $0x210] ss:$36 sps:$4 sm:$0xff]  }
  0x24   :  { %950 = vmatprep.subr.bf16.mxu0 %v1479_v36  ;;  %1003 = vmatprep.subr.bf16.mxu1 %v1481_v37  ;;  %v1574_v36 = vld [vmem:[%s2234_s1 + $0x254] ss:$36 sps:$4 sm:$0xff]   ;;  %v1577_v37 = vld [vmem:[%s2234_s1 + $0x25c] ss:$36 sps:$4 sm:$0xff]  }
  0x27   :  { %951 = vmatpush1.bf16.msra.mxu0 %v1483_v38  ;;  %1004 = vmatpush1.bf16.msra.mxu1 %v1484_v39  ;;  %v1572_v38 = vld [vmem:[%s2234_s1 + $0x250] ss:$36 sps:$4 sm:$0xff]   ;;  %v1575_v39 = vld [vmem:[%s2234_s1 + $0x258] ss:$36 sps:$4 sm:$0xff]  }
  0x28   :  { %952 = vmatprep.subr.bf16.mxu0 %v1485_v40  ;;  %1005 = vmatprep.subr.bf16.mxu1 %v1487_v41  ;;  %v1580_v40 = vld [vmem:[%s2234_s1 + $0x29c] ss:$36 sps:$4 sm:$0xff]   ;;  %v1583_v41 = vld [vmem:[%s2234_s1 + $0x2a4] ss:$36 sps:$4 sm:$0xff]  }
  0x2b   :  { %953 = vmatpush1.bf16.msra.mxu0 %v1489_v42  ;;  %1006 = vmatpush1.bf16.msra.mxu1 %v1490_v43  ;;  %v1578_v42 = vld [vmem:[%s2234_s1 + $0x298] ss:$36 sps:$4 sm:$0xff]   ;;  %v1581_v43 = vld [vmem:[%s2234_s1 + $0x2a0] ss:$36 sps:$4 sm:$0xff]  }
  0x2c   :  { %954 = vmatprep.subr.bf16.mxu0 %v1491_v44  ;;  %1007 = vmatprep.subr.bf16.mxu1 %v1493_v45  ;;  %v1586_v44 = vld [vmem:[%s2234_s1 + $0x2e4] ss:$36 sps:$4 sm:$0xff]   ;;  %v1589_v45 = vld [vmem:[%s2234_s1 + $0x2ec] ss:$36 sps:$4 sm:$0xff]  }
  0x2f   :  { %955 = vmatpush1.bf16.msra.mxu0 %v1495_v46  ;;  %1008 = vmatpush1.bf16.msra.mxu1 %v1496_v47  ;;  %v1584_v46 = vld [vmem:[%s2234_s1 + $0x2e0] ss:$36 sps:$4 sm:$0xff]   ;;  %v1587_v47 = vld [vmem:[%s2234_s1 + $0x2e8] ss:$36 sps:$4 sm:$0xff]  }
  0x30   :  { %956 = vmatprep.subr.bf16.mxu0 %v1497_v49  ;;  %1009 = vmatprep.subr.bf16.mxu1 %v1499_v50  ;;  %v1592_v49 = vld [vmem:[%s2234_s1 + $0x32c] ss:$36 sps:$4 sm:$0xff]   ;;  %v1595_v50 = vld [vmem:[%s2234_s1 + $0x334] ss:$36 sps:$4 sm:$0xff]  }
  0x33   :  { %957 = vmatpush1.bf16.msra.mxu0 %v1501_v51  ;;  %1010 = vmatpush1.bf16.msra.mxu1 %v1502_v52  ;;  %v1590_v51 = vld [vmem:[%s2234_s1 + $0x328] ss:$36 sps:$4 sm:$0xff]   ;;  %v1593_v52 = vld [vmem:[%s2234_s1 + $0x330] ss:$36 sps:$4 sm:$0xff]  }
  0x34   :  { %958 = vmatprep.subr.bf16.mxu0 %v1503_v53  ;;  %1011 = vmatprep.subr.bf16.mxu1 %v1505_v54  ;;  %v1598_v53 = vld [vmem:[%s2234_s1 + $0x374] ss:$36 sps:$4 sm:$0xff]   ;;  %v1601_v54 = vld [vmem:[%s2234_s1 + $0x37c] ss:$36 sps:$4 sm:$0xff]  }
  0x37   :  { %959 = vmatpush1.bf16.msra.mxu0 %v1507_v55  ;;  %1012 = vmatpush1.bf16.msra.mxu1 %v1508_v56  ;;  %v1596_v55 = vld [vmem:[%s2234_s1 + $0x370] ss:$36 sps:$4 sm:$0xff]   ;;  %v1599_v56 = vld [vmem:[%s2234_s1 + $0x378] ss:$36 sps:$4 sm:$0xff]  }
  0x38   :  { %960 = vmatprep.subr.bf16.mxu0 %v1509_v57  ;;  %1013 = vmatprep.subr.bf16.mxu1 %v1511_v58  ;;  %v1604_v57 = vld [vmem:[%s2234_s1 + $0x3bc] ss:$36 sps:$4 sm:$0xff]   ;;  %v1607_v58 = vld [vmem:[%s2234_s1 + $0x3c4] ss:$36 sps:$4 sm:$0xff]  }
  0x3b   :  { %961 = vmatpush1.bf16.msra.mxu0 %v1513_v59  ;;  %1014 = vmatpush1.bf16.msra.mxu1 %v1514_v60  ;;  %v1602_v59 = vld [vmem:[%s2234_s1 + $0x3b8] ss:$36 sps:$4 sm:$0xff]   ;;  %v1605_v60 = vld [vmem:[%s2234_s1 + $0x3c0] ss:$36 sps:$4 sm:$0xff]  }
  0x3c   :  { %962 = vmatprep.subr.bf16.mxu0 %v1515_v61  ;;  %1015 = vmatprep.subr.bf16.mxu1 %v1517_v62  ;;  %v1613_v61 = vld [vmem:[%s2234_s1 + $0x404] ss:$36 sps:$4 sm:$0xff]   ;;  %v1616_v62 = vld [vmem:[%s2234_s1 + $0x40c] ss:$36 sps:$4 sm:$0xff]  }
  0x3f   :  { %963 = vmatpush1.bf16.msra.mxu0 %v1519_v63  ;;  %1016 = vmatpush1.bf16.msra.mxu1 %v1520_v0  ;;  %v1611_v63 = vld [vmem:[%s2234_s1 + $0x400] ss:$36 sps:$4 sm:$0xff]   ;;  %v1614_v0 = vld [vmem:[%s2234_s1 + $0x408] ss:$36 sps:$4 sm:$0xff]  }
  0x40   :  { %1038 = vmatprep.subr.bf16.mxu0 %v1526_v1  ;;  %1091 = vmatprep.subr.bf16.mxu1 %v1529_v2  ;;  %v1619_v1 = vld [vmem:[%s2234_s1 + $0x44c] ss:$36 sps:$4 sm:$0xff]   ;;  %v1622_v2 = vld [vmem:[%s2234_s1 + $0x454] ss:$36 sps:$4 sm:$0xff]  }
  0x42   :  { %965 = vmatmul.mubr.bf16.vlgmr.msra.gmra.mrb[0].mxu0 %v1862_v3  ;;  %1018 = vmatmul.mubr.bf16.vlgmr.msra.gmra.mrb[0].mxu1 %v1862_v3 }
  0x43   :  { %1039 = vmatpush1.bf16.msra.mxu0 %v1524_v4  ;;  %1092 = vmatpush1.bf16.msra.mxu1 %v1527_v5  ;;  %v1617_v4 = vld [vmem:[%s2234_s1 + $0x448] ss:$36 sps:$4 sm:$0xff]   ;;  %v1620_v5 = vld [vmem:[%s2234_s1 + $0x450] ss:$36 sps:$4 sm:$0xff]  }
  0x44   :  { %1040 = vmatprep.subr.bf16.mxu0 %v1532_v6  ;;  %1093 = vmatprep.subr.bf16.mxu1 %v1535_v7  ;;  %v1623_v6 = vld [vmem:[%s2234_s1 + $0x260] ss:$36 sps:$4 sm:$0xff]  }
  0x45   :  { %974 = vmatprep.mubr.bf16.mxu0 %v1932_v25  ;;  %1027 = vmatprep.mubr.bf16.mxu1 %v1932_v25  ;;  %v1624_v7 = vld [vmem:[%s2234_s1 + $0x20] ss:$36 sps:$4 sm:$0xff]  }
  0x47   :  { %1041 = vmatpush1.bf16.msra.mxu0 %v1530_v8  ;;  %1094 = vmatpush1.bf16.msra.mxu1 %v1533_v9  ;;  %v1625_v8 = vld [vmem:[%s2234_s1 + $0x2a8] ss:$36 sps:$4 sm:$0xff]  }
  0x48   :  { %1042 = vmatprep.subr.bf16.mxu0 %v1538_v10  ;;  %1095 = vmatprep.subr.bf16.mxu1 %v1541_v11  ;;  %v1626_v9 = vld [vmem:[%s2234_s1 + $0x68] ss:$36 sps:$4 sm:$0xff]   ;;  %v1627_v10 = vld [vmem:[%s2234_s1 + $0x2f0] ss:$36 sps:$4 sm:$0xff]  }
  0x49   :  { %v1628_v11 = vld [vmem:[%s2234_s1 + $0xb0] ss:$36 sps:$4 sm:$0xff]  }
  0x4a   :  { %975 = vmatmul.mubr.bf16.gmra.mrb[4].mxu0 %v1940_v27  ;;  %1028 = vmatmul.mubr.bf16.gmra.mrb[4].mxu1 %v1940_v27 }
  0x4b   :  { %1043 = vmatpush1.bf16.msra.mxu0 %v1536_v12  ;;  %1096 = vmatpush1.bf16.msra.mxu1 %v1539_v13  ;;  %v1629_v12 = vld [vmem:[%s2234_s1 + $0x338] ss:$36 sps:$4 sm:$0xff]  }
  0x4c   :  { %1044 = vmatprep.subr.bf16.mxu0 %v1544_v14  ;;  %1097 = vmatprep.subr.bf16.mxu1 %v1547_v15  ;;  %v1630_v13 = vld [vmem:[%s2234_s1 + $0xf8] ss:$36 sps:$4 sm:$0xff]   ;;  %v1631_v14 = vld [vmem:[%s2234_s1 + $0x380] ss:$36 sps:$4 sm:$0xff]  }
  0x4d   :  { %1070 = vmatprep.mubr.bf16.mxu0 %v1801_v48  ;;  %1123 = vmatprep.mubr.bf16.mxu1 %v1801_v48  ;;  %v1632_v15 = vld [vmem:[%s2234_s1 + $0x140] ss:$36 sps:$4 sm:$0xff]  }
  0x4f   :  { %1045 = vmatpush1.bf16.msra.mxu0 %v1542_v16  ;;  %1098 = vmatpush1.bf16.msra.mxu1 %v1545_v17  ;;  %v1633_v16 = vld [vmem:[%s2234_s1 + $0x3c8] ss:$36 sps:$4 sm:$0xff]   ;;  %v1635_v17 = vld [vmem:[%s2234_s1 + $0x410] ss:$36 sps:$4 sm:$0xff]  }
  0x50   :  { %1046 = vmatprep.subr.bf16.mxu0 %v1550_v18  ;;  %1099 = vmatprep.subr.bf16.mxu1 %v1553_v19  ;;  %v1636_v18 = vld [vmem:[%s2234_s1 + $0x1d0] ss:$36 sps:$4 sm:$0xff]   ;;  %v1637_v19 = vld [vmem:[%s2234_s1 + $0x458] ss:$36 sps:$4 sm:$0xff]  }
  0x53   :  { %1047 = vmatpush1.bf16.msra.mxu0 %v1548_v20  ;;  %1100 = vmatpush1.bf16.msra.mxu1 %v1551_v21  ;;  %v1638_v20 = vld [vmem:[%s2234_s1 + $0x218] ss:$36 sps:$4 sm:$0xff]  }
  0x54   :  { %1048 = vmatprep.subr.bf16.mxu0 %v1556_v22  ;;  %1101 = vmatprep.subr.bf16.mxu1 %v1559_v23 }
  0x57   :  { %1049 = vmatpush1.bf16.msra.mxu0 %v1554_v24  ;;  %1102 = vmatpush1.bf16.msra.mxu1 %v1557_v26 }
  0x58   :  { %1050 = vmatprep.subr.bf16.mxu0 %v1562_v28  ;;  %1103 = vmatprep.subr.bf16.mxu1 %v1565_v29 }
  0x5b   :  { %1051 = vmatpush1.bf16.msra.mxu0 %v1560_v30  ;;  %1104 = vmatpush1.bf16.msra.mxu1 %v1563_v31 }
  0x5c   :  { %1052 = vmatprep.subr.bf16.mxu0 %v1568_v32  ;;  %1105 = vmatprep.subr.bf16.mxu1 %v1571_v33 }
  0x5f   :  { %1053 = vmatpush1.bf16.msra.mxu0 %v1566_v34  ;;  %1106 = vmatpush1.bf16.msra.mxu1 %v1569_v35 }
  0x60   :  { %1054 = vmatprep.subr.bf16.mxu0 %v1574_v36  ;;  %1107 = vmatprep.subr.bf16.mxu1 %v1577_v37 }
  0x63   :  { %1055 = vmatpush1.bf16.msra.mxu0 %v1572_v38  ;;  %1108 = vmatpush1.bf16.msra.mxu1 %v1575_v39 }
  0x64   :  { %1056 = vmatprep.subr.bf16.mxu0 %v1580_v40  ;;  %1109 = vmatprep.subr.bf16.mxu1 %v1583_v41 }
  0x67   :  { %1057 = vmatpush1.bf16.msra.mxu0 %v1578_v42  ;;  %1110 = vmatpush1.bf16.msra.mxu1 %v1581_v43 }
  0x68   :  { %1058 = vmatprep.subr.bf16.mxu0 %v1586_v44  ;;  %1111 = vmatprep.subr.bf16.mxu1 %v1589_v45 }
  0x6b   :  { %1059 = vmatpush1.bf16.msra.mxu0 %v1584_v46  ;;  %1112 = vmatpush1.bf16.msra.mxu1 %v1587_v47 }
  0x6c   :  { %1060 = vmatprep.subr.bf16.mxu0 %v1592_v49  ;;  %1113 = vmatprep.subr.bf16.mxu1 %v1595_v50 }
  0x6f   :  { %1061 = vmatpush1.bf16.msra.mxu0 %v1590_v51  ;;  %1114 = vmatpush1.bf16.msra.mxu1 %v1593_v52 }
  0x70   :  { %1062 = vmatprep.subr.bf16.mxu0 %v1598_v53  ;;  %1115 = vmatprep.subr.bf16.mxu1 %v1601_v54 }
  0x73   :  { %1063 = vmatpush1.bf16.msra.mxu0 %v1596_v55  ;;  %1116 = vmatpush1.bf16.msra.mxu1 %v1599_v56 }
  0x74   :  { %1064 = vmatprep.subr.bf16.mxu0 %v1604_v57  ;;  %1117 = vmatprep.subr.bf16.mxu1 %v1607_v58 }
  0x77   :  { %1065 = vmatpush1.bf16.msra.mxu0 %v1602_v59  ;;  %1118 = vmatpush1.bf16.msra.mxu1 %v1605_v60 }
  0x78   :  { %1066 = vmatprep.subr.bf16.mxu0 %v1613_v61  ;;  %1119 = vmatprep.subr.bf16.mxu1 %v1616_v62 }
  0x7b   :  { %1067 = vmatpush1.bf16.msra.mxu0 %v1611_v63  ;;  %1120 = vmatpush1.bf16.msra.mxu1 %v1614_v0 }
  0x7c   :  { %1068 = vmatprep.subr.bf16.mxu0 %v1619_v1  ;;  %1121 = vmatprep.subr.bf16.mxu1 %v1622_v2 }
  0x7f   :  { %1069 = vmatpush1.bf16.msra.mxu0 %v1617_v4  ;;  %1122 = vmatpush1.bf16.msra.mxu1 %v1620_v5 }
  0x80   :  { %1381 = vmatprep.subr.bf16.mxu0 %v1623_v6  ;;  %1409 = vmatprep.subr.bf16.mxu1 %v1623_v6 }
  0x82   :  { %1071 = vmatmul.mubr.bf16.vlgmr.msra.gmra.mrb[8].mxu0 %v1862_v3  ;;  %1124 = vmatmul.mubr.bf16.vlgmr.msra.gmra.mrb[8].mxu1 %v1862_v3 }
  0x83   :  { %1382 = vmatpush3.bf16.msra.mxu0 %v1624_v7  ;;  %1417 = vmatpush3.bf16.msra.mxu1 %v1624_v7 }
  0x84   :  { %1383 = vmatprep.subr.bf16.mxu0 %v1625_v8  ;;  %1410 = vmatprep.subr.bf16.mxu1 %v1625_v8 }
  0x85   :  { %1080 = vmatprep.mubr.bf16.mxu0 %v1932_v25  ;;  %1133 = vmatprep.mubr.bf16.mxu1 %v1932_v25 }
  0x87   :  { %1384 = vmatpush3.bf16.msra.mxu0 %v1626_v9  ;;  %1418 = vmatpush3.bf16.msra.mxu1 %v1626_v9 }
  0x88   :  { %1385 = vmatprep.subr.bf16.mxu0 %v1627_v10  ;;  %1411 = vmatprep.subr.bf16.mxu1 %v1627_v10 }
  0x8a   :  { %1081 = vmatmul.mubr.bf16.gmra.mrb[12].mxu0 %v1940_v27  ;;  %1134 = vmatmul.mubr.bf16.gmra.mrb[12].mxu1 %v1940_v27 }
  0x8b   :  { %1386 = vmatpush3.bf16.msra.mxu0 %v1628_v11  ;;  %1419 = vmatpush3.bf16.msra.mxu1 %v1628_v11 }
  0x8c   :  { %1387 = vmatprep.subr.bf16.mxu0 %v1629_v12  ;;  %1412 = vmatprep.subr.bf16.mxu1 %v1629_v12 }
  0x8d   :  { %1176 = vmatprep.mubr.bf16.mxu0 %v1801_v48  ;;  %1184 = vmatprep.mubr.bf16.mxu1 %v1932_v25  ;;  %v1634_v48 = vld [vmem:[%s2234_s1 + $0x188] ss:$36 sps:$4 sm:$0xff]  }
  0x8f   :  { %1388 = vmatpush3.bf16.msra.mxu0 %v1630_v13  ;;  %1420 = vmatpush3.bf16.msra.mxu1 %v1630_v13 }
  0x90   :  { %1389 = vmatprep.subr.bf16.mxu0 %v1631_v14  ;;  %1413 = vmatprep.subr.bf16.mxu1 %v1631_v14 }
  0x93   :  { %1390 = vmatpush3.bf16.msra.mxu0 %v1632_v15  ;;  %1421 = vmatpush3.bf16.msra.mxu1 %v1632_v15 }
  0x94   :  { %1391 = vmatprep.subr.bf16.mxu0 %v1633_v16  ;;  %1414 = vmatprep.subr.bf16.mxu1 %v1633_v16 }
  0x97   :  { %1392 = vmatpush3.bf16.msra.mxu0 %v1634_v48  ;;  %1422 = vmatpush3.bf16.msra.mxu1 %v1634_v48 }
  0x98   :  { %1393 = vmatprep.subr.bf16.mxu0 %v1635_v17  ;;  %1415 = vmatprep.subr.bf16.mxu1 %v1635_v17 }
  0x9b   :  { %1394 = vmatpush3.bf16.msra.mxu0 %v1636_v18  ;;  %1423 = vmatpush3.bf16.msra.mxu1 %v1636_v18 }
  0x9c   :  { %1395 = vmatprep.subr.bf16.mxu0 %v1637_v19  ;;  %1416 = vmatprep.subr.bf16.mxu1 %v1637_v19 }
  0x9f   :  { %1396 = vmatpush3.bf16.msra.mxu0 %v1638_v20  ;;  %1424 = vmatpush3.bf16.msra.mxu1 %v1638_v20 }
  0xa2   :  { %1177 = vmatmul.mubr.bf16.vlgmr.msra.gmra.mrb[16].mxu0 %v1862_v3  ;;  %1185 = vmatmul.mubr.bf16.vlgmr.msra.gmra.mrb[16].mxu1 %v1940_v27 }
 0x115   :  { %v966_v21 = vpop.f32.mrb[0].mxu0  ;;  %v1019_v22 = vpop.f32.mrb[0].mxu1 }
 0x116   :  { %1193 = vst [vmem:[%s2236_s2] sm:$0xff] %v966_v21  ;;  %1195 = vst [vmem:[%s2236_s2 + $0x10] sm:$0xff] %v1019_v22  ;;  %v968_v23 = vpop.f32.mrb[1].mxu0  ;;  %v1021_v24 = vpop.f32.mrb[1].mxu1 }
 0x117   :  { %1194 = vst [vmem:[%s2236_s2 + $0x8] sm:$0xff] %v968_v23  ;;  %1196 = vst [vmem:[%s2236_s2 + $0x18] sm:$0xff] %v1021_v24  ;;  %v970_v3 = vpop.f32.mrb[2].mxu0  ;;  %v1023_v25 = vpop.f32.mrb[2].mxu1 }
 0x118   :  { %1202 = vst [vmem:[%s2236_s2 + $0x48] sm:$0xff] %v970_v3  ;;  %1204 = vst [vmem:[%s2236_s2 + $0x58] sm:$0xff] %v1023_v25  ;;  %v972_v26 = vpop.f32.mrb[3].mxu0  ;;  %v1025_v27 = vpop.f32.mrb[3].mxu1 }
 0x119   :  { %1203 = vst [vmem:[%s2236_s2 + $0x50] sm:$0xff] %v972_v26  ;;  %1205 = vst [vmem:[%s2236_s2 + $0x60] sm:$0xff] %v1025_v27 }
 0x11d   :  { %v976_v28 = vpop.f32.mrb[4].mxu0  ;;  %v1029_v29 = vpop.f32.mrb[4].mxu1 }
 0x11e   :  { %1211 = vst [vmem:[%s2236_s2 + $0x90] sm:$0xff] %v976_v28  ;;  %1213 = vst [vmem:[%s2236_s2 + $0xa0] sm:$0xff] %v1029_v29  ;;  %v978_v30 = vpop.f32.mrb[5].mxu0  ;;  %v1031_v31 = vpop.f32.mrb[5].mxu1 }
 0x11f   :  { %1212 = vst [vmem:[%s2236_s2 + $0x98] sm:$0xff] %v978_v30  ;;  %1214 = vst [vmem:[%s2236_s2 + $0xa8] sm:$0xff] %v1031_v31  ;;  %v980_v32 = vpop.f32.mrb[6].mxu0  ;;  %v1033_v33 = vpop.f32.mrb[6].mxu1 }
 0x120   :  { %1220 = vst [vmem:[%s2236_s2 + $0xd8] sm:$0xff] %v980_v32  ;;  %1222 = vst [vmem:[%s2236_s2 + $0xe8] sm:$0xff] %v1033_v33  ;;  %v982_v34 = vpop.f32.mrb[7].mxu0  ;;  %v1035_v35 = vpop.f32.mrb[7].mxu1 }
 0x121   :  { %1221 = vst [vmem:[%s2236_s2 + $0xe0] sm:$0xff] %v982_v34  ;;  %1223 = vst [vmem:[%s2236_s2 + $0xf0] sm:$0xff] %v1035_v35 }
 0x155   :  { %v1072_v36 = vpop.f32.mrb[8].mxu0  ;;  %v1125_v37 = vpop.f32.mrb[8].mxu1 }
 0x156   :  { %1197 = vst [vmem:[%s2236_s2 + $0x20] sm:$0xff] %v1072_v36  ;;  %1199 = vst [vmem:[%s2236_s2 + $0x30] sm:$0xff] %v1125_v37  ;;  %v1074_v38 = vpop.f32.mrb[9].mxu0  ;;  %v1127_v39 = vpop.f32.mrb[9].mxu1 }
 0x157   :  { %1198 = vst [vmem:[%s2236_s2 + $0x28] sm:$0xff] %v1074_v38  ;;  %1200 = vst [vmem:[%s2236_s2 + $0x38] sm:$0xff] %v1127_v39  ;;  %v1076_v40 = vpop.f32.mrb[10].mxu0  ;;  %v1129_v41 = vpop.f32.mrb[10].mxu1 }
 0x158   :  { %1206 = vst [vmem:[%s2236_s2 + $0x68] sm:$0xff] %v1076_v40  ;;  %1208 = vst [vmem:[%s2236_s2 + $0x78] sm:$0xff] %v1129_v41  ;;  %v1078_v42 = vpop.f32.mrb[11].mxu0  ;;  %v1131_v43 = vpop.f32.mrb[11].mxu1 }
 0x159   :  { %1207 = vst [vmem:[%s2236_s2 + $0x70] sm:$0xff] %v1078_v42  ;;  %1209 = vst [vmem:[%s2236_s2 + $0x80] sm:$0xff] %v1131_v43 }
 0x15d   :  { %v1082_v44 = vpop.f32.mrb[12].mxu0  ;;  %v1135_v45 = vpop.f32.mrb[12].mxu1 }
 0x15e   :  { %1215 = vst [vmem:[%s2236_s2 + $0xb0] sm:$0xff] %v1082_v44  ;;  %1217 = vst [vmem:[%s2236_s2 + $0xc0] sm:$0xff] %v1135_v45  ;;  %v1084_v46 = vpop.f32.mrb[13].mxu0  ;;  %v1137_v47 = vpop.f32.mrb[13].mxu1 }
 0x15f   :  { %1216 = vst [vmem:[%s2236_s2 + $0xb8] sm:$0xff] %v1084_v46  ;;  %1218 = vst [vmem:[%s2236_s2 + $0xc8] sm:$0xff] %v1137_v47  ;;  %v1086_v49 = vpop.f32.mrb[14].mxu0  ;;  %v1139_v50 = vpop.f32.mrb[14].mxu1 }
 0x160   :  { %1224 = vst [vmem:[%s2236_s2 + $0xf8] sm:$0xff] %v1086_v49  ;;  %1226 = vst [vmem:[%s2236_s2 + $0x108] sm:$0xff] %v1139_v50  ;;  %v1088_v51 = vpop.f32.mrb[15].mxu0  ;;  %v1141_v52 = vpop.f32.mrb[15].mxu1 }
 0x161   :  { %1225 = vst [vmem:[%s2236_s2 + $0x100] sm:$0xff] %v1088_v51  ;;  %1227 = vst [vmem:[%s2236_s2 + $0x110] sm:$0xff] %v1141_v52 }
 0x175   :  { %v1397_v53 = vpop.f32.mrb[16].mxu0  ;;  %v1403_v54 = vpop.f32.mrb[16].mxu1 }
 0x176   :  { %v1398_v55 = vpop.f32.mrb[17].mxu0  ;;  %v1404_v56 = vpop.f32.mrb[17].mxu1 }
 0x177   :  { %v1399_v57 = vadd.f32 %v1398_v55, %v1397_v53  ;;  %v1405_v58 = vadd.f32 %v1404_v56, %v1403_v54  ;;  %v1400_v59 = vpop.f32.mrb[18].mxu0  ;;  %v1406_v60 = vpop.f32.mrb[18].mxu1 }
 0x178   :  { %v1401_v61 = vpop.f32.mrb[19].mxu0  ;;  %v1407_v62 = vpop.f32.mrb[19].mxu1 }
 0x179   :  { %1201 = vst [vmem:[%s2236_s2 + $0x40] sm:$0xff] %v1399_v57  ;;  %1219 = vst [vmem:[%s2236_s2 + $0xd0] sm:$0xff] %v1405_v58  ;;  %v1402_v63 = vadd.f32 %v1401_v61, %v1400_v59  ;;  %v1408_v0 = vadd.f32 %v1407_v62, %v1406_v60 }
 0x17b   :  { %1210 = vst [vmem:[%s2236_s2 + $0x88] sm:$0xff] %v1402_v63  ;;  %1228 = vst [vmem:[%s2236_s2 + $0x118] sm:$0xff] %v1408_v0 }

// kernel: decoder_forward.5
= control target key start
LH: loop header
LB: loop body
LE: loop exit
PB: predicated region body
PF: predicated region fallthrough
CT: control target
= control target key end

     0   :  { %s7497_s0 = inlined_call_operand.vmem [shape: bf16[2,32], index: 0, kind: input, shape index: {}]   ;;  %s7498_s1 = inlined_call_operand.hbm [shape: bf16[32,256], index: 1, kind: input, shape index: {}]   ;;  %s7499_s2 = inlined_call_operand.hbm [shape: f32[1,256], index: 2, kind: input, shape index: {}]   ;;  %s7500_s3 = inlined_call_operand.hbm [shape: bf16[256,1024], index: 3, kind: input, shape index: {}]   ;;  %s7501_s4 = inlined_call_operand.hbm [shape: f32[1,1024], index: 4, kind: input, shape index: {}]   ;;  %s7502_s5 = inlined_call_operand.hbm [shape: bf16[1024,4096], index: 5, kind: input, shape index: {}]   ;;  %s7503_s6 = inlined_call_operand.hbm [shape: f32[1,4096], index: 6, kind: input, shape index: {}]   ;;  %s7504_s7 = inlined_call_operand.vmem [shape: f32[2,4096], index: 7, kind: output, shape index: {}]  }
   0x1   :  { %7515 = sst [smem:[#allocation17_spill]] %s7498_s1 }
   0x2   :  { %7516 = sst [smem:[#allocation18_spill]] %s7499_s2 }
   0x3   :  { %12 = vsyncpa [#allocation3], 0 }
   0x4   :  { %13 = vsyncpa [#allocation5], 0 }
   0x5   :  { %14 = vsyncpa [#allocation8], 0  ;;  %s6551_s24 = smov 0   ;;  %s6553_s25 = smov 0  }
   0x6   :  { %s6555_s26 = smov 0   ;;  %s6557_s27 = smov 0  }
   0x7 LB: > { %s6570_s28 = sadd.s32 4294967295, %s6496_s27   ;;  %s6573_s29 = sadd.s32 1, %s6496_s27   ;;  %s6496_s27 = sphi %s6557_s27, %s7540_s27   ;;  %s6492_s26 = sphi %s6555_s26, %s7544_s26   ;;  %s6488_s25 = sphi %s6553_s25, %s7543_s25   ;;  %s6484_s24 = sphi %s6551_s24, %s7542_s24  }
   0x8   : > { %7517 = sst [smem:[#allocation15_spill]] %s6573_s29  ;;  %s129_s30 = ssub.s32 %s6496_s27, %s6573_s29 }
   0x9   : > { %s132_s8 = sadd.s32 1, %s6492_s26  ;;  %p130_p0 = scmp.eq.s32.totalorder %s129_s30, 0 }
   0xa   : > { %p139_p1 = scmp.ne.s32.totalorder %s6492_s26, %s6488_s25  ;;  %p140_p2 = scmp.eq.s32.totalorder %s6496_s27, 0 }
   0xb   : > { %p145_p3 = scmp.ne.s32.totalorder %s6488_s25, %s6484_s24  ;;  %p7505_p5 = scmp.eq.s32.totalorder %s6570_s28, 0 }
   0xc   : > { %s6583_s9 = scalar_select %p130_p0, %s6492_s26, %s132_s8  }
   0xd   : > { %p141_p4 = por %p140_p2, %p139_p1  ;;  %p5453_p6 = scmp.ge.s32.totalorder %s6496_s27, 1 }
   0xe   : > { %7518 = sst [smem:[#allocation16_spill]] %s6583_s9  ;;  %p208_p7 = scmp.lt.s32.totalorder %s6496_s27, 5 }
   0xf   : > { %p6590_p8 = por %p7505_p5, %p145_p3  ;;  %s6498_s12 = smov [#allocation2]  }
  0x10   : > { %p6594_p9 = pnand %p5453_p6, %p208_p7  ;;  %s223_s13 = sshll.u32 %s6498_s12, 4  ;;  %s224_s13 = int_to_ptr.vmem [resolvable:$true] %s223_s13 }
  0x11   : > { %s7519_s10 = scalar_select %p6590_p8, 1, 0 }
  0x12   : > { %s7520_s11 = scalar_select %p6594_p9, 1, 0 }
  0x13   : > { %p6199_p10 = pneg %p6594_p9  ;;  %p6223_p12 = scmp.lt.s32.totalorder %s6496_s27, 4 }
  0x14   : > { %s7523_s1 = sld [smem:[#allocation17_spill]] }
  0x15   : > { %p6602_p11 = pnand %p6199_p10, %p7505_p5  ;;  %p6607_p13 = pnand %p6223_p12, %p141_p4 }
  0x17   : > { %s7521_s14 = scalar_select %p6602_p11, 1, 0 }
  0x18   : > { %s7522_s15 = scalar_select %p6607_p13, 1, 0 }
  0x19   : > { %p6619_p1 = pneg %p6602_p11 }
  0x1a   : > { %s6278_s18 = scalar_lea.hbm %s7523_s1, 512 }
  0x1b   : > { %p6279_p0 = scmp.ne.s32.totalorder %s7523_s1, %s6278_s18  ;;  %p6285_p4 = scmp.lt.u32.totalorder %s6278_s18, %s7523_s1 }
  0x1d   : > { %p6281_p2 = pnand %p6619_p1, %p6279_p0 }
  0x1f   : > { %p6282_p3 = pneg %p6281_p2 }
  0x21   : > { %p6287_p6 = pnand %p6285_p4, %p6282_p3 }
  0x23   : > { %6290 = shalt.err (!%p6287_p6)
}
  0x24   : > { %s6291_s24 = scalar_lea.vmem %s224_s13, 512  ;;  %p6299_p5 = scmp.lt.s32.totalorder %s224_s13, %s224_s13 }
  0x25   : > { %p6292_p7 = scmp.ne.s32.totalorder %s224_s13, %s6291_s24  ;;  %p6300_p8 = scmp.lt.s32.totalorder %s6291_s24, %s6291_s24 }
  0x27   : > { %p6294_p10 = pnand %p6292_p7, %p6619_p1  ;;  %p6301_p9 = por %p6300_p8, %p6299_p5 }
  0x29   : > { %p6295_p12 = pneg %p6294_p10 }
  0x2b   : > { %p6302_p13 = pnand %p6301_p9, %p6295_p12 }
  0x2d   : > { %6305 = shalt.err (!%p6302_p13)
}
  0x2e   : > { %s6499_s30 = smov 128   ;;  %s6500_s8 = smov 8  }
  0x2f   : > { %6202 = dma.hbm_to_vmem [thread:$0]  (!%p6602_p11), %s7523_s1, 512, %s224_s13, [#allocation3], %s6499_s30, %s6499_s30, %s6500_s8  }
  0x30   : > { %s6501_s17 = smov [#allocation4]   ;;  %s7525_s2 = sld [smem:[#allocation18_spill]] }
  0x31   : > { %s237_s18 = sshll.u32 %s6501_s17, 4  ;;  %s238_s18 = int_to_ptr.vmem [resolvable:$true] %s237_s18 }
  0x36   : > { %s6306_s22 = scalar_lea.hbm %s7525_s2, 32 }
  0x37   : > { %p6307_p5 = scmp.ne.s32.totalorder %s7525_s2, %s6306_s22  ;;  %p6313_p13 = scmp.lt.u32.totalorder %s6306_s22, %s7525_s2 }
  0x39   : > { %p6309_p8 = pnand %p6307_p5, %p6619_p1 }
  0x3b   : > { %p6310_p9 = pneg %p6309_p8 }
  0x3d   : > { %p6315_p0 = pnand %p6313_p13, %p6310_p9 }
  0x3f   : > { %6318 = shalt.err (!%p6315_p0)
}
  0x40   : > { %s6319_s13 = scalar_lea.vmem %s238_s18, 32  ;;  %p6327_p6 = scmp.lt.s32.totalorder %s238_s18, %s238_s18 }
  0x41   : > { %p6320_p2 = scmp.ne.s32.totalorder %s238_s18, %s6319_s13  ;;  %p6328_p7 = scmp.lt.s32.totalorder %s6319_s13, %s6319_s13 }
  0x43   : > { %p6322_p3 = pnand %p6320_p2, %p6619_p1  ;;  %p6329_p10 = por %p6328_p7, %p6327_p6 }
  0x45   : > { %p6323_p4 = pneg %p6322_p3 }
  0x47   : > { %p6330_p12 = pnand %p6329_p10, %p6323_p4 }
  0x49   : > { %6333 = shalt.err (!%p6330_p12)
}
  0x4a   : > { %6205 = dma.hbm_to_vmem [thread:$0]  (!%p6602_p11), %s7525_s2, 32, %s238_s18, [#allocation5]  }
  0x4b   : > { %s272_s29 = sand.u32 1, %s6496_s27   ;;  %s7513_s9 = sand.u32 1, %s6492_s26  }
  0x4c   : > { %s5459_s12 = sshll.u32 %s7513_s9, 12  ;;  %s6121_s16 = sshll.u32 %s6496_s27, 9 }
  0x4d   : > { %s6661_s20 = scalar_lea.hbm %s7502_s5, %s6121_s16  ;;  %s276_s22 = scalar_lea.vmem [#allocation9], %s5459_s12 }
  0x4e   : > { %s283_s23 = sshll.u32 %s276_s22, 4  ;;  %s6665_s24 = scalar_lea.sflag [#allocation3], %s272_s29  ;;  %s6663_s23 = int_to_ptr.vmem [resolvable:$true] %s283_s23 }
  0x4f   : > { %s6334_s18 = scalar_lea.hbm %s6661_s20, 65536  ;;  %p7526_p8 = scmp.ne.s32.totalorder %s7522_s15, 0 }
  0x50   : > { %p6335_p5 = scmp.ne.s32.totalorder %s6661_s20, %s6334_s18  ;;  %s6339_s8 = scalar_lea.hbm %s7502_s5, 262144 }
  0x51   : > { %p7514_p9 = pneg %p7526_p8  ;;  %p6340_p2 = scmp.lt.u32.totalorder %s6661_s20, %s7502_s5 }
  0x52   : > { %p6341_p3 = scmp.lt.u32.totalorder %s6339_s8, %s6334_s18  ;;  %p6343_p6 = scmp.lt.u32.totalorder %s6334_s18, %s6661_s20 }
  0x53   : > { %p6337_p13 = pnand %p7514_p9, %p6335_p5 }
  0x54   : > { %p6342_p4 = por %p6341_p3, %p6340_p2 }
  0x55   : > { %p6338_p0 = pneg %p6337_p13 }
  0x56   : > { %p6344_p7 = por %p6343_p6, %p6342_p4 }
  0x58   : > { %p6345_p10 = pnand %p6344_p7, %p6338_p0 }
  0x5a   : > { %6348 = shalt.err (!%p6345_p10)
}
  0x5b   : > { %s6349_s29 = scalar_lea.vmem %s6663_s23, 65536  ;;  %s6502_s12 = smov [#allocation9]  }
  0x5c   : > { %p6350_p12 = scmp.ne.s32.totalorder %s6663_s23, %s6349_s29  ;;  %s6354_s19 = sshll.u32 %s6502_s12, 4  ;;  %s6355_s19 = int_to_ptr.vmem [resolvable:$false] %s6354_s19 }
  0x5d   : > { %s6356_s22 = scalar_lea.vmem %s6355_s19, 131072  ;;  %p6357_p11 = scmp.lt.s32.totalorder %s6663_s23, %s6355_s19 }
  0x5e   : > { %p6352_p5 = pnand %p6350_p12, %p7514_p9  ;;  %p6358_p2 = scmp.lt.s32.totalorder %s6356_s22, %s6349_s29 }
  0x60   : > { %p6353_p13 = pneg %p6352_p5  ;;  %p6359_p3 = por %p6358_p2, %p6357_p11 }
  0x62   : > { %p6360_p4 = pnand %p6359_p3, %p6353_p13 }
  0x64   : > { %6363 = shalt.err (!%p6360_p4)
}
  0x65   : > { %s6503_s18 = smov 2048   ;;  %s6504_s13 = smov 512  }
  0x66   : > { %s6505_s30 = smov 32   ;;  %s6506_s8 = smov [#allocation6]  }
  0x67   : > { %6215 = dma.hbm_to_vmem [thread:$0]  (!%p7526_p8), %s6661_s20, 65536, %s6663_s23, %s6665_s24, %s6503_s18, %s6504_s13, %s6505_s30  }
  0x68   : > { %s247_s16 = sshll.u32 %s6506_s8, 4  ;;  %s6507_s17 = smov [#allocation7]   ;;  %s248_s16 = int_to_ptr.vmem [resolvable:$true] %s247_s16 }
  0x69   : > { %s261_s12 = sshll.u32 %s6507_s17, 4  ;;  %s6364_s22 = scalar_lea.hbm %s7500_s3, 16384  ;;  %s6693_s12 = int_to_ptr.vmem [resolvable:$true] %s261_s12 }
  0x6a   : > { %p6365_p11 = scmp.ne.s32.totalorder %s7500_s3, %s6364_s22  ;;  %p6371_p7 = scmp.lt.u32.totalorder %s6364_s22, %s7500_s3 }
  0x6c   : > { %p6367_p0 = pnand %p6365_p11, %p6619_p1 }
  0x6e   : > { %p6368_p6 = pneg %p6367_p0 }
  0x70   : > { %p6373_p10 = pnand %p6371_p7, %p6368_p6 }
  0x72   : > { %6376 = shalt.err (!%p6373_p10)
}
  0x73   : > { %s6377_s23 = scalar_lea.vmem %s248_s16, 16384  ;;  %p6385_p2 = scmp.lt.s32.totalorder %s248_s16, %s248_s16 }
  0x74   : > { %p6378_p12 = scmp.ne.s32.totalorder %s248_s16, %s6377_s23  ;;  %p6386_p3 = scmp.lt.s32.totalorder %s6377_s23, %s6377_s23 }
  0x76   : > { %p6380_p5 = pnand %p6378_p12, %p6619_p1  ;;  %p6387_p4 = por %p6386_p3, %p6385_p2 }
  0x78   : > { %p6381_p13 = pneg %p6380_p5 }
  0x7a   : > { %p6388_p9 = pnand %p6387_p4, %p6381_p13 }
  0x7c   : > { %6391 = shalt.err (!%p6388_p9)
}
  0x7d   : > { %p7527_p11 = scmp.ne.s32.totalorder %s7521_s14, 0  ;;  %s6392_s8 = scalar_lea.hbm %s7501_s4, 128 }
  0x7e   : > { %p6393_p0 = scmp.ne.s32.totalorder %s7501_s4, %s6392_s8  ;;  %p6399_p9 = scmp.lt.u32.totalorder %s6392_s8, %s7501_s4 }
  0x7f   : > { %6208 = dma.hbm_to_vmem [thread:$0]  (!%p7527_p11), %s7500_s3, 16384, %s248_s16, [#allocation5], %s6504_s13, %s6504_s13, %s6505_s30  }
  0x80   : > { %p6395_p6 = pnand %p6393_p0, %p6619_p1 }
  0x82   : > { %p6396_p7 = pneg %p6395_p6 }
  0x84   : > { %p6401_p10 = pnand %p6399_p9, %p6396_p7 }
  0x86   : > { %6404 = shalt.err (!%p6401_p10)
}
  0x87   : > { %s6405_s13 = scalar_lea.vmem %s6693_s12, 128  ;;  %p6413_p2 = scmp.lt.s32.totalorder %s6693_s12, %s6693_s12 }
  0x88   : > { %p6406_p12 = scmp.ne.s32.totalorder %s6693_s12, %s6405_s13  ;;  %p6414_p3 = scmp.lt.s32.totalorder %s6405_s13, %s6405_s13 }
  0x8a   : > { %p6408_p5 = pnand %p6406_p12, %p6619_p1  ;;  %p6415_p4 = por %p6414_p3, %p6413_p2 }
  0x8c   : > { %p6409_p13 = pneg %p6408_p5 }
  0x8e   : > { %p6416_p0 = pnand %p6415_p4, %p6409_p13 }
  0x90   : > { %6419 = shalt.err (!%p6416_p0)
}
  0x91   : > { %6211 = dma.hbm_to_vmem [thread:$0]  (!%p7527_p11), %s7501_s4, 128, %s6693_s12, [#allocation8]  }
  0x92   : > { %s7528_s20 = sand.u32 1, %s6492_s26   ;;  %s6122_s23 = sshll.u32 %s6496_s27, 7 }
  0x93   : > { %s5462_s21 = sshll.u32 %s7528_s20, 3  ;;  %s6742_s2 = scalar_lea.hbm %s7503_s6, %s6122_s23 }
  0x94   : > { %s297_s14 = scalar_lea.vmem [#allocation10], %s5462_s21  ;;  %s6420_s8 = scalar_lea.hbm %s6742_s2, 128 }
  0x95   : > { %s305_s18 = sshll.u32 %s297_s14, 4  ;;  %p6421_p1 = scmp.ne.s32.totalorder %s6742_s2, %s6420_s8  ;;  %s306_s18 = int_to_ptr.vmem [resolvable:$true] %s305_s18 }
  0x96   : > { %p7529_p6 = pneg %p7526_p8  ;;  %s6425_s17 = scalar_lea.hbm %s7503_s6, 512 }
  0x97   : > { %p6426_p9 = scmp.lt.u32.totalorder %s6742_s2, %s7503_s6  ;;  %p6427_p10 = scmp.lt.u32.totalorder %s6425_s17, %s6420_s8 }
  0x98   : > { %p6423_p11 = pnand %p6421_p1, %p7529_p6  ;;  %p6429_p5 = scmp.lt.u32.totalorder %s6420_s8, %s6742_s2 }
  0x99   : > { %p6428_p12 = por %p6427_p10, %p6426_p9 }
  0x9a   : > { %p6424_p7 = pneg %p6423_p11 }
  0x9b   : > { %p6430_p13 = por %p6429_p5, %p6428_p12 }
  0x9d   : > { %p6431_p2 = pnand %p6430_p13, %p6424_p7 }
  0x9f   : > { %6434 = shalt.err (!%p6431_p2)
}
  0xa0   : > { %s6435_s22 = scalar_lea.vmem %s306_s18, 128  ;;  %p7530_p4 = pmov %p7529_p6 }
  0xa1   : > { %p6436_p3 = scmp.ne.s32.totalorder %s306_s18, %s6435_s22  ;;  %s6508_s13 = smov [#allocation10]  }
  0xa2   : > { %s6440_s30 = sshll.u32 %s6508_s13, 4  ;;  %s6441_s30 = int_to_ptr.vmem [resolvable:$false] %s6440_s30 }
  0xa3   : > { %p6438_p0 = pnand %p6436_p3, %p7530_p4  ;;  %s6442_s16 = scalar_lea.vmem %s6441_s30, 256 }
  0xa4   : > { %p6443_p6 = scmp.lt.s32.totalorder %s306_s18, %s6441_s30  ;;  %p6444_p11 = scmp.lt.s32.totalorder %s6442_s16, %s6435_s22 }
  0xa5   : > { %p6439_p1 = pneg %p6438_p0 }
  0xa6   : > { %p6445_p9 = por %p6444_p11, %p6443_p6 }
  0xa8   : > { %p6446_p10 = pnand %p6445_p9, %p6439_p1 }
  0xaa   : > { %6449 = shalt.err (!%p6446_p10)
}
  0xab   : > { %6218 = dma.hbm_to_vmem [thread:$0]  (!%p7526_p8), %s6742_s2, 128, %s306_s18, %s6665_s24  }
  0xac   : > { %p7531_p7 = scmp.ne.s32.totalorder %s7520_s11, 0 }
  0xad   : > { %p7532_p12 = scmp.eq.s32.totalorder (!%p7531_p7), %s6570_s28, 0 }
  0xae   : > { %314 = sbr.rel (%p7531_p7) target bundleno = 1319 (0x527), region = 48 }
  0xb5   : > { %6467 = dma.done.wait (%p7532_p12), [#allocation3], 512   ;;  %p7533_p5 = pmov %p7532_p12 }
  0xb7   : > { %6469 = vsyncadd (%p7533_p5), [#allocation3], 4294966784  ;;  %p7534_p13 = pmov %p7533_p5 }
  0xb8   : > { %p7535_p2 = pmov %p7533_p5 }
  0xb9   : > { %6471 = dma.done.wait (%p7534_p13), [#allocation5], 16416  }
  0xba   : > { %6473 = vsyncadd (%p7535_p2), [#allocation5], 4294950880  ;;  %p7536_p3 = pmov %p7535_p2 }
  0xbb   : > { %p7537_p8 = pmov %p7535_p2 }
  0xbc   : > { %6475 = dma.done.wait (%p7536_p3), [#allocation8], 128  }
  0xbd   : > { %6477 = vsyncadd (%p7537_p8), [#allocation8], 4294967168  ;;  %s332_s11 = sand.u32 1, %s6570_s28   ;;  %s334_s15 = sand.u32 1, %s6488_s25  }
  0xbe   : > { %s5470_s24 = sshll.u32 %s334_s15, 12  ;;  %s333_s20 = scalar_lea.sflag [#allocation3], %s332_s11 }
  0xbf   : > { %s6782_s21 = scalar_lea.vmem [#allocation9], %s5470_s24  ;;  %p7538_p4 = scmp.ne.s32.totalorder %s7519_s10, 0 }
  0xc1   : > { %6479 = dma.done.wait (%p7538_p4), %s333_s20, 65664  }
  0xc2   : > { %6481 = vsyncadd (%p7538_p4), %s333_s20, 4294901632  ;;  %v6509_v0 = vmov 0   ;;  %v6271_v1 = vld [vmem:[#allocation2 + $0x4] ss:$8 sps:$4 sm:$0xff]   ;;  %v6273_v2 = vld [vmem:[#allocation2] ss:$8 sps:$4 sm:$0xff]  }
  0xc3   : > { %463 = vmatprep.mubr.bf16.mxu0 %v6509_v0  ;;  %431 = vmatprep.subr.bf16.mxu0 %v6271_v1  ;;  %v6274_v3 = vld [vmem:[#allocation2 + $0x14] ss:$8 sps:$4 sm:$0xff]   ;;  %v6276_v4 = vld [vmem:[#allocation2 + $0x10] ss:$8 sps:$4 sm:$0xff]   ;;  %v480_v5 = vld [vmem:[#allocation6] sm:$0xff]  ;;  %vm427_vm0 = vcmask 261120  }
  0xc4   : > { %432 = vmatpush1.bf16.msra.mxu0 %v6273_v2  ;;  %v484_v6 = vld [vmem:[#allocation6 + $0x20] sm:$0xff]  ;;  %v481_v7 = vld [vmem:[#allocation6 + $0x8] sm:$0xff]  ;;  %v390_v19 = vld [vmem:[%s7497_s0] sm:$0x1]  ;;  %s5471_s1 = sshll.u32 %s334_s15, 3  ;;  %s5472_s2 = sshll.u32 %s6570_s28, 3 }
  0xc5   : > { %433 = vmatprep.subr.bf16.mxu0 %v6274_v3  ;;  %v5480_v8 = vcombine.high %v480_v5, %v484_v6  ;;  %v485_v9 = vld [vmem:[#allocation6 + $0x28] sm:$0xff]  ;;  %v5479_v10 = vcombine.low %v480_v5, %v484_v6  ;;  %v488_v11 = vld [vmem:[#allocation6 + $0x40] sm:$0xff]  ;;  %s345_s9 = scalar_lea.vmem [#allocation10], %s5471_s1  ;;  %p7406_p0 = scmp.lt.s32.totalorder %s5472_s2, 31 }
  0xc6   : > { %v492_v12 = vld [vmem:[#allocation6 + $0x60] sm:$0xff]  ;;  %v5482_v13 = vcombine.high %v481_v7, %v485_v9  ;;  %v489_v15 = vld [vmem:[#allocation6 + $0x48] sm:$0xff]  ;;  %v5481_v20 = vcombine.low %v481_v7, %v485_v9 }
  0xc7   : > { %v5488_v14 = vcombine.high %v488_v11, %v492_v12  ;;  %v493_v16 = vld [vmem:[#allocation6 + $0x68] sm:$0xff]  ;;  %v496_v17 = vld [vmem:[#allocation6 + $0x80] sm:$0xff]  ;;  %1290 = vmatprep.subr.bf16.mxu1 %v5480_v8  ;;  %v5487_v21 = vcombine.low %v488_v11, %v492_v12  ;;  %s7546_s2 = smov (!%p7406_p0, %s5472_s2), 31 }
  0xc8   : > { %v500_v18 = vld [vmem:[#allocation6 + $0xa0] sm:$0xff]  ;;  %434 = vmatpush1.bf16.msra.mxu0 %v6276_v4  ;;  %1291 = vmatpush1.bf16.msra.mxu1 %v5479_v10  ;;  %v5490_v22 = vcombine.high %v489_v15, %v493_v16  ;;  %v497_v24 = vld [vmem:[#allocation6 + $0x88] sm:$0xff]  ;;  %v5489_v28 = vcombine.low %v489_v15, %v493_v16  ;;  %s5473_s28 = sshll.u32 %s7546_s2, 1 }
  0xc9   : > { %1331 = vmatprep.subr.bf16.mxu0 %v5482_v13  ;;  %1292 = vmatprep.subr.bf16.mxu1 %v5488_v14  ;;  %v5496_v23 = vcombine.high %v496_v17, %v500_v18  ;;  %v501_v25 = vld [vmem:[#allocation6 + $0xa8] sm:$0xff]  ;;  %v504_v26 = vld [vmem:[#allocation6 + $0xc0] sm:$0xff]  ;;  %v5495_v29 = vcombine.low %v496_v17, %v500_v18  ;;  %s7440_s12 = scalar_lea.vmem %s7504_s7, %s5473_s28 }
  0xca   : > { %v508_v27 = vld [vmem:[#allocation6 + $0xe0] sm:$0xff]  ;;  %v5498_v30 = vcombine.high %v497_v24, %v501_v25  ;;  %v505_v32 = vld [vmem:[#allocation6 + $0xc8] sm:$0xff]  ;;  %v5497_v36 = vcombine.low %v497_v24, %v501_v25 }
  0xcb   : > { %5478 = vmatmul.mubr.msk.bf16.vlgmr.msra.gmra.mrb[0].mxu0 %vm427_vm0, %v390_v19  ;;  %v5504_v31 = vcombine.high %v504_v26, %v508_v27  ;;  %v509_v33 = vld [vmem:[#allocation6 + $0xe8] sm:$0xff]  ;;  %v512_v34 = vld [vmem:[#allocation6 + $0x100] sm:$0xff]  ;;  %v5503_v37 = vcombine.low %v504_v26, %v508_v27 }
  0xcc   : > { %1332 = vmatpush1.bf16.msra.mxu0 %v5481_v20  ;;  %1293 = vmatpush1.bf16.msra.mxu1 %v5487_v21  ;;  %v516_v35 = vld [vmem:[#allocation6 + $0x120] sm:$0xff]  ;;  %v5506_v38 = vcombine.high %v505_v32, %v509_v33  ;;  %v513_v40 = vld [vmem:[#allocation6 + $0x108] sm:$0xff]  ;;  %v5505_v44 = vcombine.low %v505_v32, %v509_v33 }
  0xcd   : > { %1333 = vmatprep.subr.bf16.mxu0 %v5490_v22  ;;  %1294 = vmatprep.subr.bf16.mxu1 %v5496_v23  ;;  %v5512_v39 = vcombine.high %v512_v34, %v516_v35  ;;  %v517_v41 = vld [vmem:[#allocation6 + $0x128] sm:$0xff]  ;;  %v520_v42 = vld [vmem:[#allocation6 + $0x140] sm:$0xff]  ;;  %v5511_v45 = vcombine.low %v512_v34, %v516_v35 }
  0xce   : > { %v524_v43 = vld [vmem:[#allocation6 + $0x160] sm:$0xff]  ;;  %v5514_v46 = vcombine.high %v513_v40, %v517_v41  ;;  %v521_v48 = vld [vmem:[#allocation6 + $0x148] sm:$0xff]  ;;  %v5513_v52 = vcombine.low %v513_v40, %v517_v41 }
  0xcf   : > { %v5520_v47 = vcombine.high %v520_v42, %v524_v43  ;;  %v525_v49 = vld [vmem:[#allocation6 + $0x168] sm:$0xff]  ;;  %v528_v50 = vld [vmem:[#allocation6 + $0x180] sm:$0xff]  ;;  %v5519_v53 = vcombine.low %v520_v42, %v524_v43 }
  0xd0   : > { %1334 = vmatpush1.bf16.msra.mxu0 %v5489_v28  ;;  %1295 = vmatpush1.bf16.msra.mxu1 %v5495_v29  ;;  %v532_v51 = vld [vmem:[#allocation6 + $0x1a0] sm:$0xff]  ;;  %v5522_v54 = vcombine.high %v521_v48, %v525_v49  ;;  %v529_v56 = vld [vmem:[#allocation6 + $0x188] sm:$0xff]  ;;  %v5521_v60 = vcombine.low %v521_v48, %v525_v49 }
  0xd1   : > { %1335 = vmatprep.subr.bf16.mxu0 %v5498_v30  ;;  %1296 = vmatprep.subr.bf16.mxu1 %v5504_v31  ;;  %v5528_v55 = vcombine.high %v528_v50, %v532_v51  ;;  %v533_v57 = vld [vmem:[#allocation6 + $0x1a8] sm:$0xff]  ;;  %v536_v58 = vld [vmem:[#allocation6 + $0x1c0] sm:$0xff]  ;;  %v5527_v61 = vcombine.low %v528_v50, %v532_v51 }
  0xd2   : > { %v540_v59 = vld [vmem:[#allocation6 + $0x1e0] sm:$0xff]  ;;  %v5530_v62 = vcombine.high %v529_v56, %v533_v57  ;;  %v537_v0 = vld [vmem:[#allocation6 + $0x1c8] sm:$0xff]  ;;  %v5529_v4 = vcombine.low %v529_v56, %v533_v57 }
  0xd3   : > { %v5536_v63 = vcombine.high %v536_v58, %v540_v59  ;;  %v541_v1 = vld [vmem:[#allocation6 + $0x1e8] sm:$0xff]  ;;  %v544_v2 = vld [vmem:[#allocation6 + $0x200] sm:$0xff]  ;;  %v5535_v5 = vcombine.low %v536_v58, %v540_v59 }
  0xd4   : > { %1336 = vmatpush1.bf16.msra.mxu0 %v5497_v36  ;;  %1297 = vmatpush1.bf16.msra.mxu1 %v5503_v37  ;;  %v548_v3 = vld [vmem:[#allocation6 + $0x220] sm:$0xff]  ;;  %v5538_v6 = vcombine.high %v537_v0, %v541_v1  ;;  %v545_v8 = vld [vmem:[#allocation6 + $0x208] sm:$0xff]  ;;  %v5537_v12 = vcombine.low %v537_v0, %v541_v1 }
  0xd5   : > { %1337 = vmatprep.subr.bf16.mxu0 %v5506_v38  ;;  %1298 = vmatprep.subr.bf16.mxu1 %v5512_v39  ;;  %v5544_v7 = vcombine.high %v544_v2, %v548_v3  ;;  %v549_v9 = vld [vmem:[#allocation6 + $0x228] sm:$0xff]  ;;  %v552_v10 = vld [vmem:[#allocation6 + $0x240] sm:$0xff]  ;;  %v5543_v13 = vcombine.low %v544_v2, %v548_v3 }
  0xd6   : > { %v556_v11 = vld [vmem:[#allocation6 + $0x260] sm:$0xff]  ;;  %v5546_v14 = vcombine.high %v545_v8, %v549_v9  ;;  %v553_v16 = vld [vmem:[#allocation6 + $0x248] sm:$0xff]  ;;  %v5545_v20 = vcombine.low %v545_v8, %v549_v9  ;;  %v483_v8 = vld [vmem:[#allocation6 + $0x18] sm:$0xff] }
  0xd7   : > { %v5552_v15 = vcombine.high %v552_v10, %v556_v11  ;;  %v557_v17 = vld [vmem:[#allocation6 + $0x268] sm:$0xff]  ;;  %v560_v18 = vld [vmem:[#allocation6 + $0x280] sm:$0xff]  ;;  %v5551_v21 = vcombine.low %v552_v10, %v556_v11  ;;  %v487_v10 = vld [vmem:[#allocation6 + $0x38] sm:$0xff] }
  0xd8   : > { %1338 = vmatpush1.bf16.msra.mxu0 %v5505_v44  ;;  %1299 = vmatpush1.bf16.msra.mxu1 %v5511_v45  ;;  %v564_v19 = vld [vmem:[#allocation6 + $0x2a0] sm:$0xff]  ;;  %v5554_v22 = vcombine.high %v553_v16, %v557_v17  ;;  %v561_v24 = vld [vmem:[#allocation6 + $0x288] sm:$0xff]  ;;  %v5553_v28 = vcombine.low %v553_v16, %v557_v17  ;;  %v395_v17 = vld [vmem:[#allocation4] sm:$0x3] }
  0xd9   : > { %1339 = vmatprep.subr.bf16.mxu0 %v5514_v46  ;;  %1300 = vmatprep.subr.bf16.mxu1 %v5520_v47  ;;  %v5560_v23 = vcombine.high %v560_v18, %v564_v19  ;;  %v565_v25 = vld [vmem:[#allocation6 + $0x2a8] sm:$0xff]  ;;  %v568_v26 = vld [vmem:[#allocation6 + $0x2c0] sm:$0xff]  ;;  %v5559_v29 = vcombine.low %v560_v18, %v564_v19 }
  0xda   : > { %v572_v27 = vld [vmem:[#allocation6 + $0x2e0] sm:$0xff]  ;;  %v5562_v30 = vcombine.high %v561_v24, %v565_v25  ;;  %v569_v32 = vld [vmem:[#allocation6 + $0x2c8] sm:$0xff]  ;;  %v5561_v36 = vcombine.low %v561_v24, %v565_v25 }
  0xdb   : > { %v5568_v31 = vcombine.high %v568_v26, %v572_v27  ;;  %v573_v33 = vld [vmem:[#allocation6 + $0x2e8] sm:$0xff]  ;;  %v576_v34 = vld [vmem:[#allocation6 + $0x300] sm:$0xff]  ;;  %v5567_v37 = vcombine.low %v568_v26, %v572_v27 }
  0xdc   : > { %1340 = vmatpush1.bf16.msra.mxu0 %v5513_v52  ;;  %1301 = vmatpush1.bf16.msra.mxu1 %v5519_v53  ;;  %v580_v35 = vld [vmem:[#allocation6 + $0x320] sm:$0xff]  ;;  %v5570_v38 = vcombine.high %v569_v32, %v573_v33  ;;  %v577_v40 = vld [vmem:[#allocation6 + $0x308] sm:$0xff]  ;;  %v5569_v44 = vcombine.low %v569_v32, %v573_v33  ;;  %v494_v32 = vld [vmem:[#allocation6 + $0x70] sm:$0xff] }
  0xdd   : > { %1341 = vmatprep.subr.bf16.mxu0 %v5522_v54  ;;  %1302 = vmatprep.subr.bf16.mxu1 %v5528_v55  ;;  %v5576_v39 = vcombine.high %v576_v34, %v580_v35  ;;  %v581_v41 = vld [vmem:[#allocation6 + $0x328] sm:$0xff]  ;;  %v584_v42 = vld [vmem:[#allocation6 + $0x340] sm:$0xff]  ;;  %v5575_v45 = vcombine.low %v576_v34, %v580_v35  ;;  %v491_v33 = vld [vmem:[#allocation6 + $0x58] sm:$0xff] }
  0xde   : > { %v588_v43 = vld [vmem:[#allocation6 + $0x360] sm:$0xff]  ;;  %v5578_v46 = vcombine.high %v577_v40, %v581_v41  ;;  %v585_v48 = vld [vmem:[#allocation6 + $0x348] sm:$0xff]  ;;  %v5577_v50 = vcombine.low %v577_v40, %v581_v41  ;;  %v495_v34 = vld [vmem:[#allocation6 + $0x78] sm:$0xff] }
  0xdf   : > { %v5584_v47 = vcombine.high %v584_v42, %v588_v43  ;;  %v589_v49 = vld [vmem:[#allocation6 + $0x368] sm:$0xff]  ;;  %v5583_v51 = vcombine.low %v584_v42, %v588_v43  ;;  %v592_v54 = vld [vmem:[#allocation6 + $0x380] sm:$0xff]  ;;  %v502_v40 = vld [vmem:[#allocation6 + $0xb0] sm:$0xff] }
  0xe0   : > { %1342 = vmatpush1.bf16.msra.mxu0 %v5521_v60  ;;  %1303 = vmatpush1.bf16.msra.mxu1 %v5527_v61  ;;  %v5586_v52 = vcombine.high %v585_v48, %v589_v49  ;;  %v5585_v53 = vcombine.low %v585_v48, %v589_v49  ;;  %v596_v55 = vld [vmem:[#allocation6 + $0x3a0] sm:$0xff]  ;;  %v593_v56 = vld [vmem:[#allocation6 + $0x388] sm:$0xff]  ;;  %v499_v41 = vld [vmem:[#allocation6 + $0x98] sm:$0xff] }
  0xe1   : > { %1343 = vmatprep.subr.bf16.mxu0 %v5530_v62  ;;  %1304 = vmatprep.subr.bf16.mxu1 %v5536_v63  ;;  %v5592_v57 = vcombine.high %v592_v54, %v596_v55  ;;  %v597_v58 = vld [vmem:[#allocation6 + $0x3a8] sm:$0xff]  ;;  %v5591_v61 = vcombine.low %v592_v54, %v596_v55  ;;  %v600_v62 = vld [vmem:[#allocation6 + $0x3c0] sm:$0xff]  ;;  %v503_v42 = vld [vmem:[#allocation6 + $0xb8] sm:$0xff] }
  0xe2   : > { %v5593_v59 = vcombine.low %v593_v56, %v597_v58  ;;  %v5594_v60 = vcombine.high %v593_v56, %v597_v58  ;;  %v604_v63 = vld [vmem:[#allocation6 + $0x3e0] sm:$0xff]  ;;  %v601_v0 = vld [vmem:[#allocation6 + $0x3c8] sm:$0xff]  ;;  %v510_v48 = vld [vmem:[#allocation6 + $0xf0] sm:$0xff] }
  0xe3   : > { %v5600_v1 = vcombine.high %v600_v62, %v604_v63  ;;  %v605_v2 = vld [vmem:[#allocation6 + $0x3e8] sm:$0xff]  ;;  %v507_v49 = vld [vmem:[#allocation6 + $0xd8] sm:$0xff]  ;;  %v514_v55 = vld [vmem:[#allocation6 + $0x110] sm:$0xff] }
  0xe4   : > { %1344 = vmatpush1.bf16.msra.mxu0 %v5529_v4  ;;  %1305 = vmatpush1.bf16.msra.mxu1 %v5535_v5  ;;  %v5601_v3 = vcombine.low %v601_v0, %v605_v2  ;;  %v5602_v4 = vcombine.high %v601_v0, %v605_v2  ;;  %v5599_v5 = vcombine.low %v600_v62, %v604_v63  ;;  %v518_v56 = vld [vmem:[#allocation6 + $0x130] sm:$0xff]  ;;  %v519_v58 = vld [vmem:[#allocation6 + $0x138] sm:$0xff] }
  0xe5   : > { %1345 = vmatprep.subr.bf16.mxu0 %v5538_v6  ;;  %1306 = vmatprep.subr.bf16.mxu1 %v5544_v7  ;;  %v482_v6 = vld [vmem:[#allocation6 + $0x10] sm:$0xff]  ;;  %v527_v2 = vld [vmem:[#allocation6 + $0x178] sm:$0xff] }
  0xe6   : > { %v486_v7 = vld [vmem:[#allocation6 + $0x30] sm:$0xff] }
  0xe7   : > { %v5484_v9 = vcombine.high %v482_v6, %v486_v7  ;;  %v5483_v11 = vcombine.low %v482_v6, %v486_v7  ;;  %v522_v63 = vld [vmem:[#allocation6 + $0x150] sm:$0xff] }
  0xe8   : > { %1346 = vmatpush1.bf16.msra.mxu0 %v5537_v12  ;;  %1307 = vmatpush1.bf16.msra.mxu1 %v5543_v13  ;;  %v5485_v12 = vcombine.low %v483_v8, %v487_v10  ;;  %v5486_v13 = vcombine.high %v483_v8, %v487_v10  ;;  %v526_v0 = vld [vmem:[#allocation6 + $0x170] sm:$0xff]  ;;  %v535_v10 = vld [vmem:[#allocation6 + $0x1b8] sm:$0xff] }
  0xe9   : > { %1347 = vmatprep.subr.bf16.mxu0 %v5546_v14  ;;  %1308 = vmatprep.subr.bf16.mxu1 %v5552_v15  ;;  %v397_v14 = vlaneseq  ;;  %v530_v7 = vld [vmem:[#allocation6 + $0x190] sm:$0xff] }
  0xea   : > { %v534_v8 = vld [vmem:[#allocation6 + $0x1b0] sm:$0xff] }
  0xeb   : > { %v6791_v15 = vshrl.u32 %v397_v14, 7 }
  0xec   : > { %1348 = vmatpush1.bf16.msra.mxu0 %v5545_v20  ;;  %1309 = vmatpush1.bf16.msra.mxu1 %v5551_v21 }
  0xed   : > { %1349 = vmatprep.subr.bf16.mxu0 %v5554_v22  ;;  %1310 = vmatprep.subr.bf16.mxu1 %v5560_v23  ;;  %v6794_v16 = vsub.s32 0, %v6791_v15  ;;  %v6797_v18 = vsub.s32 1, %v6791_v15 }
  0xef   : > { %v400_v19 = vrot.slane %v395_v17, %v6794_v16  ;;  %v404_v20 = vrot.slane %v395_v17, %v6797_v18  ;;  %v538_v17 = vld [vmem:[#allocation6 + $0x1d0] sm:$0xff] }
  0xf0   : > { %1350 = vmatpush1.bf16.msra.mxu0 %v5553_v28  ;;  %1311 = vmatpush1.bf16.msra.mxu1 %v5559_v29 }
  0xf1   : > { %1351 = vmatprep.subr.bf16.mxu0 %v5562_v30  ;;  %1312 = vmatprep.subr.bf16.mxu1 %v5568_v31  ;;  %v490_v30 = vld [vmem:[#allocation6 + $0x50] sm:$0xff] }
  0xf2   : > { %v5491_v43 = vcombine.low %v490_v30, %v494_v32 }
  0xf4   : > { %1352 = vmatpush1.bf16.msra.mxu0 %v5561_v36  ;;  %1313 = vmatpush1.bf16.msra.mxu1 %v5567_v37  ;;  %v498_v37 = vld [vmem:[#allocation6 + $0x90] sm:$0xff] }
  0xf5   : > { %1353 = vmatprep.subr.bf16.mxu0 %v5570_v38  ;;  %1314 = vmatprep.subr.bf16.mxu1 %v5576_v39  ;;  %v5492_v38 = vcombine.high %v490_v30, %v494_v32  ;;  %v5494_v39 = vcombine.high %v491_v33, %v495_v34 }
  0xf8   : > { %1354 = vmatpush1.bf16.msra.mxu0 %v5569_v44  ;;  %1315 = vmatpush1.bf16.msra.mxu1 %v5575_v45  ;;  %v5493_v44 = vcombine.low %v491_v33, %v495_v34  ;;  %v5500_v45 = vcombine.high %v498_v37, %v502_v40  ;;  %v554_v34 = vld [vmem:[#allocation6 + $0x250] sm:$0xff] }
  0xf9   : > { %1355 = vmatprep.subr.bf16.mxu0 %v5578_v46  ;;  %1316 = vmatprep.subr.bf16.mxu1 %v5584_v47  ;;  %v5502_v46 = vcombine.high %v499_v41, %v503_v42  ;;  %v506_v47 = vld [vmem:[#allocation6 + $0xd0] sm:$0xff] }
  0xfc   : > { %1356 = vmatpush1.bf16.msra.mxu0 %v5577_v50  ;;  %1317 = vmatpush1.bf16.msra.mxu1 %v5583_v51  ;;  %v511_v50 = vld [vmem:[#allocation6 + $0xf8] sm:$0xff]  ;;  %v5499_v51 = vcombine.low %v498_v37, %v502_v40 }
  0xfd   : > { %1357 = vmatprep.subr.bf16.mxu0 %v5586_v52  ;;  %1318 = vmatprep.subr.bf16.mxu1 %v5592_v57  ;;  %v5501_v52 = vcombine.low %v499_v41, %v503_v42  ;;  %v5510_v54 = vcombine.high %v507_v49, %v511_v50  ;;  %v515_v57 = vld [vmem:[#allocation6 + $0x118] sm:$0xff] }
  0xfe   : > { %v5518_v62 = vcombine.high %v515_v57, %v519_v58  ;;  %v555_v37 = vld [vmem:[#allocation6 + $0x258] sm:$0xff] }
 0x100   : > { %1358 = vmatpush1.bf16.msra.mxu0 %v5585_v53  ;;  %1319 = vmatpush1.bf16.msra.mxu1 %v5591_v61  ;;  %v5508_v53 = vcombine.high %v506_v47, %v510_v48  ;;  %v5516_v61 = vcombine.high %v514_v55, %v518_v56 }
 0x101   : > { %1359 = vmatprep.subr.bf16.mxu0 %v5594_v60  ;;  %1320 = vmatprep.subr.bf16.mxu1 %v5600_v1  ;;  %v5509_v60 = vcombine.low %v507_v49, %v511_v50  ;;  %v523_v1 = vld [vmem:[#allocation6 + $0x158] sm:$0xff] }
 0x102   : > { %v5526_v6 = vcombine.high %v523_v1, %v527_v2 }
 0x104   : > { %1360 = vmatpush1.bf16.msra.mxu0 %v5593_v59  ;;  %1321 = vmatpush1.bf16.msra.mxu1 %v5599_v5  ;;  %v5507_v59 = vcombine.low %v506_v47, %v510_v48  ;;  %v5524_v5 = vcombine.high %v522_v63, %v526_v0 }
 0x105   : > { %1361 = vmatprep.subr.bf16.mxu0 %v5602_v4  ;;  %1372 = vmatprep.subr.bf16.mxu1 %v5484_v9  ;;  %v5517_v4 = vcombine.low %v515_v57, %v519_v58  ;;  %v531_v9 = vld [vmem:[#allocation6 + $0x198] sm:$0xff] }
 0x106   : > { %v5534_v14 = vcombine.high %v531_v9, %v535_v10 }
 0x108   : > { %1362 = vmatpush1.bf16.msra.mxu0 %v5601_v3  ;;  %v5515_v3 = vcombine.low %v514_v55, %v518_v56 }
 0x109   : > { %1413 = vmatprep.subr.bf16.mxu0 %v5486_v13  ;;  %v5532_v13 = vcombine.high %v530_v7, %v534_v8 }
 0x19e   : > { %v465_v21 = vpop.f32.mrb[0].mxu0 }
 0x19f   : > { %v466_v22 = vadd.f32 %v465_v21, %v400_v19  ;;  %v467_v23 = vpop.f32.mrb[1].mxu0  ;;  %v542_v19 = vld [vmem:[#allocation6 + $0x1f0] sm:$0xff]  ;;  %v543_v21 = vld [vmem:[#allocation6 + $0x1f8] sm:$0xff] }
 0x1a0   : > { %v468_v24 = vadd.f32 %v467_v23, %v404_v20  ;;  %v469_v25 = vpop.f32.mrb[2].mxu0  ;;  %v539_v20 = vld [vmem:[#allocation6 + $0x1d8] sm:$0xff]  ;;  %v5533_v23 = vcombine.low %v531_v9, %v535_v10  ;;  %v5539_v30 = vcombine.low %v538_v17, %v542_v19 }
 0x1a1   : > { %vm472_vm1 = vcmp.ge.f32.partialorder %v466_v22, 0.0  ;;  %v474_v26 = vmul.f32 0.01, %v466_v22  ;;  %v470_v27 = vpop.f32.mrb[3].mxu0  ;;  %v5542_v25 = vcombine.high %v539_v20, %v543_v21 }
 0x1a2   : > { %vm473_vm2 = vcmp.ge.f32.partialorder %v468_v24, 0.0  ;;  %v475_v28 = vmul.f32 0.01, %v468_v24  ;;  %v550_v27 = vld [vmem:[#allocation6 + $0x230] sm:$0xff] }
 0x1a3   : > { %v476_v29 = vsel %vm472_vm1, %v466_v22, %v474_v26  ;;  %v5531_v22 = vcombine.low %v530_v7, %v534_v8  ;;  %v546_v26 = vld [vmem:[#allocation6 + $0x210] sm:$0xff] }
 0x1a4   : > { %v477_v31 = vsel %vm473_vm2, %v468_v24, %v475_v28  ;;  %v6801_v36 = vpack.c.bf16 %v476_v29, %v476_v29  ;;  %v5540_v24 = vcombine.high %v538_v17, %v542_v19  ;;  %v547_v28 = vld [vmem:[#allocation6 + $0x218] sm:$0xff]  ;;  %v5548_v32 = vcombine.high %v546_v26, %v550_v27 }
 0x1a5   : > { %v479_v35 = vpack.c.bf16 %v477_v31, %v477_v31  ;;  %v551_v29 = vld [vmem:[#allocation6 + $0x238] sm:$0xff]  ;;  %v5541_v31 = vcombine.low %v539_v20, %v543_v21 }
 0x1a6   : > { %v5550_v33 = vcombine.high %v547_v28, %v551_v29  ;;  %v5549_v40 = vcombine.low %v547_v28, %v551_v29 }
 0x1a7   : > { %1322 = vmatprep.mubr.bf16.mxu1 %v479_v35  ;;  %1363 = vmatprep.mubr.bf16.mxu0 %v479_v35 }
 0x1a8   : > { %1323 = vmatmul.mubr.bf16.vlgmr.msra.gmra.mrb[0].mxu1 %v6801_v36  ;;  %1364 = vmatmul.mubr.bf16.vlgmr.msra.gmra.mrb[4].mxu0 %v6801_v36 }
 0x1a9   : > { %1373 = vmatpush1.bf16.msra.mxu1 %v5483_v11  ;;  %1414 = vmatpush1.bf16.msra.mxu0 %v5485_v12  ;;  %v5523_v11 = vcombine.low %v522_v63, %v526_v0  ;;  %v5525_v12 = vcombine.low %v523_v1, %v527_v2 }
 0x1aa   : > { %1404 = vmatprep.mubr.bf16.mxu1 %v479_v35  ;;  %1445 = vmatprep.mubr.bf16.mxu0 %v479_v35  ;;  %v558_v35 = vld [vmem:[#allocation6 + $0x270] sm:$0xff] }
 0x1ab   : > { %1374 = vmatprep.subr.bf16.mxu1 %v5492_v38  ;;  %1415 = vmatprep.subr.bf16.mxu0 %v5494_v39  ;;  %v559_v38 = vld [vmem:[#allocation6 + $0x278] sm:$0xff]  ;;  %v5547_v39 = vcombine.low %v546_v26, %v550_v27  ;;  %v5556_v41 = vcombine.high %v554_v34, %v558_v35  ;;  %v5555_v47 = vcombine.low %v554_v34, %v558_v35 }
 0x1ac   : > { %v5558_v42 = vcombine.high %v555_v37, %v559_v38  ;;  %v5557_v48 = vcombine.low %v555_v37, %v559_v38 }
 0x1ad   : > { %1375 = vmatpush1.bf16.msra.mxu1 %v5491_v43  ;;  %1416 = vmatpush1.bf16.msra.mxu0 %v5493_v44  ;;  %v562_v43 = vld [vmem:[#allocation6 + $0x290] sm:$0xff] }
 0x1ae   : > { %1376 = vmatprep.subr.bf16.mxu1 %v5500_v45  ;;  %1417 = vmatprep.subr.bf16.mxu0 %v5502_v46  ;;  %v566_v44 = vld [vmem:[#allocation6 + $0x2b0] sm:$0xff]  ;;  %v563_v45 = vld [vmem:[#allocation6 + $0x298] sm:$0xff] }
 0x1af   : > { %v567_v46 = vld [vmem:[#allocation6 + $0x2b8] sm:$0xff]  ;;  %v5564_v49 = vcombine.high %v562_v43, %v566_v44  ;;  %v5563_v55 = vcombine.low %v562_v43, %v566_v44 }
 0x1b0   : > { %v5566_v50 = vcombine.high %v563_v45, %v567_v46  ;;  %v5565_v56 = vcombine.low %v563_v45, %v567_v46 }
 0x1b1   : > { %1377 = vmatpush1.bf16.msra.mxu1 %v5499_v51  ;;  %1418 = vmatpush1.bf16.msra.mxu0 %v5501_v52  ;;  %v570_v51 = vld [vmem:[#allocation6 + $0x2d0] sm:$0xff] }
 0x1b2   : > { %1378 = vmatprep.subr.bf16.mxu1 %v5508_v53  ;;  %1419 = vmatprep.subr.bf16.mxu0 %v5510_v54  ;;  %v574_v52 = vld [vmem:[#allocation6 + $0x2f0] sm:$0xff]  ;;  %v571_v53 = vld [vmem:[#allocation6 + $0x2d8] sm:$0xff] }
 0x1b3   : > { %v575_v54 = vld [vmem:[#allocation6 + $0x2f8] sm:$0xff]  ;;  %v5572_v57 = vcombine.high %v570_v51, %v574_v52  ;;  %v5571_v63 = vcombine.low %v570_v51, %v574_v52 }
 0x1b4   : > { %v5574_v58 = vcombine.high %v571_v53, %v575_v54  ;;  %v5573_v0 = vcombine.low %v571_v53, %v575_v54 }
 0x1b5   : > { %1379 = vmatpush1.bf16.msra.mxu1 %v5507_v59  ;;  %1420 = vmatpush1.bf16.msra.mxu0 %v5509_v60  ;;  %v578_v59 = vld [vmem:[#allocation6 + $0x310] sm:$0xff] }
 0x1b6   : > { %1380 = vmatprep.subr.bf16.mxu1 %v5516_v61  ;;  %1421 = vmatprep.subr.bf16.mxu0 %v5518_v62  ;;  %v582_v60 = vld [vmem:[#allocation6 + $0x330] sm:$0xff]  ;;  %v579_v61 = vld [vmem:[#allocation6 + $0x318] sm:$0xff] }
 0x1b7   : > { %v583_v62 = vld [vmem:[#allocation6 + $0x338] sm:$0xff]  ;;  %v5580_v1 = vcombine.high %v578_v59, %v582_v60  ;;  %v5579_v7 = vcombine.low %v578_v59, %v582_v60 }
 0x1b8   : > { %v5582_v2 = vcombine.high %v579_v61, %v583_v62  ;;  %v5581_v8 = vcombine.low %v579_v61, %v583_v62  ;;  %v1518_v62 = vld [vmem:[%s6782_s21 + $0x100] sm:$0xff] }
 0x1b9   : > { %1381 = vmatpush1.bf16.msra.mxu1 %v5515_v3  ;;  %1422 = vmatpush1.bf16.msra.mxu0 %v5517_v4  ;;  %v586_v3 = vld [vmem:[#allocation6 + $0x350] sm:$0xff] }
 0x1ba   : > { %1382 = vmatprep.subr.bf16.mxu1 %v5524_v5  ;;  %1423 = vmatprep.subr.bf16.mxu0 %v5526_v6  ;;  %v590_v4 = vld [vmem:[#allocation6 + $0x370] sm:$0xff]  ;;  %v587_v5 = vld [vmem:[#allocation6 + $0x358] sm:$0xff] }
 0x1bb   : > { %v591_v6 = vld [vmem:[#allocation6 + $0x378] sm:$0xff]  ;;  %v5588_v9 = vcombine.high %v586_v3, %v590_v4  ;;  %v5587_v17 = vcombine.low %v586_v3, %v590_v4 }
 0x1bc   : > { %v5590_v10 = vcombine.high %v587_v5, %v591_v6  ;;  %v5589_v19 = vcombine.low %v587_v5, %v591_v6  ;;  %v1526_v6 = vld [vmem:[%s6782_s21 + $0x140] sm:$0xff] }
 0x1bd   : > { %1383 = vmatpush1.bf16.msra.mxu1 %v5523_v11  ;;  %1424 = vmatpush1.bf16.msra.mxu0 %v5525_v12  ;;  %v594_v11 = vld [vmem:[#allocation6 + $0x390] sm:$0xff] }
 0x1be   : > { %1384 = vmatprep.subr.bf16.mxu1 %v5532_v13  ;;  %1425 = vmatprep.subr.bf16.mxu0 %v5534_v14  ;;  %v598_v12 = vld [vmem:[#allocation6 + $0x3b0] sm:$0xff]  ;;  %v595_v13 = vld [vmem:[#allocation6 + $0x398] sm:$0xff] }
 0x1bf   : > { %v599_v14 = vld [vmem:[#allocation6 + $0x3b8] sm:$0xff]  ;;  %v5596_v20 = vcombine.high %v594_v11, %v598_v12  ;;  %v5595_v26 = vcombine.low %v594_v11, %v598_v12 }
 0x1c0   : > { %v5598_v21 = vcombine.high %v595_v13, %v599_v14  ;;  %v5597_v27 = vcombine.low %v595_v13, %v599_v14  ;;  %v1534_v14 = vld [vmem:[%s6782_s21 + $0x180] sm:$0xff] }
 0x1c1   : > { %1385 = vmatpush1.bf16.msra.mxu1 %v5531_v22  ;;  %1426 = vmatpush1.bf16.msra.mxu0 %v5533_v23  ;;  %v602_v22 = vld [vmem:[#allocation6 + $0x3d0] sm:$0xff] }
 0x1c2   : > { %1386 = vmatprep.subr.bf16.mxu1 %v5540_v24  ;;  %1427 = vmatprep.subr.bf16.mxu0 %v5542_v25  ;;  %v606_v23 = vld [vmem:[#allocation6 + $0x3f0] sm:$0xff]  ;;  %v603_v24 = vld [vmem:[#allocation6 + $0x3d8] sm:$0xff] }
 0x1c3   : > { %v607_v25 = vld [vmem:[#allocation6 + $0x3f8] sm:$0xff]  ;;  %v5604_v28 = vcombine.high %v602_v22, %v606_v23  ;;  %v5603_v34 = vcombine.low %v602_v22, %v606_v23 }
 0x1c4   : > { %v5606_v29 = vcombine.high %v603_v24, %v607_v25  ;;  %v5605_v35 = vcombine.low %v603_v24, %v607_v25  ;;  %v1542_v25 = vld [vmem:[%s6782_s21 + $0x1c0] sm:$0xff] }
 0x1c5   : > { %1387 = vmatpush1.bf16.msra.mxu1 %v5539_v30  ;;  %1428 = vmatpush1.bf16.msra.mxu0 %v5541_v31  ;;  %v1486_v30 = vld [vmem:[%s6782_s21] sm:$0xff] }
 0x1c6   : > { %1388 = vmatprep.subr.bf16.mxu1 %v5548_v32  ;;  %1429 = vmatprep.subr.bf16.mxu0 %v5550_v33  ;;  %v1490_v31 = vld [vmem:[%s6782_s21 + $0x20] sm:$0xff]  ;;  %v1487_v32 = vld [vmem:[%s6782_s21 + $0x8] sm:$0xff] }
 0x1c7   : > { %v1491_v33 = vld [vmem:[%s6782_s21 + $0x28] sm:$0xff]  ;;  %v5608_v37 = vcombine.high %v1486_v30, %v1490_v31  ;;  %v5607_v43 = vcombine.low %v1486_v30, %v1490_v31 }
 0x1c8   : > { %v5610_v38 = vcombine.high %v1487_v32, %v1491_v33  ;;  %v5609_v44 = vcombine.low %v1487_v32, %v1491_v33  ;;  %v1550_v33 = vld [vmem:[%s6782_s21 + $0x200] sm:$0xff] }
 0x1c9   : > { %1389 = vmatpush1.bf16.msra.mxu1 %v5547_v39  ;;  %1430 = vmatpush1.bf16.msra.mxu0 %v5549_v40  ;;  %v1494_v39 = vld [vmem:[%s6782_s21 + $0x40] sm:$0xff] }
 0x1ca   : > { %1390 = vmatprep.subr.bf16.mxu1 %v5556_v41  ;;  %1431 = vmatprep.subr.bf16.mxu0 %v5558_v42  ;;  %v1498_v40 = vld [vmem:[%s6782_s21 + $0x60] sm:$0xff]  ;;  %v1495_v41 = vld [vmem:[%s6782_s21 + $0x48] sm:$0xff] }
 0x1cb   : > { %v1499_v42 = vld [vmem:[%s6782_s21 + $0x68] sm:$0xff]  ;;  %v5616_v45 = vcombine.high %v1494_v39, %v1498_v40  ;;  %v5615_v51 = vcombine.low %v1494_v39, %v1498_v40  ;;  %v1558_v40 = vld [vmem:[%s6782_s21 + $0x240] sm:$0xff] }
 0x1cc   : > { %v5618_v46 = vcombine.high %v1495_v41, %v1499_v42  ;;  %v5617_v52 = vcombine.low %v1495_v41, %v1499_v42 }
 0x1cd   : > { %1391 = vmatpush1.bf16.msra.mxu1 %v5555_v47  ;;  %1432 = vmatpush1.bf16.msra.mxu0 %v5557_v48  ;;  %v1502_v47 = vld [vmem:[%s6782_s21 + $0x80] sm:$0xff] }
 0x1ce   : > { %1392 = vmatprep.subr.bf16.mxu1 %v5564_v49  ;;  %1433 = vmatprep.subr.bf16.mxu0 %v5566_v50  ;;  %v1506_v48 = vld [vmem:[%s6782_s21 + $0xa0] sm:$0xff]  ;;  %v1503_v49 = vld [vmem:[%s6782_s21 + $0x88] sm:$0xff] }
 0x1cf   : > { %v1507_v50 = vld [vmem:[%s6782_s21 + $0xa8] sm:$0xff]  ;;  %v5624_v53 = vcombine.high %v1502_v47, %v1506_v48  ;;  %v5623_v59 = vcombine.low %v1502_v47, %v1506_v48  ;;  %v6851_v47 = vld [vmem:[%s6782_s21 + $0x420] sm:$0xff] }
 0x1d0   : > { %v5626_v54 = vcombine.high %v1503_v49, %v1507_v50  ;;  %v6854_v48 = vld [vmem:[%s6782_s21 + $0x408] sm:$0xff] }
 0x1d1   : > { %1393 = vmatpush1.bf16.msra.mxu1 %v5563_v55  ;;  %1434 = vmatpush1.bf16.msra.mxu0 %v5565_v56  ;;  %v1510_v55 = vld [vmem:[%s6782_s21 + $0xc0] sm:$0xff] }
 0x1d2   : > { %1394 = vmatprep.subr.bf16.mxu1 %v5572_v57  ;;  %1435 = vmatprep.subr.bf16.mxu0 %v5574_v58  ;;  %v1514_v56 = vld [vmem:[%s6782_s21 + $0xe0] sm:$0xff]  ;;  %v1511_v57 = vld [vmem:[%s6782_s21 + $0xc8] sm:$0xff] }
 0x1d3   : > { %v1515_v58 = vld [vmem:[%s6782_s21 + $0xe8] sm:$0xff]  ;;  %v5632_v60 = vcombine.high %v1510_v55, %v1514_v56 }
 0x1d4   : > { %v5634_v61 = vcombine.high %v1511_v57, %v1515_v58  ;;  %v5633_v3 = vcombine.low %v1511_v57, %v1515_v58  ;;  %v1570_v57 = vld [vmem:[%s6782_s21 + $0x2a0] sm:$0xff]  ;;  %v1567_v58 = vld [vmem:[%s6782_s21 + $0x288] sm:$0xff] }
 0x1d5   : > { %1395 = vmatpush1.bf16.msra.mxu1 %v5571_v63  ;;  %1436 = vmatpush1.bf16.msra.mxu0 %v5573_v0  ;;  %v1522_v63 = vld [vmem:[%s6782_s21 + $0x120] sm:$0xff]  ;;  %v1519_v0 = vld [vmem:[%s6782_s21 + $0x108] sm:$0xff] }
 0x1d6   : > { %1396 = vmatprep.subr.bf16.mxu1 %v5580_v1  ;;  %1437 = vmatprep.subr.bf16.mxu0 %v5582_v2  ;;  %v1523_v1 = vld [vmem:[%s6782_s21 + $0x128] sm:$0xff]  ;;  %v5631_v2 = vcombine.low %v1510_v55, %v1514_v56  ;;  %v5640_v4 = vcombine.high %v1518_v62, %v1522_v63  ;;  %v1566_v56 = vld [vmem:[%s6782_s21 + $0x280] sm:$0xff] }
 0x1d7   : > { %v5642_v5 = vcombine.high %v1519_v0, %v1523_v1  ;;  %v5641_v11 = vcombine.low %v1519_v0, %v1523_v1  ;;  %v1578_v0 = vld [vmem:[%s6782_s21 + $0x2e0] sm:$0xff]  ;;  %v1575_v1 = vld [vmem:[%s6782_s21 + $0x2c8] sm:$0xff] }
 0x1d9   : > { %1397 = vmatpush1.bf16.msra.mxu1 %v5579_v7  ;;  %1438 = vmatpush1.bf16.msra.mxu0 %v5581_v8  ;;  %v1530_v7 = vld [vmem:[%s6782_s21 + $0x160] sm:$0xff]  ;;  %v1527_v8 = vld [vmem:[%s6782_s21 + $0x148] sm:$0xff] }
 0x1da   : > { %1398 = vmatprep.subr.bf16.mxu1 %v5588_v9  ;;  %1439 = vmatprep.subr.bf16.mxu0 %v5590_v10  ;;  %v1531_v9 = vld [vmem:[%s6782_s21 + $0x168] sm:$0xff]  ;;  %v5639_v10 = vcombine.low %v1518_v62, %v1522_v63  ;;  %v5648_v12 = vcombine.high %v1526_v6, %v1530_v7  ;;  %v1574_v63 = vld [vmem:[%s6782_s21 + $0x2c0] sm:$0xff] }
 0x1db   : > { %v5650_v13 = vcombine.high %v1527_v8, %v1531_v9  ;;  %v5649_v22 = vcombine.low %v1527_v8, %v1531_v9  ;;  %v1586_v8 = vld [vmem:[%s6782_s21 + $0x320] sm:$0xff]  ;;  %v1583_v9 = vld [vmem:[%s6782_s21 + $0x308] sm:$0xff] }
 0x1dd   : > { %1399 = vmatpush1.bf16.msra.mxu1 %v5587_v17  ;;  %1440 = vmatpush1.bf16.msra.mxu0 %v5589_v19  ;;  %v1538_v17 = vld [vmem:[%s6782_s21 + $0x1a0] sm:$0xff]  ;;  %v1535_v19 = vld [vmem:[%s6782_s21 + $0x188] sm:$0xff] }
 0x1de   : > { %1400 = vmatprep.subr.bf16.mxu1 %v5596_v20  ;;  %1441 = vmatprep.subr.bf16.mxu0 %v5598_v21  ;;  %v1539_v20 = vld [vmem:[%s6782_s21 + $0x1a8] sm:$0xff]  ;;  %v5647_v21 = vcombine.low %v1526_v6, %v1530_v7  ;;  %v5656_v23 = vcombine.high %v1534_v14, %v1538_v17  ;;  %v1582_v7 = vld [vmem:[%s6782_s21 + $0x300] sm:$0xff] }
 0x1df   : > { %v5658_v24 = vcombine.high %v1535_v19, %v1539_v20  ;;  %v5657_v30 = vcombine.low %v1535_v19, %v1539_v20  ;;  %v1594_v19 = vld [vmem:[%s6782_s21 + $0x360] sm:$0xff]  ;;  %v1591_v20 = vld [vmem:[%s6782_s21 + $0x348] sm:$0xff] }
 0x1e1   : > { %1401 = vmatpush1.bf16.msra.mxu1 %v5595_v26  ;;  %1442 = vmatpush1.bf16.msra.mxu0 %v5597_v27  ;;  %v1546_v26 = vld [vmem:[%s6782_s21 + $0x1e0] sm:$0xff]  ;;  %v1543_v27 = vld [vmem:[%s6782_s21 + $0x1c8] sm:$0xff] }
 0x1e2   : > { %1402 = vmatprep.subr.bf16.mxu1 %v5604_v28  ;;  %1443 = vmatprep.subr.bf16.mxu0 %v5606_v29  ;;  %v1547_v28 = vld [vmem:[%s6782_s21 + $0x1e8] sm:$0xff]  ;;  %v5655_v29 = vcombine.low %v1534_v14, %v1538_v17  ;;  %v5664_v31 = vcombine.high %v1542_v25, %v1546_v26  ;;  %v1590_v17 = vld [vmem:[%s6782_s21 + $0x340] sm:$0xff] }
 0x1e3   : > { %v5666_v32 = vcombine.high %v1543_v27, %v1547_v28  ;;  %v5665_v39 = vcombine.low %v1543_v27, %v1547_v28  ;;  %v1602_v27 = vld [vmem:[%s6782_s21 + $0x3a0] sm:$0xff]  ;;  %v1599_v28 = vld [vmem:[%s6782_s21 + $0x388] sm:$0xff] }
 0x1e5   : > { %1403 = vmatpush1.bf16.msra.mxu1 %v5603_v34  ;;  %1444 = vmatpush1.bf16.msra.mxu0 %v5605_v35  ;;  %v1554_v34 = vld [vmem:[%s6782_s21 + $0x220] sm:$0xff]  ;;  %v1551_v35 = vld [vmem:[%s6782_s21 + $0x208] sm:$0xff] }
 0x1e6   : > { %4600 = vmatprep.subr.bf16.mxu1 %v5608_v37  ;;  %4764 = vmatprep.subr.bf16.mxu0 %v5610_v38  ;;  %v1555_v37 = vld [vmem:[%s6782_s21 + $0x228] sm:$0xff]  ;;  %v5663_v38 = vcombine.low %v1542_v25, %v1546_v26  ;;  %v5672_v41 = vcombine.high %v1550_v33, %v1554_v34  ;;  %v1598_v26 = vld [vmem:[%s6782_s21 + $0x380] sm:$0xff] }
 0x1e7   : > { %v5674_v42 = vcombine.high %v1551_v35, %v1555_v37 }
 0x1e8   : > { %1405 = vmatmul.mubr.bf16.vlgmr.msra.gmra.mrb[4].mxu1 %v6801_v36  ;;  %1446 = vmatmul.mubr.bf16.vlgmr.msra.gmra.mrb[8].mxu0 %v6801_v36  ;;  %v5625_v36 = vcombine.low %v1503_v49, %v1507_v50  ;;  %v6859_v50 = vld [vmem:[%s6782_s21 + $0x428] sm:$0xff] }
 0x1e9   : > { %4601 = vmatpush1.bf16.msra.mxu1 %v5607_v43  ;;  %4765 = vmatpush1.bf16.msra.mxu0 %v5609_v44  ;;  %v1562_v43 = vld [vmem:[%s6782_s21 + $0x260] sm:$0xff]  ;;  %v1559_v44 = vld [vmem:[%s6782_s21 + $0x248] sm:$0xff] }
 0x1ea   : > { %4602 = vmatprep.subr.bf16.mxu1 %v5616_v45  ;;  %4766 = vmatprep.subr.bf16.mxu0 %v5618_v46  ;;  %v1563_v45 = vld [vmem:[%s6782_s21 + $0x268] sm:$0xff]  ;;  %v6848_v46 = vld [vmem:[%s6782_s21 + $0x400] sm:$0xff] }
 0x1eb   : > { %v5735_v49 = vcombine.low %v6848_v46, %v6851_v47  ;;  %v5682_v55 = vcombine.high %v1559_v44, %v1563_v45 }
 0x1ed   : > { %4603 = vmatpush1.bf16.msra.mxu1 %v5615_v51  ;;  %4767 = vmatpush1.bf16.msra.mxu0 %v5617_v52  ;;  %v5671_v51 = vcombine.low %v1550_v33, %v1554_v34  ;;  %v5673_v52 = vcombine.low %v1551_v35, %v1555_v37  ;;  %v1606_v34 = vld [vmem:[%s6782_s21 + $0x3c0] sm:$0xff]  ;;  %v1607_v37 = vld [vmem:[%s6782_s21 + $0x3c8] sm:$0xff] }
 0x1ee   : > { %4604 = vmatprep.subr.bf16.mxu1 %v5624_v53  ;;  %4768 = vmatprep.subr.bf16.mxu0 %v5626_v54  ;;  %v5737_v53 = vcombine.low %v6854_v48, %v6859_v50  ;;  %v5680_v54 = vcombine.high %v1558_v40, %v1562_v43  ;;  %v1610_v35 = vld [vmem:[%s6782_s21 + $0x3e0] sm:$0xff] }
 0x1f1   : > { %4605 = vmatpush1.bf16.msra.mxu1 %v5623_v59  ;;  %4769 = vmatpush1.bf16.msra.mxu0 %v5625_v36  ;;  %v1571_v59 = vld [vmem:[%s6782_s21 + $0x2a8] sm:$0xff]  ;;  %v5679_v36 = vcombine.low %v1558_v40, %v1562_v43  ;;  %v5727_v43 = vcombine.low %v1606_v34, %v1610_v35 }
 0x1f2   : > { %4606 = vmatprep.subr.bf16.mxu1 %v5632_v60  ;;  %4770 = vmatprep.subr.bf16.mxu0 %v5634_v61  ;;  %v5681_v60 = vcombine.low %v1559_v44, %v1563_v45  ;;  %v5688_v61 = vcombine.high %v1566_v56, %v1570_v57  ;;  %v5690_v62 = vcombine.high %v1567_v58, %v1571_v59 }
 0x1f3   : > { %v5736_v45 = vcombine.high %v6848_v46, %v6851_v47  ;;  %v1642_v46 = vld [vmem:[%s6782_s21 + $0x4e0] sm:$0xff]  ;;  %v1639_v47 = vld [vmem:[%s6782_s21 + $0x4c8] sm:$0xff] }
 0x1f5   : > { %4607 = vmatpush1.bf16.msra.mxu1 %v5631_v2  ;;  %4771 = vmatpush1.bf16.msra.mxu0 %v5633_v3  ;;  %v1579_v2 = vld [vmem:[%s6782_s21 + $0x2e8] sm:$0xff]  ;;  %v5687_v3 = vcombine.low %v1566_v56, %v1570_v57 }
 0x1f6   : > { %4608 = vmatprep.subr.bf16.mxu1 %v5640_v4  ;;  %4772 = vmatprep.subr.bf16.mxu0 %v5642_v5  ;;  %v5689_v4 = vcombine.low %v1567_v58, %v1571_v59  ;;  %v5696_v5 = vcombine.high %v1574_v63, %v1578_v0  ;;  %v5698_v6 = vcombine.high %v1575_v1, %v1579_v2 }
 0x1f9   : > { %4609 = vmatpush1.bf16.msra.mxu1 %v5639_v10  ;;  %4773 = vmatpush1.bf16.msra.mxu0 %v5641_v11  ;;  %v1587_v10 = vld [vmem:[%s6782_s21 + $0x328] sm:$0xff]  ;;  %v5695_v11 = vcombine.low %v1574_v63, %v1578_v0 }
 0x1fa   : > { %4610 = vmatprep.subr.bf16.mxu1 %v5648_v12  ;;  %4774 = vmatprep.subr.bf16.mxu0 %v5650_v13  ;;  %v5697_v12 = vcombine.low %v1575_v1, %v1579_v2  ;;  %v5704_v13 = vcombine.high %v1582_v7, %v1586_v8  ;;  %v5706_v14 = vcombine.high %v1583_v9, %v1587_v10 }
 0x1fd   : > { %4611 = vmatpush1.bf16.msra.mxu1 %v5647_v21  ;;  %4775 = vmatpush1.bf16.msra.mxu0 %v5649_v22  ;;  %v1595_v21 = vld [vmem:[%s6782_s21 + $0x368] sm:$0xff]  ;;  %v5703_v22 = vcombine.low %v1582_v7, %v1586_v8  ;;  %v1622_v8 = vld [vmem:[%s6782_s21 + $0x440] sm:$0xff] }
 0x1fe   : > { %4612 = vmatprep.subr.bf16.mxu1 %v5656_v23  ;;  %4776 = vmatprep.subr.bf16.mxu0 %v5658_v24  ;;  %v5705_v23 = vcombine.low %v1583_v9, %v1587_v10  ;;  %v5712_v24 = vcombine.high %v1590_v17, %v1594_v19  ;;  %v5714_v25 = vcombine.high %v1591_v20, %v1595_v21  ;;  %v1626_v10 = vld [vmem:[%s6782_s21 + $0x460] sm:$0xff] }
 0x201   : > { %4613 = vmatpush1.bf16.msra.mxu1 %v5655_v29  ;;  %4777 = vmatpush1.bf16.msra.mxu0 %v5657_v30  ;;  %v1603_v29 = vld [vmem:[%s6782_s21 + $0x3a8] sm:$0xff]  ;;  %v5711_v30 = vcombine.low %v1590_v17, %v1594_v19  ;;  %v1630_v19 = vld [vmem:[%s6782_s21 + $0x480] sm:$0xff] }
 0x202   : > { %4614 = vmatprep.subr.bf16.mxu1 %v5664_v31  ;;  %4778 = vmatprep.subr.bf16.mxu0 %v5666_v32  ;;  %v5713_v31 = vcombine.low %v1591_v20, %v1595_v21  ;;  %v5720_v32 = vcombine.high %v1598_v26, %v1602_v27  ;;  %v5722_v33 = vcombine.high %v1599_v28, %v1603_v29 }
 0x203   : > { %v5721_v40 = vcombine.low %v1599_v28, %v1603_v29  ;;  %v5744_v20 = vcombine.high %v1622_v8, %v1626_v10 }
 0x205   : > { %4615 = vmatpush1.bf16.msra.mxu1 %v5663_v38  ;;  %4779 = vmatpush1.bf16.msra.mxu0 %v5665_v39  ;;  %v1611_v38 = vld [vmem:[%s6782_s21 + $0x3e8] sm:$0xff]  ;;  %v5719_v39 = vcombine.low %v1598_v26, %v1602_v27  ;;  %v5743_v26 = vcombine.low %v1622_v8, %v1626_v10  ;;  %v1682_v10 = vld [vmem:[%s6782_s21 + $0x620] sm:$0xff] }
 0x206   : > { %4616 = vmatprep.subr.bf16.mxu1 %v5672_v41  ;;  %4780 = vmatprep.subr.bf16.mxu0 %v5674_v42  ;;  %v5728_v41 = vcombine.high %v1606_v34, %v1610_v35  ;;  %v5730_v42 = vcombine.high %v1607_v37, %v1611_v38  ;;  %v5729_v44 = vcombine.low %v1607_v37, %v1611_v38  ;;  %v1647_v34 = vld [vmem:[%s6782_s21 + $0x508] sm:$0xff] }
 0x207   : > { %v1651_v35 = vld [vmem:[%s6782_s21 + $0x528] sm:$0xff] }
 0x209   : > { %4617 = vmatpush1.bf16.msra.mxu1 %v5671_v51  ;;  %4781 = vmatpush1.bf16.msra.mxu0 %v5673_v52  ;;  %v5738_v51 = vcombine.high %v6854_v48, %v6859_v50  ;;  %v6891_v52 = vld [vmem:[#allocation7] sm:$0xff] }
 0x20a   : > { %4618 = vmatprep.subr.bf16.mxu1 %v5680_v54  ;;  %4782 = vmatprep.subr.bf16.mxu0 %v5682_v55  ;;  %v624_v54 = vsub.s32 3, %v6791_v15  ;;  %v613_v55 = vrot.slane %v6891_v52, %v6794_v16  ;;  %v617_v56 = vrot.slane %v6891_v52, %v6797_v18 }
 0x20c   : > { %v625_v57 = vrot.slane %v6891_v52, %v624_v54 }
 0x20d   : > { %4619 = vmatpush1.bf16.msra.mxu1 %v5679_v36  ;;  %4783 = vmatpush1.bf16.msra.mxu0 %v5681_v60 }
 0x20e   : > { %4620 = vmatprep.subr.bf16.mxu1 %v5688_v61  ;;  %4784 = vmatprep.subr.bf16.mxu0 %v5690_v62 }
 0x211   : > { %4621 = vmatpush1.bf16.msra.mxu1 %v5687_v3  ;;  %4785 = vmatpush1.bf16.msra.mxu0 %v5689_v4 }
 0x212   : > { %4622 = vmatprep.subr.bf16.mxu1 %v5696_v5  ;;  %4786 = vmatprep.subr.bf16.mxu0 %v5698_v6 }
 0x215   : > { %4623 = vmatpush1.bf16.msra.mxu1 %v5695_v11  ;;  %4787 = vmatpush1.bf16.msra.mxu0 %v5697_v12  ;;  %v1623_v11 = vld [vmem:[%s6782_s21 + $0x448] sm:$0xff] }
 0x216   : > { %4624 = vmatprep.subr.bf16.mxu1 %v5704_v13  ;;  %4788 = vmatprep.subr.bf16.mxu0 %v5706_v14  ;;  %v1627_v12 = vld [vmem:[%s6782_s21 + $0x468] sm:$0xff] }
 0x217   : > { %v5746_v21 = vcombine.high %v1623_v11, %v1627_v12  ;;  %v5745_v27 = vcombine.low %v1623_v11, %v1627_v12  ;;  %v1679_v11 = vld [vmem:[%s6782_s21 + $0x608] sm:$0xff] }
 0x218   : > { %v1683_v12 = vld [vmem:[%s6782_s21 + $0x628] sm:$0xff] }
 0x219   : > { %4625 = vmatpush1.bf16.msra.mxu1 %v5703_v22  ;;  %4789 = vmatpush1.bf16.msra.mxu0 %v5705_v23  ;;  %v1634_v22 = vld [vmem:[%s6782_s21 + $0x4a0] sm:$0xff]  ;;  %v1631_v23 = vld [vmem:[%s6782_s21 + $0x488] sm:$0xff] }
 0x21a   : > { %4626 = vmatprep.subr.bf16.mxu1 %v5712_v24  ;;  %4790 = vmatprep.subr.bf16.mxu0 %v5714_v25  ;;  %v1635_v24 = vld [vmem:[%s6782_s21 + $0x4a8] sm:$0xff]  ;;  %v5752_v28 = vcombine.high %v1630_v19, %v1634_v22  ;;  %v5751_v48 = vcombine.low %v1630_v19, %v1634_v22  ;;  %v1686_v22 = vld [vmem:[%s6782_s21 + $0x640] sm:$0xff] }
 0x21b   : > { %v5754_v29 = vcombine.high %v1631_v23, %v1635_v24  ;;  %v5753_v50 = vcombine.low %v1631_v23, %v1635_v24  ;;  %v1690_v23 = vld [vmem:[%s6782_s21 + $0x660] sm:$0xff]  ;;  %v1687_v24 = vld [vmem:[%s6782_s21 + $0x648] sm:$0xff] }
 0x21d   : > { %4627 = vmatpush1.bf16.msra.mxu1 %v5711_v30  ;;  %4791 = vmatpush1.bf16.msra.mxu0 %v5713_v31  ;;  %v1638_v30 = vld [vmem:[%s6782_s21 + $0x4c0] sm:$0xff] }
 0x21e   : > { %4628 = vmatprep.subr.bf16.mxu1 %v5720_v32  ;;  %4792 = vmatprep.subr.bf16.mxu0 %v5722_v33  ;;  %v1646_v32 = vld [vmem:[%s6782_s21 + $0x500] sm:$0xff]  ;;  %v5759_v37 = vcombine.low %v1638_v30, %v1642_v46 }
 0x21f   : > { %v1650_v33 = vld [vmem:[%s6782_s21 + $0x520] sm:$0xff] }
 0x221   : > { %4629 = vmatpush1.bf16.msra.mxu1 %v5719_v39  ;;  %4793 = vmatpush1.bf16.msra.mxu0 %v5721_v40  ;;  %v5768_v39 = vcombine.high %v1646_v32, %v1650_v33  ;;  %v5770_v40 = vcombine.high %v1647_v34, %v1651_v35 }
 0x222   : > { %4630 = vmatprep.subr.bf16.mxu1 %v5728_v41  ;;  %4794 = vmatprep.subr.bf16.mxu0 %v5730_v42  ;;  %v1654_v41 = vld [vmem:[%s6782_s21 + $0x540] sm:$0xff] }
 0x223   : > { %v1658_v42 = vld [vmem:[%s6782_s21 + $0x560] sm:$0xff] }
 0x225   : > { %4631 = vmatpush1.bf16.msra.mxu1 %v5727_v43  ;;  %4795 = vmatpush1.bf16.msra.mxu0 %v5729_v44  ;;  %v1655_v43 = vld [vmem:[%s6782_s21 + $0x548] sm:$0xff] }
 0x226   : > { %4641 = vmatprep.subr.bf16.mxu1 %v5736_v45  ;;  %4805 = vmatprep.subr.bf16.mxu0 %v5738_v51  ;;  %v1659_v44 = vld [vmem:[%s6782_s21 + $0x568] sm:$0xff]  ;;  %v5767_v45 = vcombine.low %v1646_v32, %v1650_v33  ;;  %v5769_v51 = vcombine.low %v1647_v34, %v1651_v35  ;;  %v1702_v33 = vld [vmem:[%s6782_s21 + $0x6c0] sm:$0xff] }
 0x227   : > { %v1706_v34 = vld [vmem:[%s6782_s21 + $0x6e0] sm:$0xff]  ;;  %v1703_v35 = vld [vmem:[%s6782_s21 + $0x6c8] sm:$0xff] }
 0x27b   : > { %v1324_v58 = vpop.f32.mrb[0].mxu1  ;;  %v6901_v59 = vpop.f32.mrb[4].mxu0 }
 0x27c   : > { %v1325_v36 = vadd.f32 %v1324_v58, %v613_v55  ;;  %v1326_v60 = vpop.f32.mrb[1].mxu1  ;;  %v1367_v61 = vpop.f32.mrb[5].mxu0  ;;  %v5776_v55 = vcombine.high %v1654_v41, %v1658_v42  ;;  %v1666_v58 = vld [vmem:[%s6782_s21 + $0x5a0] sm:$0xff] }
 0x27d   : > { %v1327_v62 = vadd.f32 %v1326_v60, %v617_v56  ;;  %v1368_v63 = vadd.f32 %v1367_v61, %v625_v57  ;;  %v1328_v0 = vpop.f32.mrb[2].mxu1  ;;  %v1369_v1 = vpop.f32.mrb[6].mxu0  ;;  %v5778_v56 = vcombine.high %v1655_v43, %v1659_v44  ;;  %v1662_v57 = vld [vmem:[%s6782_s21 + $0x580] sm:$0xff]  ;;  %v1667_v60 = vld [vmem:[%s6782_s21 + $0x5a8] sm:$0xff]  ;;  %v5775_v61 = vcombine.low %v1654_v41, %v1658_v42 }
 0x27e   : > { %vm1454_vm3 = vcmp.ge.f32.partialorder %v1325_v36, 0.0  ;;  %v1462_v2 = vmul.f32 0.01, %v1325_v36  ;;  %v1329_v6 = vpop.f32.mrb[3].mxu1  ;;  %v1370_v7 = vpop.f32.mrb[7].mxu0  ;;  %v1670_v1 = vld [vmem:[%s6782_s21 + $0x5c0] sm:$0xff] }
 0x27f   : > { %vm1455_vm4 = vcmp.ge.f32.partialorder %v1327_v62, 0.0  ;;  %v1463_v3 = vmul.f32 0.01, %v1327_v62  ;;  %vm1457_vm5 = vcmp.ge.f32.partialorder %v1368_v63, 0.0  ;;  %v1465_v4 = vmul.f32 0.01, %v1368_v63 }
 0x280   : > { %v1470_v5 = vsel %vm1454_vm3, %v1325_v36, %v1462_v2  ;;  %v1663_v36 = vld [vmem:[%s6782_s21 + $0x588] sm:$0xff]  ;;  %v1674_v2 = vld [vmem:[%s6782_s21 + $0x5e0] sm:$0xff] }
 0x281   : > { %v1471_v9 = vsel %vm1455_vm4, %v1327_v62, %v1463_v3  ;;  %v1473_v14 = vsel %vm1457_vm5, %v1368_v63, %v1465_v4  ;;  %v6909_v17 = vpack.c.bf16 %v1470_v5, %v1470_v5  ;;  %v5777_v62 = vcombine.low %v1655_v43, %v1659_v44  ;;  %v1671_v3 = vld [vmem:[%s6782_s21 + $0x5c8] sm:$0xff]  ;;  %v1710_v42 = vld [vmem:[%s6782_s21 + $0x700] sm:$0xff] }
 0x282   : > { %v6907_v13 = vpack.c.bf16 %v1471_v9, %v1471_v9  ;;  %v6917_v25 = vpack.c.bf16 %v1473_v14, %v1473_v14  ;;  %v5784_v63 = vcombine.high %v1662_v57, %v1666_v58  ;;  %v5786_v0 = vcombine.high %v1663_v36, %v1667_v60  ;;  %v1675_v4 = vld [vmem:[%s6782_s21 + $0x5e8] sm:$0xff]  ;;  %v1678_v9 = vld [vmem:[%s6782_s21 + $0x600] sm:$0xff] }
 0x283   : > { %v5783_v5 = vcombine.low %v1662_v57, %v1666_v58  ;;  %v5785_v6 = vcombine.low %v1663_v36, %v1667_v60  ;;  %v5792_v7 = vcombine.high %v1670_v1, %v1674_v2  ;;  %v5794_v8 = vcombine.high %v1671_v3, %v1675_v4  ;;  %v1714_v43 = vld [vmem:[%s6782_s21 + $0x720] sm:$0xff]  ;;  %v1711_v44 = vld [vmem:[%s6782_s21 + $0x708] sm:$0xff] }
 0x284   : > { %4632 = vmatprep.mubr.bf16.mxu1 %v6907_v13  ;;  %4796 = vmatprep.mubr.bf16.mxu0 %v6907_v13  ;;  %v5791_v14 = vcombine.low %v1670_v1, %v1674_v2  ;;  %v5793_v19 = vcombine.low %v1671_v3, %v1675_v4  ;;  %v1718_v58 = vld [vmem:[%s6782_s21 + $0x740] sm:$0xff]  ;;  %v620_v36 = vsub.s32 2, %v6791_v15 }
 0x285   : > { %4633 = vmatmul.mubr.bf16.vlgmr.msra.gmra.mrb[8].mxu1 %v6909_v17  ;;  %4797 = vmatmul.mubr.bf16.vlgmr.msra.gmra.mrb[12].mxu0 %v6909_v17  ;;  %v1722_v60 = vld [vmem:[%s6782_s21 + $0x760] sm:$0xff] }
 0x286   : > { %4642 = vmatpush1.bf16.msra.mxu1 %v5735_v49  ;;  %4806 = vmatpush1.bf16.msra.mxu0 %v5737_v53  ;;  %v1643_v49 = vld [vmem:[%s6782_s21 + $0x4e8] sm:$0xff]  ;;  %v5760_v53 = vcombine.high %v1638_v30, %v1642_v46  ;;  %v1694_v46 = vld [vmem:[%s6782_s21 + $0x680] sm:$0xff]  ;;  %v5840_v1 = vcombine.high %v1718_v58, %v1722_v60  ;;  %v621_v4 = vrot.slane %v6891_v52, %v620_v36 }
 0x287   : > { %4673 = vmatprep.mubr.bf16.mxu1 %v6917_v25  ;;  %4837 = vmatprep.mubr.bf16.mxu0 %v6917_v25  ;;  %v5762_v31 = vcombine.high %v1639_v47, %v1643_v49  ;;  %v5761_v38 = vcombine.low %v1639_v47, %v1643_v49  ;;  %v1698_v47 = vld [vmem:[%s6782_s21 + $0x6a0] sm:$0xff]  ;;  %v1695_v49 = vld [vmem:[%s6782_s21 + $0x688] sm:$0xff] }
 0x288   : > { %4643 = vmatprep.subr.bf16.mxu1 %v5744_v20  ;;  %4807 = vmatprep.subr.bf16.mxu0 %v5746_v21  ;;  %v5800_v20 = vcombine.high %v1678_v9, %v1682_v10  ;;  %v5802_v21 = vcombine.high %v1679_v11, %v1683_v12  ;;  %v1726_v3 = vld [vmem:[%s6782_s21 + $0x780] sm:$0xff] }
 0x28a   : > { %4644 = vmatpush1.bf16.msra.mxu1 %v5743_v26  ;;  %4808 = vmatpush1.bf16.msra.mxu0 %v5745_v27  ;;  %v1691_v26 = vld [vmem:[%s6782_s21 + $0x668] sm:$0xff]  ;;  %v5799_v27 = vcombine.low %v1678_v9, %v1682_v10  ;;  %v5839_v9 = vcombine.low %v1718_v58, %v1722_v60 }
 0x28b   : > { %4645 = vmatprep.subr.bf16.mxu1 %v5752_v28  ;;  %4809 = vmatprep.subr.bf16.mxu0 %v5754_v29  ;;  %v5801_v28 = vcombine.low %v1679_v11, %v1683_v12  ;;  %v5808_v29 = vcombine.high %v1686_v22, %v1690_v23  ;;  %v5810_v30 = vcombine.high %v1687_v24, %v1691_v26 }
 0x28e   : > { %4646 = vmatpush1.bf16.msra.mxu1 %v5751_v48  ;;  %4810 = vmatpush1.bf16.msra.mxu0 %v5753_v50  ;;  %v1699_v48 = vld [vmem:[%s6782_s21 + $0x6a8] sm:$0xff]  ;;  %v5807_v50 = vcombine.low %v1686_v22, %v1690_v23 }
 0x28f   : > { %4647 = vmatprep.subr.bf16.mxu1 %v5760_v53  ;;  %4811 = vmatprep.subr.bf16.mxu0 %v5762_v31  ;;  %v5809_v53 = vcombine.low %v1687_v24, %v1691_v26  ;;  %v5816_v31 = vcombine.high %v1694_v46, %v1698_v47  ;;  %v5818_v32 = vcombine.high %v1695_v49, %v1699_v48  ;;  %v1739_v22 = vld [vmem:[%s6782_s21 + $0x7e8] sm:$0xff] }
 0x292   : > { %4648 = vmatpush1.bf16.msra.mxu1 %v5759_v37  ;;  %4812 = vmatpush1.bf16.msra.mxu0 %v5761_v38  ;;  %v1707_v37 = vld [vmem:[%s6782_s21 + $0x6e8] sm:$0xff]  ;;  %v5815_v38 = vcombine.low %v1694_v46, %v1698_v47  ;;  %v1746_v46 = vld [vmem:[%s6782_s21 + $0x820] sm:$0xff] }
 0x293   : > { %4649 = vmatprep.subr.bf16.mxu1 %v5768_v39  ;;  %4813 = vmatprep.subr.bf16.mxu0 %v5770_v40  ;;  %v5817_v39 = vcombine.low %v1695_v49, %v1699_v48  ;;  %v5824_v40 = vcombine.high %v1702_v33, %v1706_v34  ;;  %v5826_v41 = vcombine.high %v1703_v35, %v1707_v37 }
 0x296   : > { %4650 = vmatpush1.bf16.msra.mxu1 %v5767_v45  ;;  %4814 = vmatpush1.bf16.msra.mxu0 %v5769_v51  ;;  %v1715_v45 = vld [vmem:[%s6782_s21 + $0x728] sm:$0xff]  ;;  %v5823_v51 = vcombine.low %v1702_v33, %v1706_v34 }
 0x297   : > { %4651 = vmatprep.subr.bf16.mxu1 %v5776_v55  ;;  %4815 = vmatprep.subr.bf16.mxu0 %v5778_v56  ;;  %v5825_v55 = vcombine.low %v1703_v35, %v1707_v37  ;;  %v5832_v56 = vcombine.high %v1710_v42, %v1714_v43  ;;  %v5834_v57 = vcombine.high %v1711_v44, %v1715_v45 }
 0x29a   : > { %4652 = vmatpush1.bf16.msra.mxu1 %v5775_v61  ;;  %4816 = vmatpush1.bf16.msra.mxu0 %v5777_v62  ;;  %v1719_v61 = vld [vmem:[%s6782_s21 + $0x748] sm:$0xff] }
 0x29b   : > { %4653 = vmatprep.subr.bf16.mxu1 %v5784_v63  ;;  %4817 = vmatprep.subr.bf16.mxu0 %v5786_v0  ;;  %v1723_v62 = vld [vmem:[%s6782_s21 + $0x768] sm:$0xff]  ;;  %v5831_v63 = vcombine.low %v1710_v42, %v1714_v43  ;;  %v5833_v0 = vcombine.low %v1711_v44, %v1715_v45  ;;  %v1750_v43 = vld [vmem:[%s6782_s21 + $0x840] sm:$0xff] }
 0x29c   : > { %v5842_v2 = vcombine.high %v1719_v61, %v1723_v62  ;;  %v5841_v10 = vcombine.low %v1719_v61, %v1723_v62  ;;  %v1754_v45 = vld [vmem:[%s6782_s21 + $0x860] sm:$0xff] }
 0x29d   : > { %v5872_v61 = vcombine.high %v1750_v43, %v1754_v45 }
 0x29e   : > { %4654 = vmatpush1.bf16.msra.mxu1 %v5783_v5  ;;  %4818 = vmatpush1.bf16.msra.mxu0 %v5785_v6  ;;  %v1730_v5 = vld [vmem:[%s6782_s21 + $0x7a0] sm:$0xff]  ;;  %v1727_v6 = vld [vmem:[%s6782_s21 + $0x788] sm:$0xff] }
 0x29f   : > { %4655 = vmatprep.subr.bf16.mxu1 %v5792_v7  ;;  %4819 = vmatprep.subr.bf16.mxu0 %v5794_v8  ;;  %v1731_v7 = vld [vmem:[%s6782_s21 + $0x7a8] sm:$0xff]  ;;  %v632_v8 = vsub.s32 5, %v6791_v15  ;;  %v5848_v11 = vcombine.high %v1726_v3, %v1730_v5  ;;  %v5847_v24 = vcombine.low %v1726_v3, %v1730_v5  ;;  %v5871_v3 = vcombine.low %v1750_v43, %v1754_v45  ;;  %v1798_v43 = vld [vmem:[%s6782_s21 + $0x9c0] sm:$0xff] }
 0x2a0   : > { %v5850_v12 = vcombine.high %v1727_v6, %v1731_v7  ;;  %v5849_v26 = vcombine.low %v1727_v6, %v1731_v7  ;;  %v1766_v7 = vld [vmem:[%s6782_s21 + $0x8c0] sm:$0xff]  ;;  %v1799_v45 = vld [vmem:[%s6782_s21 + $0x9c8] sm:$0xff] }
 0x2a1   : > { %v633_v23 = vrot.slane %v6891_v52, %v632_v8 }
 0x2a2   : > { %4656 = vmatpush1.bf16.msra.mxu1 %v5791_v14  ;;  %4820 = vmatpush1.bf16.msra.mxu0 %v5793_v19  ;;  %v1734_v14 = vld [vmem:[%s6782_s21 + $0x7c0] sm:$0xff]  ;;  %v1366_v19 = vadd.f32 %v6901_v59, %v621_v4 }
 0x2a3   : > { %4657 = vmatprep.subr.bf16.mxu1 %v5800_v20  ;;  %4821 = vmatprep.subr.bf16.mxu0 %v5802_v21  ;;  %v1738_v20 = vld [vmem:[%s6782_s21 + $0x7e0] sm:$0xff]  ;;  %v1735_v21 = vld [vmem:[%s6782_s21 + $0x7c8] sm:$0xff] }
 0x2a4   : > { %v5856_v59 = vcombine.high %v1734_v14, %v1738_v20  ;;  %v1464_v47 = vmul.f32 0.01, %v1366_v19  ;;  %vm1456_vm6 = vcmp.ge.f32.partialorder %v1366_v19, 0.0  ;;  %v5855_v34 = vcombine.low %v1734_v14, %v1738_v20 }
 0x2a5   : > { %v5857_v35 = vcombine.low %v1735_v21, %v1739_v22 }
 0x2a6   : > { %4658 = vmatpush1.bf16.msra.mxu1 %v5799_v27  ;;  %4822 = vmatpush1.bf16.msra.mxu0 %v5801_v28 }
 0x2a7   : > { %4659 = vmatprep.subr.bf16.mxu1 %v5808_v29  ;;  %4823 = vmatprep.subr.bf16.mxu0 %v5810_v30  ;;  %v5858_v29 = vcombine.high %v1735_v21, %v1739_v22  ;;  %v1742_v30 = vld [vmem:[%s6782_s21 + $0x800] sm:$0xff] }
 0x2a8   : > { %v1774_v21 = vld [vmem:[%s6782_s21 + $0x900] sm:$0xff] }
 0x2a9   : > { %v1778_v22 = vld [vmem:[%s6782_s21 + $0x920] sm:$0xff] }
 0x2aa   : > { %4660 = vmatpush1.bf16.msra.mxu1 %v5807_v50  ;;  %4824 = vmatpush1.bf16.msra.mxu0 %v5809_v53  ;;  %v1743_v50 = vld [vmem:[%s6782_s21 + $0x808] sm:$0xff] }
 0x2ab   : > { %4661 = vmatprep.subr.bf16.mxu1 %v5816_v31  ;;  %4825 = vmatprep.subr.bf16.mxu0 %v5818_v32  ;;  %v1747_v53 = vld [vmem:[%s6782_s21 + $0x828] sm:$0xff] }
 0x2ac   : > { %v5865_v58 = vcombine.low %v1743_v50, %v1747_v53 }
 0x2ae   : > { %4662 = vmatpush1.bf16.msra.mxu1 %v5815_v38  ;;  %4826 = vmatpush1.bf16.msra.mxu0 %v5817_v39  ;;  %v5864_v38 = vcombine.high %v1742_v30, %v1746_v46  ;;  %v5866_v39 = vcombine.high %v1743_v50, %v1747_v53  ;;  %v1787_v50 = vld [vmem:[%s6782_s21 + $0x968] sm:$0xff]  ;;  %v5895_v53 = vcombine.low %v1774_v21, %v1778_v22 }
 0x2af   : > { %4663 = vmatprep.subr.bf16.mxu1 %v5824_v40  ;;  %4827 = vmatprep.subr.bf16.mxu0 %v5826_v41  ;;  %v1472_v40 = vsel %vm1456_vm6, %v1366_v19, %v1464_v47  ;;  %v1786_v47 = vld [vmem:[%s6782_s21 + $0x960] sm:$0xff] }
 0x2b2   : > { %4664 = vmatpush1.bf16.msra.mxu1 %v5823_v51  ;;  %4828 = vmatpush1.bf16.msra.mxu0 %v5825_v55  ;;  %v1751_v51 = vld [vmem:[%s6782_s21 + $0x848] sm:$0xff] }
 0x2b3   : > { %4665 = vmatprep.subr.bf16.mxu1 %v5832_v56  ;;  %4829 = vmatprep.subr.bf16.mxu0 %v5834_v57  ;;  %v1755_v55 = vld [vmem:[%s6782_s21 + $0x868] sm:$0xff]  ;;  %v5863_v56 = vcombine.low %v1742_v30, %v1746_v46  ;;  %v7004_v57 = vpack.c.bf16 %v1472_v40, %v1472_v40  ;;  %v1782_v46 = vld [vmem:[%s6782_s21 + $0x940] sm:$0xff] }
 0x2b4   : > { %v5874_v62 = vcombine.high %v1751_v51, %v1755_v55  ;;  %v5873_v4 = vcombine.low %v1751_v51, %v1755_v55  ;;  %v1803_v51 = vld [vmem:[%s6782_s21 + $0x9e8] sm:$0xff] }
 0x2b6   : > { %4666 = vmatpush1.bf16.msra.mxu1 %v5831_v63  ;;  %4830 = vmatpush1.bf16.msra.mxu0 %v5833_v0  ;;  %v1758_v63 = vld [vmem:[%s6782_s21 + $0x880] sm:$0xff] }
 0x2b7   : > { %4667 = vmatprep.subr.bf16.mxu1 %v5840_v1  ;;  %4831 = vmatprep.subr.bf16.mxu0 %v5842_v2  ;;  %v1762_v0 = vld [vmem:[%s6782_s21 + $0x8a0] sm:$0xff]  ;;  %v1759_v1 = vld [vmem:[%s6782_s21 + $0x888] sm:$0xff] }
 0x2b8   : > { %v1763_v2 = vld [vmem:[%s6782_s21 + $0x8a8] sm:$0xff]  ;;  %v5880_v5 = vcombine.high %v1758_v63, %v1762_v0 }
 0x2b9   : > { %v5882_v6 = vcombine.high %v1759_v1, %v1763_v2  ;;  %v5881_v14 = vcombine.low %v1759_v1, %v1763_v2  ;;  %v1811_v1 = vld [vmem:[%s6782_s21 + $0xa28] sm:$0xff] }
 0x2ba   : > { %4668 = vmatpush1.bf16.msra.mxu1 %v5839_v9  ;;  %4832 = vmatpush1.bf16.msra.mxu0 %v5841_v10  ;;  %v1770_v9 = vld [vmem:[%s6782_s21 + $0x8e0] sm:$0xff]  ;;  %v1767_v10 = vld [vmem:[%s6782_s21 + $0x8c8] sm:$0xff] }
 0x2bb   : > { %v6990_v27 = vpop.f32.mrb[4].mxu1  ;;  %v6992_v28 = vpop.f32.mrb[8].mxu0  ;;  %4669 = vmatprep.subr.bf16.mxu1 %v5848_v11  ;;  %4833 = vmatprep.subr.bf16.mxu0 %v5850_v12  ;;  %v1771_v11 = vld [vmem:[%s6782_s21 + $0x8e8] sm:$0xff]  ;;  %v5879_v12 = vcombine.low %v1758_v63, %v1762_v0  ;;  %v5888_v19 = vcombine.high %v1766_v7, %v1770_v9  ;;  %v1810_v63 = vld [vmem:[%s6782_s21 + $0xa20] sm:$0xff] }
 0x2bc   : > { %v1408_v49 = vpop.f32.mrb[5].mxu1  ;;  %v6996_v48 = vpop.f32.mrb[9].mxu0  ;;  %v5890_v20 = vcombine.high %v1767_v10, %v1771_v11  ;;  %v1807_v0 = vld [vmem:[%s6782_s21 + $0xa08] sm:$0xff] }
 0x2bd   : > { %v1409_v31 = vadd.f32 %v1408_v49, %v633_v23  ;;  %v1410_v32 = vpop.f32.mrb[6].mxu1  ;;  %v1451_v33 = vpop.f32.mrb[10].mxu0  ;;  %v1775_v23 = vld [vmem:[%s6782_s21 + $0x908] sm:$0xff] }
 0x2be   : > { %4670 = vmatpush1.bf16.msra.mxu1 %v5847_v24  ;;  %4834 = vmatpush1.bf16.msra.mxu0 %v5849_v26  ;;  %v1411_v41 = vpop.f32.mrb[7].mxu1  ;;  %v1452_v42 = vpop.f32.mrb[11].mxu0  ;;  %v1779_v24 = vld [vmem:[%s6782_s21 + $0x928] sm:$0xff]  ;;  %v5887_v26 = vcombine.low %v1766_v7, %v1770_v9  ;;  %v5904_v32 = vcombine.high %v1782_v46, %v1786_v47  ;;  %v1818_v7 = vld [vmem:[%s6782_s21 + $0xa60] sm:$0xff] }
 0x2bf   : > { %vm1459_vm7 = vcmp.ge.f32.partialorder %v1409_v31, 0.0  ;;  %v1467_v37 = vmul.f32 0.01, %v1409_v31  ;;  %4671 = vmatprep.subr.bf16.mxu1 %v5856_v59  ;;  %4835 = vmatprep.subr.bf16.mxu0 %v5858_v29  ;;  %v5889_v59 = vcombine.low %v1767_v10, %v1771_v11  ;;  %v5896_v29 = vcombine.high %v1774_v21, %v1778_v22  ;;  %v1783_v49 = vld [vmem:[%s6782_s21 + $0x948] sm:$0xff]  ;;  %v1826_v21 = vld [vmem:[%s6782_s21 + $0xaa0] sm:$0xff] }
 0x2c0   : > { %v5898_v30 = vcombine.high %v1775_v23, %v1779_v24  ;;  %v5906_v33 = vcombine.high %v1783_v49, %v1787_v50  ;;  %v5905_v40 = vcombine.low %v1783_v49, %v1787_v50  ;;  %v1815_v9 = vld [vmem:[%s6782_s21 + $0xa48] sm:$0xff] }
 0x2c1   : > { %v1475_v44 = vsel %vm1459_vm7, %v1409_v31, %v1467_v37  ;;  %v5897_v31 = vcombine.low %v1775_v23, %v1779_v24  ;;  %v1791_v37 = vld [vmem:[%s6782_s21 + $0x988] sm:$0xff] }
 0x2c2   : > { %4672 = vmatpush1.bf16.msra.mxu1 %v5855_v34  ;;  %4836 = vmatpush1.bf16.msra.mxu0 %v5857_v35  ;;  %v7006_v60 = vpack.c.bf16 %v1475_v44, %v1475_v44  ;;  %v1790_v34 = vld [vmem:[%s6782_s21 + $0x980] sm:$0xff]  ;;  %v1819_v10 = vld [vmem:[%s6782_s21 + $0xa68] sm:$0xff] }
 0x2c3   : > { %4682 = vmatprep.subr.bf16.mxu1 %v5864_v38  ;;  %4846 = vmatprep.subr.bf16.mxu0 %v5866_v39  ;;  %v1794_v35 = vld [vmem:[%s6782_s21 + $0x9a0] sm:$0xff]  ;;  %v1795_v38 = vld [vmem:[%s6782_s21 + $0x9a8] sm:$0xff]  ;;  %v5903_v39 = vcombine.low %v1782_v46, %v1786_v47 }
 0x2c4   : > { %v5912_v41 = vcombine.high %v1790_v34, %v1794_v35  ;;  %v5914_v42 = vcombine.high %v1791_v37, %v1795_v38  ;;  %v1802_v44 = vld [vmem:[%s6782_s21 + $0x9e0] sm:$0xff]  ;;  %v5911_v55 = vcombine.low %v1790_v34, %v1794_v35  ;;  %v1823_v22 = vld [vmem:[%s6782_s21 + $0xa88] sm:$0xff] }
 0x2c5   : > { %4674 = vmatmul.mubr.bf16.vlgmr.msra.gmra.mrb[8].mxu1 %v7004_v57  ;;  %4838 = vmatmul.mubr.bf16.vlgmr.msra.gmra.mrb[12].mxu0 %v7004_v57  ;;  %v5919_v2 = vcombine.low %v1798_v43, %v1802_v44  ;;  %v1827_v23 = vld [vmem:[%s6782_s21 + $0xaa8] sm:$0xff]  ;;  %v1834_v46 = vld [vmem:[%s6782_s21 + $0xae0] sm:$0xff] }
 0x2c6   : > { %4683 = vmatpush1.bf16.msra.mxu1 %v5863_v56  ;;  %4714 = vmatprep.mubr.bf16.mxu1 %v7006_v60  ;;  %v5913_v56 = vcombine.low %v1791_v37, %v1795_v38  ;;  %v1831_v47 = vld [vmem:[%s6782_s21 + $0xac8] sm:$0xff]  ;;  %v1842_v34 = vld [vmem:[%s6782_s21 + $0xb20] sm:$0xff] }
 0x2c7   : > { %4847 = vmatpush1.bf16.msra.mxu0 %v5865_v58  ;;  %4878 = vmatprep.mubr.bf16.mxu0 %v7006_v60  ;;  %v5920_v58 = vcombine.high %v1798_v43, %v1802_v44  ;;  %v1835_v49 = vld [vmem:[%s6782_s21 + $0xae8] sm:$0xff]  ;;  %v1846_v43 = vld [vmem:[%s6782_s21 + $0xb40] sm:$0xff] }
 0x2c8   : > { %4684 = vmatprep.subr.bf16.mxu1 %v5872_v61  ;;  %4848 = vmatprep.subr.bf16.mxu0 %v5874_v62  ;;  %v5922_v61 = vcombine.high %v1799_v45, %v1803_v51  ;;  %v1806_v62 = vld [vmem:[%s6782_s21 + $0xa00] sm:$0xff]  ;;  %v1839_v35 = vld [vmem:[%s6782_s21 + $0xb08] sm:$0xff] }
 0x2c9   : > { %v5927_v11 = vcombine.low %v1806_v62, %v1810_v63  ;;  %v1843_v37 = vld [vmem:[%s6782_s21 + $0xb28] sm:$0xff]  ;;  %v1850_v44 = vld [vmem:[%s6782_s21 + $0xb60] sm:$0xff] }
 0x2ca   : > { %4685 = vmatpush1.bf16.msra.mxu1 %v5871_v3  ;;  %v5921_v3 = vcombine.low %v1799_v45, %v1803_v51  ;;  %v1847_v45 = vld [vmem:[%s6782_s21 + $0xb48] sm:$0xff] }
 0x2cb   : > { %4849 = vmatpush1.bf16.msra.mxu0 %v5873_v4  ;;  %4686 = vmatprep.subr.bf16.mxu1 %v5880_v5  ;;  %v5928_v4 = vcombine.high %v1806_v62, %v1810_v63  ;;  %v5930_v5 = vcombine.high %v1807_v0, %v1811_v1  ;;  %v1851_v51 = vld [vmem:[%s6782_s21 + $0xb68] sm:$0xff] }
 0x2cc   : > { %4850 = vmatprep.subr.bf16.mxu0 %v5882_v6  ;;  %v1814_v6 = vld [vmem:[%s6782_s21 + $0xa40] sm:$0xff]  ;;  %v5970_v63 = vcombine.high %v1847_v45, %v1851_v51 }
 0x2cd   : > { %v5935_v24 = vcombine.low %v1814_v6, %v1818_v7 }
 0x2ce   : > { %4687 = vmatpush1.bf16.msra.mxu1 %v5879_v12  ;;  %v5929_v12 = vcombine.low %v1807_v0, %v1811_v1  ;;  %v1854_v0 = vld [vmem:[%s6782_s21 + $0xb80] sm:$0xff] }
 0x2cf   : > { %4851 = vmatpush1.bf16.msra.mxu0 %v5881_v14  ;;  %4688 = vmatprep.subr.bf16.mxu1 %v5888_v19  ;;  %v5936_v14 = vcombine.high %v1814_v6, %v1818_v7  ;;  %v5938_v19 = vcombine.high %v1815_v9, %v1819_v10  ;;  %v1858_v1 = vld [vmem:[%s6782_s21 + $0xba0] sm:$0xff]  ;;  %v5969_v6 = vcombine.low %v1847_v45, %v1851_v51  ;;  %v1887_v45 = vld [vmem:[%s6782_s21 + $0xc88] sm:$0xff] }
 0x2d0   : > { %4852 = vmatprep.subr.bf16.mxu0 %v5890_v20  ;;  %v1822_v20 = vld [vmem:[%s6782_s21 + $0xa80] sm:$0xff]  ;;  %v5976_v7 = vcombine.high %v1854_v0, %v1858_v1  ;;  %v1891_v51 = vld [vmem:[%s6782_s21 + $0xca8] sm:$0xff] }
 0x2d1   : > { %v5943_v50 = vcombine.low %v1822_v20, %v1826_v21 }
 0x2d2   : > { %4689 = vmatpush1.bf16.msra.mxu1 %v5887_v26  ;;  %v5937_v26 = vcombine.low %v1815_v9, %v1819_v10 }
 0x2d3   : > { %4853 = vmatpush1.bf16.msra.mxu0 %v5889_v59  ;;  %4690 = vmatprep.subr.bf16.mxu1 %v5896_v29  ;;  %v5944_v59 = vcombine.high %v1822_v20, %v1826_v21  ;;  %v5946_v29 = vcombine.high %v1823_v22, %v1827_v23  ;;  %v5975_v20 = vcombine.low %v1854_v0, %v1858_v1  ;;  %v1898_v0 = vld [vmem:[%s6782_s21 + $0xce0] sm:$0xff]  ;;  %v1895_v1 = vld [vmem:[%s6782_s21 + $0xcc8] sm:$0xff] }
 0x2d4   : > { %4854 = vmatprep.subr.bf16.mxu0 %v5898_v30  ;;  %v1830_v30 = vld [vmem:[%s6782_s21 + $0xac0] sm:$0xff] }
 0x2d5   : > { %v5951_v38 = vcombine.low %v1830_v30, %v1834_v46 }
 0x2d6   : > { %4691 = vmatpush1.bf16.msra.mxu1 %v5895_v53  ;;  %v5945_v53 = vcombine.low %v1823_v22, %v1827_v23 }
 0x2d7   : > { %4855 = vmatpush1.bf16.msra.mxu0 %v5897_v31  ;;  %4692 = vmatprep.subr.bf16.mxu1 %v5904_v32  ;;  %v5952_v31 = vcombine.high %v1830_v30, %v1834_v46  ;;  %v5954_v32 = vcombine.high %v1831_v47, %v1835_v49 }
 0x2d8   : > { %4856 = vmatprep.subr.bf16.mxu0 %v5906_v33  ;;  %v1838_v33 = vld [vmem:[%s6782_s21 + $0xb00] sm:$0xff] }
 0x2da   : > { %4693 = vmatpush1.bf16.msra.mxu1 %v5903_v39  ;;  %v5953_v39 = vcombine.low %v1831_v47, %v1835_v49 }
 0x2db   : > { %4857 = vmatpush1.bf16.msra.mxu0 %v5905_v40  ;;  %4694 = vmatprep.subr.bf16.mxu1 %v5912_v41  ;;  %v5960_v40 = vcombine.high %v1838_v33, %v1842_v34  ;;  %v628_v41 = vsub.s32 4, %v6791_v15 }
 0x2dc   : > { %4858 = vmatprep.subr.bf16.mxu0 %v5914_v42  ;;  %v5962_v42 = vcombine.high %v1839_v35, %v1843_v37 }
 0x2dd   : > { %v629_v62 = vrot.slane %v6891_v52, %v628_v41 }
 0x2de   : > { %4695 = vmatpush1.bf16.msra.mxu1 %v5911_v55  ;;  %v640_v55 = vsub.s32 7, %v6791_v15 }
 0x2df   : > { %4859 = vmatpush1.bf16.msra.mxu0 %v5913_v56  ;;  %4696 = vmatprep.subr.bf16.mxu1 %v5920_v58  ;;  %v5959_v56 = vcombine.low %v1838_v33, %v1842_v34  ;;  %v5961_v58 = vcombine.low %v1839_v35, %v1843_v37  ;;  %v1407_v9 = vadd.f32 %v6990_v27, %v629_v62  ;;  %v1879_v34 = vld [vmem:[%s6782_s21 + $0xc48] sm:$0xff] }
 0x2e0   : > { %4860 = vmatprep.subr.bf16.mxu0 %v5922_v61  ;;  %v5968_v61 = vcombine.high %v1846_v43, %v1850_v44  ;;  %v1883_v35 = vld [vmem:[%s6782_s21 + $0xc68] sm:$0xff]  ;;  %v6010_v62 = vcombine.high %v1887_v45, %v1891_v51 }
 0x2e1   : > { %v1466_v23 = vmul.f32 0.01, %v1407_v9  ;;  %vm1458_vm8 = vcmp.ge.f32.partialorder %v1407_v9, 0.0 }
 0x2e2   : > { %4697 = vmatpush1.bf16.msra.mxu1 %v5919_v2  ;;  %v1855_v2 = vld [vmem:[%s6782_s21 + $0xb88] sm:$0xff] }
 0x2e3   : > { %4861 = vmatpush1.bf16.msra.mxu0 %v5921_v3  ;;  %4698 = vmatprep.subr.bf16.mxu1 %v5928_v4  ;;  %v1859_v3 = vld [vmem:[%s6782_s21 + $0xba8] sm:$0xff]  ;;  %v641_v4 = vrot.slane %v6891_v52, %v640_v55  ;;  %v1474_v49 = vsel %vm1458_vm8, %v1407_v9, %v1466_v23  ;;  %v1906_v9 = vld [vmem:[%s6782_s21 + $0xd20] sm:$0xff] }
 0x2e4   : > { %4862 = vmatprep.subr.bf16.mxu0 %v5930_v5  ;;  %v5967_v5 = vcombine.low %v1846_v43, %v1850_v44  ;;  %v5978_v10 = vcombine.high %v1855_v2, %v1859_v3  ;;  %v5977_v21 = vcombine.low %v1855_v2, %v1859_v3  ;;  %v7086_v37 = vpack.c.bf16 %v1474_v49, %v1474_v49  ;;  %v1899_v2 = vld [vmem:[%s6782_s21 + $0xce8] sm:$0xff] }
 0x2e5   : > { %v1450_v52 = vadd.f32 %v6996_v48, %v641_v4  ;;  %v6002_v44 = vcombine.high %v1879_v34, %v1883_v35  ;;  %v6009_v4 = vcombine.low %v1887_v45, %v1891_v51  ;;  %v1915_v23 = vld [vmem:[%s6782_s21 + $0xd68] sm:$0xff] }
 0x2e6   : > { %4699 = vmatpush1.bf16.msra.mxu1 %v5927_v11  ;;  %v1862_v11 = vld [vmem:[%s6782_s21 + $0xbc0] sm:$0xff]  ;;  %v1935_v45 = vld [vmem:[%s6782_s21 + $0xe08] sm:$0xff] }
 0x2e7   : > { %4863 = vmatpush1.bf16.msra.mxu0 %v5929_v12  ;;  %4700 = vmatprep.subr.bf16.mxu1 %v5936_v14  ;;  %v1866_v12 = vld [vmem:[%s6782_s21 + $0xbe0] sm:$0xff]  ;;  %v1863_v14 = vld [vmem:[%s6782_s21 + $0xbc8] sm:$0xff]  ;;  %v1469_v30 = vmul.f32 0.01, %v1450_v52  ;;  %vm1461_vm9 = vcmp.ge.f32.partialorder %v1450_v52, 0.0 }
 0x2e8   : > { %4864 = vmatprep.subr.bf16.mxu0 %v5938_v19  ;;  %v1867_v19 = vld [vmem:[%s6782_s21 + $0xbe8] sm:$0xff]  ;;  %v5984_v22 = vcombine.high %v1862_v11, %v1866_v12  ;;  %v5983_v48 = vcombine.low %v1862_v11, %v1866_v12 }
 0x2e9   : > { %v5986_v27 = vcombine.high %v1863_v14, %v1867_v19  ;;  %v5985_v46 = vcombine.low %v1863_v14, %v1867_v19  ;;  %v1907_v11 = vld [vmem:[%s6782_s21 + $0xd28] sm:$0xff]  ;;  %v6017_v14 = vcombine.low %v1895_v1, %v1899_v2 }
 0x2ea   : > { %4701 = vmatpush1.bf16.msra.mxu1 %v5935_v24  ;;  %v1870_v24 = vld [vmem:[%s6782_s21 + $0xc00] sm:$0xff]  ;;  %v1939_v51 = vld [vmem:[%s6782_s21 + $0xe28] sm:$0xff] }
 0x2eb   : > { %4865 = vmatpush1.bf16.msra.mxu0 %v5937_v26  ;;  %4702 = vmatprep.subr.bf16.mxu1 %v5944_v59  ;;  %v1874_v26 = vld [vmem:[%s6782_s21 + $0xc20] sm:$0xff]  ;;  %v1871_v59 = vld [vmem:[%s6782_s21 + $0xc08] sm:$0xff] }
 0x2ec   : > { %4866 = vmatprep.subr.bf16.mxu0 %v5946_v29  ;;  %v1875_v29 = vld [vmem:[%s6782_s21 + $0xc28] sm:$0xff]  ;;  %v5992_v47 = vcombine.high %v1870_v24, %v1874_v26  ;;  %v5991_v33 = vcombine.low %v1870_v24, %v1874_v26 }
 0x2ee   : > { %4703 = vmatpush1.bf16.msra.mxu1 %v5943_v50  ;;  %v5994_v50 = vcombine.high %v1871_v59, %v1875_v29 }
 0x2ef   : > { %4867 = vmatpush1.bf16.msra.mxu0 %v5945_v53  ;;  %4704 = vmatprep.subr.bf16.mxu1 %v5952_v31  ;;  %v1878_v53 = vld [vmem:[%s6782_s21 + $0xc40] sm:$0xff] }
 0x2f0   : > { %4868 = vmatprep.subr.bf16.mxu0 %v5954_v32  ;;  %v1882_v31 = vld [vmem:[%s6782_s21 + $0xc60] sm:$0xff]  ;;  %v1477_v32 = vsel %vm1461_vm9, %v1450_v52, %v1469_v30 }
 0x2f1   : > { %v7090_v43 = vpack.c.bf16 %v1477_v32, %v1477_v32  ;;  %v1922_v30 = vld [vmem:[%s6782_s21 + $0xda0] sm:$0xff] }
 0x2f2   : > { %4705 = vmatpush1.bf16.msra.mxu1 %v5951_v38  ;;  %v5993_v38 = vcombine.low %v1871_v59, %v1875_v29  ;;  %v1918_v29 = vld [vmem:[%s6782_s21 + $0xd80] sm:$0xff] }
 0x2f3   : > { %4869 = vmatpush1.bf16.msra.mxu0 %v5953_v39  ;;  %4706 = vmatprep.subr.bf16.mxu1 %v5960_v40  ;;  %v6000_v39 = vcombine.high %v1878_v53, %v1882_v31  ;;  %v1886_v40 = vld [vmem:[%s6782_s21 + $0xc80] sm:$0xff] }
 0x2f4   : > { %4870 = vmatprep.subr.bf16.mxu0 %v5962_v42  ;;  %v1890_v42 = vld [vmem:[%s6782_s21 + $0xca0] sm:$0xff] }
 0x2f5   : > { %v6007_v3 = vcombine.low %v1886_v40, %v1890_v42  ;;  %v1930_v32 = vld [vmem:[%s6782_s21 + $0xde0] sm:$0xff] }
 0x2f6   : > { %4707 = vmatpush1.bf16.msra.mxu1 %v5959_v56  ;;  %v5999_v56 = vcombine.low %v1878_v53, %v1882_v31  ;;  %v1926_v31 = vld [vmem:[%s6782_s21 + $0xdc0] sm:$0xff] }
 0x2f7   : > { %4871 = vmatpush1.bf16.msra.mxu0 %v5961_v58  ;;  %4708 = vmatprep.subr.bf16.mxu1 %v5968_v61  ;;  %v6001_v58 = vcombine.low %v1879_v34, %v1883_v35  ;;  %v6008_v61 = vcombine.high %v1886_v40, %v1890_v42  ;;  %v1931_v34 = vld [vmem:[%s6782_s21 + $0xde8] sm:$0xff]  ;;  %v6039_v35 = vcombine.low %v1918_v29, %v1922_v30  ;;  %v1934_v42 = vld [vmem:[%s6782_s21 + $0xe00] sm:$0xff] }
 0x2f8   : > { %4872 = vmatprep.subr.bf16.mxu0 %v5970_v63  ;;  %v1894_v63 = vld [vmem:[%s6782_s21 + $0xcc0] sm:$0xff] }
 0x2f9   : > { %v6015_v12 = vcombine.low %v1894_v63, %v1898_v0 }
 0x2fa   : > { %4709 = vmatpush1.bf16.msra.mxu1 %v5967_v5  ;;  %v6016_v5 = vcombine.high %v1894_v63, %v1898_v0  ;;  %v1942_v63 = vld [vmem:[%s6782_s21 + $0xe40] sm:$0xff] }
 0x2fb   : > { %4873 = vmatpush1.bf16.msra.mxu0 %v5969_v6  ;;  %4710 = vmatprep.subr.bf16.mxu1 %v5976_v7  ;;  %v6018_v6 = vcombine.high %v1895_v1, %v1899_v2  ;;  %v1902_v7 = vld [vmem:[%s6782_s21 + $0xd00] sm:$0xff]  ;;  %v1943_v1 = vld [vmem:[%s6782_s21 + $0xe48] sm:$0xff] }
 0x2fc   : > { %4874 = vmatprep.subr.bf16.mxu0 %v5978_v10  ;;  %v1903_v10 = vld [vmem:[%s6782_s21 + $0xd08] sm:$0xff]  ;;  %v6024_v19 = vcombine.high %v1902_v7, %v1906_v9  ;;  %v1946_v0 = vld [vmem:[%s6782_s21 + $0xe60] sm:$0xff] }
 0x2fd   : > { %v6026_v52 = vcombine.high %v1903_v10, %v1907_v11  ;;  %v6025_v24 = vcombine.low %v1903_v10, %v1907_v11  ;;  %v1947_v2 = vld [vmem:[%s6782_s21 + $0xe68] sm:$0xff] }
 0x2fe   : > { %4711 = vmatpush1.bf16.msra.mxu1 %v5975_v20  ;;  %v1910_v20 = vld [vmem:[%s6782_s21 + $0xd40] sm:$0xff]  ;;  %v1951_v10 = vld [vmem:[%s6782_s21 + $0xe88] sm:$0xff] }
 0x2ff   : > { %4875 = vmatpush1.bf16.msra.mxu0 %v5977_v21  ;;  %4712 = vmatprep.subr.bf16.mxu1 %v5984_v22  ;;  %v1914_v21 = vld [vmem:[%s6782_s21 + $0xd60] sm:$0xff]  ;;  %v1911_v22 = vld [vmem:[%s6782_s21 + $0xd48] sm:$0xff] }
 0x300   : > { %4876 = vmatprep.subr.bf16.mxu0 %v5986_v27  ;;  %v6023_v27 = vcombine.low %v1902_v7, %v1906_v9  ;;  %v6032_v26 = vcombine.high %v1910_v20, %v1914_v21  ;;  %v6034_v59 = vcombine.high %v1911_v22, %v1915_v23  ;;  %v6033_v49 = vcombine.low %v1911_v22, %v1915_v23  ;;  %v1950_v7 = vld [vmem:[%s6782_s21 + $0xe80] sm:$0xff]  ;;  %v1955_v11 = vld [vmem:[%s6782_s21 + $0xea8] sm:$0xff] }
 0x301   : > { %v1954_v9 = vld [vmem:[%s6782_s21 + $0xea0] sm:$0xff]  ;;  %v1959_v22 = vld [vmem:[%s6782_s21 + $0xec8] sm:$0xff] }
 0x302   : > { %4713 = vmatpush1.bf16.msra.mxu1 %v5983_v48  ;;  %v1919_v48 = vld [vmem:[%s6782_s21 + $0xd88] sm:$0xff] }
 0x303   : > { %4877 = vmatpush1.bf16.msra.mxu0 %v5985_v46  ;;  %4723 = vmatprep.subr.bf16.mxu1 %v5992_v47  ;;  %v1923_v46 = vld [vmem:[%s6782_s21 + $0xda8] sm:$0xff]  ;;  %v6031_v47 = vcombine.low %v1910_v20, %v1914_v21  ;;  %v1958_v20 = vld [vmem:[%s6782_s21 + $0xec0] sm:$0xff] }
 0x304   : > { %4887 = vmatprep.subr.bf16.mxu0 %v5994_v50  ;;  %v6040_v50 = vcombine.high %v1918_v29, %v1922_v30  ;;  %v6042_v53 = vcombine.high %v1919_v48, %v1923_v46  ;;  %v1962_v21 = vld [vmem:[%s6782_s21 + $0xee0] sm:$0xff]  ;;  %v1963_v23 = vld [vmem:[%s6782_s21 + $0xee8] sm:$0xff] }
 0x305   : > { %4715 = vmatmul.mubr.bf16.vlgmr.msra.gmra.mrb[8].mxu1 %v7086_v37  ;;  %v1966_v29 = vld [vmem:[%s6782_s21 + $0xf00] sm:$0xff] }
 0x306   : > { %4879 = vmatmul.mubr.bf16.vlgmr.msra.gmra.mrb[12].mxu0 %v7086_v37  ;;  %4724 = vmatpush1.bf16.msra.mxu1 %v5991_v33  ;;  %v1927_v33 = vld [vmem:[%s6782_s21 + $0xdc8] sm:$0xff]  ;;  %v1970_v30 = vld [vmem:[%s6782_s21 + $0xf20] sm:$0xff] }
 0x307   : > { %4755 = vmatprep.mubr.bf16.mxu1 %v7090_v43  ;;  %4888 = vmatpush1.bf16.msra.mxu0 %v5993_v38  ;;  %v6041_v38 = vcombine.low %v1919_v48, %v1923_v46  ;;  %v6050_v40 = vcombine.high %v1927_v33, %v1931_v34  ;;  %v1967_v48 = vld [vmem:[%s6782_s21 + $0xf08] sm:$0xff] }
 0x308   : > { %4919 = vmatprep.mubr.bf16.mxu0 %v7090_v43  ;;  %4725 = vmatprep.subr.bf16.mxu1 %v6000_v39  ;;  %v6048_v39 = vcombine.high %v1926_v31, %v1930_v32  ;;  %v1971_v46 = vld [vmem:[%s6782_s21 + $0xf28] sm:$0xff] }
 0x309   : > { %4889 = vmatprep.subr.bf16.mxu0 %v6002_v44  ;;  %v1938_v44 = vld [vmem:[%s6782_s21 + $0xe20] sm:$0xff] }
 0x30a   : > { %4726 = vmatpush1.bf16.msra.mxu1 %v5999_v56  ;;  %v6047_v56 = vcombine.low %v1926_v31, %v1930_v32  ;;  %v6090_v31 = vcombine.high %v1967_v48, %v1971_v46  ;;  %v1974_v32 = vld [vmem:[%s6782_s21 + $0xf40] sm:$0xff] }
 0x30b   : > { %4890 = vmatpush1.bf16.msra.mxu0 %v6001_v58  ;;  %4727 = vmatprep.subr.bf16.mxu1 %v6008_v61  ;;  %v6049_v58 = vcombine.low %v1927_v33, %v1931_v34  ;;  %v6056_v61 = vcombine.high %v1934_v42, %v1938_v44  ;;  %v1978_v33 = vld [vmem:[%s6782_s21 + $0xf60] sm:$0xff]  ;;  %v1975_v34 = vld [vmem:[%s6782_s21 + $0xf48] sm:$0xff] }
 0x30c   : > { %4891 = vmatprep.subr.bf16.mxu0 %v6010_v62  ;;  %v6058_v62 = vcombine.high %v1935_v45, %v1939_v51 }
 0x30e   : > { %4728 = vmatpush1.bf16.msra.mxu1 %v6007_v3  ;;  %v6055_v3 = vcombine.low %v1934_v42, %v1938_v44  ;;  %v6277_v42 = vld [vmem:[#allocation7] sm:$0xff] }
 0x30f   : > { %4892 = vmatpush1.bf16.msra.mxu0 %v6009_v4  ;;  %4729 = vmatprep.subr.bf16.mxu1 %v6016_v5  ;;  %v6057_v4 = vcombine.low %v1935_v45, %v1939_v51  ;;  %v6064_v5 = vcombine.high %v1942_v63, %v1946_v0  ;;  %v1982_v51 = vld [vmem:[%s6782_s21 + $0xf80] sm:$0xff] }
 0x310   : > { %4893 = vmatprep.subr.bf16.mxu0 %v6018_v6  ;;  %v6066_v6 = vcombine.high %v1943_v1, %v1947_v2 }
 0x312   : > { %4730 = vmatpush1.bf16.msra.mxu1 %v6015_v12  ;;  %v6063_v12 = vcombine.low %v1942_v63, %v1946_v0 }
 0x313   : > { %4894 = vmatpush1.bf16.msra.mxu0 %v6017_v14  ;;  %4731 = vmatprep.subr.bf16.mxu1 %v6024_v19  ;;  %v6065_v14 = vcombine.low %v1943_v1, %v1947_v2  ;;  %v6072_v19 = vcombine.high %v1950_v7, %v1954_v9 }
 0x314   : > { %4895 = vmatprep.subr.bf16.mxu0 %v6026_v52  ;;  %v6074_v52 = vcombine.high %v1951_v10, %v1955_v11 }
 0x316   : > { %4732 = vmatpush1.bf16.msra.mxu1 %v6023_v27  ;;  %v6071_v27 = vcombine.low %v1950_v7, %v1954_v9 }
 0x317   : > { %4896 = vmatpush1.bf16.msra.mxu0 %v6025_v24  ;;  %4733 = vmatprep.subr.bf16.mxu1 %v6032_v26  ;;  %v6073_v24 = vcombine.low %v1951_v10, %v1955_v11  ;;  %v6080_v26 = vcombine.high %v1958_v20, %v1962_v21 }
 0x318   : > { %4897 = vmatprep.subr.bf16.mxu0 %v6034_v59  ;;  %v6082_v59 = vcombine.high %v1959_v22, %v1963_v23 }
 0x31a   : > { %4734 = vmatpush1.bf16.msra.mxu1 %v6031_v47  ;;  %v6079_v47 = vcombine.low %v1958_v20, %v1962_v21 }
 0x31b   : > { %4898 = vmatpush1.bf16.msra.mxu0 %v6033_v49  ;;  %4735 = vmatprep.subr.bf16.mxu1 %v6040_v50  ;;  %v6081_v49 = vcombine.low %v1959_v22, %v1963_v23  ;;  %v6088_v50 = vcombine.high %v1966_v29, %v1970_v30 }
 0x31c   : > { %4899 = vmatprep.subr.bf16.mxu0 %v6042_v53  ;;  %v636_v53 = vsub.s32 6, %v6791_v15 }
 0x31e   : > { %4736 = vmatpush1.bf16.msra.mxu1 %v6039_v35  ;;  %v1979_v35 = vld [vmem:[%s6782_s21 + $0xf68] sm:$0xff]  ;;  %v637_v44 = vrot.slane %v6277_v42, %v636_v53  ;;  %v1516_v42 = vld [vmem:[%s6782_s21 + $0xf0] sm:$0xff] }
 0x31f   : > { %4900 = vmatpush1.bf16.msra.mxu0 %v6041_v38  ;;  %4737 = vmatprep.subr.bf16.mxu1 %v6048_v39  ;;  %v6087_v38 = vcombine.low %v1966_v29, %v1970_v30  ;;  %v6089_v39 = vcombine.low %v1967_v48, %v1971_v46  ;;  %v6098_v45 = vcombine.high %v1975_v34, %v1979_v35  ;;  %v1497_v29 = vld [vmem:[%s6782_s21 + $0x58] sm:$0xff] }
 0x320   : > { %4901 = vmatprep.subr.bf16.mxu0 %v6050_v40  ;;  %v6096_v40 = vcombine.high %v1974_v32, %v1978_v33  ;;  %v6097_v63 = vcombine.low %v1975_v34, %v1979_v35  ;;  %v1448_v1 = vadd.f32 %v6992_v28, %v637_v44  ;;  %v1501_v30 = vld [vmem:[%s6782_s21 + $0x78] sm:$0xff] }
 0x321   : > { %v5621_v35 = vcombine.low %v1497_v29, %v1501_v30  ;;  %v1513_v44 = vld [vmem:[%s6782_s21 + $0xd8] sm:$0xff] }
 0x322   : > { %4738 = vmatpush1.bf16.msra.mxu1 %v6047_v56  ;;  %v1986_v56 = vld [vmem:[%s6782_s21 + $0xfa0] sm:$0xff]  ;;  %v1468_v11 = vmul.f32 0.01, %v1448_v1  ;;  %vm1460_vm10 = vcmp.ge.f32.partialorder %v1448_v1, 0.0 }
 0x323   : > { %4902 = vmatpush1.bf16.msra.mxu0 %v6049_v58  ;;  %4739 = vmatprep.subr.bf16.mxu1 %v6056_v61  ;;  %v1983_v58 = vld [vmem:[%s6782_s21 + $0xf88] sm:$0xff]  ;;  %v6104_v0 = vcombine.high %v1982_v51, %v1986_v56  ;;  %v6103_v7 = vcombine.low %v1982_v51, %v1986_v56 }
 0x324   : > { %4903 = vmatprep.subr.bf16.mxu0 %v6058_v62  ;;  %v1987_v61 = vld [vmem:[%s6782_s21 + $0xfa8] sm:$0xff]  ;;  %v6095_v62 = vcombine.low %v1974_v32, %v1978_v33  ;;  %v1476_v23 = vsel %vm1460_vm10, %v1448_v1, %v1468_v11  ;;  %v1505_v32 = vld [vmem:[%s6782_s21 + $0x98] sm:$0xff] }
 0x325   : > { %v6106_v2 = vcombine.high %v1983_v58, %v1987_v61  ;;  %v6105_v9 = vcombine.low %v1983_v58, %v1987_v61  ;;  %v7162_v48 = vpack.c.bf16 %v1476_v23, %v1476_v23  ;;  %v1509_v33 = vld [vmem:[%s6782_s21 + $0xb8] sm:$0xff]  ;;  %v1520_v61 = vld [vmem:[%s6782_s21 + $0x110] sm:$0xff] }
 0x326   : > { %4740 = vmatpush1.bf16.msra.mxu1 %v6055_v3  ;;  %v1990_v3 = vld [vmem:[%s6782_s21 + $0xfc0] sm:$0xff]  ;;  %v5629_v56 = vcombine.low %v1505_v32, %v1509_v33 }
 0x327   : > { %4904 = vmatpush1.bf16.msra.mxu0 %v6057_v4  ;;  %4741 = vmatprep.subr.bf16.mxu1 %v6064_v5  ;;  %v1994_v4 = vld [vmem:[%s6782_s21 + $0xfe0] sm:$0xff]  ;;  %v1991_v5 = vld [vmem:[%s6782_s21 + $0xfc8] sm:$0xff] }
 0x328   : > { %4905 = vmatprep.subr.bf16.mxu0 %v6066_v6  ;;  %v1995_v6 = vld [vmem:[%s6782_s21 + $0xfe8] sm:$0xff]  ;;  %v6112_v10 = vcombine.high %v1990_v3, %v1994_v4  ;;  %v6111_v20 = vcombine.low %v1990_v3, %v1994_v4 }
 0x329   : > { %v6114_v28 = vcombine.high %v1991_v5, %v1995_v6  ;;  %v6113_v21 = vcombine.low %v1991_v5, %v1995_v6  ;;  %v1528_v5 = vld [vmem:[%s6782_s21 + $0x150] sm:$0xff] }
 0x32a   : > { %4742 = vmatpush1.bf16.msra.mxu1 %v6063_v12  ;;  %v1488_v12 = vld [vmem:[%s6782_s21 + $0x10] sm:$0xff] }
 0x32b   : > { %4906 = vmatpush1.bf16.msra.mxu0 %v6065_v14  ;;  %4743 = vmatprep.subr.bf16.mxu1 %v6072_v19  ;;  %v1492_v14 = vld [vmem:[%s6782_s21 + $0x30] sm:$0xff]  ;;  %v1489_v19 = vld [vmem:[%s6782_s21 + $0x18] sm:$0xff] }
 0x32c   : > { %4907 = vmatprep.subr.bf16.mxu0 %v6074_v52  ;;  %v1493_v52 = vld [vmem:[%s6782_s21 + $0x38] sm:$0xff]  ;;  %v5612_v22 = vcombine.high %v1488_v12, %v1492_v14  ;;  %v1532_v6 = vld [vmem:[%s6782_s21 + $0x170] sm:$0xff] }
 0x32d   : > { %v5613_v46 = vcombine.low %v1489_v19, %v1493_v52 }
 0x32e   : > { %4744 = vmatpush1.bf16.msra.mxu1 %v6071_v27  ;;  %v5614_v27 = vcombine.high %v1489_v19, %v1493_v52  ;;  %v1540_v19 = vld [vmem:[%s6782_s21 + $0x1b0] sm:$0xff]  ;;  %v1537_v52 = vld [vmem:[%s6782_s21 + $0x198] sm:$0xff] }
 0x32f   : > { %4908 = vmatpush1.bf16.msra.mxu0 %v6073_v24  ;;  %4745 = vmatprep.subr.bf16.mxu1 %v6080_v26  ;;  %v1496_v24 = vld [vmem:[%s6782_s21 + $0x50] sm:$0xff] }
 0x330   : > { %4909 = vmatprep.subr.bf16.mxu0 %v6082_v59  ;;  %v1500_v26 = vld [vmem:[%s6782_s21 + $0x70] sm:$0xff]  ;;  %v5611_v59 = vcombine.low %v1488_v12, %v1492_v14 }
 0x331   : > { %v5619_v34 = vcombine.low %v1496_v24, %v1500_v26  ;;  %v1536_v14 = vld [vmem:[%s6782_s21 + $0x190] sm:$0xff] }
 0x332   : > { %4746 = vmatpush1.bf16.msra.mxu1 %v6079_v47  ;;  %v5620_v47 = vcombine.high %v1496_v24, %v1500_v26  ;;  %v5660_v23 = vcombine.high %v1536_v14, %v1540_v19  ;;  %v1544_v24 = vld [vmem:[%s6782_s21 + $0x1d0] sm:$0xff] }
 0x333   : > { %4910 = vmatpush1.bf16.msra.mxu0 %v6081_v49  ;;  %4747 = vmatprep.subr.bf16.mxu1 %v6088_v50  ;;  %v1504_v49 = vld [vmem:[%s6782_s21 + $0x90] sm:$0xff] }
 0x334   : > { %4911 = vmatprep.subr.bf16.mxu0 %v6090_v31  ;;  %v1508_v50 = vld [vmem:[%s6782_s21 + $0xb0] sm:$0xff]  ;;  %v5622_v31 = vcombine.high %v1497_v29, %v1501_v30  ;;  %v1549_v29 = vld [vmem:[%s6782_s21 + $0x1f8] sm:$0xff]  ;;  %v5659_v30 = vcombine.low %v1536_v14, %v1540_v19 }
 0x335   : > { %v5627_v51 = vcombine.low %v1504_v49, %v1508_v50  ;;  %v1548_v26 = vld [vmem:[%s6782_s21 + $0x1f0] sm:$0xff] }
 0x336   : > { %4748 = vmatpush1.bf16.msra.mxu1 %v6087_v38  ;;  %v5628_v38 = vcombine.high %v1504_v49, %v1508_v50  ;;  %v1552_v50 = vld [vmem:[%s6782_s21 + $0x210] sm:$0xff] }
 0x337   : > { %4912 = vmatpush1.bf16.msra.mxu0 %v6089_v39  ;;  %4749 = vmatprep.subr.bf16.mxu1 %v6096_v40  ;;  %v5630_v39 = vcombine.high %v1505_v32, %v1509_v33  ;;  %v1512_v40 = vld [vmem:[%s6782_s21 + $0xd0] sm:$0xff]  ;;  %v1553_v32 = vld [vmem:[%s6782_s21 + $0x218] sm:$0xff] }
 0x338   : > { %4913 = vmatprep.subr.bf16.mxu0 %v6098_v45  ;;  %v1517_v45 = vld [vmem:[%s6782_s21 + $0xf8] sm:$0xff]  ;;  %v5636_v58 = vcombine.high %v1512_v40, %v1516_v42  ;;  %v5635_v1 = vcombine.low %v1512_v40, %v1516_v42  ;;  %v1560_v40 = vld [vmem:[%s6782_s21 + $0x250] sm:$0xff] }
 0x339   : > { %v1557_v33 = vld [vmem:[%s6782_s21 + $0x238] sm:$0xff]  ;;  %v1564_v42 = vld [vmem:[%s6782_s21 + $0x270] sm:$0xff] }
 0x33a   : > { %4750 = vmatpush1.bf16.msra.mxu1 %v6095_v62  ;;  %v1524_v62 = vld [vmem:[%s6782_s21 + $0x130] sm:$0xff] }
 0x33b   : > { %4914 = vmatpush1.bf16.msra.mxu0 %v6097_v63  ;;  %4751 = vmatprep.subr.bf16.mxu1 %v6104_v0  ;;  %v1521_v63 = vld [vmem:[%s6782_s21 + $0x118] sm:$0xff]  ;;  %v5644_v3 = vcombine.high %v1520_v61, %v1524_v62  ;;  %v1584_v14 = vld [vmem:[%s6782_s21 + $0x310] sm:$0xff] }
 0x33c   : > { %4915 = vmatprep.subr.bf16.mxu0 %v6106_v2  ;;  %v1525_v0 = vld [vmem:[%s6782_s21 + $0x138] sm:$0xff]  ;;  %v5637_v2 = vcombine.low %v1513_v44, %v1517_v45  ;;  %v1588_v19 = vld [vmem:[%s6782_s21 + $0x330] sm:$0xff] }
 0x33d   : > { %v5646_v4 = vcombine.high %v1521_v63, %v1525_v0  ;;  %v5645_v11 = vcombine.low %v1521_v63, %v1525_v0  ;;  %v1569_v63 = vld [vmem:[%s6782_s21 + $0x298] sm:$0xff] }
 0x33e   : > { %4752 = vmatpush1.bf16.msra.mxu1 %v6103_v7  ;;  %v1529_v7 = vld [vmem:[%s6782_s21 + $0x158] sm:$0xff] }
 0x33f   : > { %4916 = vmatpush1.bf16.msra.mxu0 %v6105_v9  ;;  %4753 = vmatprep.subr.bf16.mxu1 %v6112_v10  ;;  %v1533_v9 = vld [vmem:[%s6782_s21 + $0x178] sm:$0xff]  ;;  %v5643_v10 = vcombine.low %v1520_v61, %v1524_v62  ;;  %v1568_v61 = vld [vmem:[%s6782_s21 + $0x290] sm:$0xff] }
 0x340   : > { %4917 = vmatprep.subr.bf16.mxu0 %v6114_v28  ;;  %v5652_v28 = vcombine.high %v1528_v5, %v1532_v6  ;;  %v5654_v12 = vcombine.high %v1529_v7, %v1533_v9  ;;  %v1572_v62 = vld [vmem:[%s6782_s21 + $0x2b0] sm:$0xff]  ;;  %v1573_v0 = vld [vmem:[%s6782_s21 + $0x2b8] sm:$0xff] }
 0x342   : > { %4754 = vmatpush1.bf16.msra.mxu1 %v6111_v20  ;;  %v1541_v20 = vld [vmem:[%s6782_s21 + $0x1b8] sm:$0xff] }
 0x343   : > { %4918 = vmatpush1.bf16.msra.mxu0 %v6113_v21  ;;  %4928 = vmatprep.subr.bf16.mxu1 %v5612_v22  ;;  %v5651_v21 = vcombine.low %v1528_v5, %v1532_v6  ;;  %v5653_v22 = vcombine.low %v1529_v7, %v1533_v9  ;;  %v1576_v5 = vld [vmem:[%s6782_s21 + $0x2d0] sm:$0xff]  ;;  %v1577_v7 = vld [vmem:[%s6782_s21 + $0x2d8] sm:$0xff] }
 0x344   : > { %5092 = vmatprep.subr.bf16.mxu0 %v5614_v27  ;;  %v5662_v27 = vcombine.high %v1537_v52, %v1541_v20  ;;  %v1580_v6 = vld [vmem:[%s6782_s21 + $0x2f0] sm:$0xff]  ;;  %v1581_v9 = vld [vmem:[%s6782_s21 + $0x2f8] sm:$0xff] }
 0x345   : > { %4756 = vmatmul.mubr.bf16.vlgmr.msra.gmra.mrb[8].mxu1 %v7162_v48 }
 0x346   : > { %4920 = vmatmul.mubr.bf16.vlgmr.msra.gmra.mrb[12].mxu0 %v7162_v48  ;;  %4929 = vmatpush1.bf16.msra.mxu1 %v5611_v59  ;;  %v1545_v59 = vld [vmem:[%s6782_s21 + $0x1d8] sm:$0xff] }
 0x347   : > { %4960 = vmatprep.mubr.bf16.mxu1 %v6907_v13  ;;  %5093 = vmatpush1.bf16.msra.mxu0 %v5613_v46  ;;  %v5661_v46 = vcombine.low %v1537_v52, %v1541_v20  ;;  %v5670_v49 = vcombine.high %v1545_v59, %v1549_v29  ;;  %v1585_v52 = vld [vmem:[%s6782_s21 + $0x318] sm:$0xff] }
 0x348   : > { %5124 = vmatprep.mubr.bf16.mxu0 %v6907_v13  ;;  %4930 = vmatprep.subr.bf16.mxu1 %v5620_v47  ;;  %v5638_v13 = vcombine.high %v1513_v44, %v1517_v45  ;;  %v5668_v47 = vcombine.high %v1544_v24, %v1548_v26  ;;  %v1561_v44 = vld [vmem:[%s6782_s21 + $0x258] sm:$0xff] }
 0x349   : > { %5094 = vmatprep.subr.bf16.mxu0 %v5622_v31  ;;  %v1556_v31 = vld [vmem:[%s6782_s21 + $0x230] sm:$0xff]  ;;  %v1565_v45 = vld [vmem:[%s6782_s21 + $0x278] sm:$0xff] }
 0x34a   : > { %4931 = vmatpush1.bf16.msra.mxu1 %v5619_v34  ;;  %v5667_v34 = vcombine.low %v1544_v24, %v1548_v26  ;;  %v1589_v20 = vld [vmem:[%s6782_s21 + $0x338] sm:$0xff]  ;;  %v1592_v24 = vld [vmem:[%s6782_s21 + $0x350] sm:$0xff] }
 0x34b   : > { %5095 = vmatpush1.bf16.msra.mxu0 %v5621_v35  ;;  %4932 = vmatprep.subr.bf16.mxu1 %v5628_v38  ;;  %v5669_v35 = vcombine.low %v1545_v59, %v1549_v29  ;;  %v5676_v38 = vcombine.high %v1552_v50, %v1556_v31  ;;  %v1596_v26 = vld [vmem:[%s6782_s21 + $0x370] sm:$0xff]  ;;  %v1593_v59 = vld [vmem:[%s6782_s21 + $0x358] sm:$0xff] }
 0x34c   : > { %5096 = vmatprep.subr.bf16.mxu0 %v5630_v39  ;;  %v5678_v39 = vcombine.high %v1553_v32, %v1557_v33  ;;  %v1597_v29 = vld [vmem:[%s6782_s21 + $0x378] sm:$0xff] }
 0x34e   : > { %4933 = vmatpush1.bf16.msra.mxu1 %v5627_v51  ;;  %v5675_v51 = vcombine.low %v1552_v50, %v1556_v31  ;;  %v1600_v50 = vld [vmem:[%s6782_s21 + $0x390] sm:$0xff] }
 0x34f   : > { %5097 = vmatpush1.bf16.msra.mxu0 %v5629_v56  ;;  %4934 = vmatprep.subr.bf16.mxu1 %v5636_v58  ;;  %v5677_v56 = vcombine.low %v1553_v32, %v1557_v33  ;;  %v5684_v58 = vcombine.high %v1560_v40, %v1564_v42  ;;  %v1604_v31 = vld [vmem:[%s6782_s21 + $0x3b0] sm:$0xff]  ;;  %v1601_v32 = vld [vmem:[%s6782_s21 + $0x398] sm:$0xff] }
 0x350   : > { %5098 = vmatprep.subr.bf16.mxu0 %v5638_v13  ;;  %v5686_v13 = vcombine.high %v1561_v44, %v1565_v45  ;;  %v1605_v33 = vld [vmem:[%s6782_s21 + $0x3b8] sm:$0xff] }
 0x352   : > { %4935 = vmatpush1.bf16.msra.mxu1 %v5635_v1  ;;  %v5683_v1 = vcombine.low %v1560_v40, %v1564_v42  ;;  %v1608_v40 = vld [vmem:[%s6782_s21 + $0x3d0] sm:$0xff] }
 0x353   : > { %5099 = vmatpush1.bf16.msra.mxu0 %v5637_v2  ;;  %4936 = vmatprep.subr.bf16.mxu1 %v5644_v3  ;;  %v5685_v2 = vcombine.low %v1561_v44, %v1565_v45  ;;  %v5692_v3 = vcombine.high %v1568_v61, %v1572_v62  ;;  %v1612_v42 = vld [vmem:[%s6782_s21 + $0x3f0] sm:$0xff]  ;;  %v1609_v44 = vld [vmem:[%s6782_s21 + $0x3d8] sm:$0xff] }
 0x354   : > { %5100 = vmatprep.subr.bf16.mxu0 %v5646_v4  ;;  %v5694_v4 = vcombine.high %v1569_v63, %v1573_v0  ;;  %v1613_v45 = vld [vmem:[%s6782_s21 + $0x3f8] sm:$0xff] }
 0x356   : > { %4937 = vmatpush1.bf16.msra.mxu1 %v5643_v10  ;;  %v5691_v10 = vcombine.low %v1568_v61, %v1572_v62  ;;  %v1616_v61 = vld [vmem:[%s6782_s21 + $0x410] sm:$0xff] }
 0x357   : > { %5101 = vmatpush1.bf16.msra.mxu0 %v5645_v11  ;;  %4938 = vmatprep.subr.bf16.mxu1 %v5652_v28  ;;  %v5693_v11 = vcombine.low %v1569_v63, %v1573_v0  ;;  %v5700_v28 = vcombine.high %v1576_v5, %v1580_v6  ;;  %v1620_v62 = vld [vmem:[%s6782_s21 + $0x430] sm:$0xff]  ;;  %v1617_v63 = vld [vmem:[%s6782_s21 + $0x418] sm:$0xff] }
 0x358   : > { %5102 = vmatprep.subr.bf16.mxu0 %v5654_v12  ;;  %v5702_v12 = vcombine.high %v1577_v7, %v1581_v9  ;;  %v1621_v0 = vld [vmem:[%s6782_s21 + $0x438] sm:$0xff] }
 0x35a   : > { %4939 = vmatpush1.bf16.msra.mxu1 %v5651_v21  ;;  %v5699_v21 = vcombine.low %v1576_v5, %v1580_v6  ;;  %v1624_v5 = vld [vmem:[%s6782_s21 + $0x450] sm:$0xff] }
 0x35b   : > { %5103 = vmatpush1.bf16.msra.mxu0 %v5653_v22  ;;  %4940 = vmatprep.subr.bf16.mxu1 %v5660_v23  ;;  %v5701_v22 = vcombine.low %v1577_v7, %v1581_v9  ;;  %v5708_v23 = vcombine.high %v1584_v14, %v1588_v19  ;;  %v1628_v6 = vld [vmem:[%s6782_s21 + $0x470] sm:$0xff]  ;;  %v5739_v7 = vcombine.low %v1616_v61, %v1620_v62  ;;  %v1625_v9 = vld [vmem:[%s6782_s21 + $0x458] sm:$0xff] }
 0x35c   : > { %5104 = vmatprep.subr.bf16.mxu0 %v5662_v27  ;;  %v5710_v27 = vcombine.high %v1585_v52, %v1589_v20 }
 0x35e   : > { %4941 = vmatpush1.bf16.msra.mxu1 %v5659_v30  ;;  %v5707_v30 = vcombine.low %v1584_v14, %v1588_v19  ;;  %v1636_v14 = vld [vmem:[%s6782_s21 + $0x4b0] sm:$0xff] }
 0x35f   : > { %5105 = vmatpush1.bf16.msra.mxu0 %v5661_v46  ;;  %4942 = vmatprep.subr.bf16.mxu1 %v5668_v47  ;;  %v5709_v46 = vcombine.low %v1585_v52, %v1589_v20  ;;  %v5716_v47 = vcombine.high %v1592_v24, %v1596_v26  ;;  %v1633_v52 = vld [vmem:[%s6782_s21 + $0x498] sm:$0xff] }
 0x360   : > { %5106 = vmatprep.subr.bf16.mxu0 %v5670_v49  ;;  %v5718_v49 = vcombine.high %v1593_v59, %v1597_v29  ;;  %v1637_v20 = vld [vmem:[%s6782_s21 + $0x4b8] sm:$0xff] }
 0x362   : > { %4943 = vmatpush1.bf16.msra.mxu1 %v5667_v34  ;;  %v5715_v34 = vcombine.low %v1592_v24, %v1596_v26  ;;  %v1640_v24 = vld [vmem:[%s6782_s21 + $0x4d0] sm:$0xff] }
 0x363   : > { %5107 = vmatpush1.bf16.msra.mxu0 %v5669_v35  ;;  %4944 = vmatprep.subr.bf16.mxu1 %v5676_v38  ;;  %v5717_v35 = vcombine.low %v1593_v59, %v1597_v29  ;;  %v5724_v38 = vcombine.high %v1600_v50, %v1604_v31  ;;  %v1644_v26 = vld [vmem:[%s6782_s21 + $0x4f0] sm:$0xff]  ;;  %v1641_v59 = vld [vmem:[%s6782_s21 + $0x4d8] sm:$0xff] }
 0x364   : > { %5108 = vmatprep.subr.bf16.mxu0 %v5678_v39  ;;  %v5726_v39 = vcombine.high %v1601_v32, %v1605_v33 }
 0x366   : > { %4945 = vmatpush1.bf16.msra.mxu1 %v5675_v51  ;;  %v5723_v51 = vcombine.low %v1600_v50, %v1604_v31  ;;  %v1649_v50 = vld [vmem:[%s6782_s21 + $0x518] sm:$0xff] }
 0x367   : > { %5109 = vmatpush1.bf16.msra.mxu0 %v5677_v56  ;;  %4946 = vmatprep.subr.bf16.mxu1 %v5684_v58  ;;  %v5725_v56 = vcombine.low %v1601_v32, %v1605_v33  ;;  %v5732_v58 = vcombine.high %v1608_v40, %v1612_v42  ;;  %v1653_v31 = vld [vmem:[%s6782_s21 + $0x538] sm:$0xff]  ;;  %v5763_v32 = vcombine.low %v1640_v24, %v1644_v26 }
 0x368   : > { %5110 = vmatprep.subr.bf16.mxu0 %v5686_v13  ;;  %v5734_v13 = vcombine.high %v1609_v44, %v1613_v45 }
 0x36a   : > { %4947 = vmatpush1.bf16.msra.mxu1 %v5683_v1  ;;  %v5731_v1 = vcombine.low %v1608_v40, %v1612_v42  ;;  %v1657_v40 = vld [vmem:[%s6782_s21 + $0x558] sm:$0xff] }
 0x36b   : > { %5111 = vmatpush1.bf16.msra.mxu0 %v5685_v2  ;;  %4948 = vmatprep.subr.bf16.mxu1 %v5692_v3  ;;  %v5733_v2 = vcombine.low %v1609_v44, %v1613_v45  ;;  %v5740_v3 = vcombine.high %v1616_v61, %v1620_v62  ;;  %v1661_v42 = vld [vmem:[%s6782_s21 + $0x578] sm:$0xff]  ;;  %v5773_v45 = vcombine.low %v1649_v50, %v1653_v31 }
 0x36c   : > { %5112 = vmatprep.subr.bf16.mxu0 %v5694_v4  ;;  %v5742_v4 = vcombine.high %v1617_v63, %v1621_v0  ;;  %v1665_v61 = vld [vmem:[%s6782_s21 + $0x598] sm:$0xff] }
 0x36d   : > { %v1669_v62 = vld [vmem:[%s6782_s21 + $0x5b8] sm:$0xff] }
 0x36e   : > { %4949 = vmatpush1.bf16.msra.mxu1 %v5691_v10  ;;  %v1629_v10 = vld [vmem:[%s6782_s21 + $0x478] sm:$0xff] }
 0x36f   : > { %5113 = vmatpush1.bf16.msra.mxu0 %v5693_v11  ;;  %4950 = vmatprep.subr.bf16.mxu1 %v5700_v28  ;;  %v5741_v11 = vcombine.low %v1617_v63, %v1621_v0  ;;  %v5748_v28 = vcombine.high %v1624_v5, %v1628_v6  ;;  %v5750_v19 = vcombine.high %v1625_v9, %v1629_v10 }
 0x370   : > { %5114 = vmatprep.subr.bf16.mxu0 %v5702_v12  ;;  %v1632_v12 = vld [vmem:[%s6782_s21 + $0x490] sm:$0xff]  ;;  %v5781_v0 = vcombine.low %v1657_v40, %v1661_v42 }
 0x371   : > { %v5755_v29 = vcombine.low %v1632_v12, %v1636_v14 }
 0x372   : > { %4951 = vmatpush1.bf16.msra.mxu1 %v5699_v21  ;;  %v5747_v21 = vcombine.low %v1624_v5, %v1628_v6  ;;  %v1673_v5 = vld [vmem:[%s6782_s21 + $0x5d8] sm:$0xff] }
 0x373   : > { %5115 = vmatpush1.bf16.msra.mxu0 %v5701_v22  ;;  %4952 = vmatprep.subr.bf16.mxu1 %v5708_v23  ;;  %v5749_v22 = vcombine.low %v1625_v9, %v1629_v10  ;;  %v5756_v23 = vcombine.high %v1632_v12, %v1636_v14  ;;  %v1677_v6 = vld [vmem:[%s6782_s21 + $0x5f8] sm:$0xff]  ;;  %v5789_v9 = vcombine.low %v1665_v61, %v1669_v62  ;;  %v1684_v12 = vld [vmem:[%s6782_s21 + $0x630] sm:$0xff] }
 0x374   : > { %5116 = vmatprep.subr.bf16.mxu0 %v5710_v27  ;;  %v5758_v27 = vcombine.high %v1633_v52, %v1637_v20  ;;  %v1681_v14 = vld [vmem:[%s6782_s21 + $0x618] sm:$0xff] }
 0x376   : > { %4953 = vmatpush1.bf16.msra.mxu1 %v5707_v30  ;;  %v5757_v30 = vcombine.low %v1633_v52, %v1637_v20  ;;  %v5797_v20 = vcombine.low %v1673_v5, %v1677_v6 }
 0x377   : > { %5117 = vmatpush1.bf16.msra.mxu0 %v5709_v46  ;;  %4954 = vmatprep.subr.bf16.mxu1 %v5716_v47  ;;  %v5764_v46 = vcombine.high %v1640_v24, %v1644_v26  ;;  %v1648_v47 = vld [vmem:[%s6782_s21 + $0x510] sm:$0xff]  ;;  %v1689_v24 = vld [vmem:[%s6782_s21 + $0x658] sm:$0xff] }
 0x378   : > { %5118 = vmatprep.subr.bf16.mxu0 %v5718_v49  ;;  %v1652_v49 = vld [vmem:[%s6782_s21 + $0x530] sm:$0xff]  ;;  %v1693_v26 = vld [vmem:[%s6782_s21 + $0x678] sm:$0xff] }
 0x379   : > { %v5771_v44 = vcombine.low %v1648_v47, %v1652_v49 }
 0x37a   : > { %4955 = vmatpush1.bf16.msra.mxu1 %v5715_v34  ;;  %v5772_v34 = vcombine.high %v1648_v47, %v1652_v49  ;;  %v1697_v47 = vld [vmem:[%s6782_s21 + $0x698] sm:$0xff] }
 0x37b   : > { %5119 = vmatpush1.bf16.msra.mxu0 %v5717_v35  ;;  %4956 = vmatprep.subr.bf16.mxu1 %v5724_v38  ;;  %v5774_v35 = vcombine.high %v1649_v50, %v1653_v31  ;;  %v1656_v38 = vld [vmem:[%s6782_s21 + $0x550] sm:$0xff]  ;;  %v1701_v49 = vld [vmem:[%s6782_s21 + $0x6b8] sm:$0xff]  ;;  %v5813_v31 = vcombine.low %v1689_v24, %v1693_v26 }
 0x37c   : > { %5120 = vmatprep.subr.bf16.mxu0 %v5726_v39  ;;  %v1660_v39 = vld [vmem:[%s6782_s21 + $0x570] sm:$0xff] }
 0x37d   : > { %v5779_v63 = vcombine.low %v1656_v38, %v1660_v39 }
 0x37e   : > { %4957 = vmatpush1.bf16.msra.mxu1 %v5723_v51  ;;  %v5780_v51 = vcombine.high %v1656_v38, %v1660_v39  ;;  %v1705_v38 = vld [vmem:[%s6782_s21 + $0x6d8] sm:$0xff] }
 0x37f   : > { %5121 = vmatpush1.bf16.msra.mxu0 %v5725_v56  ;;  %4958 = vmatprep.subr.bf16.mxu1 %v5732_v58  ;;  %v5782_v56 = vcombine.high %v1657_v40, %v1661_v42  ;;  %v1664_v58 = vld [vmem:[%s6782_s21 + $0x590] sm:$0xff]  ;;  %v1709_v39 = vld [vmem:[%s6782_s21 + $0x6f8] sm:$0xff]  ;;  %v5821_v42 = vcombine.low %v1697_v47, %v1701_v49 }
 0x380   : > { %5122 = vmatprep.subr.bf16.mxu0 %v5734_v13  ;;  %v1668_v13 = vld [vmem:[%s6782_s21 + $0x5b0] sm:$0xff] }
 0x382   : > { %4959 = vmatpush1.bf16.msra.mxu1 %v5731_v1  ;;  %v5788_v1 = vcombine.high %v1664_v58, %v1668_v13 }
 0x383   : > { %5123 = vmatpush1.bf16.msra.mxu0 %v5733_v2  ;;  %4969 = vmatprep.subr.bf16.mxu1 %v5740_v3  ;;  %v5790_v2 = vcombine.high %v1665_v61, %v1669_v62  ;;  %v1672_v3 = vld [vmem:[%s6782_s21 + $0x5d0] sm:$0xff]  ;;  %v5829_v62 = vcombine.low %v1705_v38, %v1709_v39 }
 0x384   : > { %5133 = vmatprep.subr.bf16.mxu0 %v5742_v4  ;;  %v1676_v4 = vld [vmem:[%s6782_s21 + $0x5f0] sm:$0xff] }
 0x385   : > { %4961 = vmatmul.mubr.bf16.vlgmr.msra.gmra.mrb[12].mxu1 %v6909_v17  ;;  %v5796_v10 = vcombine.high %v1672_v3, %v1676_v4  ;;  %v5795_v52 = vcombine.low %v1672_v3, %v1676_v4  ;;  %v1721_v3 = vld [vmem:[%s6782_s21 + $0x758] sm:$0xff] }
 0x386   : > { %5125 = vmatmul.mubr.bf16.vlgmr.msra.gmra.mrb[16].mxu0 %v6909_v17  ;;  %4970 = vmatpush1.bf16.msra.mxu1 %v5739_v7  ;;  %v1645_v17 = vld [vmem:[%s6782_s21 + $0x4f8] sm:$0xff]  ;;  %v5787_v7 = vcombine.low %v1664_v58, %v1668_v13 }
 0x387   : > { %5001 = vmatprep.mubr.bf16.mxu1 %v6917_v25  ;;  %5134 = vmatpush1.bf16.msra.mxu0 %v5741_v11  ;;  %v5765_v33 = vcombine.low %v1641_v59, %v1645_v17  ;;  %v5798_v11 = vcombine.high %v1673_v5, %v1677_v6  ;;  %v1713_v58 = vld [vmem:[%s6782_s21 + $0x718] sm:$0xff] }
 0x388   : > { %5165 = vmatprep.mubr.bf16.mxu0 %v6917_v25  ;;  %4971 = vmatprep.subr.bf16.mxu1 %v5748_v28  ;;  %v5766_v25 = vcombine.high %v1641_v59, %v1645_v17  ;;  %v1680_v28 = vld [vmem:[%s6782_s21 + $0x610] sm:$0xff]  ;;  %v1717_v13 = vld [vmem:[%s6782_s21 + $0x738] sm:$0xff] }
 0x389   : > { %5135 = vmatprep.subr.bf16.mxu0 %v5750_v19  ;;  %v1685_v19 = vld [vmem:[%s6782_s21 + $0x638] sm:$0xff]  ;;  %v5803_v59 = vcombine.low %v1680_v28, %v1684_v12  ;;  %v5837_v6 = vcombine.low %v1713_v58, %v1717_v13 }
 0x38a   : > { %4972 = vmatpush1.bf16.msra.mxu1 %v5747_v21  ;;  %v5804_v21 = vcombine.high %v1680_v28, %v1684_v12  ;;  %v5805_v17 = vcombine.low %v1681_v14, %v1685_v19  ;;  %v1725_v4 = vld [vmem:[%s6782_s21 + $0x778] sm:$0xff] }
 0x38b   : > { %5136 = vmatpush1.bf16.msra.mxu0 %v5749_v22  ;;  %4973 = vmatprep.subr.bf16.mxu1 %v5756_v23  ;;  %v5806_v22 = vcombine.high %v1681_v14, %v1685_v19  ;;  %v1688_v23 = vld [vmem:[%s6782_s21 + $0x650] sm:$0xff]  ;;  %v1729_v28 = vld [vmem:[%s6782_s21 + $0x798] sm:$0xff]  ;;  %v5845_v19 = vcombine.low %v1721_v3, %v1725_v4 }
 0x38c   : > { %5137 = vmatprep.subr.bf16.mxu0 %v5758_v27  ;;  %v1692_v27 = vld [vmem:[%s6782_s21 + $0x670] sm:$0xff]  ;;  %v1733_v12 = vld [vmem:[%s6782_s21 + $0x7b8] sm:$0xff] }
 0x38d   : > { %v5811_v50 = vcombine.low %v1688_v23, %v1692_v27 }
 0x38e   : > { %4974 = vmatpush1.bf16.msra.mxu1 %v5755_v29  ;;  %v5812_v29 = vcombine.high %v1688_v23, %v1692_v27  ;;  %v1737_v23 = vld [vmem:[%s6782_s21 + $0x7d8] sm:$0xff] }
 0x38f   : > { %5138 = vmatpush1.bf16.msra.mxu0 %v5757_v30  ;;  %4975 = vmatprep.subr.bf16.mxu1 %v5764_v46  ;;  %v5814_v30 = vcombine.high %v1689_v24, %v1693_v26  ;;  %v1696_v46 = vld [vmem:[%s6782_s21 + $0x690] sm:$0xff]  ;;  %v1741_v27 = vld [vmem:[%s6782_s21 + $0x7f8] sm:$0xff]  ;;  %v5853_v26 = vcombine.low %v1729_v28, %v1733_v12 }
 0x390   : > { %5139 = vmatprep.subr.bf16.mxu0 %v5766_v25  ;;  %v1700_v25 = vld [vmem:[%s6782_s21 + $0x6b0] sm:$0xff] }
 0x391   : > { %v5819_v40 = vcombine.low %v1696_v46, %v1700_v25 }
 0x392   : > { %4976 = vmatpush1.bf16.msra.mxu1 %v5763_v32  ;;  %v5820_v32 = vcombine.high %v1696_v46, %v1700_v25  ;;  %v1745_v46 = vld [vmem:[%s6782_s21 + $0x818] sm:$0xff] }
 0x393   : > { %5140 = vmatpush1.bf16.msra.mxu0 %v5765_v33  ;;  %4977 = vmatprep.subr.bf16.mxu1 %v5772_v34  ;;  %v5822_v33 = vcombine.high %v1697_v47, %v1701_v49  ;;  %v1704_v34 = vld [vmem:[%s6782_s21 + $0x6d0] sm:$0xff]  ;;  %v1749_v25 = vld [vmem:[%s6782_s21 + $0x838] sm:$0xff]  ;;  %v5861_v49 = vcombine.low %v1737_v23, %v1741_v27 }
 0x394   : > { %5141 = vmatprep.subr.bf16.mxu0 %v5774_v35  ;;  %v1708_v35 = vld [vmem:[%s6782_s21 + $0x6f0] sm:$0xff] }
 0x395   : > { %v5827_v61 = vcombine.low %v1704_v34, %v1708_v35 }
 0x396   : > { %4978 = vmatpush1.bf16.msra.mxu1 %v5771_v44  ;;  %v5828_v44 = vcombine.high %v1704_v34, %v1708_v35  ;;  %v1753_v35 = vld [vmem:[%s6782_s21 + $0x858] sm:$0xff] }
 0x397   : > { %5142 = vmatpush1.bf16.msra.mxu0 %v5773_v45  ;;  %4979 = vmatprep.subr.bf16.mxu1 %v5780_v51  ;;  %v5830_v45 = vcombine.high %v1705_v38, %v1709_v39  ;;  %v1712_v51 = vld [vmem:[%s6782_s21 + $0x710] sm:$0xff]  ;;  %v1757_v38 = vld [vmem:[%s6782_s21 + $0x878] sm:$0xff]  ;;  %v5869_v39 = vcombine.low %v1745_v46, %v1749_v25 }
 0x398   : > { %5143 = vmatprep.subr.bf16.mxu0 %v5782_v56  ;;  %v1716_v56 = vld [vmem:[%s6782_s21 + $0x730] sm:$0xff] }
 0x399   : > { %v5835_v5 = vcombine.low %v1712_v51, %v1716_v56 }
 0x39a   : > { %4980 = vmatpush1.bf16.msra.mxu1 %v5779_v63  ;;  %v5836_v63 = vcombine.high %v1712_v51, %v1716_v56  ;;  %v1761_v51 = vld [vmem:[%s6782_s21 + $0x898] sm:$0xff] }
 0x39b   : > { %5144 = vmatpush1.bf16.msra.mxu0 %v5781_v0  ;;  %4981 = vmatprep.subr.bf16.mxu1 %v5788_v1  ;;  %v5838_v0 = vcombine.high %v1713_v58, %v1717_v13  ;;  %v1720_v1 = vld [vmem:[%s6782_s21 + $0x750] sm:$0xff]  ;;  %v1765_v56 = vld [vmem:[%s6782_s21 + $0x8b8] sm:$0xff]  ;;  %v5877_v13 = vcombine.low %v1753_v35, %v1757_v38 }
 0x39c   : > { %5145 = vmatprep.subr.bf16.mxu0 %v5790_v2  ;;  %v1724_v2 = vld [vmem:[%s6782_s21 + $0x770] sm:$0xff] }
 0x39d   : > { %v5843_v14 = vcombine.low %v1720_v1, %v1724_v2 }
 0x39e   : > { %4982 = vmatpush1.bf16.msra.mxu1 %v5787_v7  ;;  %v5844_v7 = vcombine.high %v1720_v1, %v1724_v2  ;;  %v1769_v1 = vld [vmem:[%s6782_s21 + $0x8d8] sm:$0xff] }
 0x39f   : > { %5146 = vmatpush1.bf16.msra.mxu0 %v5789_v9  ;;  %4983 = vmatprep.subr.bf16.mxu1 %v5796_v10  ;;  %v5846_v9 = vcombine.high %v1721_v3, %v1725_v4  ;;  %v1728_v10 = vld [vmem:[%s6782_s21 + $0x790] sm:$0xff]  ;;  %v5885_v3 = vcombine.low %v1761_v51, %v1765_v56 }
 0x3a0   : > { %5147 = vmatprep.subr.bf16.mxu0 %v5798_v11  ;;  %v1732_v11 = vld [vmem:[%s6782_s21 + $0x7b0] sm:$0xff] }
 0x3a1   : > { %v5851_v24 = vcombine.low %v1728_v10, %v1732_v11 }
 0x3a2   : > { %4984 = vmatpush1.bf16.msra.mxu1 %v5795_v52  ;;  %v5852_v52 = vcombine.high %v1728_v10, %v1732_v11 }
 0x3a3   : > { %5148 = vmatpush1.bf16.msra.mxu0 %v5797_v20  ;;  %4985 = vmatprep.subr.bf16.mxu1 %v5804_v21  ;;  %v5854_v20 = vcombine.high %v1729_v28, %v1733_v12  ;;  %v1736_v21 = vld [vmem:[%s6782_s21 + $0x7d0] sm:$0xff] }
 0x3a4   : > { %5149 = vmatprep.subr.bf16.mxu0 %v5806_v22  ;;  %v1740_v22 = vld [vmem:[%s6782_s21 + $0x7f0] sm:$0xff] }
 0x3a5   : > { %v5859_v47 = vcombine.low %v1736_v21, %v1740_v22 }
 0x3a6   : > { %4986 = vmatpush1.bf16.msra.mxu1 %v5803_v59  ;;  %v5860_v59 = vcombine.high %v1736_v21, %v1740_v22 }
 0x3a7   : > { %5150 = vmatpush1.bf16.msra.mxu0 %v5805_v17  ;;  %4987 = vmatprep.subr.bf16.mxu1 %v5812_v29  ;;  %v5862_v17 = vcombine.high %v1737_v23, %v1741_v27  ;;  %v1744_v29 = vld [vmem:[%s6782_s21 + $0x810] sm:$0xff] }
 0x3a8   : > { %5151 = vmatprep.subr.bf16.mxu0 %v5814_v30  ;;  %v1748_v30 = vld [vmem:[%s6782_s21 + $0x830] sm:$0xff] }
 0x3a9   : > { %v5867_v34 = vcombine.low %v1744_v29, %v1748_v30 }
 0x3aa   : > { %4988 = vmatpush1.bf16.msra.mxu1 %v5811_v50  ;;  %v5868_v50 = vcombine.high %v1744_v29, %v1748_v30 }
 0x3ab   : > { %5152 = vmatpush1.bf16.msra.mxu0 %v5813_v31  ;;  %4989 = vmatprep.subr.bf16.mxu1 %v5820_v32  ;;  %v5870_v31 = vcombine.high %v1745_v46, %v1749_v25  ;;  %v1752_v32 = vld [vmem:[%s6782_s21 + $0x850] sm:$0xff] }
 0x3ac   : > { %5153 = vmatprep.subr.bf16.mxu0 %v5822_v33  ;;  %v1756_v33 = vld [vmem:[%s6782_s21 + $0x870] sm:$0xff] }
 0x3ad   : > { %v5875_v58 = vcombine.low %v1752_v32, %v1756_v33 }
 0x3ae   : > { %4990 = vmatpush1.bf16.msra.mxu1 %v5819_v40  ;;  %v5876_v40 = vcombine.high %v1752_v32, %v1756_v33 }
 0x3af   : > { %5154 = vmatpush1.bf16.msra.mxu0 %v5821_v42  ;;  %4991 = vmatprep.subr.bf16.mxu1 %v5828_v44  ;;  %v1760_v42 = vld [vmem:[%s6782_s21 + $0x890] sm:$0xff] }
 0x3b0   : > { %5155 = vmatprep.subr.bf16.mxu0 %v5830_v45  ;;  %v1764_v44 = vld [vmem:[%s6782_s21 + $0x8b0] sm:$0xff]  ;;  %v5878_v45 = vcombine.high %v1753_v35, %v1757_v38 }
 0x3b1   : > { %v5883_v2 = vcombine.low %v1760_v42, %v1764_v44  ;;  %v1808_v38 = vld [vmem:[%s6782_s21 + $0xa10] sm:$0xff] }
 0x3b2   : > { %4992 = vmatpush1.bf16.msra.mxu1 %v5827_v61  ;;  %v5884_v61 = vcombine.high %v1760_v42, %v1764_v44  ;;  %v1813_v42 = vld [vmem:[%s6782_s21 + $0xa38] sm:$0xff] }
 0x3b3   : > { %5156 = vmatpush1.bf16.msra.mxu0 %v5829_v62  ;;  %4993 = vmatprep.subr.bf16.mxu1 %v5836_v63  ;;  %v5886_v62 = vcombine.high %v1761_v51, %v1765_v56  ;;  %v1768_v63 = vld [vmem:[%s6782_s21 + $0x8d0] sm:$0xff] }
 0x3b4   : > { %5157 = vmatprep.subr.bf16.mxu0 %v5838_v0  ;;  %v1772_v0 = vld [vmem:[%s6782_s21 + $0x8f0] sm:$0xff] }
 0x3b5   : > { %v5892_v4 = vcombine.high %v1768_v63, %v1772_v0  ;;  %v5891_v10 = vcombine.low %v1768_v63, %v1772_v0 }
 0x3b6   : > { %4994 = vmatpush1.bf16.msra.mxu1 %v5835_v5  ;;  %v1776_v5 = vld [vmem:[%s6782_s21 + $0x910] sm:$0xff] }
 0x3b7   : > { %5158 = vmatpush1.bf16.msra.mxu0 %v5837_v6  ;;  %4995 = vmatprep.subr.bf16.mxu1 %v5844_v7  ;;  %v1780_v6 = vld [vmem:[%s6782_s21 + $0x930] sm:$0xff]  ;;  %v1777_v7 = vld [vmem:[%s6782_s21 + $0x918] sm:$0xff] }
 0x3b8   : > { %5159 = vmatprep.subr.bf16.mxu0 %v5846_v9  ;;  %v1781_v9 = vld [vmem:[%s6782_s21 + $0x938] sm:$0xff]  ;;  %v5900_v28 = vcombine.high %v1776_v5, %v1780_v6  ;;  %v5899_v21 = vcombine.low %v1776_v5, %v1780_v6 }
 0x3b9   : > { %v5902_v12 = vcombine.high %v1777_v7, %v1781_v9  ;;  %v5901_v22 = vcombine.low %v1777_v7, %v1781_v9 }
 0x3ba   : > { %4996 = vmatpush1.bf16.msra.mxu1 %v5843_v14  ;;  %v1784_v14 = vld [vmem:[%s6782_s21 + $0x950] sm:$0xff] }
 0x3bb   : > { %5160 = vmatpush1.bf16.msra.mxu0 %v5845_v19  ;;  %4997 = vmatprep.subr.bf16.mxu1 %v5852_v52  ;;  %v1788_v19 = vld [vmem:[%s6782_s21 + $0x970] sm:$0xff]  ;;  %v1785_v52 = vld [vmem:[%s6782_s21 + $0x958] sm:$0xff] }
 0x3bc   : > { %5161 = vmatprep.subr.bf16.mxu0 %v5854_v20  ;;  %v1789_v20 = vld [vmem:[%s6782_s21 + $0x978] sm:$0xff]  ;;  %v5908_v23 = vcombine.high %v1784_v14, %v1788_v19  ;;  %v5907_v29 = vcombine.low %v1784_v14, %v1788_v19 }
 0x3bd   : > { %v5910_v27 = vcombine.high %v1785_v52, %v1789_v20  ;;  %v5909_v30 = vcombine.low %v1785_v52, %v1789_v20 }
 0x3be   : > { %4998 = vmatpush1.bf16.msra.mxu1 %v5851_v24  ;;  %v1792_v24 = vld [vmem:[%s6782_s21 + $0x990] sm:$0xff] }
 0x3bf   : > { %5162 = vmatpush1.bf16.msra.mxu0 %v5853_v26  ;;  %4999 = vmatprep.subr.bf16.mxu1 %v5860_v59  ;;  %v1796_v26 = vld [vmem:[%s6782_s21 + $0x9b0] sm:$0xff]  ;;  %v1793_v59 = vld [vmem:[%s6782_s21 + $0x998] sm:$0xff] }
 0x3c0   : > { %5163 = vmatprep.subr.bf16.mxu0 %v5862_v17  ;;  %v1797_v17 = vld [vmem:[%s6782_s21 + $0x9b8] sm:$0xff]  ;;  %v5916_v46 = vcombine.high %v1792_v24, %v1796_v26  ;;  %v5915_v32 = vcombine.low %v1792_v24, %v1796_v26 }
 0x3c1   : > { %v5918_v25 = vcombine.high %v1793_v59, %v1797_v17  ;;  %v5917_v33 = vcombine.low %v1793_v59, %v1797_v17 }
 0x3c2   : > { %5000 = vmatpush1.bf16.msra.mxu1 %v5859_v47  ;;  %v1800_v47 = vld [vmem:[%s6782_s21 + $0x9d0] sm:$0xff] }
 0x3c3   : > { %5164 = vmatpush1.bf16.msra.mxu0 %v5861_v49  ;;  %5010 = vmatprep.subr.bf16.mxu1 %v5868_v50  ;;  %v1804_v49 = vld [vmem:[%s6782_s21 + $0x9f0] sm:$0xff]  ;;  %v1801_v50 = vld [vmem:[%s6782_s21 + $0x9d8] sm:$0xff] }
 0x3c4   : > { %5174 = vmatprep.subr.bf16.mxu0 %v5870_v31  ;;  %v1805_v31 = vld [vmem:[%s6782_s21 + $0x9f8] sm:$0xff]  ;;  %v5923_v44 = vcombine.low %v1800_v47, %v1804_v49 }
 0x3c5   : > { %5002 = vmatmul.mubr.bf16.vlgmr.msra.gmra.mrb[12].mxu1 %v7004_v57  ;;  %v5926_v35 = vcombine.high %v1801_v50, %v1805_v31 }
 0x3c6   : > { %5166 = vmatmul.mubr.bf16.vlgmr.msra.gmra.mrb[16].mxu0 %v7004_v57  ;;  %5011 = vmatpush1.bf16.msra.mxu1 %v5867_v34  ;;  %v1773_v57 = vld [vmem:[%s6782_s21 + $0x8f8] sm:$0xff]  ;;  %v5924_v34 = vcombine.high %v1800_v47, %v1804_v49 }
 0x3c7   : > { %5042 = vmatprep.mubr.bf16.mxu1 %v7006_v60  ;;  %5175 = vmatpush1.bf16.msra.mxu0 %v5869_v39  ;;  %v5893_v11 = vcombine.low %v1769_v1, %v1773_v57  ;;  %v1812_v39 = vld [vmem:[%s6782_s21 + $0xa30] sm:$0xff] }
 0x3c8   : > { %5206 = vmatprep.mubr.bf16.mxu0 %v7006_v60  ;;  %5012 = vmatprep.subr.bf16.mxu1 %v5876_v40  ;;  %v5894_v60 = vcombine.high %v1769_v1, %v1773_v57  ;;  %v1809_v40 = vld [vmem:[%s6782_s21 + $0xa18] sm:$0xff]  ;;  %v5932_v51 = vcombine.high %v1808_v38, %v1812_v39  ;;  %v5931_v63 = vcombine.low %v1808_v38, %v1812_v39 }
 0x3c9   : > { %5176 = vmatprep.subr.bf16.mxu0 %v5878_v45  ;;  %v5925_v45 = vcombine.low %v1801_v50, %v1805_v31  ;;  %v5934_v56 = vcombine.high %v1809_v40, %v1813_v42  ;;  %v5933_v0 = vcombine.low %v1809_v40, %v1813_v42 }
 0x3ca   : > { %5013 = vmatpush1.bf16.msra.mxu1 %v5875_v58  ;;  %v1816_v58 = vld [vmem:[%s6782_s21 + $0xa50] sm:$0xff] }
 0x3cb   : > { %5177 = vmatpush1.bf16.msra.mxu0 %v5877_v13  ;;  %5014 = vmatprep.subr.bf16.mxu1 %v5884_v61  ;;  %v1820_v13 = vld [vmem:[%s6782_s21 + $0xa70] sm:$0xff]  ;;  %v1817_v61 = vld [vmem:[%s6782_s21 + $0xa58] sm:$0xff] }
 0x3cc   : > { %5178 = vmatprep.subr.bf16.mxu0 %v5886_v62  ;;  %v1821_v62 = vld [vmem:[%s6782_s21 + $0xa78] sm:$0xff]  ;;  %v5940_v1 = vcombine.high %v1816_v58, %v1820_v13  ;;  %v5939_v5 = vcombine.low %v1816_v58, %v1820_v13 }
 0x3cd   : > { %v5942_v57 = vcombine.high %v1817_v61, %v1821_v62  ;;  %v5941_v6 = vcombine.low %v1817_v61, %v1821_v62 }
 0x3ce   : > { %5015 = vmatpush1.bf16.msra.mxu1 %v5883_v2  ;;  %v1824_v2 = vld [vmem:[%s6782_s21 + $0xa90] sm:$0xff] }
 0x3cf   : > { %5179 = vmatpush1.bf16.msra.mxu0 %v5885_v3  ;;  %5016 = vmatprep.subr.bf16.mxu1 %v5892_v4  ;;  %v1828_v3 = vld [vmem:[%s6782_s21 + $0xab0] sm:$0xff]  ;;  %v1825_v4 = vld [vmem:[%s6782_s21 + $0xa98] sm:$0xff] }
 0x3d0   : > { %5180 = vmatprep.subr.bf16.mxu0 %v5894_v60  ;;  %v1829_v60 = vld [vmem:[%s6782_s21 + $0xab8] sm:$0xff]  ;;  %v5948_v7 = vcombine.high %v1824_v2, %v1828_v3  ;;  %v5947_v14 = vcombine.low %v1824_v2, %v1828_v3 }
 0x3d1   : > { %v5950_v9 = vcombine.high %v1825_v4, %v1829_v60  ;;  %v5949_v19 = vcombine.low %v1825_v4, %v1829_v60 }
 0x3d2   : > { %5017 = vmatpush1.bf16.msra.mxu1 %v5891_v10  ;;  %v1832_v10 = vld [vmem:[%s6782_s21 + $0xad0] sm:$0xff] }
 0x3d3   : > { %5181 = vmatpush1.bf16.msra.mxu0 %v5893_v11  ;;  %5018 = vmatprep.subr.bf16.mxu1 %v5900_v28  ;;  %v1836_v11 = vld [vmem:[%s6782_s21 + $0xaf0] sm:$0xff]  ;;  %v1833_v28 = vld [vmem:[%s6782_s21 + $0xad8] sm:$0xff] }
 0x3d4   : > { %5182 = vmatprep.subr.bf16.mxu0 %v5902_v12  ;;  %v1837_v12 = vld [vmem:[%s6782_s21 + $0xaf8] sm:$0xff]  ;;  %v5956_v52 = vcombine.high %v1832_v10, %v1836_v11  ;;  %v5955_v24 = vcombine.low %v1832_v10, %v1836_v11 }
 0x3d5   : > { %v5958_v20 = vcombine.high %v1833_v28, %v1837_v12  ;;  %v5957_v26 = vcombine.low %v1833_v28, %v1837_v12  ;;  %v1885_v10 = vld [vmem:[%s6782_s21 + $0xc78] sm:$0xff]  ;;  %v1888_v12 = vld [vmem:[%s6782_s21 + $0xc90] sm:$0xff] }
 0x3d6   : > { %5019 = vmatpush1.bf16.msra.mxu1 %v5899_v21  ;;  %v1840_v21 = vld [vmem:[%s6782_s21 + $0xb10] sm:$0xff] }
 0x3d7   : > { %5183 = vmatpush1.bf16.msra.mxu0 %v5901_v22  ;;  %5020 = vmatprep.subr.bf16.mxu1 %v5908_v23  ;;  %v1844_v22 = vld [vmem:[%s6782_s21 + $0xb30] sm:$0xff]  ;;  %v1841_v23 = vld [vmem:[%s6782_s21 + $0xb18] sm:$0xff] }
 0x3d8   : > { %5184 = vmatprep.subr.bf16.mxu0 %v5910_v27  ;;  %v1845_v27 = vld [vmem:[%s6782_s21 + $0xb38] sm:$0xff]  ;;  %v5964_v59 = vcombine.high %v1840_v21, %v1844_v22  ;;  %v5963_v47 = vcombine.low %v1840_v21, %v1844_v22 }
 0x3d9   : > { %v5966_v17 = vcombine.high %v1841_v23, %v1845_v27  ;;  %v5965_v49 = vcombine.low %v1841_v23, %v1845_v27 }
 0x3da   : > { %5021 = vmatpush1.bf16.msra.mxu1 %v5907_v29  ;;  %v1848_v29 = vld [vmem:[%s6782_s21 + $0xb50] sm:$0xff] }
 0x3db   : > { %5185 = vmatpush1.bf16.msra.mxu0 %v5909_v30  ;;  %5022 = vmatprep.subr.bf16.mxu1 %v5916_v46  ;;  %v1852_v30 = vld [vmem:[%s6782_s21 + $0xb70] sm:$0xff]  ;;  %v1849_v46 = vld [vmem:[%s6782_s21 + $0xb58] sm:$0xff] }
 0x3dc   : > { %5186 = vmatprep.subr.bf16.mxu0 %v5918_v25  ;;  %v1853_v25 = vld [vmem:[%s6782_s21 + $0xb78] sm:$0xff]  ;;  %v5972_v50 = vcombine.high %v1848_v29, %v1852_v30  ;;  %v5971_v38 = vcombine.low %v1848_v29, %v1852_v30 }
 0x3dd   : > { %v5974_v31 = vcombine.high %v1849_v46, %v1853_v25  ;;  %v5973_v39 = vcombine.low %v1849_v46, %v1853_v25  ;;  %v1904_v46 = vld [vmem:[%s6782_s21 + $0xd10] sm:$0xff] }
 0x3de   : > { %5023 = vmatpush1.bf16.msra.mxu1 %v5915_v32  ;;  %v1856_v32 = vld [vmem:[%s6782_s21 + $0xb90] sm:$0xff] }
 0x3df   : > { %5187 = vmatpush1.bf16.msra.mxu0 %v5917_v33  ;;  %5024 = vmatprep.subr.bf16.mxu1 %v5924_v34  ;;  %v1860_v33 = vld [vmem:[%s6782_s21 + $0xbb0] sm:$0xff]  ;;  %v1857_v34 = vld [vmem:[%s6782_s21 + $0xb98] sm:$0xff] }
 0x3e0   : > { %5188 = vmatprep.subr.bf16.mxu0 %v5926_v35  ;;  %v1861_v35 = vld [vmem:[%s6782_s21 + $0xbb8] sm:$0xff]  ;;  %v5980_v40 = vcombine.high %v1856_v32, %v1860_v33  ;;  %v5979_v58 = vcombine.low %v1856_v32, %v1860_v33  ;;  %v1908_v25 = vld [vmem:[%s6782_s21 + $0xd30] sm:$0xff] }
 0x3e1   : > { %v5982_v42 = vcombine.high %v1857_v34, %v1861_v35  ;;  %v5981_v13 = vcombine.low %v1857_v34, %v1861_v35  ;;  %v6028_v32 = vcombine.high %v1904_v46, %v1908_v25  ;;  %v1912_v34 = vld [vmem:[%s6782_s21 + $0xd50] sm:$0xff] }
 0x3e2   : > { %5025 = vmatpush1.bf16.msra.mxu1 %v5923_v44  ;;  %v1864_v44 = vld [vmem:[%s6782_s21 + $0xbd0] sm:$0xff] }
 0x3e3   : > { %5189 = vmatpush1.bf16.msra.mxu0 %v5925_v45  ;;  %5026 = vmatprep.subr.bf16.mxu1 %v5932_v51  ;;  %v1868_v45 = vld [vmem:[%s6782_s21 + $0xbf0] sm:$0xff]  ;;  %v1865_v51 = vld [vmem:[%s6782_s21 + $0xbd8] sm:$0xff] }
 0x3e4   : > { %5190 = vmatprep.subr.bf16.mxu0 %v5934_v56  ;;  %v1869_v56 = vld [vmem:[%s6782_s21 + $0xbf8] sm:$0xff]  ;;  %v5988_v61 = vcombine.high %v1864_v44, %v1868_v45  ;;  %v5987_v2 = vcombine.low %v1864_v44, %v1868_v45  ;;  %v1916_v35 = vld [vmem:[%s6782_s21 + $0xd70] sm:$0xff] }
 0x3e5   : > { %v5990_v62 = vcombine.high %v1865_v51, %v1869_v56  ;;  %v5989_v3 = vcombine.low %v1865_v51, %v1869_v56  ;;  %v6036_v45 = vcombine.high %v1912_v34, %v1916_v35  ;;  %v1920_v56 = vld [vmem:[%s6782_s21 + $0xd90] sm:$0xff] }
 0x3e6   : > { %5027 = vmatpush1.bf16.msra.mxu1 %v5931_v63  ;;  %v1872_v63 = vld [vmem:[%s6782_s21 + $0xc10] sm:$0xff] }
 0x3e7   : > { %5191 = vmatpush1.bf16.msra.mxu0 %v5933_v0  ;;  %5028 = vmatprep.subr.bf16.mxu1 %v5940_v1  ;;  %v1876_v0 = vld [vmem:[%s6782_s21 + $0xc30] sm:$0xff]  ;;  %v1873_v1 = vld [vmem:[%s6782_s21 + $0xc18] sm:$0xff] }
 0x3e8   : > { %5192 = vmatprep.subr.bf16.mxu0 %v5942_v57  ;;  %v1877_v57 = vld [vmem:[%s6782_s21 + $0xc38] sm:$0xff]  ;;  %v5996_v4 = vcombine.high %v1872_v63, %v1876_v0 }
 0x3e9   : > { %v5998_v60 = vcombine.high %v1873_v1, %v1877_v57  ;;  %v5997_v11 = vcombine.low %v1873_v1, %v1877_v57 }
 0x3ea   : > { %5029 = vmatpush1.bf16.msra.mxu1 %v5939_v5  ;;  %v1880_v5 = vld [vmem:[%s6782_s21 + $0xc50] sm:$0xff] }
 0x3eb   : > { %5193 = vmatpush1.bf16.msra.mxu0 %v5941_v6  ;;  %5030 = vmatprep.subr.bf16.mxu1 %v5948_v7  ;;  %v1884_v6 = vld [vmem:[%s6782_s21 + $0xc70] sm:$0xff]  ;;  %v5995_v7 = vcombine.low %v1872_v63, %v1876_v0  ;;  %v1921_v63 = vld [vmem:[%s6782_s21 + $0xd98] sm:$0xff] }
 0x3ec   : > { %5194 = vmatprep.subr.bf16.mxu0 %v5950_v9  ;;  %v1881_v9 = vld [vmem:[%s6782_s21 + $0xc58] sm:$0xff]  ;;  %v6004_v28 = vcombine.high %v1880_v5, %v1884_v6  ;;  %v6003_v21 = vcombine.low %v1880_v5, %v1884_v6 }
 0x3ed   : > { %v6005_v22 = vcombine.low %v1881_v9, %v1885_v10  ;;  %v1925_v0 = vld [vmem:[%s6782_s21 + $0xdb8] sm:$0xff] }
 0x3ee   : > { %5031 = vmatpush1.bf16.msra.mxu1 %v5947_v14  ;;  %v1892_v14 = vld [vmem:[%s6782_s21 + $0xcb0] sm:$0xff]  ;;  %v1929_v6 = vld [vmem:[%s6782_s21 + $0xdd8] sm:$0xff] }
 0x3ef   : > { %5195 = vmatpush1.bf16.msra.mxu0 %v5949_v19  ;;  %5032 = vmatprep.subr.bf16.mxu1 %v5956_v52  ;;  %v6006_v19 = vcombine.high %v1881_v9, %v1885_v10  ;;  %v1889_v52 = vld [vmem:[%s6782_s21 + $0xc98] sm:$0xff]  ;;  %v6012_v23 = vcombine.high %v1888_v12, %v1892_v14 }
 0x3f0   : > { %5196 = vmatprep.subr.bf16.mxu0 %v5958_v20  ;;  %v1893_v20 = vld [vmem:[%s6782_s21 + $0xcb8] sm:$0xff] }
 0x3f1   : > { %v6014_v27 = vcombine.high %v1889_v52, %v1893_v20  ;;  %v6013_v29 = vcombine.low %v1889_v52, %v1893_v20  ;;  %v6045_v20 = vcombine.low %v1921_v63, %v1925_v0 }
 0x3f2   : > { %5033 = vmatpush1.bf16.msra.mxu1 %v5955_v24  ;;  %v1896_v24 = vld [vmem:[%s6782_s21 + $0xcd0] sm:$0xff] }
 0x3f3   : > { %5197 = vmatpush1.bf16.msra.mxu0 %v5957_v26  ;;  %5034 = vmatprep.subr.bf16.mxu1 %v5964_v59  ;;  %v1900_v26 = vld [vmem:[%s6782_s21 + $0xcf0] sm:$0xff]  ;;  %v1901_v59 = vld [vmem:[%s6782_s21 + $0xcf8] sm:$0xff] }
 0x3f4   : > { %5198 = vmatprep.subr.bf16.mxu0 %v5966_v17  ;;  %v6011_v17 = vcombine.low %v1888_v12, %v1892_v14  ;;  %v6020_v30 = vcombine.high %v1896_v24, %v1900_v26 }
 0x3f6   : > { %5035 = vmatpush1.bf16.msra.mxu1 %v5963_v47  ;;  %v1905_v47 = vld [vmem:[%s6782_s21 + $0xd18] sm:$0xff] }
 0x3f7   : > { %5199 = vmatpush1.bf16.msra.mxu0 %v5965_v49  ;;  %5036 = vmatprep.subr.bf16.mxu1 %v5972_v50  ;;  %v1909_v49 = vld [vmem:[%s6782_s21 + $0xd38] sm:$0xff]  ;;  %v6019_v50 = vcombine.low %v1896_v24, %v1900_v26 }
 0x3f8   : > { %5200 = vmatprep.subr.bf16.mxu0 %v5974_v31  ;;  %v6030_v33 = vcombine.high %v1905_v47, %v1909_v49  ;;  %v6029_v44 = vcombine.low %v1905_v47, %v1909_v49  ;;  %v1937_v47 = vld [vmem:[%s6782_s21 + $0xe18] sm:$0xff] }
 0x3f9   : > { %v1941_v49 = vld [vmem:[%s6782_s21 + $0xe38] sm:$0xff] }
 0x3fa   : > { %5037 = vmatpush1.bf16.msra.mxu1 %v5971_v38  ;;  %v1913_v38 = vld [vmem:[%s6782_s21 + $0xd58] sm:$0xff] }
 0x3fb   : > { %5201 = vmatpush1.bf16.msra.mxu0 %v5973_v39  ;;  %5038 = vmatprep.subr.bf16.mxu1 %v5980_v40  ;;  %v1917_v39 = vld [vmem:[%s6782_s21 + $0xd78] sm:$0xff]  ;;  %v6027_v40 = vcombine.low %v1904_v46, %v1908_v25 }
 0x3fc   : > { %5202 = vmatprep.subr.bf16.mxu0 %v5982_v42  ;;  %v7390_v42 = vld [vmem:[%s345_s9] sm:$0xff]  ;;  %v6038_v51 = vcombine.high %v1913_v38, %v1917_v39 }
 0x3fd   : > { %v2011_v1 = vrot.slane %v7390_v42, %v620_v36  ;;  %v2007_v57 = vrot.slane %v7390_v42, %v6797_v18  ;;  %v1928_v36 = vld [vmem:[%s6782_s21 + $0xdd0] sm:$0xff]  ;;  %v6046_v18 = vcombine.high %v1921_v63, %v1925_v0 }
 0x3fe   : > { %5039 = vmatpush1.bf16.msra.mxu1 %v5979_v58  ;;  %v1924_v58 = vld [vmem:[%s6782_s21 + $0xdb0] sm:$0xff] }
 0x3ff   : > { %5203 = vmatpush1.bf16.msra.mxu0 %v5981_v13  ;;  %5040 = vmatprep.subr.bf16.mxu1 %v5988_v61  ;;  %v2003_v13 = vrot.slane %v7390_v42, %v6794_v16  ;;  %v6510_v61 = vmov 1983009808   ;;  %v6035_v16 = vcombine.low %v1912_v34, %v1916_v35  ;;  %v6043_v12 = vcombine.low %v1920_v56, %v1924_v58 }
 0x400   : > { %5204 = vmatprep.subr.bf16.mxu0 %v5990_v62  ;;  %v5291_v62 = vunpack.c.l.s4 %v6510_v61 }
 0x402   : > { %5041 = vmatpush1.bf16.msra.mxu1 %v5987_v2  ;;  %v2015_v2 = vrot.slane %v7390_v42, %v624_v54 }
 0x403   : > { %5205 = vmatpush1.bf16.msra.mxu0 %v5989_v3  ;;  %5051 = vmatprep.subr.bf16.mxu1 %v5996_v4  ;;  %v6037_v3 = vcombine.low %v1913_v38, %v1917_v39  ;;  %v6044_v4 = vcombine.high %v1920_v56, %v1924_v58  ;;  %v1945_v56 = vld [vmem:[%s6782_s21 + $0xe58] sm:$0xff] }
 0x404   : > { %5215 = vmatprep.subr.bf16.mxu0 %v5998_v60  ;;  %v1932_v60 = vld [vmem:[%s6782_s21 + $0xdf0] sm:$0xff]  ;;  %v1949_v58 = vld [vmem:[%s6782_s21 + $0xe78] sm:$0xff] }
 0x405   : > { %5043 = vmatmul.mubr.bf16.vlgmr.msra.gmra.mrb[12].mxu1 %v7086_v37 }
 0x406   : > { %5207 = vmatmul.mubr.bf16.vlgmr.msra.gmra.mrb[16].mxu0 %v7086_v37  ;;  %5052 = vmatpush1.bf16.msra.mxu1 %v5995_v7  ;;  %v1897_v37 = vld [vmem:[%s6782_s21 + $0xcd8] sm:$0xff] }
 0x407   : > { %5083 = vmatprep.mubr.bf16.mxu1 %v7090_v43  ;;  %5216 = vmatpush1.bf16.msra.mxu0 %v5997_v11  ;;  %v6021_v31 = vcombine.low %v1897_v37, %v1901_v59  ;;  %v1933_v7 = vld [vmem:[%s6782_s21 + $0xdf8] sm:$0xff] }
 0x408   : > { %5247 = vmatprep.mubr.bf16.mxu0 %v7090_v43  ;;  %5053 = vmatprep.subr.bf16.mxu1 %v6004_v28  ;;  %v6022_v43 = vcombine.high %v1897_v37, %v1901_v59  ;;  %v5292_v28 = vunpack.c.0.s8 %v5291_v62  ;;  %v6054_v37 = vcombine.high %v1929_v6, %v1933_v7  ;;  %v1940_v59 = vld [vmem:[%s6782_s21 + $0xe30] sm:$0xff]  ;;  %v6061_v62 = vcombine.low %v1937_v47, %v1941_v49 }
 0x409   : > { %5217 = vmatprep.subr.bf16.mxu0 %v6006_v19 }
 0x40a   : > { %5054 = vmatpush1.bf16.msra.mxu1 %v6003_v21  ;;  %v6052_v21 = vcombine.high %v1928_v36, %v1932_v60 }
 0x40b   : > { %5218 = vmatpush1.bf16.msra.mxu0 %v6005_v22  ;;  %5055 = vmatprep.subr.bf16.mxu1 %v6012_v23  ;;  %v1936_v22 = vld [vmem:[%s6782_s21 + $0xe10] sm:$0xff] }
 0x40c   : > { %5219 = vmatprep.subr.bf16.mxu0 %v6014_v27  ;;  %v6060_v38 = vcombine.high %v1936_v22, %v1940_v59  ;;  %v6059_v61 = vcombine.low %v1936_v22, %v1940_v59 }
 0x40e   : > { %5056 = vmatpush1.bf16.msra.mxu1 %v6011_v17 }
 0x40f   : > { %5220 = vmatpush1.bf16.msra.mxu0 %v6013_v29  ;;  %5057 = vmatprep.subr.bf16.mxu1 %v6020_v30 }
 0x410   : > { %5221 = vmatprep.subr.bf16.mxu0 %v6022_v43  ;;  %v7426_v43 = vsub.s32 %v5292_v28, %v6791_v15 }
 0x412   : > { %5058 = vmatpush1.bf16.msra.mxu1 %v6019_v50 }
 0x413   : > { %5222 = vmatpush1.bf16.msra.mxu0 %v6021_v31  ;;  %5059 = vmatprep.subr.bf16.mxu1 %v6028_v32  ;;  %v6051_v32 = vcombine.low %v1928_v36, %v1932_v60  ;;  %v6069_v36 = vcombine.low %v1945_v56, %v1949_v58 }
 0x414   : > { %5223 = vmatprep.subr.bf16.mxu0 %v6030_v33  ;;  %v6053_v33 = vcombine.low %v1929_v6, %v1933_v7  ;;  %v1964_v6 = vld [vmem:[%s6782_s21 + $0xef0] sm:$0xff]  ;;  %v1961_v7 = vld [vmem:[%s6782_s21 + $0xed8] sm:$0xff] }
 0x416   : > { %5060 = vmatpush1.bf16.msra.mxu1 %v6027_v40  ;;  %v6062_v40 = vcombine.high %v1937_v47, %v1941_v49  ;;  %v1985_v47 = vld [vmem:[%s6782_s21 + $0xf98] sm:$0xff] }
 0x417   : > { %5224 = vmatpush1.bf16.msra.mxu0 %v6029_v44  ;;  %5061 = vmatprep.subr.bf16.mxu1 %v6036_v45  ;;  %v1944_v44 = vld [vmem:[%s6782_s21 + $0xe50] sm:$0xff]  ;;  %v1989_v49 = vld [vmem:[%s6782_s21 + $0xfb8] sm:$0xff] }
 0x418   : > { %v4757_v5 = vpop.f32.mrb[8].mxu1  ;;  %5225 = vmatprep.subr.bf16.mxu0 %v6038_v51  ;;  %v1948_v45 = vld [vmem:[%s6782_s21 + $0xe70] sm:$0xff] }
 0x419   : > { %v6123_v9 = vadd.f32 %v4757_v5, %v2003_v13  ;;  %v4921_v10 = vpop.f32.mrb[12].mxu0  ;;  %v4759_v11 = vpop.f32.mrb[9].mxu1  ;;  %v6068_v63 = vcombine.high %v1944_v44, %v1948_v45 }
 0x41a   : > { %v6125_v14 = vadd.f32 %v4921_v10, %v2011_v1  ;;  %v6124_v54 = vadd.f32 %v4759_v11, %v2007_v57  ;;  %v4923_v19 = vpop.f32.mrb[13].mxu0  ;;  %v4761_v52 = vpop.f32.mrb[10].mxu1  ;;  %5062 = vmatpush1.bf16.msra.mxu1 %v6035_v16  ;;  %v6070_v1 = vcombine.high %v1945_v56, %v1949_v58  ;;  %v1952_v57 = vld [vmem:[%s6782_s21 + $0xe90] sm:$0xff] }
 0x41b   : > { %vm5256_vm11 = vcmp.ge.f32.partialorder %v6123_v9, 0.0  ;;  %v5264_v23 = vmul.f32 0.01, %v6123_v9  ;;  %v6126_v27 = vadd.f32 %v4923_v19, %v2015_v2  ;;  %v4925_v24 = vpop.f32.mrb[14].mxu0  ;;  %5226 = vmatpush1.bf16.msra.mxu0 %v6037_v3  ;;  %v4762_v26 = vpop.f32.mrb[11].mxu1  ;;  %5063 = vmatprep.subr.bf16.mxu1 %v6044_v4  ;;  %v1956_v16 = vld [vmem:[%s6782_s21 + $0xeb0] sm:$0xff]  ;;  %v6067_v4 = vcombine.low %v1944_v44, %v1948_v45 }
 0x41c   : > { %vm5258_vm12 = vcmp.ge.f32.partialorder %v6125_v14, 0.0  ;;  %v5266_v17 = vmul.f32 0.01, %v6125_v14  ;;  %vm5257_vm13 = vcmp.ge.f32.partialorder %v6124_v54, 0.0  ;;  %v5265_v29 = vmul.f32 0.01, %v6124_v54  ;;  %5227 = vmatprep.subr.bf16.mxu0 %v6046_v18 }
 0x41d   : > { %v5272_v30 = vsel %vm5256_vm11, %v6123_v9, %v5264_v23  ;;  %vm5259_vm14 = vcmp.ge.f32.partialorder %v6126_v27, 0.0  ;;  %v5267_v46 = vmul.f32 0.01, %v6126_v27  ;;  %v4926_v25 = vpop.f32.mrb[15].mxu0  ;;  %v1953_v2 = vld [vmem:[%s6782_s21 + $0xe98] sm:$0xff]  ;;  %v6076_v60 = vcombine.high %v1952_v57, %v1956_v16  ;;  %v1960_v18 = vld [vmem:[%s6782_s21 + $0xed0] sm:$0xff] }
 0x41e   : > { %v5274_v50 = vsel %vm5258_vm12, %v6125_v14, %v5266_v17  ;;  %v5273_v31 = vsel %vm5257_vm13, %v6124_v54, %v5265_v29  ;;  %5064 = vmatpush1.bf16.msra.mxu1 %v6043_v12  ;;  %v1957_v3 = vld [vmem:[%s6782_s21 + $0xeb8] sm:$0xff]  ;;  %v6075_v10 = vcombine.low %v1952_v57, %v1956_v16  ;;  %v6084_v28 = vcombine.high %v1960_v18, %v1964_v6  ;;  %v1968_v14 = vld [vmem:[%s6782_s21 + $0xf10] sm:$0xff] }
 0x41f   : > { %v5288_v34 = vcombine.low %v5272_v30, %v5273_v31  ;;  %v5275_v35 = vsel %vm5259_vm14, %v6126_v27, %v5267_v46  ;;  %5228 = vmatpush1.bf16.msra.mxu0 %v6045_v20  ;;  %5065 = vmatprep.subr.bf16.mxu1 %v6052_v21  ;;  %v6078_v5 = vcombine.high %v1953_v2, %v1957_v3  ;;  %v1965_v9 = vld [vmem:[%s6782_s21 + $0xef8] sm:$0xff]  ;;  %v1972_v54 = vld [vmem:[%s6782_s21 + $0xf30] sm:$0xff] }
 0x420   : > { %v5289_v39 = vcombine.low %v5274_v50, %v5275_v35  ;;  %5229 = vmatprep.subr.bf16.mxu0 %v6054_v37  ;;  %v6077_v11 = vcombine.low %v1953_v2, %v1957_v3  ;;  %v6086_v12 = vcombine.high %v1961_v7, %v1965_v9  ;;  %v1969_v19 = vld [vmem:[%s6782_s21 + $0xf18] sm:$0xff]  ;;  %v6083_v20 = vcombine.low %v1960_v18, %v1964_v6  ;;  %v1976_v27 = vld [vmem:[%s6782_s21 + $0xf50] sm:$0xff] }
 0x421   : > { %v5296_v51 = vrot.slane %v5288_v34, %v7426_v43  ;;  %v1973_v52 = vld [vmem:[%s6782_s21 + $0xf38] sm:$0xff]  ;;  %v6085_v21 = vcombine.low %v1961_v7, %v1965_v9  ;;  %v6092_v22 = vcombine.high %v1968_v14, %v1972_v54  ;;  %v1980_v24 = vld [vmem:[%s6782_s21 + $0xf70] sm:$0xff]  ;;  %v6091_v59 = vcombine.low %v1968_v14, %v1972_v54 }
 0x422   : > { %v5303_v13 = vrot.slane %v5289_v39, %v7426_v43  ;;  %5066 = vmatpush1.bf16.msra.mxu1 %v6051_v32  ;;  %v6094_v23 = vcombine.high %v1969_v19, %v1973_v52  ;;  %v1977_v26 = vld [vmem:[%s6782_s21 + $0xf58] sm:$0xff]  ;;  %v6093_v17 = vcombine.low %v1969_v19, %v1973_v52  ;;  %v6100_v29 = vcombine.high %v1976_v27, %v1980_v24  ;;  %v1984_v46 = vld [vmem:[%s6782_s21 + $0xf90] sm:$0xff] }
 0x423   : > { %5230 = vmatpush1.bf16.msra.mxu0 %v6053_v33  ;;  %5067 = vmatprep.subr.bf16.mxu1 %v6060_v38  ;;  %v1981_v37 = vld [vmem:[%s6782_s21 + $0xf78] sm:$0xff]  ;;  %v1988_v25 = vld [vmem:[%s6782_s21 + $0xfb0] sm:$0xff]  ;;  %v6099_v50 = vcombine.low %v1976_v27, %v1980_v24  ;;  %v6110_v33 = vcombine.high %v1985_v47, %v1989_v49  ;;  %v6109_v44 = vcombine.low %v1985_v47, %v1989_v49 }
 0x424   : > { %v5304_v0 = vcombine.low %v5296_v51, %v5303_v13  ;;  %5231 = vmatprep.subr.bf16.mxu0 %v6062_v40  ;;  %v6102_v30 = vcombine.high %v1977_v26, %v1981_v37  ;;  %v6101_v31 = vcombine.low %v1977_v26, %v1981_v37  ;;  %v6108_v32 = vcombine.high %v1984_v46, %v1988_v25  ;;  %v1992_v34 = vld [vmem:[%s6782_s21 + $0xfd0] sm:$0xff]  ;;  %v1993_v38 = vld [vmem:[%s6782_s21 + $0xfd8] sm:$0xff] }
 0x425   : > { %v1996_v35 = vld [vmem:[%s6782_s21 + $0xff0] sm:$0xff]  ;;  %v1997_v39 = vld [vmem:[%s6782_s21 + $0xff8] sm:$0xff]  ;;  %v6107_v40 = vcombine.low %v1984_v46, %v1988_v25  ;;  %v2019_v13 = vrot.slane %v7390_v42, %v628_v41 }
 0x426   : > { %5324 = vst [vmem:[%s7440_s12] sm:$0xff] %v5304_v0  ;;  %5068 = vmatpush1.bf16.msra.mxu1 %v6059_v61  ;;  %v6116_v45 = vcombine.high %v1992_v34, %v1996_v35  ;;  %v6118_v51 = vcombine.high %v1993_v38, %v1997_v39  ;;  %v6115_v56 = vcombine.low %v1992_v34, %v1996_v35 }
 0x427   : > { %5232 = vmatpush1.bf16.msra.mxu0 %v6061_v62  ;;  %5069 = vmatprep.subr.bf16.mxu1 %v6068_v63  ;;  %v6117_v58 = vcombine.low %v1993_v38, %v1997_v39  ;;  %v2027_v61 = vrot.slane %v7390_v42, %v636_v53  ;;  %v2023_v62 = vrot.slane %v7390_v42, %v632_v8 }
 0x428   : > { %5233 = vmatprep.subr.bf16.mxu0 %v6070_v1  ;;  %v2031_v63 = vrot.slane %v7390_v42, %v640_v55 }
 0x42a   : > { %5070 = vmatpush1.bf16.msra.mxu1 %v6067_v4 }
 0x42b   : > { %5234 = vmatpush1.bf16.msra.mxu0 %v6069_v36  ;;  %5071 = vmatprep.subr.bf16.mxu1 %v6076_v60 }
 0x42c   : > { %5235 = vmatprep.subr.bf16.mxu0 %v6078_v5 }
 0x42e   : > { %5072 = vmatpush1.bf16.msra.mxu1 %v6075_v10 }
 0x42f   : > { %5236 = vmatpush1.bf16.msra.mxu0 %v6077_v11  ;;  %5073 = vmatprep.subr.bf16.mxu1 %v6084_v28 }
 0x430   : > { %5237 = vmatprep.subr.bf16.mxu0 %v6086_v12 }
 0x432   : > { %5074 = vmatpush1.bf16.msra.mxu1 %v6083_v20 }
 0x433   : > { %5238 = vmatpush1.bf16.msra.mxu0 %v6085_v21  ;;  %5075 = vmatprep.subr.bf16.mxu1 %v6092_v22 }
 0x434   : > { %5239 = vmatprep.subr.bf16.mxu0 %v6094_v23 }
 0x436   : > { %5076 = vmatpush1.bf16.msra.mxu1 %v6091_v59 }
 0x437   : > { %5240 = vmatpush1.bf16.msra.mxu0 %v6093_v17  ;;  %5077 = vmatprep.subr.bf16.mxu1 %v6100_v29 }
 0x438   : > { %5241 = vmatprep.subr.bf16.mxu0 %v6102_v30 }
 0x43a   : > { %5078 = vmatpush1.bf16.msra.mxu1 %v6099_v50 }
 0x43b   : > { %5242 = vmatpush1.bf16.msra.mxu0 %v6101_v31  ;;  %5079 = vmatprep.subr.bf16.mxu1 %v6108_v32 }
 0x43c   : > { %5243 = vmatprep.subr.bf16.mxu0 %v6110_v33 }
 0x43e   : > { %5080 = vmatpush1.bf16.msra.mxu1 %v6107_v40 }
 0x43f   : > { %5244 = vmatpush1.bf16.msra.mxu0 %v6109_v44  ;;  %5081 = vmatprep.subr.bf16.mxu1 %v6116_v45 }
 0x440   : > { %5245 = vmatprep.subr.bf16.mxu0 %v6118_v51 }
 0x442   : > { %5082 = vmatpush1.bf16.msra.mxu1 %v6115_v56 }
 0x443   : > { %5246 = vmatpush1.bf16.msra.mxu0 %v6117_v58 }
 0x445   : > { %5084 = vmatmul.mubr.bf16.vlgmr.msra.gmra.mrb[12].mxu1 %v7162_v48 }
 0x446   : > { %5248 = vmatmul.mubr.bf16.vlgmr.msra.gmra.mrb[16].mxu0 %v7162_v48 }
 0x518   : > { %v5085_v0 = vpop.f32.mrb[12].mxu1 }
 0x519   : > { %v6127_v1 = vadd.f32 %v5085_v0, %v2019_v13  ;;  %v5249_v57 = vpop.f32.mrb[16].mxu0  ;;  %v5087_v48 = vpop.f32.mrb[13].mxu1 }
 0x51a   : > { %v6129_v16 = vadd.f32 %v5249_v57, %v2027_v61  ;;  %v6128_v2 = vadd.f32 %v5087_v48, %v2023_v62  ;;  %v5251_v3 = vpop.f32.mrb[17].mxu0  ;;  %v5089_v41 = vpop.f32.mrb[14].mxu1 }
 0x51b   : > { %vm5260_vm15 = vcmp.ge.f32.partialorder %v6127_v1, 0.0  ;;  %v5268_v4 = vmul.f32 0.01, %v6127_v1  ;;  %v6130_v36 = vadd.f32 %v5251_v3, %v2031_v63  ;;  %v5253_v53 = vpop.f32.mrb[18].mxu0  ;;  %v5090_v60 = vpop.f32.mrb[15].mxu1 }
 0x51c   : > { %vm5262_vm0 = vcmp.ge.f32.partialorder %v6129_v16, 0.0  ;;  %v5270_v8 = vmul.f32 0.01, %v6129_v16  ;;  %vm5261_vm1 = vcmp.ge.f32.partialorder %v6128_v2, 0.0  ;;  %v5269_v15 = vmul.f32 0.01, %v6128_v2 }
 0x51d   : > { %v5276_v5 = vsel %vm5260_vm15, %v6127_v1, %v5268_v4  ;;  %vm5263_vm2 = vcmp.ge.f32.partialorder %v6130_v36, 0.0  ;;  %v5271_v55 = vmul.f32 0.01, %v6130_v36  ;;  %v5254_v42 = vpop.f32.mrb[19].mxu0 }
 0x51e   : > { %v5278_v18 = vsel %vm5262_vm0, %v6129_v16, %v5270_v8  ;;  %v5277_v6 = vsel %vm5261_vm1, %v6128_v2, %v5269_v15 }
 0x51f   : > { %v5305_v7 = vcombine.low %v5276_v5, %v5277_v6  ;;  %v5279_v9 = vsel %vm5263_vm2, %v6130_v36, %v5271_v55 }
 0x520   : > { %v5306_v10 = vcombine.low %v5278_v18, %v5279_v9 }
 0x521   : > { %v5313_v11 = vrot.slane %v5305_v7, %v7426_v43 }
 0x522   : > { %v5320_v28 = vrot.slane %v5306_v10, %v7426_v43 }
 0x524   : > { %v5321_v12 = vcombine.low %v5313_v11, %v5320_v28 }
 0x526   : > { %5325 = vst [vmem:[%s7440_s12 + $0x8] sm:$0xff] %v5321_v12 }
 0x527 PF: > { %s7540_s27 = sld [smem:[#allocation15_spill]]  ;;  %s7541_s17 = sld [smem:[#allocation16_spill]] }
 0x528   : > { %s7542_s24 = smov %s6488_s25  ;;  %s7543_s25 = smov %s6492_s26 }
 0x52d   : > { %p17_p1 = scmp.ge.s32.totalorder %s7540_s27, 6   ;;  %s7544_s26 = smov %s7541_s17 }
 0x52f   :  { %19 = sbr.rel (!%p17_p1) target bundleno = 7 (0x7), region = 114 }
 0x536   :  { %5348 = vsyncpa [#allocation3], 1 }
 0x537   :  { %5350 = vsyncpa [#allocation3 + $0x1], 1 }
 0x538   :  { %5351 = vsyncpa [#allocation5], 1 }
 0x539   :  { %5352 = vsyncpa [#allocation8], 1 }

// kernel: decoder_forward.7
= control target key start
LH: loop header
LB: loop body
LE: loop exit
PB: predicated region body
PF: predicated region fallthrough
CT: control target
= control target key end

     0   :  { %v868_v1 = vmov 0   ;;  %v869_v22 = vmov 0.0   ;;  %vm870_vm0 = vmmov 0   ;;  %s1278_s1 = inlined_call_operand.vmem [shape: bf16[128,640], index: 1, kind: input, shape index: {}]   ;;  %s1279_s0 = inlined_call_operand.vmem [shape: bf16[98,128], index: 0, kind: input, shape index: {}]   ;;  %s1280_s2 = inlined_call_operand.vmem [shape: f32[98,640], index: 2, kind: output, shape index: {}]  }
   0x1   :  { %v805_v0 = vld [vmem:[%s1278_s1 + $0x4] ss:$20 sps:$4 sm:$0xff]   ;;  %353 = vmatprep.mubr.bf16.mxu0 %v868_v1  ;;  %393 = vmatprep.mubr.bf16.mxu1 %v868_v1  ;;  %v807_v2 = vld [vmem:[%s1278_s1] ss:$20 sps:$4 sm:$0xff]   ;;  %v810_v4 = vld [vmem:[%s1278_s1 + $0x28] ss:$20 sps:$4 sm:$0xff]  }
   0x2   :  { %321 = vmatprep.subr.bf16.mxu0 %v805_v0  ;;  %786 = vmatprep.subr.bf16.mxu1 %v805_v0  ;;  %v808_v3 = vld [vmem:[%s1278_s1 + $0x2c] ss:$20 sps:$4 sm:$0xff]   ;;  %v811_v5 = vld [vmem:[%s1278_s1 + $0x54] ss:$20 sps:$4 sm:$0xff]   ;;  %v813_v6 = vld [vmem:[%s1278_s1 + $0x50] ss:$20 sps:$4 sm:$0xff]  }
   0x3   :  { %322 = vmatpush1.bf16.msra.mxu0 %v807_v2  ;;  %794 = vmatpush1.bf16.msra.mxu1 %v807_v2  ;;  %v814_v7 = vld [vmem:[%s1278_s1 + $0x7c] ss:$20 sps:$4 sm:$0xff]   ;;  %v816_v8 = vld [vmem:[%s1278_s1 + $0x78] ss:$20 sps:$4 sm:$0xff]   ;;  %v819_v10 = vld [vmem:[%s1278_s1 + $0xa0] ss:$20 sps:$4 sm:$0xff]  }
   0x4   :  { %323 = vmatprep.subr.bf16.mxu0 %v808_v3  ;;  %787 = vmatprep.subr.bf16.mxu1 %v808_v3  ;;  %v817_v9 = vld [vmem:[%s1278_s1 + $0xa4] ss:$20 sps:$4 sm:$0xff]   ;;  %v820_v11 = vld [vmem:[%s1278_s1 + $0xcc] ss:$20 sps:$4 sm:$0xff]   ;;  %v822_v12 = vld [vmem:[%s1278_s1 + $0xc8] ss:$20 sps:$4 sm:$0xff]  }
   0x5   :  { %v823_v13 = vld [vmem:[%s1278_s1 + $0xf4] ss:$20 sps:$4 sm:$0xff]   ;;  %v825_v14 = vld [vmem:[%s1278_s1 + $0xf0] ss:$20 sps:$4 sm:$0xff]   ;;  %v828_v16 = vld [vmem:[%s1278_s1 + $0x118] ss:$20 sps:$4 sm:$0xff]  }
   0x6   :  { %v826_v15 = vld [vmem:[%s1278_s1 + $0x11c] ss:$20 sps:$4 sm:$0xff]   ;;  %v939_v17 = vld [vmem:[%s1279_s0] sm:$0xff]   ;;  %v837_v23 = vld [vmem:[%s1278_s1 + $0x34] ss:$20 sps:$4 sm:$0xff]  }
   0x7   :  { %324 = vmatpush1.bf16.msra.mxu0 %v810_v4  ;;  %795 = vmatpush1.bf16.msra.mxu1 %v810_v4  ;;  %v833_v18 = vld [vmem:[%s1278_s1 + $0xc] ss:$20 sps:$4 sm:$0xff]   ;;  %v831_v20 = vld [vmem:[%s1278_s1 + $0x8] ss:$20 sps:$4 sm:$0xff]   ;;  %v834_v21 = vld [vmem:[%s1278_s1 + $0x10] ss:$20 sps:$4 sm:$0xff]  }
   0x8   :  { %325 = vmatprep.subr.bf16.mxu0 %v811_v5  ;;  %788 = vmatprep.subr.bf16.mxu1 %v811_v5  ;;  %v947_v19 = vld [vmem:[%s1279_s0 + $0x20] sm:$0xff]   ;;  %v838_v25 = vld [vmem:[%s1278_s1 + $0x38] ss:$20 sps:$4 sm:$0xff]   ;;  %v842_v26 = vld [vmem:[%s1278_s1 + $0x5c] ss:$20 sps:$4 sm:$0xff]  }
   0x9   :  { %v835_v24 = vld [vmem:[%s1278_s1 + $0x30] ss:$20 sps:$4 sm:$0xff]   ;;  %v976_v27 = vld [vmem:[%s1279_s0 + $0x8] sm:$0xff]   ;;  %v843_v30 = vld [vmem:[%s1278_s1 + $0x60] ss:$20 sps:$4 sm:$0xff]  }
   0xa   :  { %v981_v28 = vld [vmem:[%s1279_s0 + $0x28] sm:$0xff]   ;;  %v846_v31 = vld [vmem:[%s1278_s1 + $0x84] ss:$20 sps:$4 sm:$0xff]   ;;  %v844_v32 = vld [vmem:[%s1278_s1 + $0x80] ss:$20 sps:$4 sm:$0xff]  }
   0xb   :  { %326 = vmatpush1.bf16.msra.mxu0 %v813_v6  ;;  %796 = vmatpush1.bf16.msra.mxu1 %v813_v6  ;;  %v840_v29 = vld [vmem:[%s1278_s1 + $0x58] ss:$20 sps:$4 sm:$0xff]   ;;  %v847_v33 = vld [vmem:[%s1278_s1 + $0x88] ss:$20 sps:$4 sm:$0xff]   ;;  %v849_v35 = vld [vmem:[%s1279_s0 + $0x10] sm:$0xff]  }
   0xc   :  { %327 = vmatprep.subr.bf16.mxu0 %v814_v7  ;;  %789 = vmatprep.subr.bf16.mxu1 %v814_v7  ;;  %v852_v34 = vld [vmem:[%s1278_s1 + $0xac] ss:$20 sps:$4 sm:$0xff]   ;;  %v858_v36 = vld [vmem:[%s1279_s0 + $0x30] ss:$0 sps:$4 sm:$0x11]   ;;  %v859_v43 = vld [vmem:[%s1279_s0 + $0x18] sm:$0xff]  }
   0xd   :  { %v850_v37 = vld [vmem:[%s1278_s1 + $0xa8] ss:$20 sps:$4 sm:$0xff]   ;;  %v853_v38 = vld [vmem:[%s1278_s1 + $0xb0] ss:$20 sps:$4 sm:$0xff]   ;;  %v857_v41 = vld [vmem:[%s1278_s1 + $0xd8] ss:$20 sps:$4 sm:$0xff]  }
   0xe   :  { %v856_v39 = vld [vmem:[%s1278_s1 + $0xd4] ss:$20 sps:$4 sm:$0xff]   ;;  %v854_v40 = vld [vmem:[%s1278_s1 + $0xd0] ss:$20 sps:$4 sm:$0xff]   ;;  %v860_v44 = vld [vmem:[%s1278_s1 + $0xf8] ss:$20 sps:$4 sm:$0xff]  }
   0xf   :  { %328 = vmatpush1.bf16.msra.mxu0 %v816_v8  ;;  %797 = vmatpush1.bf16.msra.mxu1 %v816_v8  ;;  %v862_v42 = vld [vmem:[%s1278_s1 + $0xfc] ss:$20 sps:$4 sm:$0xff]   ;;  %v863_v45 = vld [vmem:[%s1278_s1 + $0x100] ss:$20 sps:$4 sm:$0xff]   ;;  %v866_v46 = vld [vmem:[%s1278_s1 + $0x124] ss:$20 sps:$4 sm:$0xff]  }
  0x10   :  { %329 = vmatprep.subr.bf16.mxu0 %v817_v9  ;;  %790 = vmatprep.subr.bf16.mxu1 %v817_v9  ;;  %v864_v47 = vld [vmem:[%s1278_s1 + $0x120] ss:$20 sps:$4 sm:$0xff]   ;;  %v867_v48 = vld [vmem:[%s1278_s1 + $0x128] ss:$20 sps:$4 sm:$0xff]  }
  0x13   :  { %330 = vmatpush1.bf16.msra.mxu0 %v819_v10  ;;  %798 = vmatpush1.bf16.msra.mxu1 %v819_v10 }
  0x14   :  { %331 = vmatprep.subr.bf16.mxu0 %v820_v11  ;;  %791 = vmatprep.subr.bf16.mxu1 %v820_v11 }
  0x17   :  { %332 = vmatpush1.bf16.msra.mxu0 %v822_v12  ;;  %799 = vmatpush1.bf16.msra.mxu1 %v822_v12 }
  0x18   :  { %333 = vmatprep.subr.bf16.mxu0 %v823_v13  ;;  %792 = vmatprep.subr.bf16.mxu1 %v823_v13 }
  0x1b   :  { %334 = vmatpush1.bf16.msra.mxu0 %v825_v14  ;;  %800 = vmatpush1.bf16.msra.mxu1 %v825_v14 }
  0x1c   :  { %335 = vmatprep.subr.bf16.mxu0 %v826_v15  ;;  %793 = vmatprep.subr.bf16.mxu1 %v826_v15 }
  0x1f   :  { %336 = vmatpush1.bf16.msra.mxu0 %v828_v16  ;;  %801 = vmatpush1.bf16.msra.mxu1 %v828_v16 }
  0x20   :  { %422 = vmatprep.subr.bf16.mxu1 %v833_v18  ;;  %742 = vmatprep.subr.bf16.mxu0 %v869_v22 }
  0x22   :  { %354 = vmatmul.mubr.bf16.vlgmr.msra.gmra.mrb[0].mxu0 %v939_v17  ;;  %394 = vmatmul.mubr.bf16.vlgmr.msra.gmra.mrb[0].mxu1 %v947_v19 }
  0x23   :  { %423 = vmatpush1.bf16.msra.mxu1 %v831_v20  ;;  %743 = vmatpush3.bf16.msra.mxu0 %v834_v21 }
  0x24   :  { %424 = vmatprep.subr.bf16.mxu1 %v837_v23  ;;  %744 = vmatprep.subr.bf16.mxu0 %v869_v22 }
  0x25   :  { %363 = vmatprep.mubr.bf16.mxu0 %v868_v1  ;;  %403 = vmatprep.mubr.bf16.mxu1 %v868_v1 }
  0x27   :  { %425 = vmatpush1.bf16.msra.mxu1 %v835_v24  ;;  %745 = vmatpush3.bf16.msra.mxu0 %v838_v25 }
  0x28   :  { %426 = vmatprep.subr.bf16.mxu1 %v842_v26  ;;  %746 = vmatprep.subr.bf16.mxu0 %v869_v22 }
  0x2a   :  { %364 = vmatmul.mubr.bf16.gmra.mrb[4].mxu0 %v976_v27  ;;  %404 = vmatmul.mubr.bf16.gmra.mrb[4].mxu1 %v981_v28 }
  0x2b   :  { %427 = vmatpush1.bf16.msra.mxu1 %v840_v29  ;;  %747 = vmatpush3.bf16.msra.mxu0 %v843_v30 }
  0x2c   :  { %428 = vmatprep.subr.bf16.mxu1 %v846_v31  ;;  %748 = vmatprep.subr.bf16.mxu0 %v869_v22 }
  0x2d   :  { %373 = vmatprep.mubr.bf16.mxu0 %v868_v1  ;;  %413 = vmatprep.mubr.bf16.mxu1 %v868_v1 }
  0x2f   :  { %429 = vmatpush1.bf16.msra.mxu1 %v844_v32  ;;  %749 = vmatpush3.bf16.msra.mxu0 %v847_v33 }
  0x30   :  { %430 = vmatprep.subr.bf16.mxu1 %v852_v34  ;;  %750 = vmatprep.subr.bf16.mxu0 %v869_v22 }
  0x32   :  { %374 = vmatmul.mubr.bf16.gmra.mrb[8].mxu0 %v849_v35  ;;  %414 = vmatmul.mubr.bf16.gmra.mrb[8].mxu1 %v858_v36 }
  0x33   :  { %431 = vmatpush1.bf16.msra.mxu1 %v850_v37  ;;  %751 = vmatpush3.bf16.msra.mxu0 %v853_v38 }
  0x34   :  { %432 = vmatprep.subr.bf16.mxu1 %v856_v39  ;;  %752 = vmatprep.subr.bf16.mxu0 %v869_v22 }
  0x35   :  { %383 = vmatprep.mubr.bf16.mxu0 %v868_v1  ;;  %454 = vmatprep.mubr.bf16.mxu1 %v868_v1 }
  0x37   :  { %433 = vmatpush1.bf16.msra.mxu1 %v854_v40  ;;  %753 = vmatpush3.bf16.msra.mxu0 %v857_v41 }
  0x38   :  { %434 = vmatprep.subr.bf16.mxu1 %v862_v42  ;;  %754 = vmatprep.subr.bf16.mxu0 %v869_v22 }
  0x3a   :  { %384 = vmatmul.mubr.bf16.gmra.mrb[12].mxu0 %v859_v43 }
  0x3b   :  { %435 = vmatpush1.bf16.msra.mxu1 %v860_v44  ;;  %755 = vmatpush3.bf16.msra.mxu0 %v863_v45 }
  0x3c   :  { %436 = vmatprep.subr.bf16.mxu1 %v866_v46  ;;  %756 = vmatprep.subr.bf16.mxu0 %v869_v22 }
  0x3d   :  { %758 = vmatprep.mubr.msk.bf16.mxu0 %vm870_vm0, %v869_v22 }
  0x3f   :  { %437 = vmatpush1.bf16.msra.mxu1 %v864_v47  ;;  %757 = vmatpush3.bf16.msra.mxu0 %v867_v48 }
  0x42   :  { %455 = vmatmul.mubr.bf16.vlgmr.msra.gmra.mrb[12].mxu1 %v939_v17  ;;  %759 = vmatmul.mubr.bf16.vlgmr.msra.gmra.mrb[16].mxu0 %v939_v17 }
  0x43   :  { %464 = vmatprep.mubr.bf16.mxu1 %v868_v1  ;;  %762 = vmatprep.mubr.msk.bf16.mxu0 %vm870_vm0, %v869_v22 }
  0x4a   :  { %465 = vmatmul.mubr.bf16.gmra.mrb[16].mxu1 %v976_v27  ;;  %763 = vmatmul.mubr.bf16.gmra.mrb[20].mxu0 %v976_v27 }
  0x4b   :  { %474 = vmatprep.mubr.bf16.mxu1 %v868_v1  ;;  %766 = vmatprep.mubr.msk.bf16.mxu0 %vm870_vm0, %v869_v22 }
  0x52   :  { %475 = vmatmul.mubr.bf16.gmra.mrb[20].mxu1 %v849_v35  ;;  %767 = vmatmul.mubr.bf16.gmra.mrb[24].mxu0 %v849_v35 }
  0x53   :  { %484 = vmatprep.mubr.bf16.mxu1 %v868_v1  ;;  %770 = vmatprep.mubr.msk.bf16.mxu0 %vm870_vm0, %v869_v22 }
  0x5a   :  { %485 = vmatmul.mubr.bf16.gmra.mrb[24].mxu1 %v859_v43  ;;  %771 = vmatmul.mubr.bf16.gmra.mrb[28].mxu0 %v859_v43 }
  0x5b   :  { %494 = vmatprep.mubr.bf16.mxu1 %v868_v1  ;;  %774 = vmatprep.mubr.msk.bf16.mxu0 %vm870_vm0, %v869_v22 }
  0x62   :  { %495 = vmatmul.mubr.bf16.gmra.mrb[28].mxu1 %v947_v19  ;;  %775 = vmatmul.mubr.bf16.gmra.mrb[32].mxu0 %v947_v19 }
  0x63   :  { %504 = vmatprep.mubr.bf16.mxu1 %v868_v1  ;;  %778 = vmatprep.mubr.msk.bf16.mxu0 %vm870_vm0, %v869_v22 }
  0x6a   :  { %505 = vmatmul.mubr.bf16.gmra.mrb[32].mxu1 %v981_v28  ;;  %779 = vmatmul.mubr.bf16.gmra.mrb[36].mxu0 %v981_v28 }
  0x6b   :  { %514 = vmatprep.mubr.bf16.mxu1 %v868_v1  ;;  %782 = vmatprep.mubr.msk.bf16.mxu0 %vm870_vm0, %v869_v22 }
  0x72   :  { %515 = vmatmul.mubr.bf16.gmra.mrb[36].mxu1 %v858_v36  ;;  %783 = vmatmul.mubr.bf16.gmra.mrb[40].mxu0 %v858_v36 }
  0xf5   :  { %v355_v49 = vpop.f32.mrb[0].mxu0  ;;  %v395_v50 = vpop.f32.mrb[0].mxu1 }
  0xf6   :  { %611 = vst [vmem:[%s1280_s2] sm:$0xff] %v355_v49  ;;  %651 = vst [vmem:[%s1280_s2 + $0x140] sm:$0xff] %v395_v50  ;;  %v357_v51 = vpop.f32.mrb[1].mxu0  ;;  %v397_v52 = vpop.f32.mrb[1].mxu1 }
  0xf7   :  { %612 = vst [vmem:[%s1280_s2 + $0x8] sm:$0xff] %v357_v51  ;;  %652 = vst [vmem:[%s1280_s2 + $0x148] sm:$0xff] %v397_v52  ;;  %v359_v53 = vpop.f32.mrb[2].mxu0  ;;  %v399_v54 = vpop.f32.mrb[2].mxu1 }
  0xf8   :  { %616 = vst [vmem:[%s1280_s2 + $0x28] sm:$0xff] %v359_v53  ;;  %656 = vst [vmem:[%s1280_s2 + $0x168] sm:$0xff] %v399_v54  ;;  %v361_v55 = vpop.f32.mrb[3].mxu0  ;;  %v401_v56 = vpop.f32.mrb[3].mxu1 }
  0xf9   :  { %617 = vst [vmem:[%s1280_s2 + $0x30] sm:$0xff] %v361_v55  ;;  %657 = vst [vmem:[%s1280_s2 + $0x170] sm:$0xff] %v401_v56 }
  0xfd   :  { %v365_v57 = vpop.f32.mrb[4].mxu0  ;;  %v405_v58 = vpop.f32.mrb[4].mxu1 }
  0xfe   :  { %621 = vst [vmem:[%s1280_s2 + $0x50] sm:$0xff] %v365_v57  ;;  %v367_v59 = vpop.f32.mrb[5].mxu0  ;;  %661 = vst [vmem:[%s1280_s2 + $0x190] sm:$0xff] %v405_v58  ;;  %v407_v60 = vpop.f32.mrb[5].mxu1 }
  0xff   :  { %622 = vst [vmem:[%s1280_s2 + $0x58] sm:$0xff] %v367_v59  ;;  %v369_v61 = vpop.f32.mrb[6].mxu0  ;;  %662 = vst [vmem:[%s1280_s2 + $0x198] sm:$0xff] %v407_v60  ;;  %v409_v62 = vpop.f32.mrb[6].mxu1 }
 0x100   :  { %626 = vst [vmem:[%s1280_s2 + $0x78] sm:$0xff] %v369_v61  ;;  %v371_v63 = vpop.f32.mrb[7].mxu0  ;;  %666 = vst [vmem:[%s1280_s2 + $0x1b8] sm:$0xff] %v409_v62  ;;  %v411_v0 = vpop.f32.mrb[7].mxu1 }
 0x101   :  { %627 = vst [vmem:[%s1280_s2 + $0x80] sm:$0xff] %v371_v63  ;;  %667 = vst [vmem:[%s1280_s2 + $0x1c0] sm:$0xff] %v411_v0 }
 0x105   :  { %v375_v1 = vpop.f32.mrb[8].mxu0  ;;  %v415_v2 = vpop.f32.mrb[8].mxu1 }
 0x106   :  { %631 = vst [vmem:[%s1280_s2 + $0xa0] sm:$0xff] %v375_v1  ;;  %v377_v3 = vpop.f32.mrb[9].mxu0  ;;  %671 = vst [vmem:[%s1280_s2 + $0x1e0] sm:$0x3] %v415_v2  ;;  %v417_v4 = vpop.f32.mrb[9].mxu1 }
 0x107   :  { %632 = vst [vmem:[%s1280_s2 + $0xa8] sm:$0xff] %v377_v3  ;;  %v379_v5 = vpop.f32.mrb[10].mxu0  ;;  %672 = vst [vmem:[%s1280_s2 + $0x1e8] sm:$0x3] %v417_v4  ;;  %v419_v6 = vpop.f32.mrb[10].mxu1 }
 0x108   :  { %636 = vst [vmem:[%s1280_s2 + $0xc8] sm:$0xff] %v379_v5  ;;  %v381_v7 = vpop.f32.mrb[11].mxu0  ;;  %v420_v8 = vpop.f32.mrb[11].mxu1 }
 0x109   :  { %637 = vst [vmem:[%s1280_s2 + $0xd0] sm:$0xff] %v381_v7 }
 0x10d   :  { %v385_v9 = vpop.f32.mrb[12].mxu0 }
 0x10e   :  { %641 = vst [vmem:[%s1280_s2 + $0xf0] sm:$0xff] %v385_v9  ;;  %v387_v10 = vpop.f32.mrb[13].mxu0 }
 0x10f   :  { %642 = vst [vmem:[%s1280_s2 + $0xf8] sm:$0xff] %v387_v10  ;;  %v389_v11 = vpop.f32.mrb[14].mxu0 }
 0x110   :  { %646 = vst [vmem:[%s1280_s2 + $0x118] sm:$0xff] %v389_v11  ;;  %v391_v12 = vpop.f32.mrb[15].mxu0 }
 0x111   :  { %647 = vst [vmem:[%s1280_s2 + $0x120] sm:$0xff] %v391_v12 }
 0x115   :  { %v456_v13 = vpop.f32.mrb[12].mxu1  ;;  %v557_v14 = vpop.f32.mrb[16].mxu0 }
 0x116   :  { %613 = vst [vmem:[%s1280_s2 + $0x10] sm:$0xff] %v456_v13  ;;  %615 = vst [vmem:[%s1280_s2 + $0x20] sm:$0xff] %v557_v14  ;;  %v458_v15 = vpop.f32.mrb[13].mxu1  ;;  %v760_v16 = vpop.f32.mrb[17].mxu0 }
 0x117   :  { %614 = vst [vmem:[%s1280_s2 + $0x18] sm:$0xff] %v458_v15  ;;  %v460_v17 = vpop.f32.mrb[14].mxu1  ;;  %v560_v18 = vpop.f32.mrb[18].mxu0 }
 0x118   :  { %618 = vst [vmem:[%s1280_s2 + $0x38] sm:$0xff] %v460_v17  ;;  %620 = vst [vmem:[%s1280_s2 + $0x48] sm:$0xff] %v560_v18  ;;  %v462_v19 = vpop.f32.mrb[15].mxu1  ;;  %v761_v20 = vpop.f32.mrb[19].mxu0 }
 0x119   :  { %619 = vst [vmem:[%s1280_s2 + $0x40] sm:$0xff] %v462_v19 }
 0x11d   :  { %v466_v21 = vpop.f32.mrb[16].mxu1  ;;  %v565_v22 = vpop.f32.mrb[20].mxu0 }
 0x11e   :  { %623 = vst [vmem:[%s1280_s2 + $0x60] sm:$0xff] %v466_v21  ;;  %625 = vst [vmem:[%s1280_s2 + $0x70] sm:$0xff] %v565_v22  ;;  %v468_v23 = vpop.f32.mrb[17].mxu1  ;;  %v764_v24 = vpop.f32.mrb[21].mxu0 }
 0x11f   :  { %624 = vst [vmem:[%s1280_s2 + $0x68] sm:$0xff] %v468_v23  ;;  %v470_v25 = vpop.f32.mrb[18].mxu1  ;;  %v568_v26 = vpop.f32.mrb[22].mxu0 }
 0x120   :  { %628 = vst [vmem:[%s1280_s2 + $0x88] sm:$0xff] %v470_v25  ;;  %630 = vst [vmem:[%s1280_s2 + $0x98] sm:$0xff] %v568_v26  ;;  %v472_v27 = vpop.f32.mrb[19].mxu1  ;;  %v765_v28 = vpop.f32.mrb[23].mxu0 }
 0x121   :  { %629 = vst [vmem:[%s1280_s2 + $0x90] sm:$0xff] %v472_v27 }
 0x125   :  { %v476_v29 = vpop.f32.mrb[20].mxu1  ;;  %v573_v30 = vpop.f32.mrb[24].mxu0 }
 0x126   :  { %633 = vst [vmem:[%s1280_s2 + $0xb0] sm:$0xff] %v476_v29  ;;  %635 = vst [vmem:[%s1280_s2 + $0xc0] sm:$0xff] %v573_v30  ;;  %v478_v31 = vpop.f32.mrb[21].mxu1  ;;  %v768_v32 = vpop.f32.mrb[25].mxu0 }
 0x127   :  { %634 = vst [vmem:[%s1280_s2 + $0xb8] sm:$0xff] %v478_v31  ;;  %v480_v33 = vpop.f32.mrb[22].mxu1  ;;  %v576_v34 = vpop.f32.mrb[26].mxu0 }
 0x128   :  { %638 = vst [vmem:[%s1280_s2 + $0xd8] sm:$0xff] %v480_v33  ;;  %640 = vst [vmem:[%s1280_s2 + $0xe8] sm:$0xff] %v576_v34  ;;  %v482_v35 = vpop.f32.mrb[23].mxu1  ;;  %v769_v36 = vpop.f32.mrb[27].mxu0 }
 0x129   :  { %639 = vst [vmem:[%s1280_s2 + $0xe0] sm:$0xff] %v482_v35 }
 0x12d   :  { %v486_v37 = vpop.f32.mrb[24].mxu1  ;;  %v581_v38 = vpop.f32.mrb[28].mxu0 }
 0x12e   :  { %643 = vst [vmem:[%s1280_s2 + $0x100] sm:$0xff] %v486_v37  ;;  %645 = vst [vmem:[%s1280_s2 + $0x110] sm:$0xff] %v581_v38  ;;  %v488_v39 = vpop.f32.mrb[25].mxu1  ;;  %v772_v40 = vpop.f32.mrb[29].mxu0 }
 0x12f   :  { %644 = vst [vmem:[%s1280_s2 + $0x108] sm:$0xff] %v488_v39  ;;  %v490_v41 = vpop.f32.mrb[26].mxu1  ;;  %v584_v42 = vpop.f32.mrb[30].mxu0 }
 0x130   :  { %648 = vst [vmem:[%s1280_s2 + $0x128] sm:$0xff] %v490_v41  ;;  %650 = vst [vmem:[%s1280_s2 + $0x138] sm:$0xff] %v584_v42  ;;  %v492_v43 = vpop.f32.mrb[27].mxu1  ;;  %v773_v44 = vpop.f32.mrb[31].mxu0 }
 0x131   :  { %649 = vst [vmem:[%s1280_s2 + $0x130] sm:$0xff] %v492_v43 }
 0x135   :  { %v496_v45 = vpop.f32.mrb[28].mxu1  ;;  %v589_v46 = vpop.f32.mrb[32].mxu0 }
 0x136   :  { %653 = vst [vmem:[%s1280_s2 + $0x150] sm:$0xff] %v496_v45  ;;  %655 = vst [vmem:[%s1280_s2 + $0x160] sm:$0xff] %v589_v46  ;;  %v498_v47 = vpop.f32.mrb[29].mxu1  ;;  %v776_v48 = vpop.f32.mrb[33].mxu0 }
 0x137   :  { %654 = vst [vmem:[%s1280_s2 + $0x158] sm:$0xff] %v498_v47  ;;  %v500_v49 = vpop.f32.mrb[30].mxu1  ;;  %v592_v50 = vpop.f32.mrb[34].mxu0 }
 0x138   :  { %658 = vst [vmem:[%s1280_s2 + $0x178] sm:$0xff] %v500_v49  ;;  %660 = vst [vmem:[%s1280_s2 + $0x188] sm:$0xff] %v592_v50  ;;  %v502_v51 = vpop.f32.mrb[31].mxu1  ;;  %v777_v52 = vpop.f32.mrb[35].mxu0 }
 0x139   :  { %659 = vst [vmem:[%s1280_s2 + $0x180] sm:$0xff] %v502_v51 }
 0x13d   :  { %v506_v53 = vpop.f32.mrb[32].mxu1  ;;  %v597_v54 = vpop.f32.mrb[36].mxu0 }
 0x13e   :  { %663 = vst [vmem:[%s1280_s2 + $0x1a0] sm:$0xff] %v506_v53  ;;  %665 = vst [vmem:[%s1280_s2 + $0x1b0] sm:$0xff] %v597_v54  ;;  %v508_v55 = vpop.f32.mrb[33].mxu1  ;;  %v780_v56 = vpop.f32.mrb[37].mxu0 }
 0x13f   :  { %664 = vst [vmem:[%s1280_s2 + $0x1a8] sm:$0xff] %v508_v55  ;;  %v510_v57 = vpop.f32.mrb[34].mxu1  ;;  %v600_v58 = vpop.f32.mrb[38].mxu0 }
 0x140   :  { %668 = vst [vmem:[%s1280_s2 + $0x1c8] sm:$0xff] %v510_v57  ;;  %670 = vst [vmem:[%s1280_s2 + $0x1d8] sm:$0xff] %v600_v58  ;;  %v512_v59 = vpop.f32.mrb[35].mxu1  ;;  %v781_v60 = vpop.f32.mrb[39].mxu0 }
 0x141   :  { %669 = vst [vmem:[%s1280_s2 + $0x1d0] sm:$0xff] %v512_v59 }
 0x145   :  { %v516_v61 = vpop.f32.mrb[36].mxu1  ;;  %v605_v62 = vpop.f32.mrb[40].mxu0 }
 0x146   :  { %673 = vst [vmem:[%s1280_s2 + $0x1f0] sm:$0x3] %v516_v61  ;;  %675 = vst [vmem:[%s1280_s2 + $0x200] sm:$0x3] %v605_v62  ;;  %v518_v63 = vpop.f32.mrb[37].mxu1  ;;  %v784_v0 = vpop.f32.mrb[41].mxu0 }
 0x147   :  { %674 = vst [vmem:[%s1280_s2 + $0x1f8] sm:$0x3] %v518_v63  ;;  %v520_v1 = vpop.f32.mrb[38].mxu1  ;;  %v608_v2 = vpop.f32.mrb[42].mxu0 }
 0x148   :  { %v521_v3 = vpop.f32.mrb[39].mxu1  ;;  %v785_v4 = vpop.f32.mrb[43].mxu0 }

// kernel: decoder_forward.8
= control target key start
LH: loop header
LB: loop body
LE: loop exit
PB: predicated region body
PF: predicated region fallthrough
CT: control target
= control target key end

     0   :  { %v1959_v1 = vmov 0   ;;  %vm339_vm0 = vcmask 523264   ;;  %s3314_s1 = inlined_call_operand.vmem [shape: bf16[64,896], index: 1, kind: input, shape index: {}]   ;;  %s3315_s0 = inlined_call_operand.vmem [shape: bf16[338,64], index: 0, kind: input, shape index: {}]   ;;  %s3316_s2 = inlined_call_operand.vmem [shape: f32[338,896], index: 2, kind: output, shape index: {}]  }
   0x1   :  { %v1897_v0 = vld [vmem:[%s3314_s1 + $0x4] ss:$28 sps:$4 sm:$0xff]   ;;  %438 = vmatprep.mubr.bf16.mxu0 %v1959_v1  ;;  %608 = vmatprep.mubr.bf16.mxu1 %v1959_v1  ;;  %v1900_v3 = vld [vmem:[%s3314_s1 + $0x3c] ss:$28 sps:$4 sm:$0xff]   ;;  %v1903_v5 = vld [vmem:[%s3314_s1 + $0x74] ss:$28 sps:$4 sm:$0xff]  }
   0x2   :  { %v1899_v2 = vld [vmem:[%s3314_s1] ss:$28 sps:$4 sm:$0xff]   ;;  %406 = vmatprep.subr.bf16.mxu0 %v1897_v0  ;;  %1888 = vmatprep.subr.bf16.mxu1 %v1897_v0  ;;  %v1902_v4 = vld [vmem:[%s3314_s1 + $0x38] ss:$28 sps:$4 sm:$0xff]   ;;  %v1905_v6 = vld [vmem:[%s3314_s1 + $0x70] ss:$28 sps:$4 sm:$0xff]  }
   0x3   :  { %407 = vmatpush1.bf16.msra.mxu0 %v1899_v2  ;;  %1892 = vmatpush1.bf16.msra.mxu1 %v1899_v2  ;;  %v1906_v7 = vld [vmem:[%s3314_s1 + $0xac] ss:$28 sps:$4 sm:$0xff]   ;;  %v1912_v9 = vld [vmem:[%s3314_s1 + $0x14] ss:$28 sps:$4 sm:$0xff]   ;;  %v2010_v11 = vld [vmem:[%s3315_s0] sm:$0xff]  }
   0x4   :  { %408 = vmatprep.subr.bf16.mxu0 %v1900_v3  ;;  %1889 = vmatprep.subr.bf16.mxu1 %v1900_v3  ;;  %v1908_v8 = vld [vmem:[%s3314_s1 + $0xa8] ss:$28 sps:$4 sm:$0xff]   ;;  %v1910_v13 = vld [vmem:[%s3314_s1 + $0x10] ss:$28 sps:$4 sm:$0xff]   ;;  %v1920_v16 = vld [vmem:[%s3314_s1 + $0x40] ss:$28 sps:$4 sm:$0xff]  }
   0x5   :  { %v1916_v10 = vld [vmem:[%s3314_s1 + $0xc] ss:$28 sps:$4 sm:$0xff]   ;;  %v1922_v15 = vld [vmem:[%s3314_s1 + $0x44] ss:$28 sps:$4 sm:$0xff]   ;;  %v1927_v19 = vld [vmem:[%s3314_s1 + $0x7c] ss:$28 sps:$4 sm:$0xff]  }
   0x6   :  { %v2015_v12 = vld [vmem:[%s3315_s0 + $0x88] sm:$0xff]   ;;  %v2052_v21 = vld [vmem:[%s3315_s0 + $0x90] sm:$0xff]   ;;  %v1942_v27 = vld [vmem:[%s3314_s1 + $0x80] ss:$28 sps:$4 sm:$0xff]  }
   0x7   :  { %409 = vmatpush1.bf16.msra.mxu0 %v1902_v4  ;;  %1893 = vmatpush1.bf16.msra.mxu1 %v1902_v4  ;;  %v1914_v14 = vld [vmem:[%s3314_s1 + $0x8] ss:$28 sps:$4 sm:$0xff]   ;;  %v1925_v22 = vld [vmem:[%s3314_s1 + $0x78] ss:$28 sps:$4 sm:$0xff]   ;;  %v1934_v24 = vld [vmem:[%s3314_s1 + $0xb0] ss:$28 sps:$4 sm:$0xff]  }
   0x8   :  { %410 = vmatprep.subr.bf16.mxu0 %v1903_v5  ;;  %1890 = vmatprep.subr.bf16.mxu1 %v1903_v5  ;;  %v1930_v17 = vld [vmem:[%s3314_s1 + $0x48] ss:$28 sps:$4 sm:$0xff]   ;;  %v1936_v23 = vld [vmem:[%s3314_s1 + $0xb4] ss:$28 sps:$4 sm:$0xff]   ;;  %v2086_v29 = vld [vmem:[%s3315_s0 + $0x98] sm:$0xff]  }
   0x9   :  { %v1932_v18 = vld [vmem:[%s3314_s1 + $0x4c] ss:$28 sps:$4 sm:$0xff]   ;;  %v1938_v25 = vld [vmem:[%s3314_s1 + $0x18] ss:$28 sps:$4 sm:$0xff]   ;;  %v1944_v28 = vld [vmem:[%s3314_s1 + $0x84] ss:$28 sps:$4 sm:$0xff]  }
   0xa   :  { %v2047_v20 = vld [vmem:[%s3315_s0 + $0x8] sm:$0xff]   ;;  %v2075_v26 = vld [vmem:[%s3315_s0 + $0x10] sm:$0xff]   ;;  %v1952_v31 = vld [vmem:[%s3314_s1 + $0xbc] ss:$28 sps:$4 sm:$0xff]  }
   0xb   :  { %411 = vmatpush1.bf16.msra.mxu0 %v1905_v6  ;;  %1894 = vmatpush1.bf16.msra.mxu1 %v1905_v6  ;;  %v1950_v30 = vld [vmem:[%s3314_s1 + $0xb8] ss:$28 sps:$4 sm:$0xff]   ;;  %v2108_v33 = vld [vmem:[%s3315_s0 + $0xa0] sm:$0xff]   ;;  %v2124_v35 = vld [vmem:[%s3315_s0 + $0xa8] ss:$0 sps:$4 sm:$0x11]  }
   0xc   :  { %412 = vmatprep.subr.bf16.mxu0 %v1906_v7  ;;  %1891 = vmatprep.subr.bf16.mxu1 %v1906_v7  ;;  %v2103_v32 = vld [vmem:[%s3315_s0 + $0x18] sm:$0xff]   ;;  %v2119_v34 = vld [vmem:[%s3315_s0 + $0x20] sm:$0xff]   ;;  %v2135_v36 = vld [vmem:[%s3315_s0 + $0x28] sm:$0xff]  }
   0xd   :  { %v1948_v37 = vld [vmem:[%s3314_s1 + $0x50] ss:$28 sps:$4 sm:$0xff]   ;;  %v1957_v38 = vld [vmem:[%s3314_s1 + $0x88] ss:$28 sps:$4 sm:$0xff]   ;;  %v1958_v40 = vld [vmem:[%s3314_s1 + $0xc0] ss:$28 sps:$4 sm:$0xff]  }
   0xe   :  { %v2152_v39 = vld [vmem:[%s3315_s0 + $0x30] sm:$0xff]   ;;  %v2166_v41 = vld [vmem:[%s3315_s0 + $0x38] sm:$0xff]   ;;  %v2177_v42 = vld [vmem:[%s3315_s0 + $0x40] sm:$0xff]  }
   0xf   :  { %413 = vmatpush1.bf16.msra.mxu0 %v1908_v8  ;;  %1895 = vmatpush1.bf16.msra.mxu1 %v1908_v8  ;;  %v2188_v43 = vld [vmem:[%s3315_s0 + $0x48] sm:$0xff]   ;;  %v2199_v44 = vld [vmem:[%s3315_s0 + $0x50] sm:$0xff]   ;;  %v2210_v45 = vld [vmem:[%s3315_s0 + $0x58] sm:$0xff]  }
  0x10   :  { %908 = vmatprep.subr.bf16.mxu0 %v1912_v9  ;;  %657 = vmatprep.subr.bf16.mxu1 %v1916_v10  ;;  %v2221_v46 = vld [vmem:[%s3315_s0 + $0x60] sm:$0xff]   ;;  %v2232_v47 = vld [vmem:[%s3315_s0 + $0x68] sm:$0xff]   ;;  %v2243_v48 = vld [vmem:[%s3315_s0 + $0x70] sm:$0xff]  }
  0x11   :  { %v2254_v49 = vld [vmem:[%s3315_s0 + $0x78] sm:$0xff]   ;;  %v2265_v50 = vld [vmem:[%s3315_s0 + $0x80] sm:$0xff]  }
  0x12   :  { %1722 = vmatmul.mubr.msk.bf16.vlgmr.msra.gmra.mrb[0].mxu0 %vm339_vm0, %v2010_v11  ;;  %1739 = vmatmul.mubr.msk.bf16.vlgmr.msra.gmra.mrb[0].mxu1 %vm339_vm0, %v2015_v12 }
  0x13   :  { %909 = vmatpush1.bf16.msra.mxu0 %v1910_v13  ;;  %448 = vmatprep.mubr.bf16.mxu0 %v1959_v1 }
  0x14   :  { %658 = vmatpush1.bf16.msra.mxu1 %v1914_v14  ;;  %618 = vmatprep.mubr.bf16.mxu1 %v1959_v1 }
  0x15   :  { %659 = vmatprep.subr.bf16.mxu1 %v1922_v15  ;;  %910 = vmatprep.subr.bf16.mxu0 %v1932_v18 }
  0x17   :  { %911 = vmatpush1.bf16.msra.mxu0 %v1930_v17 }
  0x18   :  { %660 = vmatpush1.bf16.msra.mxu1 %v1920_v16  ;;  %912 = vmatprep.subr.bf16.mxu0 %v1944_v28 }
  0x19   :  { %661 = vmatprep.subr.bf16.mxu1 %v1927_v19 }
  0x1a   :  { %1723 = vmatmul.mubr.msk.bf16.gmra.mrb[4].mxu0 %vm339_vm0, %v2047_v20  ;;  %1740 = vmatmul.mubr.msk.bf16.gmra.mrb[4].mxu1 %vm339_vm0, %v2052_v21 }
  0x1b   :  { %458 = vmatprep.mubr.bf16.mxu0 %v1959_v1  ;;  %628 = vmatprep.mubr.bf16.mxu1 %v1959_v1 }
  0x1c   :  { %662 = vmatpush1.bf16.msra.mxu1 %v1925_v22  ;;  %913 = vmatpush1.bf16.msra.mxu0 %v1942_v27 }
  0x1d   :  { %663 = vmatprep.subr.bf16.mxu1 %v1936_v23  ;;  %914 = vmatprep.subr.bf16.mxu0 %v1952_v31 }
  0x20   :  { %664 = vmatpush1.bf16.msra.mxu1 %v1934_v24  ;;  %915 = vmatpush1.bf16.msra.mxu0 %v1950_v30 }
  0x21   :  { %1836 = vmatprep.subr.bf16.mxu1 %v1938_v25 }
  0x22   :  { %1724 = vmatmul.mubr.msk.bf16.gmra.mrb[8].mxu0 %vm339_vm0, %v2075_v26  ;;  %1741 = vmatmul.mubr.msk.bf16.gmra.mrb[8].mxu1 %vm339_vm0, %v2086_v29 }
  0x23   :  { %468 = vmatprep.mubr.bf16.mxu0 %v1959_v1  ;;  %638 = vmatprep.mubr.bf16.mxu1 %v1959_v1 }
  0x2a   :  { %1725 = vmatmul.mubr.msk.bf16.gmra.mrb[12].mxu0 %vm339_vm0, %v2103_v32  ;;  %1742 = vmatmul.mubr.msk.bf16.gmra.mrb[12].mxu1 %vm339_vm0, %v2108_v33 }
  0x2b   :  { %478 = vmatprep.mubr.bf16.mxu0 %v1959_v1  ;;  %648 = vmatprep.mubr.bf16.mxu1 %v1959_v1 }
  0x32   :  { %1726 = vmatmul.mubr.msk.bf16.gmra.mrb[16].mxu0 %vm339_vm0, %v2119_v34  ;;  %1743 = vmatmul.mubr.msk.bf16.gmra.mrb[16].mxu1 %vm339_vm0, %v2124_v35 }
  0x33   :  { %488 = vmatprep.mubr.bf16.mxu0 %v1959_v1  ;;  %689 = vmatprep.mubr.bf16.mxu1 %v1959_v1 }
  0x3a   :  { %1727 = vmatmul.mubr.msk.bf16.gmra.mrb[20].mxu0 %vm339_vm0, %v2135_v36  ;;  %1744 = vmatmul.mubr.msk.bf16.vlgmr.msra.gmra.mrb[20].mxu1 %vm339_vm0, %v2010_v11 }
  0x3b   :  { %498 = vmatprep.mubr.bf16.mxu0 %v1959_v1  ;;  %1837 = vmatpush3.bf16.msra.mxu1 %v1938_v25 }
  0x3c   :  { %699 = vmatprep.mubr.bf16.mxu1 %v1959_v1  ;;  %1838 = vmatprep.subr.bf16.mxu1 %v1948_v37 }
  0x3f   :  { %1839 = vmatpush3.bf16.msra.mxu1 %v1948_v37 }
  0x40   :  { %1840 = vmatprep.subr.bf16.mxu1 %v1957_v38 }
  0x42   :  { %1728 = vmatmul.mubr.msk.bf16.gmra.mrb[24].mxu0 %vm339_vm0, %v2152_v39  ;;  %1745 = vmatmul.mubr.msk.bf16.gmra.mrb[24].mxu1 %vm339_vm0, %v2047_v20 }
  0x43   :  { %508 = vmatprep.mubr.bf16.mxu0 %v1959_v1  ;;  %709 = vmatprep.mubr.bf16.mxu1 %v1959_v1 }
  0x44   :  { %1841 = vmatpush3.bf16.msra.mxu1 %v1957_v38 }
  0x45   :  { %1842 = vmatprep.subr.bf16.mxu1 %v1958_v40 }
  0x48   :  { %1843 = vmatpush3.bf16.msra.mxu1 %v1958_v40 }
  0x4a   :  { %1729 = vmatmul.mubr.msk.bf16.gmra.mrb[28].mxu0 %vm339_vm0, %v2166_v41  ;;  %1746 = vmatmul.mubr.msk.bf16.gmra.mrb[28].mxu1 %vm339_vm0, %v2075_v26 }
  0x4b   :  { %518 = vmatprep.mubr.bf16.mxu0 %v1959_v1  ;;  %719 = vmatprep.mubr.bf16.mxu1 %v1959_v1 }
  0x52   :  { %1730 = vmatmul.mubr.msk.bf16.gmra.mrb[32].mxu0 %vm339_vm0, %v2177_v42  ;;  %1747 = vmatmul.mubr.msk.bf16.gmra.mrb[32].mxu1 %vm339_vm0, %v2103_v32 }
  0x53   :  { %528 = vmatprep.mubr.bf16.mxu0 %v1959_v1  ;;  %729 = vmatprep.mubr.bf16.mxu1 %v1959_v1 }
  0x5a   :  { %1731 = vmatmul.mubr.msk.bf16.gmra.mrb[36].mxu0 %vm339_vm0, %v2188_v43  ;;  %1748 = vmatmul.mubr.msk.bf16.gmra.mrb[36].mxu1 %vm339_vm0, %v2119_v34 }
  0x5b   :  { %538 = vmatprep.mubr.bf16.mxu0 %v1959_v1  ;;  %739 = vmatprep.mubr.bf16.mxu1 %v1959_v1 }
  0x62   :  { %1732 = vmatmul.mubr.msk.bf16.gmra.mrb[40].mxu0 %vm339_vm0, %v2199_v44  ;;  %1749 = vmatmul.mubr.msk.bf16.gmra.mrb[40].mxu1 %vm339_vm0, %v2135_v36 }
  0x63   :  { %548 = vmatprep.mubr.bf16.mxu0 %v1959_v1  ;;  %749 = vmatprep.mubr.bf16.mxu1 %v1959_v1 }
  0x6a   :  { %1733 = vmatmul.mubr.msk.bf16.gmra.mrb[44].mxu0 %vm339_vm0, %v2210_v45  ;;  %1750 = vmatmul.mubr.msk.bf16.gmra.mrb[44].mxu1 %vm339_vm0, %v2152_v39 }
  0x6b   :  { %558 = vmatprep.mubr.bf16.mxu0 %v1959_v1  ;;  %759 = vmatprep.mubr.bf16.mxu1 %v1959_v1 }
  0x72   :  { %1734 = vmatmul.mubr.msk.bf16.gmra.mrb[48].mxu0 %vm339_vm0, %v2221_v46  ;;  %1751 = vmatmul.mubr.msk.bf16.gmra.mrb[48].mxu1 %vm339_vm0, %v2166_v41 }
  0x73   :  { %568 = vmatprep.mubr.bf16.mxu0 %v1959_v1  ;;  %769 = vmatprep.mubr.bf16.mxu1 %v1959_v1 }
  0x7a   :  { %1735 = vmatmul.mubr.msk.bf16.gmra.mrb[52].mxu0 %vm339_vm0, %v2232_v47  ;;  %1752 = vmatmul.mubr.msk.bf16.gmra.mrb[52].mxu1 %vm339_vm0, %v2177_v42 }
  0x7b   :  { %578 = vmatprep.mubr.bf16.mxu0 %v1959_v1  ;;  %779 = vmatprep.mubr.bf16.mxu1 %v1959_v1 }
  0x82   :  { %1736 = vmatmul.mubr.msk.bf16.gmra.mrb[56].mxu0 %vm339_vm0, %v2243_v48  ;;  %1753 = vmatmul.mubr.msk.bf16.gmra.mrb[56].mxu1 %vm339_vm0, %v2188_v43 }
  0x83   :  { %588 = vmatprep.mubr.bf16.mxu0 %v1959_v1  ;;  %789 = vmatprep.mubr.bf16.mxu1 %v1959_v1 }
  0x8a   :  { %1737 = vmatmul.mubr.msk.bf16.gmra.mrb[60].mxu0 %vm339_vm0, %v2254_v49  ;;  %1754 = vmatmul.mubr.msk.bf16.gmra.mrb[60].mxu1 %vm339_vm0, %v2199_v44 }
  0x8b   :  { %598 = vmatprep.mubr.bf16.mxu0 %v1959_v1  ;;  %799 = vmatprep.mubr.bf16.mxu1 %v1959_v1 }
  0x92   :  { %1738 = vmatmul.mubr.msk.bf16.gmra.mrb[64].mxu0 %vm339_vm0, %v2265_v50  ;;  %1755 = vmatmul.mubr.msk.bf16.gmra.mrb[64].mxu1 %vm339_vm0, %v2210_v45 }
  0x93   :  { %940 = vmatprep.mubr.bf16.mxu0 %v1959_v1  ;;  %809 = vmatprep.mubr.bf16.mxu1 %v1959_v1 }
  0x9a   :  { %1766 = vmatmul.mubr.msk.bf16.vlgmr.msra.gmra.mrb[68].mxu0 %vm339_vm0, %v2010_v11  ;;  %1756 = vmatmul.mubr.msk.bf16.gmra.mrb[68].mxu1 %vm339_vm0, %v2221_v46 }
  0x9b   :  { %950 = vmatprep.mubr.bf16.mxu0 %v1959_v1  ;;  %819 = vmatprep.mubr.bf16.mxu1 %v1959_v1 }
  0xa2   :  { %1767 = vmatmul.mubr.msk.bf16.gmra.mrb[72].mxu0 %vm339_vm0, %v2047_v20  ;;  %1757 = vmatmul.mubr.msk.bf16.gmra.mrb[72].mxu1 %vm339_vm0, %v2232_v47 }
  0xa3   :  { %960 = vmatprep.mubr.bf16.mxu0 %v1959_v1  ;;  %829 = vmatprep.mubr.bf16.mxu1 %v1959_v1 }
  0xaa   :  { %1768 = vmatmul.mubr.msk.bf16.gmra.mrb[76].mxu0 %vm339_vm0, %v2075_v26  ;;  %1758 = vmatmul.mubr.msk.bf16.gmra.mrb[76].mxu1 %vm339_vm0, %v2243_v48 }
  0xab   :  { %970 = vmatprep.mubr.bf16.mxu0 %v1959_v1  ;;  %839 = vmatprep.mubr.bf16.mxu1 %v1959_v1 }
  0xb2   :  { %1769 = vmatmul.mubr.msk.bf16.gmra.mrb[80].mxu0 %vm339_vm0, %v2103_v32  ;;  %1759 = vmatmul.mubr.msk.bf16.gmra.mrb[80].mxu1 %vm339_vm0, %v2254_v49 }
  0xb3   :  { %980 = vmatprep.mubr.bf16.mxu0 %v1959_v1  ;;  %849 = vmatprep.mubr.bf16.mxu1 %v1959_v1 }
  0xba   :  { %1770 = vmatmul.mubr.msk.bf16.gmra.mrb[84].mxu0 %vm339_vm0, %v2119_v34  ;;  %1760 = vmatmul.mubr.msk.bf16.gmra.mrb[84].mxu1 %vm339_vm0, %v2265_v50 }
  0xbb   :  { %990 = vmatprep.mubr.bf16.mxu0 %v1959_v1  ;;  %859 = vmatprep.mubr.bf16.mxu1 %v1959_v1 }
  0xc2   :  { %1771 = vmatmul.mubr.msk.bf16.gmra.mrb[88].mxu0 %vm339_vm0, %v2135_v36  ;;  %1761 = vmatmul.mubr.msk.bf16.gmra.mrb[88].mxu1 %vm339_vm0, %v2015_v12 }
  0xc3   :  { %1000 = vmatprep.mubr.bf16.mxu0 %v1959_v1  ;;  %869 = vmatprep.mubr.bf16.mxu1 %v1959_v1 }
  0xca   :  { %1772 = vmatmul.mubr.msk.bf16.gmra.mrb[92].mxu0 %vm339_vm0, %v2152_v39  ;;  %1762 = vmatmul.mubr.msk.bf16.gmra.mrb[92].mxu1 %vm339_vm0, %v2052_v21 }
  0xcb   :  { %1010 = vmatprep.mubr.bf16.mxu0 %v1959_v1  ;;  %879 = vmatprep.mubr.bf16.mxu1 %v1959_v1 }
  0xd2   :  { %1773 = vmatmul.mubr.msk.bf16.gmra.mrb[96].mxu0 %vm339_vm0, %v2166_v41  ;;  %1763 = vmatmul.mubr.msk.bf16.gmra.mrb[96].mxu1 %vm339_vm0, %v2086_v29 }
  0xd3   :  { %1020 = vmatprep.mubr.bf16.mxu0 %v1959_v1  ;;  %889 = vmatprep.mubr.bf16.mxu1 %v1959_v1 }
  0xda   :  { %1774 = vmatmul.mubr.msk.bf16.gmra.mrb[100].mxu0 %vm339_vm0, %v2177_v42  ;;  %1764 = vmatmul.mubr.msk.bf16.gmra.mrb[100].mxu1 %vm339_vm0, %v2108_v33 }
  0xdb   :  { %1030 = vmatprep.mubr.bf16.mxu0 %v1959_v1  ;;  %899 = vmatprep.mubr.bf16.mxu1 %v1959_v1 }
  0xe2   :  { %1775 = vmatmul.mubr.msk.bf16.gmra.mrb[104].mxu0 %vm339_vm0, %v2188_v43  ;;  %1765 = vmatmul.mubr.msk.bf16.gmra.mrb[104].mxu1 %vm339_vm0, %v2124_v35 }
  0xe3   :  { %1040 = vmatprep.mubr.bf16.mxu0 %v1959_v1  ;;  %1844 = vmatprep.mubr.msk.bf16.mxu1 %vm339_vm0, %v2010_v11 }
  0xe5   :  { %v440_v51 = vpop.f32.mrb[0].mxu0  ;;  %v610_v52 = vpop.f32.mrb[0].mxu1 }
  0xe6   :  { %1367 = vst [vmem:[%s3316_s2] sm:$0xff] %v440_v51  ;;  %v442_v53 = vpop.f32.mrb[1].mxu0  ;;  %1605 = vst [vmem:[%s3316_s2 + $0x770] sm:$0xff] %v610_v52  ;;  %v612_v54 = vpop.f32.mrb[1].mxu1 }
  0xe7   :  { %1368 = vst [vmem:[%s3316_s2 + $0x8] sm:$0xff] %v442_v53  ;;  %v444_v55 = vpop.f32.mrb[2].mxu0  ;;  %1606 = vst [vmem:[%s3316_s2 + $0x778] sm:$0xff] %v612_v54  ;;  %v614_v56 = vpop.f32.mrb[2].mxu1 }
  0xe8   :  { %1374 = vst [vmem:[%s3316_s2 + $0x38] sm:$0xff] %v444_v55  ;;  %v446_v57 = vpop.f32.mrb[3].mxu0  ;;  %1612 = vst [vmem:[%s3316_s2 + $0x7a8] sm:$0xff] %v614_v56  ;;  %v616_v58 = vpop.f32.mrb[3].mxu1 }
  0xe9   :  { %1375 = vst [vmem:[%s3316_s2 + $0x40] sm:$0xff] %v446_v57  ;;  %1613 = vst [vmem:[%s3316_s2 + $0x7b0] sm:$0xff] %v616_v58 }
  0xea   :  { %1776 = vmatmul.mubr.msk.bf16.gmra.mrb[108].mxu0 %vm339_vm0, %v2199_v44  ;;  %1845 = vmatmul.mubr.msk.bf16.vlgmr.msra.gmra.mrb[108].mxu1 %vm339_vm0, %v2047_v20 }
  0xeb   :  { %1050 = vmatprep.mubr.bf16.mxu0 %v1959_v1  ;;  %1848 = vmatprep.mubr.msk.bf16.mxu1 %vm339_vm0, %v2075_v26 }
  0xed   :  { %v450_v59 = vpop.f32.mrb[4].mxu0  ;;  %v620_v60 = vpop.f32.mrb[4].mxu1 }
  0xee   :  { %1381 = vst [vmem:[%s3316_s2 + $0x70] sm:$0xff] %v450_v59  ;;  %v452_v61 = vpop.f32.mrb[5].mxu0  ;;  %1619 = vst [vmem:[%s3316_s2 + $0x7e0] sm:$0xff] %v620_v60  ;;  %v622_v62 = vpop.f32.mrb[5].mxu1 }
  0xef   :  { %1382 = vst [vmem:[%s3316_s2 + $0x78] sm:$0xff] %v452_v61  ;;  %v454_v63 = vpop.f32.mrb[6].mxu0  ;;  %1620 = vst [vmem:[%s3316_s2 + $0x7e8] sm:$0xff] %v622_v62  ;;  %v624_v0 = vpop.f32.mrb[6].mxu1 }
  0xf0   :  { %1388 = vst [vmem:[%s3316_s2 + $0xa8] sm:$0xff] %v454_v63  ;;  %v456_v2 = vpop.f32.mrb[7].mxu0  ;;  %1626 = vst [vmem:[%s3316_s2 + $0x818] sm:$0xff] %v624_v0  ;;  %v626_v3 = vpop.f32.mrb[7].mxu1 }
  0xf1   :  { %1389 = vst [vmem:[%s3316_s2 + $0xb0] sm:$0xff] %v456_v2  ;;  %1627 = vst [vmem:[%s3316_s2 + $0x820] sm:$0xff] %v626_v3 }
  0xf2   :  { %1777 = vmatmul.mubr.msk.bf16.gmra.mrb[112].mxu0 %vm339_vm0, %v2210_v45  ;;  %1849 = vmatmul.mubr.msk.bf16.gmra.mrb[112].mxu1 %vm339_vm0, %v2103_v32 }
  0xf3   :  { %1060 = vmatprep.mubr.bf16.mxu0 %v1959_v1  ;;  %1852 = vmatprep.mubr.msk.bf16.mxu1 %vm339_vm0, %v2119_v34 }
  0xf5   :  { %v460_v4 = vpop.f32.mrb[8].mxu0  ;;  %v630_v5 = vpop.f32.mrb[8].mxu1 }
  0xf6   :  { %1395 = vst [vmem:[%s3316_s2 + $0xe0] sm:$0xff] %v460_v4  ;;  %v462_v6 = vpop.f32.mrb[9].mxu0  ;;  %1633 = vst [vmem:[%s3316_s2 + $0x850] sm:$0xff] %v630_v5  ;;  %v632_v7 = vpop.f32.mrb[9].mxu1 }
  0xf7   :  { %1396 = vst [vmem:[%s3316_s2 + $0xe8] sm:$0xff] %v462_v6  ;;  %v464_v8 = vpop.f32.mrb[10].mxu0  ;;  %1634 = vst [vmem:[%s3316_s2 + $0x858] sm:$0xff] %v632_v7  ;;  %v634_v9 = vpop.f32.mrb[10].mxu1 }
  0xf8   :  { %1402 = vst [vmem:[%s3316_s2 + $0x118] sm:$0xff] %v464_v8  ;;  %v466_v10 = vpop.f32.mrb[11].mxu0  ;;  %1640 = vst [vmem:[%s3316_s2 + $0x888] sm:$0xff] %v634_v9  ;;  %v636_v11 = vpop.f32.mrb[11].mxu1 }
  0xf9   :  { %1403 = vst [vmem:[%s3316_s2 + $0x120] sm:$0xff] %v466_v10  ;;  %1641 = vst [vmem:[%s3316_s2 + $0x890] sm:$0xff] %v636_v11 }
  0xfa   :  { %1778 = vmatmul.mubr.msk.bf16.gmra.mrb[116].mxu0 %vm339_vm0, %v2221_v46  ;;  %1853 = vmatmul.mubr.msk.bf16.gmra.mrb[116].mxu1 %vm339_vm0, %v2135_v36 }
  0xfb   :  { %1070 = vmatprep.mubr.bf16.mxu0 %v1959_v1  ;;  %1856 = vmatprep.mubr.msk.bf16.mxu1 %vm339_vm0, %v2152_v39 }
  0xfd   :  { %v470_v13 = vpop.f32.mrb[12].mxu0  ;;  %v640_v14 = vpop.f32.mrb[12].mxu1 }
  0xfe   :  { %1409 = vst [vmem:[%s3316_s2 + $0x150] sm:$0xff] %v470_v13  ;;  %v472_v15 = vpop.f32.mrb[13].mxu0  ;;  %1647 = vst [vmem:[%s3316_s2 + $0x8c0] sm:$0xff] %v640_v14  ;;  %v642_v16 = vpop.f32.mrb[13].mxu1 }
  0xff   :  { %1410 = vst [vmem:[%s3316_s2 + $0x158] sm:$0xff] %v472_v15  ;;  %v474_v17 = vpop.f32.mrb[14].mxu0  ;;  %1648 = vst [vmem:[%s3316_s2 + $0x8c8] sm:$0xff] %v642_v16  ;;  %v644_v18 = vpop.f32.mrb[14].mxu1 }
 0x100   :  { %1416 = vst [vmem:[%s3316_s2 + $0x188] sm:$0xff] %v474_v17  ;;  %v476_v19 = vpop.f32.mrb[15].mxu0  ;;  %1654 = vst [vmem:[%s3316_s2 + $0x8f8] sm:$0xff] %v644_v18  ;;  %v646_v20 = vpop.f32.mrb[15].mxu1 }
 0x101   :  { %1417 = vst [vmem:[%s3316_s2 + $0x190] sm:$0xff] %v476_v19  ;;  %1655 = vst [vmem:[%s3316_s2 + $0x900] sm:$0xff] %v646_v20 }
 0x102   :  { %1779 = vmatmul.mubr.msk.bf16.gmra.mrb[120].mxu0 %vm339_vm0, %v2232_v47  ;;  %1857 = vmatmul.mubr.msk.bf16.gmra.mrb[120].mxu1 %vm339_vm0, %v2166_v41 }
 0x103   :  { %1080 = vmatprep.mubr.bf16.mxu0 %v1959_v1  ;;  %1860 = vmatprep.mubr.msk.bf16.mxu1 %vm339_vm0, %v2177_v42 }
 0x105   :  { %v480_v22 = vpop.f32.mrb[16].mxu0  ;;  %v650_v23 = vpop.f32.mrb[16].mxu1 }
 0x106   :  { %1423 = vst [vmem:[%s3316_s2 + $0x1c0] sm:$0xff] %v480_v22  ;;  %v482_v24 = vpop.f32.mrb[17].mxu0  ;;  %1661 = vst [vmem:[%s3316_s2 + $0x930] sm:$0x3] %v650_v23  ;;  %v652_v25 = vpop.f32.mrb[17].mxu1 }
 0x107   :  { %1424 = vst [vmem:[%s3316_s2 + $0x1c8] sm:$0xff] %v482_v24  ;;  %v484_v26 = vpop.f32.mrb[18].mxu0  ;;  %1662 = vst [vmem:[%s3316_s2 + $0x938] sm:$0x3] %v652_v25  ;;  %v654_v27 = vpop.f32.mrb[18].mxu1 }
 0x108   :  { %1430 = vst [vmem:[%s3316_s2 + $0x1f8] sm:$0xff] %v484_v26  ;;  %v486_v28 = vpop.f32.mrb[19].mxu0  ;;  %v655_v30 = vpop.f32.mrb[19].mxu1 }
 0x109   :  { %1431 = vst [vmem:[%s3316_s2 + $0x200] sm:$0xff] %v486_v28 }
 0x10a   :  { %1780 = vmatmul.mubr.msk.bf16.gmra.mrb[124].mxu0 %vm339_vm0, %v2243_v48  ;;  %1861 = vmatmul.mubr.msk.bf16.gmra.mrb[124].mxu1 %vm339_vm0, %v2188_v43 }
 0x10b   :  { %1090 = vmatprep.mubr.bf16.mxu0 %v1959_v1  ;;  %1864 = vmatprep.mubr.msk.bf16.mxu1 %vm339_vm0, %v2199_v44 }
 0x10d   :  { %v490_v31 = vpop.f32.mrb[20].mxu0  ;;  %v691_v32 = vpop.f32.mrb[20].mxu1 }
 0x10e   :  { %1437 = vst [vmem:[%s3316_s2 + $0x230] sm:$0xff] %v490_v31  ;;  %v492_v34 = vpop.f32.mrb[21].mxu0  ;;  %1369 = vst [vmem:[%s3316_s2 + $0x10] sm:$0xff] %v691_v32  ;;  %v693_v36 = vpop.f32.mrb[21].mxu1 }
 0x10f   :  { %1438 = vst [vmem:[%s3316_s2 + $0x238] sm:$0xff] %v492_v34  ;;  %v494_v37 = vpop.f32.mrb[22].mxu0  ;;  %1370 = vst [vmem:[%s3316_s2 + $0x18] sm:$0xff] %v693_v36  ;;  %v695_v38 = vpop.f32.mrb[22].mxu1 }
 0x110   :  { %1444 = vst [vmem:[%s3316_s2 + $0x268] sm:$0xff] %v494_v37  ;;  %v496_v39 = vpop.f32.mrb[23].mxu0  ;;  %1376 = vst [vmem:[%s3316_s2 + $0x48] sm:$0xff] %v695_v38  ;;  %v697_v40 = vpop.f32.mrb[23].mxu1 }
 0x111   :  { %1445 = vst [vmem:[%s3316_s2 + $0x270] sm:$0xff] %v496_v39  ;;  %1377 = vst [vmem:[%s3316_s2 + $0x50] sm:$0xff] %v697_v40 }
 0x112   :  { %1781 = vmatmul.mubr.msk.bf16.gmra.mrb[128].mxu0 %vm339_vm0, %v2254_v49  ;;  %1865 = vmatmul.mubr.msk.bf16.gmra.mrb[128].mxu1 %vm339_vm0, %v2210_v45 }
 0x113   :  { %1100 = vmatprep.mubr.bf16.mxu0 %v1959_v1  ;;  %1868 = vmatprep.mubr.msk.bf16.mxu1 %vm339_vm0, %v2221_v46 }
 0x115   :  { %v500_v41 = vpop.f32.mrb[24].mxu0  ;;  %v701_v42 = vpop.f32.mrb[24].mxu1 }
 0x116   :  { %1451 = vst [vmem:[%s3316_s2 + $0x2a0] sm:$0xff] %v500_v41  ;;  %v502_v43 = vpop.f32.mrb[25].mxu0  ;;  %1383 = vst [vmem:[%s3316_s2 + $0x80] sm:$0xff] %v701_v42  ;;  %v703_v44 = vpop.f32.mrb[25].mxu1 }
 0x117   :  { %1452 = vst [vmem:[%s3316_s2 + $0x2a8] sm:$0xff] %v502_v43  ;;  %v504_v45 = vpop.f32.mrb[26].mxu0  ;;  %1384 = vst [vmem:[%s3316_s2 + $0x88] sm:$0xff] %v703_v44  ;;  %v705_v46 = vpop.f32.mrb[26].mxu1 }
 0x118   :  { %1458 = vst [vmem:[%s3316_s2 + $0x2d8] sm:$0xff] %v504_v45  ;;  %v506_v51 = vpop.f32.mrb[27].mxu0  ;;  %1390 = vst [vmem:[%s3316_s2 + $0xb8] sm:$0xff] %v705_v46  ;;  %v707_v52 = vpop.f32.mrb[27].mxu1 }
 0x119   :  { %1459 = vst [vmem:[%s3316_s2 + $0x2e0] sm:$0xff] %v506_v51  ;;  %1391 = vst [vmem:[%s3316_s2 + $0xc0] sm:$0xff] %v707_v52 }
 0x11a   :  { %1782 = vmatmul.mubr.msk.bf16.gmra.mrb[132].mxu0 %vm339_vm0, %v2265_v50  ;;  %1869 = vmatmul.mubr.msk.bf16.gmra.mrb[132].mxu1 %vm339_vm0, %v2232_v47 }
 0x11b   :  { %1110 = vmatprep.mubr.bf16.mxu0 %v1959_v1  ;;  %1872 = vmatprep.mubr.msk.bf16.mxu1 %vm339_vm0, %v2243_v48 }
 0x11d   :  { %v510_v53 = vpop.f32.mrb[28].mxu0  ;;  %v711_v54 = vpop.f32.mrb[28].mxu1 }
 0x11e   :  { %1465 = vst [vmem:[%s3316_s2 + $0x310] sm:$0xff] %v510_v53  ;;  %v512_v55 = vpop.f32.mrb[29].mxu0  ;;  %1397 = vst [vmem:[%s3316_s2 + $0xf0] sm:$0xff] %v711_v54  ;;  %v713_v56 = vpop.f32.mrb[29].mxu1 }
 0x11f   :  { %1466 = vst [vmem:[%s3316_s2 + $0x318] sm:$0xff] %v512_v55  ;;  %v514_v47 = vpop.f32.mrb[30].mxu0  ;;  %1398 = vst [vmem:[%s3316_s2 + $0xf8] sm:$0xff] %v713_v56  ;;  %v715_v48 = vpop.f32.mrb[30].mxu1 }
 0x120   :  { %1472 = vst [vmem:[%s3316_s2 + $0x348] sm:$0xff] %v514_v47  ;;  %v516_v57 = vpop.f32.mrb[31].mxu0  ;;  %1404 = vst [vmem:[%s3316_s2 + $0x128] sm:$0xff] %v715_v48  ;;  %v717_v58 = vpop.f32.mrb[31].mxu1 }
 0x121   :  { %1473 = vst [vmem:[%s3316_s2 + $0x350] sm:$0xff] %v516_v57  ;;  %1405 = vst [vmem:[%s3316_s2 + $0x130] sm:$0xff] %v717_v58 }
 0x122   :  { %1783 = vmatmul.mubr.msk.bf16.gmra.mrb[136].mxu0 %vm339_vm0, %v2015_v12  ;;  %1873 = vmatmul.mubr.msk.bf16.gmra.mrb[136].mxu1 %vm339_vm0, %v2254_v49 }
 0x123   :  { %1120 = vmatprep.mubr.bf16.mxu0 %v1959_v1  ;;  %1876 = vmatprep.mubr.msk.bf16.mxu1 %vm339_vm0, %v2265_v50 }
 0x125   :  { %v520_v59 = vpop.f32.mrb[32].mxu0  ;;  %v721_v60 = vpop.f32.mrb[32].mxu1 }
 0x126   :  { %1479 = vst [vmem:[%s3316_s2 + $0x380] sm:$0xff] %v520_v59  ;;  %v522_v61 = vpop.f32.mrb[33].mxu0  ;;  %1411 = vst [vmem:[%s3316_s2 + $0x160] sm:$0xff] %v721_v60  ;;  %v723_v62 = vpop.f32.mrb[33].mxu1 }
 0x127   :  { %1480 = vst [vmem:[%s3316_s2 + $0x388] sm:$0xff] %v522_v61  ;;  %v524_v49 = vpop.f32.mrb[34].mxu0  ;;  %1412 = vst [vmem:[%s3316_s2 + $0x168] sm:$0xff] %v723_v62  ;;  %v725_v50 = vpop.f32.mrb[34].mxu1 }
 0x128   :  { %1486 = vst [vmem:[%s3316_s2 + $0x3b8] sm:$0xff] %v524_v49  ;;  %v526_v63 = vpop.f32.mrb[35].mxu0  ;;  %1418 = vst [vmem:[%s3316_s2 + $0x198] sm:$0xff] %v725_v50  ;;  %v727_v0 = vpop.f32.mrb[35].mxu1 }
 0x129   :  { %1487 = vst [vmem:[%s3316_s2 + $0x3c0] sm:$0xff] %v526_v63  ;;  %1419 = vst [vmem:[%s3316_s2 + $0x1a0] sm:$0xff] %v727_v0 }
 0x12a   :  { %1784 = vmatmul.mubr.msk.bf16.gmra.mrb[140].mxu0 %vm339_vm0, %v2052_v21  ;;  %1877 = vmatmul.mubr.msk.bf16.gmra.mrb[140].mxu1 %vm339_vm0, %v2015_v12 }
 0x12b   :  { %1130 = vmatprep.mubr.bf16.mxu0 %v1959_v1  ;;  %1880 = vmatprep.mubr.msk.bf16.mxu1 %vm339_vm0, %v2052_v21 }
 0x12d   :  { %v530_v2 = vpop.f32.mrb[36].mxu0  ;;  %v731_v3 = vpop.f32.mrb[36].mxu1 }
 0x12e   :  { %1493 = vst [vmem:[%s3316_s2 + $0x3f0] sm:$0xff] %v530_v2  ;;  %v532_v4 = vpop.f32.mrb[37].mxu0  ;;  %1425 = vst [vmem:[%s3316_s2 + $0x1d0] sm:$0xff] %v731_v3  ;;  %v733_v5 = vpop.f32.mrb[37].mxu1 }
 0x12f   :  { %1494 = vst [vmem:[%s3316_s2 + $0x3f8] sm:$0xff] %v532_v4  ;;  %v534_v12 = vpop.f32.mrb[38].mxu0  ;;  %1426 = vst [vmem:[%s3316_s2 + $0x1d8] sm:$0xff] %v733_v5  ;;  %v735_v21 = vpop.f32.mrb[38].mxu1 }
 0x130   :  { %1500 = vst [vmem:[%s3316_s2 + $0x428] sm:$0xff] %v534_v12  ;;  %v536_v6 = vpop.f32.mrb[39].mxu0  ;;  %1432 = vst [vmem:[%s3316_s2 + $0x208] sm:$0xff] %v735_v21  ;;  %v737_v7 = vpop.f32.mrb[39].mxu1 }
 0x131   :  { %1501 = vst [vmem:[%s3316_s2 + $0x430] sm:$0xff] %v536_v6  ;;  %1433 = vst [vmem:[%s3316_s2 + $0x210] sm:$0xff] %v737_v7 }
 0x132   :  { %1785 = vmatmul.mubr.msk.bf16.gmra.mrb[144].mxu0 %vm339_vm0, %v2086_v29  ;;  %1881 = vmatmul.mubr.msk.bf16.gmra.mrb[144].mxu1 %vm339_vm0, %v2086_v29 }
 0x133   :  { %1140 = vmatprep.mubr.bf16.mxu0 %v1959_v1  ;;  %1884 = vmatprep.mubr.msk.bf16.mxu1 %vm339_vm0, %v2108_v33 }
 0x135   :  { %v540_v8 = vpop.f32.mrb[40].mxu0  ;;  %v741_v9 = vpop.f32.mrb[40].mxu1 }
 0x136   :  { %1507 = vst [vmem:[%s3316_s2 + $0x460] sm:$0xff] %v540_v8  ;;  %v542_v10 = vpop.f32.mrb[41].mxu0  ;;  %1439 = vst [vmem:[%s3316_s2 + $0x240] sm:$0xff] %v741_v9  ;;  %v743_v11 = vpop.f32.mrb[41].mxu1 }
 0x137   :  { %1508 = vst [vmem:[%s3316_s2 + $0x468] sm:$0xff] %v542_v10  ;;  %v544_v29 = vpop.f32.mrb[42].mxu0  ;;  %1440 = vst [vmem:[%s3316_s2 + $0x248] sm:$0xff] %v743_v11  ;;  %v745_v13 = vpop.f32.mrb[42].mxu1 }
 0x138   :  { %1514 = vst [vmem:[%s3316_s2 + $0x498] sm:$0xff] %v544_v29  ;;  %v546_v14 = vpop.f32.mrb[43].mxu0  ;;  %1446 = vst [vmem:[%s3316_s2 + $0x278] sm:$0xff] %v745_v13  ;;  %v747_v15 = vpop.f32.mrb[43].mxu1 }
 0x139   :  { %1515 = vst [vmem:[%s3316_s2 + $0x4a0] sm:$0xff] %v546_v14  ;;  %1447 = vst [vmem:[%s3316_s2 + $0x280] sm:$0xff] %v747_v15 }
 0x13a   :  { %1786 = vmatmul.mubr.msk.bf16.gmra.mrb[148].mxu0 %vm339_vm0, %v2108_v33  ;;  %1885 = vmatmul.mubr.msk.bf16.gmra.mrb[148].mxu1 %vm339_vm0, %v2124_v35 }
 0x13b   :  { %1150 = vmatprep.mubr.bf16.mxu0 %v1959_v1 }
 0x13d   :  { %v550_v16 = vpop.f32.mrb[44].mxu0  ;;  %v751_v17 = vpop.f32.mrb[44].mxu1 }
 0x13e   :  { %1521 = vst [vmem:[%s3316_s2 + $0x4d0] sm:$0xff] %v550_v16  ;;  %v552_v18 = vpop.f32.mrb[45].mxu0  ;;  %1453 = vst [vmem:[%s3316_s2 + $0x2b0] sm:$0xff] %v751_v17  ;;  %v753_v19 = vpop.f32.mrb[45].mxu1 }
 0x13f   :  { %1522 = vst [vmem:[%s3316_s2 + $0x4d8] sm:$0xff] %v552_v18  ;;  %v554_v33 = vpop.f32.mrb[46].mxu0  ;;  %1454 = vst [vmem:[%s3316_s2 + $0x2b8] sm:$0xff] %v753_v19  ;;  %v755_v1 = vpop.f32.mrb[46].mxu1 }
 0x140   :  { %1528 = vst [vmem:[%s3316_s2 + $0x508] sm:$0xff] %v554_v33  ;;  %v556_v20 = vpop.f32.mrb[47].mxu0  ;;  %1460 = vst [vmem:[%s3316_s2 + $0x2e8] sm:$0xff] %v755_v1  ;;  %v757_v22 = vpop.f32.mrb[47].mxu1 }
 0x141   :  { %1529 = vst [vmem:[%s3316_s2 + $0x510] sm:$0xff] %v556_v20  ;;  %1461 = vst [vmem:[%s3316_s2 + $0x2f0] sm:$0xff] %v757_v22 }
 0x142   :  { %1787 = vmatmul.mubr.msk.bf16.gmra.mrb[152].mxu0 %vm339_vm0, %v2124_v35 }
 0x145   :  { %v560_v23 = vpop.f32.mrb[48].mxu0  ;;  %v761_v24 = vpop.f32.mrb[48].mxu1 }
 0x146   :  { %1535 = vst [vmem:[%s3316_s2 + $0x540] sm:$0xff] %v560_v23  ;;  %v562_v25 = vpop.f32.mrb[49].mxu0  ;;  %1467 = vst [vmem:[%s3316_s2 + $0x320] sm:$0xff] %v761_v24  ;;  %v763_v26 = vpop.f32.mrb[49].mxu1 }
 0x147   :  { %1536 = vst [vmem:[%s3316_s2 + $0x548] sm:$0xff] %v562_v25  ;;  %v564_v27 = vpop.f32.mrb[50].mxu0  ;;  %1468 = vst [vmem:[%s3316_s2 + $0x328] sm:$0xff] %v763_v26  ;;  %v765_v35 = vpop.f32.mrb[50].mxu1 }
 0x148   :  { %1542 = vst [vmem:[%s3316_s2 + $0x578] sm:$0xff] %v564_v27  ;;  %v566_v28 = vpop.f32.mrb[51].mxu0  ;;  %1474 = vst [vmem:[%s3316_s2 + $0x358] sm:$0xff] %v765_v35  ;;  %v767_v30 = vpop.f32.mrb[51].mxu1 }
 0x149   :  { %1543 = vst [vmem:[%s3316_s2 + $0x580] sm:$0xff] %v566_v28  ;;  %1475 = vst [vmem:[%s3316_s2 + $0x360] sm:$0xff] %v767_v30 }
 0x14d   :  { %v570_v31 = vpop.f32.mrb[52].mxu0  ;;  %v771_v32 = vpop.f32.mrb[52].mxu1 }
 0x14e   :  { %1549 = vst [vmem:[%s3316_s2 + $0x5b0] sm:$0xff] %v570_v31  ;;  %v572_v34 = vpop.f32.mrb[53].mxu0  ;;  %1481 = vst [vmem:[%s3316_s2 + $0x390] sm:$0xff] %v771_v32  ;;  %v773_v36 = vpop.f32.mrb[53].mxu1 }
 0x14f   :  { %1550 = vst [vmem:[%s3316_s2 + $0x5b8] sm:$0xff] %v572_v34  ;;  %v574_v37 = vpop.f32.mrb[54].mxu0  ;;  %1482 = vst [vmem:[%s3316_s2 + $0x398] sm:$0xff] %v773_v36  ;;  %v775_v38 = vpop.f32.mrb[54].mxu1 }
 0x150   :  { %1556 = vst [vmem:[%s3316_s2 + $0x5e8] sm:$0xff] %v574_v37  ;;  %v576_v39 = vpop.f32.mrb[55].mxu0  ;;  %1488 = vst [vmem:[%s3316_s2 + $0x3c8] sm:$0xff] %v775_v38  ;;  %v777_v40 = vpop.f32.mrb[55].mxu1 }
 0x151   :  { %1557 = vst [vmem:[%s3316_s2 + $0x5f0] sm:$0xff] %v576_v39  ;;  %1489 = vst [vmem:[%s3316_s2 + $0x3d0] sm:$0xff] %v777_v40 }
 0x155   :  { %v580_v41 = vpop.f32.mrb[56].mxu0  ;;  %v781_v42 = vpop.f32.mrb[56].mxu1 }
 0x156   :  { %1563 = vst [vmem:[%s3316_s2 + $0x620] sm:$0xff] %v580_v41  ;;  %v582_v43 = vpop.f32.mrb[57].mxu0  ;;  %1495 = vst [vmem:[%s3316_s2 + $0x400] sm:$0xff] %v781_v42  ;;  %v783_v44 = vpop.f32.mrb[57].mxu1 }
 0x157   :  { %1564 = vst [vmem:[%s3316_s2 + $0x628] sm:$0xff] %v582_v43  ;;  %v584_v45 = vpop.f32.mrb[58].mxu0  ;;  %1496 = vst [vmem:[%s3316_s2 + $0x408] sm:$0xff] %v783_v44  ;;  %v785_v46 = vpop.f32.mrb[58].mxu1 }
 0x158   :  { %1570 = vst [vmem:[%s3316_s2 + $0x658] sm:$0xff] %v584_v45  ;;  %v586_v51 = vpop.f32.mrb[59].mxu0  ;;  %1502 = vst [vmem:[%s3316_s2 + $0x438] sm:$0xff] %v785_v46  ;;  %v787_v52 = vpop.f32.mrb[59].mxu1 }
 0x159   :  { %1571 = vst [vmem:[%s3316_s2 + $0x660] sm:$0xff] %v586_v51  ;;  %1503 = vst [vmem:[%s3316_s2 + $0x440] sm:$0xff] %v787_v52 }
 0x15d   :  { %v590_v53 = vpop.f32.mrb[60].mxu0  ;;  %v791_v54 = vpop.f32.mrb[60].mxu1 }
 0x15e   :  { %1577 = vst [vmem:[%s3316_s2 + $0x690] sm:$0xff] %v590_v53  ;;  %v592_v55 = vpop.f32.mrb[61].mxu0  ;;  %1509 = vst [vmem:[%s3316_s2 + $0x470] sm:$0xff] %v791_v54  ;;  %v793_v56 = vpop.f32.mrb[61].mxu1 }
 0x15f   :  { %1578 = vst [vmem:[%s3316_s2 + $0x698] sm:$0xff] %v592_v55  ;;  %v594_v47 = vpop.f32.mrb[62].mxu0  ;;  %1510 = vst [vmem:[%s3316_s2 + $0x478] sm:$0xff] %v793_v56  ;;  %v795_v48 = vpop.f32.mrb[62].mxu1 }
 0x160   :  { %1584 = vst [vmem:[%s3316_s2 + $0x6c8] sm:$0xff] %v594_v47  ;;  %v596_v57 = vpop.f32.mrb[63].mxu0  ;;  %1516 = vst [vmem:[%s3316_s2 + $0x4a8] sm:$0xff] %v795_v48  ;;  %v797_v58 = vpop.f32.mrb[63].mxu1 }
 0x161   :  { %1585 = vst [vmem:[%s3316_s2 + $0x6d0] sm:$0xff] %v596_v57  ;;  %1517 = vst [vmem:[%s3316_s2 + $0x4b0] sm:$0xff] %v797_v58 }
 0x165   :  { %v600_v59 = vpop.f32.mrb[64].mxu0  ;;  %v801_v60 = vpop.f32.mrb[64].mxu1 }
 0x166   :  { %1591 = vst [vmem:[%s3316_s2 + $0x700] sm:$0xff] %v600_v59  ;;  %v602_v61 = vpop.f32.mrb[65].mxu0  ;;  %1523 = vst [vmem:[%s3316_s2 + $0x4e0] sm:$0xff] %v801_v60  ;;  %v803_v62 = vpop.f32.mrb[65].mxu1 }
 0x167   :  { %1592 = vst [vmem:[%s3316_s2 + $0x708] sm:$0xff] %v602_v61  ;;  %v604_v49 = vpop.f32.mrb[66].mxu0  ;;  %1524 = vst [vmem:[%s3316_s2 + $0x4e8] sm:$0xff] %v803_v62  ;;  %v805_v50 = vpop.f32.mrb[66].mxu1 }
 0x168   :  { %1598 = vst [vmem:[%s3316_s2 + $0x738] sm:$0xff] %v604_v49  ;;  %v606_v63 = vpop.f32.mrb[67].mxu0  ;;  %1530 = vst [vmem:[%s3316_s2 + $0x518] sm:$0xff] %v805_v50  ;;  %v807_v0 = vpop.f32.mrb[67].mxu1 }
 0x169   :  { %1599 = vst [vmem:[%s3316_s2 + $0x740] sm:$0xff] %v606_v63  ;;  %1531 = vst [vmem:[%s3316_s2 + $0x520] sm:$0xff] %v807_v0 }
 0x16d   :  { %v942_v2 = vpop.f32.mrb[68].mxu0  ;;  %v811_v3 = vpop.f32.mrb[68].mxu1 }
 0x16e   :  { %1371 = vst [vmem:[%s3316_s2 + $0x20] sm:$0xff] %v942_v2  ;;  %v944_v4 = vpop.f32.mrb[69].mxu0  ;;  %1537 = vst [vmem:[%s3316_s2 + $0x550] sm:$0xff] %v811_v3  ;;  %v813_v5 = vpop.f32.mrb[69].mxu1 }
 0x16f   :  { %1372 = vst [vmem:[%s3316_s2 + $0x28] sm:$0xff] %v944_v4  ;;  %v946_v12 = vpop.f32.mrb[70].mxu0  ;;  %1538 = vst [vmem:[%s3316_s2 + $0x558] sm:$0xff] %v813_v5  ;;  %v815_v21 = vpop.f32.mrb[70].mxu1 }
 0x170   :  { %1378 = vst [vmem:[%s3316_s2 + $0x58] sm:$0xff] %v946_v12  ;;  %v948_v6 = vpop.f32.mrb[71].mxu0  ;;  %1544 = vst [vmem:[%s3316_s2 + $0x588] sm:$0xff] %v815_v21  ;;  %v817_v7 = vpop.f32.mrb[71].mxu1 }
 0x171   :  { %1379 = vst [vmem:[%s3316_s2 + $0x60] sm:$0xff] %v948_v6  ;;  %1545 = vst [vmem:[%s3316_s2 + $0x590] sm:$0xff] %v817_v7 }
 0x175   :  { %v952_v8 = vpop.f32.mrb[72].mxu0  ;;  %v821_v9 = vpop.f32.mrb[72].mxu1 }
 0x176   :  { %1385 = vst [vmem:[%s3316_s2 + $0x90] sm:$0xff] %v952_v8  ;;  %v954_v10 = vpop.f32.mrb[73].mxu0  ;;  %1551 = vst [vmem:[%s3316_s2 + $0x5c0] sm:$0xff] %v821_v9  ;;  %v823_v11 = vpop.f32.mrb[73].mxu1 }
 0x177   :  { %1386 = vst [vmem:[%s3316_s2 + $0x98] sm:$0xff] %v954_v10  ;;  %v956_v29 = vpop.f32.mrb[74].mxu0  ;;  %1552 = vst [vmem:[%s3316_s2 + $0x5c8] sm:$0xff] %v823_v11  ;;  %v825_v13 = vpop.f32.mrb[74].mxu1 }
 0x178   :  { %1392 = vst [vmem:[%s3316_s2 + $0xc8] sm:$0xff] %v956_v29  ;;  %v958_v14 = vpop.f32.mrb[75].mxu0  ;;  %1558 = vst [vmem:[%s3316_s2 + $0x5f8] sm:$0xff] %v825_v13  ;;  %v827_v15 = vpop.f32.mrb[75].mxu1 }
 0x179   :  { %1393 = vst [vmem:[%s3316_s2 + $0xd0] sm:$0xff] %v958_v14  ;;  %1559 = vst [vmem:[%s3316_s2 + $0x600] sm:$0xff] %v827_v15 }
 0x17d   :  { %v962_v16 = vpop.f32.mrb[76].mxu0  ;;  %v831_v17 = vpop.f32.mrb[76].mxu1 }
 0x17e   :  { %1399 = vst [vmem:[%s3316_s2 + $0x100] sm:$0xff] %v962_v16  ;;  %v964_v18 = vpop.f32.mrb[77].mxu0  ;;  %1565 = vst [vmem:[%s3316_s2 + $0x630] sm:$0xff] %v831_v17  ;;  %v833_v19 = vpop.f32.mrb[77].mxu1 }
 0x17f   :  { %1400 = vst [vmem:[%s3316_s2 + $0x108] sm:$0xff] %v964_v18  ;;  %v966_v33 = vpop.f32.mrb[78].mxu0  ;;  %1566 = vst [vmem:[%s3316_s2 + $0x638] sm:$0xff] %v833_v19  ;;  %v835_v1 = vpop.f32.mrb[78].mxu1 }
 0x180   :  { %1406 = vst [vmem:[%s3316_s2 + $0x138] sm:$0xff] %v966_v33  ;;  %v968_v20 = vpop.f32.mrb[79].mxu0  ;;  %1572 = vst [vmem:[%s3316_s2 + $0x668] sm:$0xff] %v835_v1  ;;  %v837_v22 = vpop.f32.mrb[79].mxu1 }
 0x181   :  { %1407 = vst [vmem:[%s3316_s2 + $0x140] sm:$0xff] %v968_v20  ;;  %1573 = vst [vmem:[%s3316_s2 + $0x670] sm:$0xff] %v837_v22 }
 0x185   :  { %v972_v23 = vpop.f32.mrb[80].mxu0  ;;  %v841_v24 = vpop.f32.mrb[80].mxu1 }
 0x186   :  { %1413 = vst [vmem:[%s3316_s2 + $0x170] sm:$0xff] %v972_v23  ;;  %v974_v25 = vpop.f32.mrb[81].mxu0  ;;  %1579 = vst [vmem:[%s3316_s2 + $0x6a0] sm:$0xff] %v841_v24  ;;  %v843_v26 = vpop.f32.mrb[81].mxu1 }
 0x187   :  { %1414 = vst [vmem:[%s3316_s2 + $0x178] sm:$0xff] %v974_v25  ;;  %v976_v27 = vpop.f32.mrb[82].mxu0  ;;  %1580 = vst [vmem:[%s3316_s2 + $0x6a8] sm:$0xff] %v843_v26  ;;  %v845_v35 = vpop.f32.mrb[82].mxu1 }
 0x188   :  { %1420 = vst [vmem:[%s3316_s2 + $0x1a8] sm:$0xff] %v976_v27  ;;  %v978_v28 = vpop.f32.mrb[83].mxu0  ;;  %1586 = vst [vmem:[%s3316_s2 + $0x6d8] sm:$0xff] %v845_v35  ;;  %v847_v30 = vpop.f32.mrb[83].mxu1 }
 0x189   :  { %1421 = vst [vmem:[%s3316_s2 + $0x1b0] sm:$0xff] %v978_v28  ;;  %1587 = vst [vmem:[%s3316_s2 + $0x6e0] sm:$0xff] %v847_v30 }
 0x18d   :  { %v982_v31 = vpop.f32.mrb[84].mxu0  ;;  %v851_v32 = vpop.f32.mrb[84].mxu1 }
 0x18e   :  { %1427 = vst [vmem:[%s3316_s2 + $0x1e0] sm:$0xff] %v982_v31  ;;  %v984_v34 = vpop.f32.mrb[85].mxu0  ;;  %1593 = vst [vmem:[%s3316_s2 + $0x710] sm:$0xff] %v851_v32  ;;  %v853_v36 = vpop.f32.mrb[85].mxu1 }
 0x18f   :  { %1428 = vst [vmem:[%s3316_s2 + $0x1e8] sm:$0xff] %v984_v34  ;;  %v986_v37 = vpop.f32.mrb[86].mxu0  ;;  %1594 = vst [vmem:[%s3316_s2 + $0x718] sm:$0xff] %v853_v36  ;;  %v855_v38 = vpop.f32.mrb[86].mxu1 }
 0x190   :  { %1434 = vst [vmem:[%s3316_s2 + $0x218] sm:$0xff] %v986_v37  ;;  %v988_v39 = vpop.f32.mrb[87].mxu0  ;;  %1600 = vst [vmem:[%s3316_s2 + $0x748] sm:$0xff] %v855_v38  ;;  %v857_v40 = vpop.f32.mrb[87].mxu1 }
 0x191   :  { %1435 = vst [vmem:[%s3316_s2 + $0x220] sm:$0xff] %v988_v39  ;;  %1601 = vst [vmem:[%s3316_s2 + $0x750] sm:$0xff] %v857_v40 }
 0x195   :  { %v992_v41 = vpop.f32.mrb[88].mxu0  ;;  %v861_v42 = vpop.f32.mrb[88].mxu1 }
 0x196   :  { %1441 = vst [vmem:[%s3316_s2 + $0x250] sm:$0xff] %v992_v41  ;;  %v994_v43 = vpop.f32.mrb[89].mxu0  ;;  %1607 = vst [vmem:[%s3316_s2 + $0x780] sm:$0xff] %v861_v42  ;;  %v863_v44 = vpop.f32.mrb[89].mxu1 }
 0x197   :  { %1442 = vst [vmem:[%s3316_s2 + $0x258] sm:$0xff] %v994_v43  ;;  %v996_v45 = vpop.f32.mrb[90].mxu0  ;;  %1608 = vst [vmem:[%s3316_s2 + $0x788] sm:$0xff] %v863_v44  ;;  %v865_v46 = vpop.f32.mrb[90].mxu1 }
 0x198   :  { %1448 = vst [vmem:[%s3316_s2 + $0x288] sm:$0xff] %v996_v45  ;;  %v998_v51 = vpop.f32.mrb[91].mxu0  ;;  %1614 = vst [vmem:[%s3316_s2 + $0x7b8] sm:$0xff] %v865_v46  ;;  %v867_v52 = vpop.f32.mrb[91].mxu1 }
 0x199   :  { %1449 = vst [vmem:[%s3316_s2 + $0x290] sm:$0xff] %v998_v51  ;;  %1615 = vst [vmem:[%s3316_s2 + $0x7c0] sm:$0xff] %v867_v52 }
 0x19d   :  { %v1002_v53 = vpop.f32.mrb[92].mxu0  ;;  %v871_v54 = vpop.f32.mrb[92].mxu1 }
 0x19e   :  { %1455 = vst [vmem:[%s3316_s2 + $0x2c0] sm:$0xff] %v1002_v53  ;;  %v1004_v55 = vpop.f32.mrb[93].mxu0  ;;  %1621 = vst [vmem:[%s3316_s2 + $0x7f0] sm:$0xff] %v871_v54  ;;  %v873_v56 = vpop.f32.mrb[93].mxu1 }
 0x19f   :  { %1456 = vst [vmem:[%s3316_s2 + $0x2c8] sm:$0xff] %v1004_v55  ;;  %v1006_v47 = vpop.f32.mrb[94].mxu0  ;;  %1622 = vst [vmem:[%s3316_s2 + $0x7f8] sm:$0xff] %v873_v56  ;;  %v875_v48 = vpop.f32.mrb[94].mxu1 }
 0x1a0   :  { %1462 = vst [vmem:[%s3316_s2 + $0x2f8] sm:$0xff] %v1006_v47  ;;  %v1008_v57 = vpop.f32.mrb[95].mxu0  ;;  %1628 = vst [vmem:[%s3316_s2 + $0x828] sm:$0xff] %v875_v48  ;;  %v877_v58 = vpop.f32.mrb[95].mxu1 }
 0x1a1   :  { %1463 = vst [vmem:[%s3316_s2 + $0x300] sm:$0xff] %v1008_v57  ;;  %1629 = vst [vmem:[%s3316_s2 + $0x830] sm:$0xff] %v877_v58 }
 0x1a5   :  { %v1012_v59 = vpop.f32.mrb[96].mxu0  ;;  %v881_v60 = vpop.f32.mrb[96].mxu1 }
 0x1a6   :  { %1469 = vst [vmem:[%s3316_s2 + $0x330] sm:$0xff] %v1012_v59  ;;  %v1014_v61 = vpop.f32.mrb[97].mxu0  ;;  %1635 = vst [vmem:[%s3316_s2 + $0x860] sm:$0xff] %v881_v60  ;;  %v883_v62 = vpop.f32.mrb[97].mxu1 }
 0x1a7   :  { %1470 = vst [vmem:[%s3316_s2 + $0x338] sm:$0xff] %v1014_v61  ;;  %v1016_v49 = vpop.f32.mrb[98].mxu0  ;;  %1636 = vst [vmem:[%s3316_s2 + $0x868] sm:$0xff] %v883_v62  ;;  %v885_v50 = vpop.f32.mrb[98].mxu1 }
 0x1a8   :  { %1476 = vst [vmem:[%s3316_s2 + $0x368] sm:$0xff] %v1016_v49  ;;  %v1018_v63 = vpop.f32.mrb[99].mxu0  ;;  %1642 = vst [vmem:[%s3316_s2 + $0x898] sm:$0xff] %v885_v50  ;;  %v887_v0 = vpop.f32.mrb[99].mxu1 }
 0x1a9   :  { %1477 = vst [vmem:[%s3316_s2 + $0x370] sm:$0xff] %v1018_v63  ;;  %1643 = vst [vmem:[%s3316_s2 + $0x8a0] sm:$0xff] %v887_v0 }
 0x1ad   :  { %v1022_v2 = vpop.f32.mrb[100].mxu0  ;;  %v891_v3 = vpop.f32.mrb[100].mxu1 }
 0x1ae   :  { %1483 = vst [vmem:[%s3316_s2 + $0x3a0] sm:$0xff] %v1022_v2  ;;  %v1024_v4 = vpop.f32.mrb[101].mxu0  ;;  %1649 = vst [vmem:[%s3316_s2 + $0x8d0] sm:$0xff] %v891_v3  ;;  %v893_v5 = vpop.f32.mrb[101].mxu1 }
 0x1af   :  { %1484 = vst [vmem:[%s3316_s2 + $0x3a8] sm:$0xff] %v1024_v4  ;;  %v1026_v12 = vpop.f32.mrb[102].mxu0  ;;  %1650 = vst [vmem:[%s3316_s2 + $0x8d8] sm:$0xff] %v893_v5  ;;  %v895_v21 = vpop.f32.mrb[102].mxu1 }
 0x1b0   :  { %1490 = vst [vmem:[%s3316_s2 + $0x3d8] sm:$0xff] %v1026_v12  ;;  %v1028_v6 = vpop.f32.mrb[103].mxu0  ;;  %1656 = vst [vmem:[%s3316_s2 + $0x908] sm:$0xff] %v895_v21  ;;  %v897_v7 = vpop.f32.mrb[103].mxu1 }
 0x1b1   :  { %1491 = vst [vmem:[%s3316_s2 + $0x3e0] sm:$0xff] %v1028_v6  ;;  %1657 = vst [vmem:[%s3316_s2 + $0x910] sm:$0xff] %v897_v7 }
 0x1b5   :  { %v1032_v8 = vpop.f32.mrb[104].mxu0  ;;  %v901_v9 = vpop.f32.mrb[104].mxu1 }
 0x1b6   :  { %1497 = vst [vmem:[%s3316_s2 + $0x410] sm:$0xff] %v1032_v8  ;;  %v1034_v10 = vpop.f32.mrb[105].mxu0  ;;  %1663 = vst [vmem:[%s3316_s2 + $0x940] sm:$0x3] %v901_v9  ;;  %v903_v11 = vpop.f32.mrb[105].mxu1 }
 0x1b7   :  { %1498 = vst [vmem:[%s3316_s2 + $0x418] sm:$0xff] %v1034_v10  ;;  %v1036_v29 = vpop.f32.mrb[106].mxu0  ;;  %1664 = vst [vmem:[%s3316_s2 + $0x948] sm:$0x3] %v903_v11  ;;  %v905_v13 = vpop.f32.mrb[106].mxu1 }
 0x1b8   :  { %1504 = vst [vmem:[%s3316_s2 + $0x448] sm:$0xff] %v1036_v29  ;;  %v1038_v14 = vpop.f32.mrb[107].mxu0  ;;  %v906_v15 = vpop.f32.mrb[107].mxu1 }
 0x1b9   :  { %1505 = vst [vmem:[%s3316_s2 + $0x450] sm:$0xff] %v1038_v14 }
 0x1bd   :  { %v1042_v16 = vpop.f32.mrb[108].mxu0  ;;  %v1846_v17 = vpop.f32.mrb[108].mxu1 }
 0x1be   :  { %1511 = vst [vmem:[%s3316_s2 + $0x480] sm:$0xff] %v1042_v16  ;;  %v1044_v18 = vpop.f32.mrb[109].mxu0  ;;  %1387 = vst [vmem:[%s3316_s2 + $0xa0] sm:$0xff] %v1846_v17  ;;  %v1193_v19 = vpop.f32.mrb[109].mxu1 }
 0x1bf   :  { %1512 = vst [vmem:[%s3316_s2 + $0x488] sm:$0xff] %v1044_v18  ;;  %v1046_v33 = vpop.f32.mrb[110].mxu0  ;;  %1373 = vst [vmem:[%s3316_s2 + $0x30] sm:$0xff] %v1193_v19  ;;  %v1847_v1 = vpop.f32.mrb[110].mxu1 }
 0x1c0   :  { %1518 = vst [vmem:[%s3316_s2 + $0x4b8] sm:$0xff] %v1046_v33  ;;  %v1048_v20 = vpop.f32.mrb[111].mxu0  ;;  %1394 = vst [vmem:[%s3316_s2 + $0xd8] sm:$0xff] %v1847_v1  ;;  %v1196_v22 = vpop.f32.mrb[111].mxu1 }
 0x1c1   :  { %1519 = vst [vmem:[%s3316_s2 + $0x4c0] sm:$0xff] %v1048_v20  ;;  %1380 = vst [vmem:[%s3316_s2 + $0x68] sm:$0xff] %v1196_v22 }
 0x1c5   :  { %v1052_v23 = vpop.f32.mrb[112].mxu0  ;;  %v1850_v24 = vpop.f32.mrb[112].mxu1 }
 0x1c6   :  { %1525 = vst [vmem:[%s3316_s2 + $0x4f0] sm:$0xff] %v1052_v23  ;;  %v1054_v25 = vpop.f32.mrb[113].mxu0  ;;  %1415 = vst [vmem:[%s3316_s2 + $0x180] sm:$0xff] %v1850_v24  ;;  %v1209_v26 = vpop.f32.mrb[113].mxu1 }
 0x1c7   :  { %1526 = vst [vmem:[%s3316_s2 + $0x4f8] sm:$0xff] %v1054_v25  ;;  %v1056_v27 = vpop.f32.mrb[114].mxu0  ;;  %1401 = vst [vmem:[%s3316_s2 + $0x110] sm:$0xff] %v1209_v26  ;;  %v1851_v35 = vpop.f32.mrb[114].mxu1 }
 0x1c8   :  { %1532 = vst [vmem:[%s3316_s2 + $0x528] sm:$0xff] %v1056_v27  ;;  %v1058_v28 = vpop.f32.mrb[115].mxu0  ;;  %1422 = vst [vmem:[%s3316_s2 + $0x1b8] sm:$0xff] %v1851_v35  ;;  %v1212_v30 = vpop.f32.mrb[115].mxu1 }
 0x1c9   :  { %1533 = vst [vmem:[%s3316_s2 + $0x530] sm:$0xff] %v1058_v28  ;;  %1408 = vst [vmem:[%s3316_s2 + $0x148] sm:$0xff] %v1212_v30 }
 0x1cd   :  { %v1062_v31 = vpop.f32.mrb[116].mxu0  ;;  %v1854_v32 = vpop.f32.mrb[116].mxu1 }
 0x1ce   :  { %1539 = vst [vmem:[%s3316_s2 + $0x560] sm:$0xff] %v1062_v31  ;;  %v1064_v34 = vpop.f32.mrb[117].mxu0  ;;  %1443 = vst [vmem:[%s3316_s2 + $0x260] sm:$0xff] %v1854_v32  ;;  %v1225_v36 = vpop.f32.mrb[117].mxu1 }
 0x1cf   :  { %1540 = vst [vmem:[%s3316_s2 + $0x568] sm:$0xff] %v1064_v34  ;;  %v1066_v37 = vpop.f32.mrb[118].mxu0  ;;  %1429 = vst [vmem:[%s3316_s2 + $0x1f0] sm:$0xff] %v1225_v36  ;;  %v1855_v38 = vpop.f32.mrb[118].mxu1 }
 0x1d0   :  { %1546 = vst [vmem:[%s3316_s2 + $0x598] sm:$0xff] %v1066_v37  ;;  %v1068_v39 = vpop.f32.mrb[119].mxu0  ;;  %1450 = vst [vmem:[%s3316_s2 + $0x298] sm:$0xff] %v1855_v38  ;;  %v1228_v40 = vpop.f32.mrb[119].mxu1 }
 0x1d1   :  { %1547 = vst [vmem:[%s3316_s2 + $0x5a0] sm:$0xff] %v1068_v39  ;;  %1436 = vst [vmem:[%s3316_s2 + $0x228] sm:$0xff] %v1228_v40 }
 0x1d5   :  { %v1072_v41 = vpop.f32.mrb[120].mxu0  ;;  %v1858_v42 = vpop.f32.mrb[120].mxu1 }
 0x1d6   :  { %1553 = vst [vmem:[%s3316_s2 + $0x5d0] sm:$0xff] %v1072_v41  ;;  %v1074_v43 = vpop.f32.mrb[121].mxu0  ;;  %1471 = vst [vmem:[%s3316_s2 + $0x340] sm:$0xff] %v1858_v42  ;;  %v1241_v44 = vpop.f32.mrb[121].mxu1 }
 0x1d7   :  { %1554 = vst [vmem:[%s3316_s2 + $0x5d8] sm:$0xff] %v1074_v43  ;;  %v1076_v45 = vpop.f32.mrb[122].mxu0  ;;  %1457 = vst [vmem:[%s3316_s2 + $0x2d0] sm:$0xff] %v1241_v44  ;;  %v1859_v46 = vpop.f32.mrb[122].mxu1 }
 0x1d8   :  { %1560 = vst [vmem:[%s3316_s2 + $0x608] sm:$0xff] %v1076_v45  ;;  %v1078_v51 = vpop.f32.mrb[123].mxu0  ;;  %1478 = vst [vmem:[%s3316_s2 + $0x378] sm:$0xff] %v1859_v46  ;;  %v1244_v52 = vpop.f32.mrb[123].mxu1 }
 0x1d9   :  { %1561 = vst [vmem:[%s3316_s2 + $0x610] sm:$0xff] %v1078_v51  ;;  %1464 = vst [vmem:[%s3316_s2 + $0x308] sm:$0xff] %v1244_v52 }
 0x1dd   :  { %v1082_v53 = vpop.f32.mrb[124].mxu0  ;;  %v1862_v54 = vpop.f32.mrb[124].mxu1 }
 0x1de   :  { %1567 = vst [vmem:[%s3316_s2 + $0x640] sm:$0xff] %v1082_v53  ;;  %v1084_v55 = vpop.f32.mrb[125].mxu0  ;;  %1499 = vst [vmem:[%s3316_s2 + $0x420] sm:$0xff] %v1862_v54  ;;  %v1257_v56 = vpop.f32.mrb[125].mxu1 }
 0x1df   :  { %1568 = vst [vmem:[%s3316_s2 + $0x648] sm:$0xff] %v1084_v55  ;;  %v1086_v47 = vpop.f32.mrb[126].mxu0  ;;  %1485 = vst [vmem:[%s3316_s2 + $0x3b0] sm:$0xff] %v1257_v56  ;;  %v1863_v48 = vpop.f32.mrb[126].mxu1 }
 0x1e0   :  { %1574 = vst [vmem:[%s3316_s2 + $0x678] sm:$0xff] %v1086_v47  ;;  %v1088_v57 = vpop.f32.mrb[127].mxu0  ;;  %1506 = vst [vmem:[%s3316_s2 + $0x458] sm:$0xff] %v1863_v48  ;;  %v1260_v58 = vpop.f32.mrb[127].mxu1 }
 0x1e1   :  { %1575 = vst [vmem:[%s3316_s2 + $0x680] sm:$0xff] %v1088_v57  ;;  %1492 = vst [vmem:[%s3316_s2 + $0x3e8] sm:$0xff] %v1260_v58 }
 0x1e5   :  { %v1092_v59 = vpop.f32.mrb[128].mxu0  ;;  %v1866_v60 = vpop.f32.mrb[128].mxu1 }
 0x1e6   :  { %1581 = vst [vmem:[%s3316_s2 + $0x6b0] sm:$0xff] %v1092_v59  ;;  %v1094_v61 = vpop.f32.mrb[129].mxu0  ;;  %1527 = vst [vmem:[%s3316_s2 + $0x500] sm:$0xff] %v1866_v60  ;;  %v1273_v62 = vpop.f32.mrb[129].mxu1 }
 0x1e7   :  { %1582 = vst [vmem:[%s3316_s2 + $0x6b8] sm:$0xff] %v1094_v61  ;;  %v1096_v49 = vpop.f32.mrb[130].mxu0  ;;  %1513 = vst [vmem:[%s3316_s2 + $0x490] sm:$0xff] %v1273_v62  ;;  %v1867_v50 = vpop.f32.mrb[130].mxu1 }
 0x1e8   :  { %1588 = vst [vmem:[%s3316_s2 + $0x6e8] sm:$0xff] %v1096_v49  ;;  %v1098_v63 = vpop.f32.mrb[131].mxu0  ;;  %1534 = vst [vmem:[%s3316_s2 + $0x538] sm:$0xff] %v1867_v50  ;;  %v1276_v0 = vpop.f32.mrb[131].mxu1 }
 0x1e9   :  { %1589 = vst [vmem:[%s3316_s2 + $0x6f0] sm:$0xff] %v1098_v63  ;;  %1520 = vst [vmem:[%s3316_s2 + $0x4c8] sm:$0xff] %v1276_v0 }
 0x1ed   :  { %v1102_v2 = vpop.f32.mrb[132].mxu0  ;;  %v1870_v3 = vpop.f32.mrb[132].mxu1 }
 0x1ee   :  { %1595 = vst [vmem:[%s3316_s2 + $0x720] sm:$0xff] %v1102_v2  ;;  %v1104_v4 = vpop.f32.mrb[133].mxu0  ;;  %1555 = vst [vmem:[%s3316_s2 + $0x5e0] sm:$0xff] %v1870_v3  ;;  %v1289_v5 = vpop.f32.mrb[133].mxu1 }
 0x1ef   :  { %1596 = vst [vmem:[%s3316_s2 + $0x728] sm:$0xff] %v1104_v4  ;;  %v1106_v12 = vpop.f32.mrb[134].mxu0  ;;  %1541 = vst [vmem:[%s3316_s2 + $0x570] sm:$0xff] %v1289_v5  ;;  %v1871_v21 = vpop.f32.mrb[134].mxu1 }
 0x1f0   :  { %1602 = vst [vmem:[%s3316_s2 + $0x758] sm:$0xff] %v1106_v12  ;;  %v1108_v6 = vpop.f32.mrb[135].mxu0  ;;  %1562 = vst [vmem:[%s3316_s2 + $0x618] sm:$0xff] %v1871_v21  ;;  %v1292_v7 = vpop.f32.mrb[135].mxu1 }
 0x1f1   :  { %1603 = vst [vmem:[%s3316_s2 + $0x760] sm:$0xff] %v1108_v6  ;;  %1548 = vst [vmem:[%s3316_s2 + $0x5a8] sm:$0xff] %v1292_v7 }
 0x1f5   :  { %v1112_v8 = vpop.f32.mrb[136].mxu0  ;;  %v1874_v9 = vpop.f32.mrb[136].mxu1 }
 0x1f6   :  { %1609 = vst [vmem:[%s3316_s2 + $0x790] sm:$0xff] %v1112_v8  ;;  %v1114_v10 = vpop.f32.mrb[137].mxu0  ;;  %1583 = vst [vmem:[%s3316_s2 + $0x6c0] sm:$0xff] %v1874_v9  ;;  %v1305_v11 = vpop.f32.mrb[137].mxu1 }
 0x1f7   :  { %1610 = vst [vmem:[%s3316_s2 + $0x798] sm:$0xff] %v1114_v10  ;;  %v1116_v29 = vpop.f32.mrb[138].mxu0  ;;  %1569 = vst [vmem:[%s3316_s2 + $0x650] sm:$0xff] %v1305_v11  ;;  %v1875_v13 = vpop.f32.mrb[138].mxu1 }
 0x1f8   :  { %1616 = vst [vmem:[%s3316_s2 + $0x7c8] sm:$0xff] %v1116_v29  ;;  %v1118_v14 = vpop.f32.mrb[139].mxu0  ;;  %1590 = vst [vmem:[%s3316_s2 + $0x6f8] sm:$0xff] %v1875_v13  ;;  %v1308_v15 = vpop.f32.mrb[139].mxu1 }
 0x1f9   :  { %1617 = vst [vmem:[%s3316_s2 + $0x7d0] sm:$0xff] %v1118_v14  ;;  %1576 = vst [vmem:[%s3316_s2 + $0x688] sm:$0xff] %v1308_v15 }
 0x1fd   :  { %v1122_v16 = vpop.f32.mrb[140].mxu0  ;;  %v1878_v17 = vpop.f32.mrb[140].mxu1 }
 0x1fe   :  { %1623 = vst [vmem:[%s3316_s2 + $0x800] sm:$0xff] %v1122_v16  ;;  %v1124_v18 = vpop.f32.mrb[141].mxu0  ;;  %1611 = vst [vmem:[%s3316_s2 + $0x7a0] sm:$0xff] %v1878_v17  ;;  %v1321_v19 = vpop.f32.mrb[141].mxu1 }
 0x1ff   :  { %1624 = vst [vmem:[%s3316_s2 + $0x808] sm:$0xff] %v1124_v18  ;;  %v1126_v33 = vpop.f32.mrb[142].mxu0  ;;  %1597 = vst [vmem:[%s3316_s2 + $0x730] sm:$0xff] %v1321_v19  ;;  %v1879_v1 = vpop.f32.mrb[142].mxu1 }
 0x200   :  { %1630 = vst [vmem:[%s3316_s2 + $0x838] sm:$0xff] %v1126_v33  ;;  %v1128_v20 = vpop.f32.mrb[143].mxu0  ;;  %1618 = vst [vmem:[%s3316_s2 + $0x7d8] sm:$0xff] %v1879_v1  ;;  %v1324_v22 = vpop.f32.mrb[143].mxu1 }
 0x201   :  { %1631 = vst [vmem:[%s3316_s2 + $0x840] sm:$0xff] %v1128_v20  ;;  %1604 = vst [vmem:[%s3316_s2 + $0x768] sm:$0xff] %v1324_v22 }
 0x205   :  { %v1132_v23 = vpop.f32.mrb[144].mxu0  ;;  %v1882_v24 = vpop.f32.mrb[144].mxu1 }
 0x206   :  { %1637 = vst [vmem:[%s3316_s2 + $0x870] sm:$0xff] %v1132_v23  ;;  %v1134_v25 = vpop.f32.mrb[145].mxu0  ;;  %1639 = vst [vmem:[%s3316_s2 + $0x880] sm:$0xff] %v1882_v24  ;;  %v1337_v26 = vpop.f32.mrb[145].mxu1 }
 0x207   :  { %1638 = vst [vmem:[%s3316_s2 + $0x878] sm:$0xff] %v1134_v25  ;;  %v1136_v27 = vpop.f32.mrb[146].mxu0  ;;  %1625 = vst [vmem:[%s3316_s2 + $0x810] sm:$0xff] %v1337_v26  ;;  %v1883_v35 = vpop.f32.mrb[146].mxu1 }
 0x208   :  { %1644 = vst [vmem:[%s3316_s2 + $0x8a8] sm:$0xff] %v1136_v27  ;;  %v1138_v28 = vpop.f32.mrb[147].mxu0  ;;  %1646 = vst [vmem:[%s3316_s2 + $0x8b8] sm:$0xff] %v1883_v35  ;;  %v1340_v30 = vpop.f32.mrb[147].mxu1 }
 0x209   :  { %1645 = vst [vmem:[%s3316_s2 + $0x8b0] sm:$0xff] %v1138_v28  ;;  %1632 = vst [vmem:[%s3316_s2 + $0x848] sm:$0xff] %v1340_v30 }
 0x20d   :  { %v1142_v31 = vpop.f32.mrb[148].mxu0  ;;  %v1886_v32 = vpop.f32.mrb[148].mxu1 }
 0x20e   :  { %1651 = vst [vmem:[%s3316_s2 + $0x8e0] sm:$0xff] %v1142_v31  ;;  %v1144_v34 = vpop.f32.mrb[149].mxu0  ;;  %1667 = vst [vmem:[%s3316_s2 + $0x960] sm:$0x3] %v1886_v32  ;;  %v1353_v36 = vpop.f32.mrb[149].mxu1 }
 0x20f   :  { %1652 = vst [vmem:[%s3316_s2 + $0x8e8] sm:$0xff] %v1144_v34  ;;  %v1146_v37 = vpop.f32.mrb[150].mxu0  ;;  %1653 = vst [vmem:[%s3316_s2 + $0x8f0] sm:$0xff] %v1353_v36  ;;  %v1887_v38 = vpop.f32.mrb[150].mxu1 }
 0x210   :  { %1658 = vst [vmem:[%s3316_s2 + $0x918] sm:$0xff] %v1146_v37  ;;  %v1148_v39 = vpop.f32.mrb[151].mxu0  ;;  %v1356_v40 = vpop.f32.mrb[151].mxu1 }
 0x211   :  { %1659 = vst [vmem:[%s3316_s2 + $0x920] sm:$0xff] %v1148_v39  ;;  %1660 = vst [vmem:[%s3316_s2 + $0x928] sm:$0xff] %v1356_v40 }
 0x215   :  { %v1152_v41 = vpop.f32.mrb[152].mxu0 }
 0x216   :  { %1665 = vst [vmem:[%s3316_s2 + $0x950] sm:$0x3] %v1152_v41  ;;  %v1154_v42 = vpop.f32.mrb[153].mxu0 }
 0x217   :  { %1666 = vst [vmem:[%s3316_s2 + $0x958] sm:$0x3] %v1154_v42  ;;  %v1156_v43 = vpop.f32.mrb[154].mxu0 }
 0x218   :  { %v1157_v44 = vpop.f32.mrb[155].mxu0 }

// kernel: decoder_forward.9
= control target key start
LH: loop header
LB: loop body
LE: loop exit
PB: predicated region body
PF: predicated region fallthrough
CT: control target
= control target key end

     0   :  { %v2289_v0 = vmov 0.0   ;;  %vm2290_vm0 = vmmov 0   ;;  %vm578_vm1 = vcmask 261120   ;;  %s3261_s1 = inlined_call_operand.vmem [shape: bf16[32,128], index: 1, kind: input, shape index: {}]   ;;  %s3262_s0 = inlined_call_operand.vmem [shape: bf16[1250,32], index: 0, kind: input, shape index: {}]   ;;  %s3263_s2 = inlined_call_operand.vmem [shape: f32[1250,128], index: 2, kind: output, shape index: {}]  }
   0x1   :  { %1882 = vmatprep.subr.bf16.mxu0 %v2289_v0  ;;  %v2208_v1 = vld [vmem:[%s3261_s1] sm:$0xff]   ;;  %2202 = vmatprep.subr.bf16.mxu1 %v2289_v0  ;;  %v2209_v2 = vld [vmem:[%s3261_s1 + $0x8] sm:$0xff]   ;;  %v2214_v7 = vld [vmem:[%s3262_s0 + $0x10] sm:$0xff]  }
   0x2   :  { %1886 = vmatprep.mubr.msk.bf16.mxu0 %vm2290_vm0, %v2289_v0  ;;  %2046 = vmatprep.mubr.msk.bf16.mxu1 %vm2290_vm0, %v2289_v0  ;;  %v2210_v3 = vld [vmem:[%s3262_s0] sm:$0xff]   ;;  %v2212_v5 = vld [vmem:[%s3262_s0 + $0x8] sm:$0xff]   ;;  %v2215_v8 = vld [vmem:[%s3262_s0 + $0x150] sm:$0xff]  }
   0x3   :  { %1883 = vmatpush3.bf16.msra.mxu0 %v2208_v1  ;;  %2204 = vmatpush3.bf16.msra.mxu1 %v2208_v1  ;;  %v2211_v4 = vld [vmem:[%s3262_s0 + $0x140] sm:$0xff]   ;;  %v2213_v6 = vld [vmem:[%s3262_s0 + $0x148] sm:$0xff]   ;;  %v2216_v9 = vld [vmem:[%s3262_s0 + $0x18] sm:$0xff]  }
   0x4   :  { %1884 = vmatprep.subr.bf16.mxu0 %v2289_v0  ;;  %2203 = vmatprep.subr.bf16.mxu1 %v2289_v0  ;;  %v2217_v10 = vld [vmem:[%s3262_s0 + $0x158] sm:$0xff]   ;;  %v2218_v11 = vld [vmem:[%s3262_s0 + $0x20] sm:$0xff]   ;;  %v2220_v13 = vld [vmem:[%s3262_s0 + $0x28] sm:$0xff]  }
   0x5   :  { %v2219_v12 = vld [vmem:[%s3262_s0 + $0x160] sm:$0xff]   ;;  %v2221_v14 = vld [vmem:[%s3262_s0 + $0x168] sm:$0xff]   ;;  %v2222_v15 = vld [vmem:[%s3262_s0 + $0x30] sm:$0xff]  }
   0x6   :  { %v2223_v16 = vld [vmem:[%s3262_s0 + $0x170] sm:$0xff]   ;;  %v2224_v17 = vld [vmem:[%s3262_s0 + $0x38] sm:$0xff]   ;;  %v2226_v19 = vld [vmem:[%s3262_s0 + $0x40] sm:$0xff]  }
   0x7   :  { %1885 = vmatpush3.bf16.msra.mxu0 %v2209_v2  ;;  %2205 = vmatpush3.bf16.msra.mxu1 %v2209_v2  ;;  %v2225_v18 = vld [vmem:[%s3262_s0 + $0x178] sm:$0xff]   ;;  %v2227_v20 = vld [vmem:[%s3262_s0 + $0x180] sm:$0xff]   ;;  %v2228_v21 = vld [vmem:[%s3262_s0 + $0x48] sm:$0xff]  }
   0x8   :  { %v2229_v22 = vld [vmem:[%s3262_s0 + $0x188] sm:$0xff]   ;;  %v2230_v23 = vld [vmem:[%s3262_s0 + $0x50] sm:$0xff]   ;;  %v2232_v25 = vld [vmem:[%s3262_s0 + $0x58] sm:$0xff]  }
   0x9   :  { %v2231_v24 = vld [vmem:[%s3262_s0 + $0x190] sm:$0xff]   ;;  %v2233_v26 = vld [vmem:[%s3262_s0 + $0x198] sm:$0xff]   ;;  %v2234_v27 = vld [vmem:[%s3262_s0 + $0x60] sm:$0xff]  }
   0xa   :  { %1887 = vmatmul.mubr.msk.bf16.vlgmr.msra.gmra.mrb[0].mxu0 %vm578_vm1, %v2210_v3  ;;  %2047 = vmatmul.mubr.msk.bf16.vlgmr.msra.gmra.mrb[0].mxu1 %vm578_vm1, %v2211_v4  ;;  %v2235_v28 = vld [vmem:[%s3262_s0 + $0x1a0] sm:$0xff]   ;;  %v2236_v29 = vld [vmem:[%s3262_s0 + $0x68] sm:$0xff]   ;;  %v2238_v31 = vld [vmem:[%s3262_s0 + $0x70] sm:$0xff]  }
   0xb   :  { %1890 = vmatprep.mubr.msk.bf16.mxu0 %vm2290_vm0, %v2289_v0  ;;  %2050 = vmatprep.mubr.msk.bf16.mxu1 %vm2290_vm0, %v2289_v0  ;;  %v2237_v30 = vld [vmem:[%s3262_s0 + $0x1a8] sm:$0xff]   ;;  %v2239_v32 = vld [vmem:[%s3262_s0 + $0x1b0] sm:$0xff]   ;;  %v2240_v33 = vld [vmem:[%s3262_s0 + $0x78] sm:$0xff]  }
   0xc   :  { %v2241_v34 = vld [vmem:[%s3262_s0 + $0x1b8] sm:$0xff]   ;;  %v2242_v35 = vld [vmem:[%s3262_s0 + $0x80] sm:$0xff]   ;;  %v2244_v37 = vld [vmem:[%s3262_s0 + $0x88] sm:$0xff]  }
   0xd   :  { %v2243_v36 = vld [vmem:[%s3262_s0 + $0x1c0] sm:$0xff]   ;;  %v2245_v38 = vld [vmem:[%s3262_s0 + $0x1c8] sm:$0xff]   ;;  %v2246_v39 = vld [vmem:[%s3262_s0 + $0x90] sm:$0xff]  }
   0xe   :  { %v2247_v40 = vld [vmem:[%s3262_s0 + $0x1d0] sm:$0xff]   ;;  %v2248_v41 = vld [vmem:[%s3262_s0 + $0x98] sm:$0xff]   ;;  %v2250_v43 = vld [vmem:[%s3262_s0 + $0xa0] sm:$0xff]  }
   0xf   :  { %v2249_v42 = vld [vmem:[%s3262_s0 + $0x1d8] sm:$0xff]   ;;  %v2251_v44 = vld [vmem:[%s3262_s0 + $0x1e0] sm:$0xff]   ;;  %v2252_v45 = vld [vmem:[%s3262_s0 + $0xa8] sm:$0xff]  }
  0x10   :  { %v2253_v46 = vld [vmem:[%s3262_s0 + $0x1e8] sm:$0xff]   ;;  %v2254_v47 = vld [vmem:[%s3262_s0 + $0xb0] sm:$0xff]   ;;  %v2256_v49 = vld [vmem:[%s3262_s0 + $0xb8] sm:$0xff]  }
  0x11   :  { %v2255_v48 = vld [vmem:[%s3262_s0 + $0x1f0] sm:$0xff]   ;;  %v2257_v50 = vld [vmem:[%s3262_s0 + $0x1f8] sm:$0xff]   ;;  %v2258_v51 = vld [vmem:[%s3262_s0 + $0xc0] sm:$0xff]  }
  0x12   :  { %1891 = vmatmul.mubr.msk.bf16.gmra.mrb[4].mxu0 %vm578_vm1, %v2212_v5  ;;  %2051 = vmatmul.mubr.msk.bf16.gmra.mrb[4].mxu1 %vm578_vm1, %v2213_v6  ;;  %v2259_v52 = vld [vmem:[%s3262_s0 + $0x200] sm:$0xff]   ;;  %v2260_v53 = vld [vmem:[%s3262_s0 + $0xc8] sm:$0xff]   ;;  %v2262_v55 = vld [vmem:[%s3262_s0 + $0xd0] sm:$0xff]  }
  0x13   :  { %1894 = vmatprep.mubr.msk.bf16.mxu0 %vm2290_vm0, %v2289_v0  ;;  %2054 = vmatprep.mubr.msk.bf16.mxu1 %vm2290_vm0, %v2289_v0  ;;  %v2261_v54 = vld [vmem:[%s3262_s0 + $0x208] sm:$0xff]   ;;  %v2263_v56 = vld [vmem:[%s3262_s0 + $0x210] sm:$0xff]   ;;  %v2264_v60 = vld [vmem:[%s3262_s0 + $0xd8] sm:$0xff]  }
  0x14   :  { %v2265_v62 = vld [vmem:[%s3262_s0 + $0x218] sm:$0xff]  }
  0x1a   :  { %1895 = vmatmul.mubr.msk.bf16.gmra.mrb[8].mxu0 %vm578_vm1, %v2214_v7  ;;  %2055 = vmatmul.mubr.msk.bf16.gmra.mrb[8].mxu1 %vm578_vm1, %v2215_v8  ;;  %v2266_v7 = vld [vmem:[%s3262_s0 + $0xe0] sm:$0xff]  }
  0x1b   :  { %1898 = vmatprep.mubr.msk.bf16.mxu0 %vm2290_vm0, %v2289_v0  ;;  %2058 = vmatprep.mubr.msk.bf16.mxu1 %vm2290_vm0, %v2289_v0 }
  0x22   :  { %1899 = vmatmul.mubr.msk.bf16.gmra.mrb[12].mxu0 %vm578_vm1, %v2216_v9  ;;  %2059 = vmatmul.mubr.msk.bf16.gmra.mrb[12].mxu1 %vm578_vm1, %v2217_v10  ;;  %v2267_v9 = vld [vmem:[%s3262_s0 + $0x220] sm:$0xff]  }
  0x23   :  { %1902 = vmatprep.mubr.msk.bf16.mxu0 %vm2290_vm0, %v2289_v0  ;;  %2062 = vmatprep.mubr.msk.bf16.mxu1 %vm2290_vm0, %v2289_v0 }
  0x2a   :  { %1903 = vmatmul.mubr.msk.bf16.gmra.mrb[16].mxu0 %vm578_vm1, %v2218_v11  ;;  %2063 = vmatmul.mubr.msk.bf16.gmra.mrb[16].mxu1 %vm578_vm1, %v2219_v12 }
  0x2b   :  { %1906 = vmatprep.mubr.msk.bf16.mxu0 %vm2290_vm0, %v2289_v0  ;;  %2066 = vmatprep.mubr.msk.bf16.mxu1 %vm2290_vm0, %v2289_v0 }
  0x32   :  { %1907 = vmatmul.mubr.msk.bf16.gmra.mrb[20].mxu0 %vm578_vm1, %v2220_v13  ;;  %2067 = vmatmul.mubr.msk.bf16.gmra.mrb[20].mxu1 %vm578_vm1, %v2221_v14 }
  0x33   :  { %1910 = vmatprep.mubr.msk.bf16.mxu0 %vm2290_vm0, %v2289_v0  ;;  %2070 = vmatprep.mubr.msk.bf16.mxu1 %vm2290_vm0, %v2289_v0 }
  0x3a   :  { %1911 = vmatmul.mubr.msk.bf16.gmra.mrb[24].mxu0 %vm578_vm1, %v2222_v15  ;;  %2071 = vmatmul.mubr.msk.bf16.gmra.mrb[24].mxu1 %vm578_vm1, %v2223_v16 }
  0x3b   :  { %1914 = vmatprep.mubr.msk.bf16.mxu0 %vm2290_vm0, %v2289_v0  ;;  %2074 = vmatprep.mubr.msk.bf16.mxu1 %vm2290_vm0, %v2289_v0 }
  0x42   :  { %1915 = vmatmul.mubr.msk.bf16.gmra.mrb[28].mxu0 %vm578_vm1, %v2224_v17  ;;  %2075 = vmatmul.mubr.msk.bf16.gmra.mrb[28].mxu1 %vm578_vm1, %v2225_v18  ;;  %v2268_v17 = vld [vmem:[%s3262_s0 + $0xe8] sm:$0xff]  }
  0x43   :  { %1918 = vmatprep.mubr.msk.bf16.mxu0 %vm2290_vm0, %v2289_v0  ;;  %2078 = vmatprep.mubr.msk.bf16.mxu1 %vm2290_vm0, %v2289_v0 }
  0x4a   :  { %1919 = vmatmul.mubr.msk.bf16.gmra.mrb[32].mxu0 %vm578_vm1, %v2226_v19  ;;  %2079 = vmatmul.mubr.msk.bf16.gmra.mrb[32].mxu1 %vm578_vm1, %v2227_v20  ;;  %v2269_v19 = vld [vmem:[%s3262_s0 + $0x228] sm:$0xff]  }
  0x4b   :  { %1922 = vmatprep.mubr.msk.bf16.mxu0 %vm2290_vm0, %v2289_v0  ;;  %2082 = vmatprep.mubr.msk.bf16.mxu1 %vm2290_vm0, %v2289_v0 }
  0x52   :  { %1923 = vmatmul.mubr.msk.bf16.gmra.mrb[36].mxu0 %vm578_vm1, %v2228_v21  ;;  %2083 = vmatmul.mubr.msk.bf16.gmra.mrb[36].mxu1 %vm578_vm1, %v2229_v22 }
  0x53   :  { %1926 = vmatprep.mubr.msk.bf16.mxu0 %vm2290_vm0, %v2289_v0  ;;  %2086 = vmatprep.mubr.msk.bf16.mxu1 %vm2290_vm0, %v2289_v0 }
  0x5a   :  { %1927 = vmatmul.mubr.msk.bf16.gmra.mrb[40].mxu0 %vm578_vm1, %v2230_v23  ;;  %2087 = vmatmul.mubr.msk.bf16.gmra.mrb[40].mxu1 %vm578_vm1, %v2231_v24 }
  0x5b   :  { %1930 = vmatprep.mubr.msk.bf16.mxu0 %vm2290_vm0, %v2289_v0  ;;  %2090 = vmatprep.mubr.msk.bf16.mxu1 %vm2290_vm0, %v2289_v0 }
  0x62   :  { %1931 = vmatmul.mubr.msk.bf16.gmra.mrb[44].mxu0 %vm578_vm1, %v2232_v25  ;;  %2091 = vmatmul.mubr.msk.bf16.gmra.mrb[44].mxu1 %vm578_vm1, %v2233_v26 }
  0x63   :  { %1934 = vmatprep.mubr.msk.bf16.mxu0 %vm2290_vm0, %v2289_v0  ;;  %2094 = vmatprep.mubr.msk.bf16.mxu1 %vm2290_vm0, %v2289_v0 }
  0x6a   :  { %1935 = vmatmul.mubr.msk.bf16.gmra.mrb[48].mxu0 %vm578_vm1, %v2234_v27  ;;  %2095 = vmatmul.mubr.msk.bf16.gmra.mrb[48].mxu1 %vm578_vm1, %v2235_v28  ;;  %v2270_v27 = vld [vmem:[%s3262_s0 + $0xf0] sm:$0xff]  }
  0x6b   :  { %1938 = vmatprep.mubr.msk.bf16.mxu0 %vm2290_vm0, %v2289_v0  ;;  %2098 = vmatprep.mubr.msk.bf16.mxu1 %vm2290_vm0, %v2289_v0 }
  0x72   :  { %1939 = vmatmul.mubr.msk.bf16.gmra.mrb[52].mxu0 %vm578_vm1, %v2236_v29  ;;  %2099 = vmatmul.mubr.msk.bf16.gmra.mrb[52].mxu1 %vm578_vm1, %v2237_v30  ;;  %v2271_v29 = vld [vmem:[%s3262_s0 + $0x230] sm:$0xff]  }
  0x73   :  { %1942 = vmatprep.mubr.msk.bf16.mxu0 %vm2290_vm0, %v2289_v0  ;;  %2102 = vmatprep.mubr.msk.bf16.mxu1 %vm2290_vm0, %v2289_v0 }
  0x7a   :  { %1943 = vmatmul.mubr.msk.bf16.gmra.mrb[56].mxu0 %vm578_vm1, %v2238_v31  ;;  %2103 = vmatmul.mubr.msk.bf16.gmra.mrb[56].mxu1 %vm578_vm1, %v2239_v32 }
  0x7b   :  { %1946 = vmatprep.mubr.msk.bf16.mxu0 %vm2290_vm0, %v2289_v0  ;;  %2106 = vmatprep.mubr.msk.bf16.mxu1 %vm2290_vm0, %v2289_v0 }
  0x82   :  { %1947 = vmatmul.mubr.msk.bf16.gmra.mrb[60].mxu0 %vm578_vm1, %v2240_v33  ;;  %2107 = vmatmul.mubr.msk.bf16.gmra.mrb[60].mxu1 %vm578_vm1, %v2241_v34 }
  0x83   :  { %1950 = vmatprep.mubr.msk.bf16.mxu0 %vm2290_vm0, %v2289_v0  ;;  %2110 = vmatprep.mubr.msk.bf16.mxu1 %vm2290_vm0, %v2289_v0 }
  0x8a   :  { %1951 = vmatmul.mubr.msk.bf16.gmra.mrb[64].mxu0 %vm578_vm1, %v2242_v35  ;;  %2111 = vmatmul.mubr.msk.bf16.gmra.mrb[64].mxu1 %vm578_vm1, %v2243_v36 }
  0x8b   :  { %1954 = vmatprep.mubr.msk.bf16.mxu0 %vm2290_vm0, %v2289_v0  ;;  %2114 = vmatprep.mubr.msk.bf16.mxu1 %vm2290_vm0, %v2289_v0 }
  0x92   :  { %1955 = vmatmul.mubr.msk.bf16.gmra.mrb[68].mxu0 %vm578_vm1, %v2244_v37  ;;  %2115 = vmatmul.mubr.msk.bf16.gmra.mrb[68].mxu1 %vm578_vm1, %v2245_v38  ;;  %v2272_v37 = vld [vmem:[%s3262_s0 + $0xf8] sm:$0xff]  }
  0x93   :  { %1958 = vmatprep.mubr.msk.bf16.mxu0 %vm2290_vm0, %v2289_v0  ;;  %2118 = vmatprep.mubr.msk.bf16.mxu1 %vm2290_vm0, %v2289_v0 }
  0x9a   :  { %1959 = vmatmul.mubr.msk.bf16.gmra.mrb[72].mxu0 %vm578_vm1, %v2246_v39  ;;  %2119 = vmatmul.mubr.msk.bf16.gmra.mrb[72].mxu1 %vm578_vm1, %v2247_v40  ;;  %v2273_v39 = vld [vmem:[%s3262_s0 + $0x238] sm:$0xff]  }
  0x9b   :  { %1962 = vmatprep.mubr.msk.bf16.mxu0 %vm2290_vm0, %v2289_v0  ;;  %2122 = vmatprep.mubr.msk.bf16.mxu1 %vm2290_vm0, %v2289_v0 }
  0xa2   :  { %1963 = vmatmul.mubr.msk.bf16.gmra.mrb[76].mxu0 %vm578_vm1, %v2248_v41  ;;  %2123 = vmatmul.mubr.msk.bf16.gmra.mrb[76].mxu1 %vm578_vm1, %v2249_v42 }
  0xa3   :  { %1966 = vmatprep.mubr.msk.bf16.mxu0 %vm2290_vm0, %v2289_v0  ;;  %2126 = vmatprep.mubr.msk.bf16.mxu1 %vm2290_vm0, %v2289_v0 }
  0xaa   :  { %1967 = vmatmul.mubr.msk.bf16.gmra.mrb[80].mxu0 %vm578_vm1, %v2250_v43  ;;  %2127 = vmatmul.mubr.msk.bf16.gmra.mrb[80].mxu1 %vm578_vm1, %v2251_v44 }
  0xab   :  { %1970 = vmatprep.mubr.msk.bf16.mxu0 %vm2290_vm0, %v2289_v0  ;;  %2130 = vmatprep.mubr.msk.bf16.mxu1 %vm2290_vm0, %v2289_v0 }
  0xb2   :  { %1971 = vmatmul.mubr.msk.bf16.gmra.mrb[84].mxu0 %vm578_vm1, %v2252_v45  ;;  %2131 = vmatmul.mubr.msk.bf16.gmra.mrb[84].mxu1 %vm578_vm1, %v2253_v46 }
  0xb3   :  { %1974 = vmatprep.mubr.msk.bf16.mxu0 %vm2290_vm0, %v2289_v0  ;;  %2134 = vmatprep.mubr.msk.bf16.mxu1 %vm2290_vm0, %v2289_v0 }
  0xba   :  { %1975 = vmatmul.mubr.msk.bf16.gmra.mrb[88].mxu0 %vm578_vm1, %v2254_v47  ;;  %2135 = vmatmul.mubr.msk.bf16.gmra.mrb[88].mxu1 %vm578_vm1, %v2255_v48  ;;  %v2274_v47 = vld [vmem:[%s3262_s0 + $0x100] sm:$0xff]  }
  0xbb   :  { %1978 = vmatprep.mubr.msk.bf16.mxu0 %vm2290_vm0, %v2289_v0  ;;  %2138 = vmatprep.mubr.msk.bf16.mxu1 %vm2290_vm0, %v2289_v0 }
  0xc2   :  { %1979 = vmatmul.mubr.msk.bf16.gmra.mrb[92].mxu0 %vm578_vm1, %v2256_v49  ;;  %2139 = vmatmul.mubr.msk.bf16.gmra.mrb[92].mxu1 %vm578_vm1, %v2257_v50  ;;  %v2275_v49 = vld [vmem:[%s3262_s0 + $0x240] sm:$0xff]  }
  0xc3   :  { %1982 = vmatprep.mubr.msk.bf16.mxu0 %vm2290_vm0, %v2289_v0  ;;  %2142 = vmatprep.mubr.msk.bf16.mxu1 %vm2290_vm0, %v2289_v0 }
  0xca   :  { %1983 = vmatmul.mubr.msk.bf16.gmra.mrb[96].mxu0 %vm578_vm1, %v2258_v51  ;;  %2143 = vmatmul.mubr.msk.bf16.gmra.mrb[96].mxu1 %vm578_vm1, %v2259_v52 }
  0xcb   :  { %1986 = vmatprep.mubr.msk.bf16.mxu0 %vm2290_vm0, %v2289_v0  ;;  %2146 = vmatprep.mubr.msk.bf16.mxu1 %vm2290_vm0, %v2289_v0 }
  0xd2   :  { %1987 = vmatmul.mubr.msk.bf16.gmra.mrb[100].mxu0 %vm578_vm1, %v2260_v53  ;;  %2147 = vmatmul.mubr.msk.bf16.gmra.mrb[100].mxu1 %vm578_vm1, %v2261_v54 }
  0xd3   :  { %1990 = vmatprep.mubr.msk.bf16.mxu0 %vm2290_vm0, %v2289_v0  ;;  %2150 = vmatprep.mubr.msk.bf16.mxu1 %vm2290_vm0, %v2289_v0 }
  0xda   :  { %1991 = vmatmul.mubr.msk.bf16.gmra.mrb[104].mxu0 %vm578_vm1, %v2262_v55  ;;  %2151 = vmatmul.mubr.msk.bf16.gmra.mrb[104].mxu1 %vm578_vm1, %v2263_v56 }
  0xdb   :  { %1994 = vmatprep.mubr.msk.bf16.mxu0 %vm2290_vm0, %v2289_v0  ;;  %2154 = vmatprep.mubr.msk.bf16.mxu1 %vm2290_vm0, %v2289_v0 }
  0xdd   :  { %v850_v57 = vpop.f32.mrb[0].mxu0  ;;  %v1170_v58 = vpop.f32.mrb[0].mxu1 }
  0xde   :  { %1480 = vst [vmem:[%s3263_s2] sm:$0xff] %v850_v57  ;;  %v1888_v59 = vpop.f32.mrb[1].mxu0  ;;  %1560 = vst [vmem:[%s3263_s2 + $0x280] sm:$0xff] %v1170_v58  ;;  %v2048_v61 = vpop.f32.mrb[1].mxu1  ;;  %v2276_v57 = vld [vmem:[%s3262_s0 + $0x108] sm:$0xff]  }
  0xdf   :  { %v853_v63 = vpop.f32.mrb[2].mxu0  ;;  %v1173_v1 = vpop.f32.mrb[2].mxu1  ;;  %v2277_v59 = vld [vmem:[%s3262_s0 + $0x248] sm:$0xff]  }
  0xe0   :  { %1481 = vst [vmem:[%s3263_s2 + $0x8] sm:$0xff] %v853_v63  ;;  %v1889_v2 = vpop.f32.mrb[3].mxu0  ;;  %1561 = vst [vmem:[%s3263_s2 + $0x288] sm:$0xff] %v1173_v1  ;;  %v2049_v3 = vpop.f32.mrb[3].mxu1 }
  0xe2   :  { %1995 = vmatmul.mubr.msk.bf16.gmra.mrb[108].mxu0 %vm578_vm1, %v2264_v60  ;;  %2155 = vmatmul.mubr.msk.bf16.gmra.mrb[108].mxu1 %vm578_vm1, %v2265_v62 }
  0xe3   :  { %1998 = vmatprep.mubr.msk.bf16.mxu0 %vm2290_vm0, %v2289_v0  ;;  %2158 = vmatprep.mubr.msk.bf16.mxu1 %vm2290_vm0, %v2289_v0 }
  0xe5   :  { %v858_v4 = vpop.f32.mrb[4].mxu0  ;;  %v1178_v5 = vpop.f32.mrb[4].mxu1 }
  0xe6   :  { %1482 = vst [vmem:[%s3263_s2 + $0x10] sm:$0xff] %v858_v4  ;;  %v1892_v6 = vpop.f32.mrb[5].mxu0  ;;  %1562 = vst [vmem:[%s3263_s2 + $0x290] sm:$0xff] %v1178_v5  ;;  %v2052_v8 = vpop.f32.mrb[5].mxu1  ;;  %v2278_v4 = vld [vmem:[%s3262_s0 + $0x110] sm:$0xff]  }
  0xe7   :  { %v861_v10 = vpop.f32.mrb[6].mxu0  ;;  %v1181_v11 = vpop.f32.mrb[6].mxu1  ;;  %v2279_v6 = vld [vmem:[%s3262_s0 + $0x250] sm:$0xff]  }
  0xe8   :  { %1483 = vst [vmem:[%s3263_s2 + $0x18] sm:$0xff] %v861_v10  ;;  %v1893_v12 = vpop.f32.mrb[7].mxu0  ;;  %1563 = vst [vmem:[%s3263_s2 + $0x298] sm:$0xff] %v1181_v11  ;;  %v2053_v13 = vpop.f32.mrb[7].mxu1 }
  0xea   :  { %1999 = vmatmul.mubr.msk.bf16.gmra.mrb[112].mxu0 %vm578_vm1, %v2266_v7  ;;  %2159 = vmatmul.mubr.msk.bf16.gmra.mrb[112].mxu1 %vm578_vm1, %v2267_v9 }
  0xeb   :  { %2002 = vmatprep.mubr.msk.bf16.mxu0 %vm2290_vm0, %v2289_v0  ;;  %2162 = vmatprep.mubr.msk.bf16.mxu1 %vm2290_vm0, %v2289_v0 }
  0xed   :  { %v866_v14 = vpop.f32.mrb[8].mxu0  ;;  %v1186_v15 = vpop.f32.mrb[8].mxu1 }
  0xee   :  { %1484 = vst [vmem:[%s3263_s2 + $0x20] sm:$0xff] %v866_v14  ;;  %v1896_v16 = vpop.f32.mrb[9].mxu0  ;;  %1564 = vst [vmem:[%s3263_s2 + $0x2a0] sm:$0xff] %v1186_v15  ;;  %v2056_v18 = vpop.f32.mrb[9].mxu1  ;;  %v2280_v14 = vld [vmem:[%s3262_s0 + $0x118] sm:$0xff]  }
  0xef   :  { %v869_v20 = vpop.f32.mrb[10].mxu0  ;;  %v1189_v21 = vpop.f32.mrb[10].mxu1  ;;  %v2281_v16 = vld [vmem:[%s3262_s0 + $0x258] sm:$0xff]  }
  0xf0   :  { %1485 = vst [vmem:[%s3263_s2 + $0x28] sm:$0xff] %v869_v20  ;;  %v1897_v22 = vpop.f32.mrb[11].mxu0  ;;  %1565 = vst [vmem:[%s3263_s2 + $0x2a8] sm:$0xff] %v1189_v21  ;;  %v2057_v23 = vpop.f32.mrb[11].mxu1 }
  0xf2   :  { %2003 = vmatmul.mubr.msk.bf16.gmra.mrb[116].mxu0 %vm578_vm1, %v2268_v17  ;;  %2163 = vmatmul.mubr.msk.bf16.gmra.mrb[116].mxu1 %vm578_vm1, %v2269_v19 }
  0xf3   :  { %2006 = vmatprep.mubr.msk.bf16.mxu0 %vm2290_vm0, %v2289_v0  ;;  %2166 = vmatprep.mubr.msk.bf16.mxu1 %vm2290_vm0, %v2289_v0 }
  0xf5   :  { %v874_v24 = vpop.f32.mrb[12].mxu0  ;;  %v1194_v25 = vpop.f32.mrb[12].mxu1 }
  0xf6   :  { %1486 = vst [vmem:[%s3263_s2 + $0x30] sm:$0xff] %v874_v24  ;;  %v1900_v26 = vpop.f32.mrb[13].mxu0  ;;  %1566 = vst [vmem:[%s3263_s2 + $0x2b0] sm:$0xff] %v1194_v25  ;;  %v2060_v28 = vpop.f32.mrb[13].mxu1  ;;  %v2282_v24 = vld [vmem:[%s3262_s0 + $0x120] sm:$0xff]  }
  0xf7   :  { %v877_v30 = vpop.f32.mrb[14].mxu0  ;;  %v1197_v31 = vpop.f32.mrb[14].mxu1  ;;  %v2283_v26 = vld [vmem:[%s3262_s0 + $0x260] sm:$0xff]  }
  0xf8   :  { %1487 = vst [vmem:[%s3263_s2 + $0x38] sm:$0xff] %v877_v30  ;;  %v1901_v32 = vpop.f32.mrb[15].mxu0  ;;  %1567 = vst [vmem:[%s3263_s2 + $0x2b8] sm:$0xff] %v1197_v31  ;;  %v2061_v33 = vpop.f32.mrb[15].mxu1 }
  0xfa   :  { %2007 = vmatmul.mubr.msk.bf16.gmra.mrb[120].mxu0 %vm578_vm1, %v2270_v27  ;;  %2167 = vmatmul.mubr.msk.bf16.gmra.mrb[120].mxu1 %vm578_vm1, %v2271_v29 }
  0xfb   :  { %2010 = vmatprep.mubr.msk.bf16.mxu0 %vm2290_vm0, %v2289_v0  ;;  %2170 = vmatprep.mubr.msk.bf16.mxu1 %vm2290_vm0, %v2289_v0 }
  0xfd   :  { %v882_v34 = vpop.f32.mrb[16].mxu0  ;;  %v1202_v35 = vpop.f32.mrb[16].mxu1 }
  0xfe   :  { %1488 = vst [vmem:[%s3263_s2 + $0x40] sm:$0xff] %v882_v34  ;;  %v1904_v36 = vpop.f32.mrb[17].mxu0  ;;  %1568 = vst [vmem:[%s3263_s2 + $0x2c0] sm:$0xff] %v1202_v35  ;;  %v2064_v38 = vpop.f32.mrb[17].mxu1  ;;  %v2284_v34 = vld [vmem:[%s3262_s0 + $0x128] sm:$0xff]  }
  0xff   :  { %v885_v40 = vpop.f32.mrb[18].mxu0  ;;  %v1205_v41 = vpop.f32.mrb[18].mxu1  ;;  %v2285_v36 = vld [vmem:[%s3262_s0 + $0x268] sm:$0xff]  }
 0x100   :  { %1489 = vst [vmem:[%s3263_s2 + $0x48] sm:$0xff] %v885_v40  ;;  %v1905_v42 = vpop.f32.mrb[19].mxu0  ;;  %1569 = vst [vmem:[%s3263_s2 + $0x2c8] sm:$0xff] %v1205_v41  ;;  %v2065_v43 = vpop.f32.mrb[19].mxu1 }
 0x102   :  { %2011 = vmatmul.mubr.msk.bf16.gmra.mrb[124].mxu0 %vm578_vm1, %v2272_v37  ;;  %2171 = vmatmul.mubr.msk.bf16.gmra.mrb[124].mxu1 %vm578_vm1, %v2273_v39 }
 0x103   :  { %2014 = vmatprep.mubr.msk.bf16.mxu0 %vm2290_vm0, %v2289_v0  ;;  %2174 = vmatprep.mubr.msk.bf16.mxu1 %vm2290_vm0, %v2289_v0 }
 0x105   :  { %v890_v44 = vpop.f32.mrb[20].mxu0  ;;  %v1210_v45 = vpop.f32.mrb[20].mxu1 }
 0x106   :  { %1490 = vst [vmem:[%s3263_s2 + $0x50] sm:$0xff] %v890_v44  ;;  %v1908_v46 = vpop.f32.mrb[21].mxu0  ;;  %1570 = vst [vmem:[%s3263_s2 + $0x2d0] sm:$0xff] %v1210_v45  ;;  %v2068_v48 = vpop.f32.mrb[21].mxu1  ;;  %v2286_v44 = vld [vmem:[%s3262_s0 + $0x130] sm:$0xff]  }
 0x107   :  { %v893_v50 = vpop.f32.mrb[22].mxu0  ;;  %v1213_v51 = vpop.f32.mrb[22].mxu1  ;;  %v2287_v46 = vld [vmem:[%s3262_s0 + $0x270] ss:$0 sps:$4 sm:$0x11]  }
 0x108   :  { %1491 = vst [vmem:[%s3263_s2 + $0x58] sm:$0xff] %v893_v50  ;;  %v1909_v52 = vpop.f32.mrb[23].mxu0  ;;  %1571 = vst [vmem:[%s3263_s2 + $0x2d8] sm:$0xff] %v1213_v51  ;;  %v2069_v53 = vpop.f32.mrb[23].mxu1 }
 0x10a   :  { %2015 = vmatmul.mubr.msk.bf16.gmra.mrb[128].mxu0 %vm578_vm1, %v2274_v47  ;;  %2175 = vmatmul.mubr.msk.bf16.gmra.mrb[128].mxu1 %vm578_vm1, %v2275_v49 }
 0x10b   :  { %2018 = vmatprep.mubr.msk.bf16.mxu0 %vm2290_vm0, %v2289_v0  ;;  %2178 = vmatprep.mubr.msk.bf16.mxu1 %vm2290_vm0, %v2289_v0 }
 0x10d   :  { %v898_v54 = vpop.f32.mrb[24].mxu0  ;;  %v1218_v55 = vpop.f32.mrb[24].mxu1 }
 0x10e   :  { %1492 = vst [vmem:[%s3263_s2 + $0x60] sm:$0xff] %v898_v54  ;;  %v1912_v56 = vpop.f32.mrb[25].mxu0  ;;  %1572 = vst [vmem:[%s3263_s2 + $0x2e0] sm:$0xff] %v1218_v55  ;;  %v2072_v58 = vpop.f32.mrb[25].mxu1  ;;  %v2288_v54 = vld [vmem:[%s3262_s0 + $0x138] sm:$0xff]  }
 0x10f   :  { %v901_v60 = vpop.f32.mrb[26].mxu0  ;;  %v1221_v61 = vpop.f32.mrb[26].mxu1 }
 0x110   :  { %1493 = vst [vmem:[%s3263_s2 + $0x68] sm:$0xff] %v901_v60  ;;  %v1913_v62 = vpop.f32.mrb[27].mxu0  ;;  %1573 = vst [vmem:[%s3263_s2 + $0x2e8] sm:$0xff] %v1221_v61  ;;  %v2073_v63 = vpop.f32.mrb[27].mxu1 }
 0x112   :  { %2019 = vmatmul.mubr.msk.bf16.gmra.mrb[132].mxu0 %vm578_vm1, %v2276_v57  ;;  %2179 = vmatmul.mubr.msk.bf16.gmra.mrb[132].mxu1 %vm578_vm1, %v2277_v59 }
 0x113   :  { %2022 = vmatprep.mubr.msk.bf16.mxu0 %vm2290_vm0, %v2289_v0  ;;  %2182 = vmatprep.mubr.msk.bf16.mxu1 %vm2290_vm0, %v2289_v0 }
 0x115   :  { %v906_v1 = vpop.f32.mrb[28].mxu0  ;;  %v1226_v2 = vpop.f32.mrb[28].mxu1 }
 0x116   :  { %1494 = vst [vmem:[%s3263_s2 + $0x70] sm:$0xff] %v906_v1  ;;  %v1916_v3 = vpop.f32.mrb[29].mxu0  ;;  %1574 = vst [vmem:[%s3263_s2 + $0x2f0] sm:$0xff] %v1226_v2  ;;  %v2076_v5 = vpop.f32.mrb[29].mxu1 }
 0x117   :  { %v909_v7 = vpop.f32.mrb[30].mxu0  ;;  %v1229_v8 = vpop.f32.mrb[30].mxu1 }
 0x118   :  { %1495 = vst [vmem:[%s3263_s2 + $0x78] sm:$0xff] %v909_v7  ;;  %v1917_v9 = vpop.f32.mrb[31].mxu0  ;;  %1575 = vst [vmem:[%s3263_s2 + $0x2f8] sm:$0xff] %v1229_v8  ;;  %v2077_v10 = vpop.f32.mrb[31].mxu1 }
 0x11a   :  { %2023 = vmatmul.mubr.msk.bf16.gmra.mrb[136].mxu0 %vm578_vm1, %v2278_v4  ;;  %2183 = vmatmul.mubr.msk.bf16.gmra.mrb[136].mxu1 %vm578_vm1, %v2279_v6 }
 0x11b   :  { %2026 = vmatprep.mubr.msk.bf16.mxu0 %vm2290_vm0, %v2289_v0  ;;  %2186 = vmatprep.mubr.msk.bf16.mxu1 %vm2290_vm0, %v2289_v0 }
 0x11d   :  { %v914_v11 = vpop.f32.mrb[32].mxu0  ;;  %v1234_v12 = vpop.f32.mrb[32].mxu1 }
 0x11e   :  { %1496 = vst [vmem:[%s3263_s2 + $0x80] sm:$0xff] %v914_v11  ;;  %v1920_v13 = vpop.f32.mrb[33].mxu0  ;;  %1576 = vst [vmem:[%s3263_s2 + $0x300] sm:$0xff] %v1234_v12  ;;  %v2080_v15 = vpop.f32.mrb[33].mxu1 }
 0x11f   :  { %v917_v17 = vpop.f32.mrb[34].mxu0  ;;  %v1237_v18 = vpop.f32.mrb[34].mxu1 }
 0x120   :  { %1497 = vst [vmem:[%s3263_s2 + $0x88] sm:$0xff] %v917_v17  ;;  %v1921_v19 = vpop.f32.mrb[35].mxu0  ;;  %1577 = vst [vmem:[%s3263_s2 + $0x308] sm:$0xff] %v1237_v18  ;;  %v2081_v20 = vpop.f32.mrb[35].mxu1 }
 0x122   :  { %2027 = vmatmul.mubr.msk.bf16.gmra.mrb[140].mxu0 %vm578_vm1, %v2280_v14  ;;  %2187 = vmatmul.mubr.msk.bf16.gmra.mrb[140].mxu1 %vm578_vm1, %v2281_v16 }
 0x123   :  { %2030 = vmatprep.mubr.msk.bf16.mxu0 %vm2290_vm0, %v2289_v0  ;;  %2190 = vmatprep.mubr.msk.bf16.mxu1 %vm2290_vm0, %v2289_v0 }
 0x125   :  { %v922_v21 = vpop.f32.mrb[36].mxu0  ;;  %v1242_v22 = vpop.f32.mrb[36].mxu1 }
 0x126   :  { %1498 = vst [vmem:[%s3263_s2 + $0x90] sm:$0xff] %v922_v21  ;;  %v1924_v23 = vpop.f32.mrb[37].mxu0  ;;  %1578 = vst [vmem:[%s3263_s2 + $0x310] sm:$0xff] %v1242_v22  ;;  %v2084_v25 = vpop.f32.mrb[37].mxu1 }
 0x127   :  { %v925_v27 = vpop.f32.mrb[38].mxu0  ;;  %v1245_v28 = vpop.f32.mrb[38].mxu1 }
 0x128   :  { %1499 = vst [vmem:[%s3263_s2 + $0x98] sm:$0xff] %v925_v27  ;;  %v1925_v29 = vpop.f32.mrb[39].mxu0  ;;  %1579 = vst [vmem:[%s3263_s2 + $0x318] sm:$0xff] %v1245_v28  ;;  %v2085_v30 = vpop.f32.mrb[39].mxu1 }
 0x12a   :  { %2031 = vmatmul.mubr.msk.bf16.gmra.mrb[144].mxu0 %vm578_vm1, %v2282_v24  ;;  %2191 = vmatmul.mubr.msk.bf16.gmra.mrb[144].mxu1 %vm578_vm1, %v2283_v26 }
 0x12b   :  { %2034 = vmatprep.mubr.msk.bf16.mxu0 %vm2290_vm0, %v2289_v0  ;;  %2194 = vmatprep.mubr.msk.bf16.mxu1 %vm2290_vm0, %v2289_v0 }
 0x12d   :  { %v930_v31 = vpop.f32.mrb[40].mxu0  ;;  %v1250_v32 = vpop.f32.mrb[40].mxu1 }
 0x12e   :  { %1500 = vst [vmem:[%s3263_s2 + $0xa0] sm:$0xff] %v930_v31  ;;  %v1928_v33 = vpop.f32.mrb[41].mxu0  ;;  %1580 = vst [vmem:[%s3263_s2 + $0x320] sm:$0xff] %v1250_v32  ;;  %v2088_v35 = vpop.f32.mrb[41].mxu1 }
 0x12f   :  { %v933_v37 = vpop.f32.mrb[42].mxu0  ;;  %v1253_v38 = vpop.f32.mrb[42].mxu1 }
 0x130   :  { %1501 = vst [vmem:[%s3263_s2 + $0xa8] sm:$0xff] %v933_v37  ;;  %v1929_v39 = vpop.f32.mrb[43].mxu0  ;;  %1581 = vst [vmem:[%s3263_s2 + $0x328] sm:$0xff] %v1253_v38  ;;  %v2089_v40 = vpop.f32.mrb[43].mxu1 }
 0x132   :  { %2035 = vmatmul.mubr.msk.bf16.gmra.mrb[148].mxu0 %vm578_vm1, %v2284_v34  ;;  %2195 = vmatmul.mubr.msk.bf16.gmra.mrb[148].mxu1 %vm578_vm1, %v2285_v36 }
 0x133   :  { %2038 = vmatprep.mubr.msk.bf16.mxu0 %vm2290_vm0, %v2289_v0  ;;  %2198 = vmatprep.mubr.msk.bf16.mxu1 %vm2290_vm0, %v2289_v0 }
 0x135   :  { %v938_v41 = vpop.f32.mrb[44].mxu0  ;;  %v1258_v42 = vpop.f32.mrb[44].mxu1 }
 0x136   :  { %1502 = vst [vmem:[%s3263_s2 + $0xb0] sm:$0xff] %v938_v41  ;;  %v1932_v43 = vpop.f32.mrb[45].mxu0  ;;  %1582 = vst [vmem:[%s3263_s2 + $0x330] sm:$0xff] %v1258_v42  ;;  %v2092_v45 = vpop.f32.mrb[45].mxu1 }
 0x137   :  { %v941_v47 = vpop.f32.mrb[46].mxu0  ;;  %v1261_v48 = vpop.f32.mrb[46].mxu1 }
 0x138   :  { %1503 = vst [vmem:[%s3263_s2 + $0xb8] sm:$0xff] %v941_v47  ;;  %v1933_v49 = vpop.f32.mrb[47].mxu0  ;;  %1583 = vst [vmem:[%s3263_s2 + $0x338] sm:$0xff] %v1261_v48  ;;  %v2093_v50 = vpop.f32.mrb[47].mxu1 }
 0x13a   :  { %2039 = vmatmul.mubr.msk.bf16.gmra.mrb[152].mxu0 %vm578_vm1, %v2286_v44  ;;  %2199 = vmatmul.mubr.msk.bf16.gmra.mrb[152].mxu1 %vm578_vm1, %v2287_v46 }
 0x13b   :  { %2042 = vmatprep.mubr.msk.bf16.mxu0 %vm2290_vm0, %v2289_v0 }
 0x13d   :  { %v946_v51 = vpop.f32.mrb[48].mxu0  ;;  %v1266_v52 = vpop.f32.mrb[48].mxu1 }
 0x13e   :  { %1504 = vst [vmem:[%s3263_s2 + $0xc0] sm:$0xff] %v946_v51  ;;  %v1936_v53 = vpop.f32.mrb[49].mxu0  ;;  %1584 = vst [vmem:[%s3263_s2 + $0x340] sm:$0xff] %v1266_v52  ;;  %v2096_v55 = vpop.f32.mrb[49].mxu1 }
 0x13f   :  { %v949_v56 = vpop.f32.mrb[50].mxu0  ;;  %v1269_v57 = vpop.f32.mrb[50].mxu1 }
 0x140   :  { %1505 = vst [vmem:[%s3263_s2 + $0xc8] sm:$0xff] %v949_v56  ;;  %v1937_v0 = vpop.f32.mrb[51].mxu0  ;;  %1585 = vst [vmem:[%s3263_s2 + $0x348] sm:$0xff] %v1269_v57  ;;  %v2097_v58 = vpop.f32.mrb[51].mxu1 }
 0x142   :  { %2043 = vmatmul.mubr.msk.bf16.gmra.mrb[156].mxu0 %vm578_vm1, %v2288_v54 }
 0x145   :  { %v954_v59 = vpop.f32.mrb[52].mxu0  ;;  %v1274_v60 = vpop.f32.mrb[52].mxu1 }
 0x146   :  { %1506 = vst [vmem:[%s3263_s2 + $0xd0] sm:$0xff] %v954_v59  ;;  %v1940_v61 = vpop.f32.mrb[53].mxu0  ;;  %1586 = vst [vmem:[%s3263_s2 + $0x350] sm:$0xff] %v1274_v60  ;;  %v2100_v62 = vpop.f32.mrb[53].mxu1 }
 0x147   :  { %v957_v63 = vpop.f32.mrb[54].mxu0  ;;  %v1277_v1 = vpop.f32.mrb[54].mxu1 }
 0x148   :  { %1507 = vst [vmem:[%s3263_s2 + $0xd8] sm:$0xff] %v957_v63  ;;  %v1941_v2 = vpop.f32.mrb[55].mxu0  ;;  %1587 = vst [vmem:[%s3263_s2 + $0x358] sm:$0xff] %v1277_v1  ;;  %v2101_v3 = vpop.f32.mrb[55].mxu1 }
 0x14d   :  { %v962_v4 = vpop.f32.mrb[56].mxu0  ;;  %v1282_v5 = vpop.f32.mrb[56].mxu1 }
 0x14e   :  { %1508 = vst [vmem:[%s3263_s2 + $0xe0] sm:$0xff] %v962_v4  ;;  %v1944_v6 = vpop.f32.mrb[57].mxu0  ;;  %1588 = vst [vmem:[%s3263_s2 + $0x360] sm:$0xff] %v1282_v5  ;;  %v2104_v7 = vpop.f32.mrb[57].mxu1 }
 0x14f   :  { %v965_v8 = vpop.f32.mrb[58].mxu0  ;;  %v1285_v9 = vpop.f32.mrb[58].mxu1 }
 0x150   :  { %1509 = vst [vmem:[%s3263_s2 + $0xe8] sm:$0xff] %v965_v8  ;;  %v1945_v10 = vpop.f32.mrb[59].mxu0  ;;  %1589 = vst [vmem:[%s3263_s2 + $0x368] sm:$0xff] %v1285_v9  ;;  %v2105_v11 = vpop.f32.mrb[59].mxu1 }
 0x155   :  { %v970_v12 = vpop.f32.mrb[60].mxu0  ;;  %v1290_v13 = vpop.f32.mrb[60].mxu1 }
 0x156   :  { %1510 = vst [vmem:[%s3263_s2 + $0xf0] sm:$0xff] %v970_v12  ;;  %v1948_v14 = vpop.f32.mrb[61].mxu0  ;;  %1590 = vst [vmem:[%s3263_s2 + $0x370] sm:$0xff] %v1290_v13  ;;  %v2108_v15 = vpop.f32.mrb[61].mxu1 }
 0x157   :  { %v973_v16 = vpop.f32.mrb[62].mxu0  ;;  %v1293_v17 = vpop.f32.mrb[62].mxu1 }
 0x158   :  { %1511 = vst [vmem:[%s3263_s2 + $0xf8] sm:$0xff] %v973_v16  ;;  %v1949_v18 = vpop.f32.mrb[63].mxu0  ;;  %1591 = vst [vmem:[%s3263_s2 + $0x378] sm:$0xff] %v1293_v17  ;;  %v2109_v19 = vpop.f32.mrb[63].mxu1 }
 0x15d   :  { %v978_v20 = vpop.f32.mrb[64].mxu0  ;;  %v1298_v21 = vpop.f32.mrb[64].mxu1 }
 0x15e   :  { %1512 = vst [vmem:[%s3263_s2 + $0x100] sm:$0xff] %v978_v20  ;;  %v1952_v22 = vpop.f32.mrb[65].mxu0  ;;  %1592 = vst [vmem:[%s3263_s2 + $0x380] sm:$0xff] %v1298_v21  ;;  %v2112_v23 = vpop.f32.mrb[65].mxu1 }
 0x15f   :  { %v981_v24 = vpop.f32.mrb[66].mxu0  ;;  %v1301_v25 = vpop.f32.mrb[66].mxu1 }
 0x160   :  { %1513 = vst [vmem:[%s3263_s2 + $0x108] sm:$0xff] %v981_v24  ;;  %v1953_v26 = vpop.f32.mrb[67].mxu0  ;;  %1593 = vst [vmem:[%s3263_s2 + $0x388] sm:$0xff] %v1301_v25  ;;  %v2113_v27 = vpop.f32.mrb[67].mxu1 }
 0x165   :  { %v986_v28 = vpop.f32.mrb[68].mxu0  ;;  %v1306_v29 = vpop.f32.mrb[68].mxu1 }
 0x166   :  { %1514 = vst [vmem:[%s3263_s2 + $0x110] sm:$0xff] %v986_v28  ;;  %v1956_v30 = vpop.f32.mrb[69].mxu0  ;;  %1594 = vst [vmem:[%s3263_s2 + $0x390] sm:$0xff] %v1306_v29  ;;  %v2116_v31 = vpop.f32.mrb[69].mxu1 }
 0x167   :  { %v989_v32 = vpop.f32.mrb[70].mxu0  ;;  %v1309_v33 = vpop.f32.mrb[70].mxu1 }
 0x168   :  { %1515 = vst [vmem:[%s3263_s2 + $0x118] sm:$0xff] %v989_v32  ;;  %v1957_v34 = vpop.f32.mrb[71].mxu0  ;;  %1595 = vst [vmem:[%s3263_s2 + $0x398] sm:$0xff] %v1309_v33  ;;  %v2117_v35 = vpop.f32.mrb[71].mxu1 }
 0x16d   :  { %v994_v36 = vpop.f32.mrb[72].mxu0  ;;  %v1314_v37 = vpop.f32.mrb[72].mxu1 }
 0x16e   :  { %1516 = vst [vmem:[%s3263_s2 + $0x120] sm:$0xff] %v994_v36  ;;  %v1960_v38 = vpop.f32.mrb[73].mxu0  ;;  %1596 = vst [vmem:[%s3263_s2 + $0x3a0] sm:$0xff] %v1314_v37  ;;  %v2120_v39 = vpop.f32.mrb[73].mxu1 }
 0x16f   :  { %v997_v40 = vpop.f32.mrb[74].mxu0  ;;  %v1317_v41 = vpop.f32.mrb[74].mxu1 }
 0x170   :  { %1517 = vst [vmem:[%s3263_s2 + $0x128] sm:$0xff] %v997_v40  ;;  %v1961_v42 = vpop.f32.mrb[75].mxu0  ;;  %1597 = vst [vmem:[%s3263_s2 + $0x3a8] sm:$0xff] %v1317_v41  ;;  %v2121_v43 = vpop.f32.mrb[75].mxu1 }
 0x175   :  { %v1002_v44 = vpop.f32.mrb[76].mxu0  ;;  %v1322_v45 = vpop.f32.mrb[76].mxu1 }
 0x176   :  { %1518 = vst [vmem:[%s3263_s2 + $0x130] sm:$0xff] %v1002_v44  ;;  %v1964_v46 = vpop.f32.mrb[77].mxu0  ;;  %1598 = vst [vmem:[%s3263_s2 + $0x3b0] sm:$0xff] %v1322_v45  ;;  %v2124_v47 = vpop.f32.mrb[77].mxu1 }
 0x177   :  { %v1005_v48 = vpop.f32.mrb[78].mxu0  ;;  %v1325_v49 = vpop.f32.mrb[78].mxu1 }
 0x178   :  { %1519 = vst [vmem:[%s3263_s2 + $0x138] sm:$0xff] %v1005_v48  ;;  %v1965_v50 = vpop.f32.mrb[79].mxu0  ;;  %1599 = vst [vmem:[%s3263_s2 + $0x3b8] sm:$0xff] %v1325_v49  ;;  %v2125_v51 = vpop.f32.mrb[79].mxu1 }
 0x17d   :  { %v1010_v52 = vpop.f32.mrb[80].mxu0  ;;  %v1330_v53 = vpop.f32.mrb[80].mxu1 }
 0x17e   :  { %1520 = vst [vmem:[%s3263_s2 + $0x140] sm:$0xff] %v1010_v52  ;;  %v1968_v54 = vpop.f32.mrb[81].mxu0  ;;  %1600 = vst [vmem:[%s3263_s2 + $0x3c0] sm:$0xff] %v1330_v53  ;;  %v2128_v55 = vpop.f32.mrb[81].mxu1 }
 0x17f   :  { %v1013_v56 = vpop.f32.mrb[82].mxu0  ;;  %v1333_v57 = vpop.f32.mrb[82].mxu1 }
 0x180   :  { %1521 = vst [vmem:[%s3263_s2 + $0x148] sm:$0xff] %v1013_v56  ;;  %v1969_v0 = vpop.f32.mrb[83].mxu0  ;;  %1601 = vst [vmem:[%s3263_s2 + $0x3c8] sm:$0xff] %v1333_v57  ;;  %v2129_v58 = vpop.f32.mrb[83].mxu1 }
 0x185   :  { %v1018_v59 = vpop.f32.mrb[84].mxu0  ;;  %v1338_v60 = vpop.f32.mrb[84].mxu1 }
 0x186   :  { %1522 = vst [vmem:[%s3263_s2 + $0x150] sm:$0xff] %v1018_v59  ;;  %v1972_v61 = vpop.f32.mrb[85].mxu0  ;;  %1602 = vst [vmem:[%s3263_s2 + $0x3d0] sm:$0xff] %v1338_v60  ;;  %v2132_v62 = vpop.f32.mrb[85].mxu1 }
 0x187   :  { %v1021_v63 = vpop.f32.mrb[86].mxu0  ;;  %v1341_v1 = vpop.f32.mrb[86].mxu1 }
 0x188   :  { %1523 = vst [vmem:[%s3263_s2 + $0x158] sm:$0xff] %v1021_v63  ;;  %v1973_v2 = vpop.f32.mrb[87].mxu0  ;;  %1603 = vst [vmem:[%s3263_s2 + $0x3d8] sm:$0xff] %v1341_v1  ;;  %v2133_v3 = vpop.f32.mrb[87].mxu1 }
 0x18d   :  { %v1026_v4 = vpop.f32.mrb[88].mxu0  ;;  %v1346_v5 = vpop.f32.mrb[88].mxu1 }
 0x18e   :  { %1524 = vst [vmem:[%s3263_s2 + $0x160] sm:$0xff] %v1026_v4  ;;  %v1976_v6 = vpop.f32.mrb[89].mxu0  ;;  %1604 = vst [vmem:[%s3263_s2 + $0x3e0] sm:$0xff] %v1346_v5  ;;  %v2136_v7 = vpop.f32.mrb[89].mxu1 }
 0x18f   :  { %v1029_v8 = vpop.f32.mrb[90].mxu0  ;;  %v1349_v9 = vpop.f32.mrb[90].mxu1 }
 0x190   :  { %1525 = vst [vmem:[%s3263_s2 + $0x168] sm:$0xff] %v1029_v8  ;;  %v1977_v10 = vpop.f32.mrb[91].mxu0  ;;  %1605 = vst [vmem:[%s3263_s2 + $0x3e8] sm:$0xff] %v1349_v9  ;;  %v2137_v11 = vpop.f32.mrb[91].mxu1 }
 0x195   :  { %v1034_v12 = vpop.f32.mrb[92].mxu0  ;;  %v1354_v13 = vpop.f32.mrb[92].mxu1 }
 0x196   :  { %1526 = vst [vmem:[%s3263_s2 + $0x170] sm:$0xff] %v1034_v12  ;;  %v1980_v14 = vpop.f32.mrb[93].mxu0  ;;  %1606 = vst [vmem:[%s3263_s2 + $0x3f0] sm:$0xff] %v1354_v13  ;;  %v2140_v15 = vpop.f32.mrb[93].mxu1 }
 0x197   :  { %v1037_v16 = vpop.f32.mrb[94].mxu0  ;;  %v1357_v17 = vpop.f32.mrb[94].mxu1 }
 0x198   :  { %1527 = vst [vmem:[%s3263_s2 + $0x178] sm:$0xff] %v1037_v16  ;;  %v1981_v18 = vpop.f32.mrb[95].mxu0  ;;  %1607 = vst [vmem:[%s3263_s2 + $0x3f8] sm:$0xff] %v1357_v17  ;;  %v2141_v19 = vpop.f32.mrb[95].mxu1 }
 0x19d   :  { %v1042_v20 = vpop.f32.mrb[96].mxu0  ;;  %v1362_v21 = vpop.f32.mrb[96].mxu1 }
 0x19e   :  { %1528 = vst [vmem:[%s3263_s2 + $0x180] sm:$0xff] %v1042_v20  ;;  %v1984_v22 = vpop.f32.mrb[97].mxu0  ;;  %1608 = vst [vmem:[%s3263_s2 + $0x400] sm:$0xff] %v1362_v21  ;;  %v2144_v23 = vpop.f32.mrb[97].mxu1 }
 0x19f   :  { %v1045_v24 = vpop.f32.mrb[98].mxu0  ;;  %v1365_v25 = vpop.f32.mrb[98].mxu1 }
 0x1a0   :  { %1529 = vst [vmem:[%s3263_s2 + $0x188] sm:$0xff] %v1045_v24  ;;  %v1985_v26 = vpop.f32.mrb[99].mxu0  ;;  %1609 = vst [vmem:[%s3263_s2 + $0x408] sm:$0xff] %v1365_v25  ;;  %v2145_v27 = vpop.f32.mrb[99].mxu1 }
 0x1a5   :  { %v1050_v28 = vpop.f32.mrb[100].mxu0  ;;  %v1370_v29 = vpop.f32.mrb[100].mxu1 }
 0x1a6   :  { %1530 = vst [vmem:[%s3263_s2 + $0x190] sm:$0xff] %v1050_v28  ;;  %v1988_v30 = vpop.f32.mrb[101].mxu0  ;;  %1610 = vst [vmem:[%s3263_s2 + $0x410] sm:$0xff] %v1370_v29  ;;  %v2148_v31 = vpop.f32.mrb[101].mxu1 }
 0x1a7   :  { %v1053_v32 = vpop.f32.mrb[102].mxu0  ;;  %v1373_v33 = vpop.f32.mrb[102].mxu1 }
 0x1a8   :  { %1531 = vst [vmem:[%s3263_s2 + $0x198] sm:$0xff] %v1053_v32  ;;  %v1989_v34 = vpop.f32.mrb[103].mxu0  ;;  %1611 = vst [vmem:[%s3263_s2 + $0x418] sm:$0xff] %v1373_v33  ;;  %v2149_v35 = vpop.f32.mrb[103].mxu1 }
 0x1ad   :  { %v1058_v36 = vpop.f32.mrb[104].mxu0  ;;  %v1378_v37 = vpop.f32.mrb[104].mxu1 }
 0x1ae   :  { %1532 = vst [vmem:[%s3263_s2 + $0x1a0] sm:$0xff] %v1058_v36  ;;  %v1992_v38 = vpop.f32.mrb[105].mxu0  ;;  %1612 = vst [vmem:[%s3263_s2 + $0x420] sm:$0xff] %v1378_v37  ;;  %v2152_v39 = vpop.f32.mrb[105].mxu1 }
 0x1af   :  { %v1061_v40 = vpop.f32.mrb[106].mxu0  ;;  %v1381_v41 = vpop.f32.mrb[106].mxu1 }
 0x1b0   :  { %1533 = vst [vmem:[%s3263_s2 + $0x1a8] sm:$0xff] %v1061_v40  ;;  %v1993_v42 = vpop.f32.mrb[107].mxu0  ;;  %1613 = vst [vmem:[%s3263_s2 + $0x428] sm:$0xff] %v1381_v41  ;;  %v2153_v43 = vpop.f32.mrb[107].mxu1 }
 0x1b5   :  { %v1066_v44 = vpop.f32.mrb[108].mxu0  ;;  %v1386_v45 = vpop.f32.mrb[108].mxu1 }
 0x1b6   :  { %1534 = vst [vmem:[%s3263_s2 + $0x1b0] sm:$0xff] %v1066_v44  ;;  %v1996_v46 = vpop.f32.mrb[109].mxu0  ;;  %1614 = vst [vmem:[%s3263_s2 + $0x430] sm:$0xff] %v1386_v45  ;;  %v2156_v47 = vpop.f32.mrb[109].mxu1 }
 0x1b7   :  { %v1069_v48 = vpop.f32.mrb[110].mxu0  ;;  %v1389_v49 = vpop.f32.mrb[110].mxu1 }
 0x1b8   :  { %1535 = vst [vmem:[%s3263_s2 + $0x1b8] sm:$0xff] %v1069_v48  ;;  %v1997_v50 = vpop.f32.mrb[111].mxu0  ;;  %1615 = vst [vmem:[%s3263_s2 + $0x438] sm:$0xff] %v1389_v49  ;;  %v2157_v51 = vpop.f32.mrb[111].mxu1 }
 0x1bd   :  { %v1074_v52 = vpop.f32.mrb[112].mxu0  ;;  %v1394_v53 = vpop.f32.mrb[112].mxu1 }
 0x1be   :  { %1536 = vst [vmem:[%s3263_s2 + $0x1c0] sm:$0xff] %v1074_v52  ;;  %v2000_v54 = vpop.f32.mrb[113].mxu0  ;;  %1616 = vst [vmem:[%s3263_s2 + $0x440] sm:$0xff] %v1394_v53  ;;  %v2160_v55 = vpop.f32.mrb[113].mxu1 }
 0x1bf   :  { %v1077_v56 = vpop.f32.mrb[114].mxu0  ;;  %v1397_v57 = vpop.f32.mrb[114].mxu1 }
 0x1c0   :  { %1537 = vst [vmem:[%s3263_s2 + $0x1c8] sm:$0xff] %v1077_v56  ;;  %v2001_v0 = vpop.f32.mrb[115].mxu0  ;;  %1617 = vst [vmem:[%s3263_s2 + $0x448] sm:$0xff] %v1397_v57  ;;  %v2161_v58 = vpop.f32.mrb[115].mxu1 }
 0x1c5   :  { %v1082_v59 = vpop.f32.mrb[116].mxu0  ;;  %v1402_v60 = vpop.f32.mrb[116].mxu1 }
 0x1c6   :  { %1538 = vst [vmem:[%s3263_s2 + $0x1d0] sm:$0xff] %v1082_v59  ;;  %v2004_v61 = vpop.f32.mrb[117].mxu0  ;;  %1618 = vst [vmem:[%s3263_s2 + $0x450] sm:$0xff] %v1402_v60  ;;  %v2164_v62 = vpop.f32.mrb[117].mxu1 }
 0x1c7   :  { %v1085_v63 = vpop.f32.mrb[118].mxu0  ;;  %v1405_v1 = vpop.f32.mrb[118].mxu1 }
 0x1c8   :  { %1539 = vst [vmem:[%s3263_s2 + $0x1d8] sm:$0xff] %v1085_v63  ;;  %v2005_v2 = vpop.f32.mrb[119].mxu0  ;;  %1619 = vst [vmem:[%s3263_s2 + $0x458] sm:$0xff] %v1405_v1  ;;  %v2165_v3 = vpop.f32.mrb[119].mxu1 }
 0x1cd   :  { %v1090_v4 = vpop.f32.mrb[120].mxu0  ;;  %v1410_v5 = vpop.f32.mrb[120].mxu1 }
 0x1ce   :  { %1540 = vst [vmem:[%s3263_s2 + $0x1e0] sm:$0xff] %v1090_v4  ;;  %v2008_v6 = vpop.f32.mrb[121].mxu0  ;;  %1620 = vst [vmem:[%s3263_s2 + $0x460] sm:$0xff] %v1410_v5  ;;  %v2168_v7 = vpop.f32.mrb[121].mxu1 }
 0x1cf   :  { %v1093_v8 = vpop.f32.mrb[122].mxu0  ;;  %v1413_v9 = vpop.f32.mrb[122].mxu1 }
 0x1d0   :  { %1541 = vst [vmem:[%s3263_s2 + $0x1e8] sm:$0xff] %v1093_v8  ;;  %v2009_v10 = vpop.f32.mrb[123].mxu0  ;;  %1621 = vst [vmem:[%s3263_s2 + $0x468] sm:$0xff] %v1413_v9  ;;  %v2169_v11 = vpop.f32.mrb[123].mxu1 }
 0x1d5   :  { %v1098_v12 = vpop.f32.mrb[124].mxu0  ;;  %v1418_v13 = vpop.f32.mrb[124].mxu1 }
 0x1d6   :  { %1542 = vst [vmem:[%s3263_s2 + $0x1f0] sm:$0xff] %v1098_v12  ;;  %v2012_v14 = vpop.f32.mrb[125].mxu0  ;;  %1622 = vst [vmem:[%s3263_s2 + $0x470] sm:$0xff] %v1418_v13  ;;  %v2172_v15 = vpop.f32.mrb[125].mxu1 }
 0x1d7   :  { %v1101_v16 = vpop.f32.mrb[126].mxu0  ;;  %v1421_v17 = vpop.f32.mrb[126].mxu1 }
 0x1d8   :  { %1543 = vst [vmem:[%s3263_s2 + $0x1f8] sm:$0xff] %v1101_v16  ;;  %v2013_v18 = vpop.f32.mrb[127].mxu0  ;;  %1623 = vst [vmem:[%s3263_s2 + $0x478] sm:$0xff] %v1421_v17  ;;  %v2173_v19 = vpop.f32.mrb[127].mxu1 }
 0x1dd   :  { %v1106_v20 = vpop.f32.mrb[128].mxu0  ;;  %v1426_v21 = vpop.f32.mrb[128].mxu1 }
 0x1de   :  { %1544 = vst [vmem:[%s3263_s2 + $0x200] sm:$0xff] %v1106_v20  ;;  %v2016_v22 = vpop.f32.mrb[129].mxu0  ;;  %1624 = vst [vmem:[%s3263_s2 + $0x480] sm:$0xff] %v1426_v21  ;;  %v2176_v23 = vpop.f32.mrb[129].mxu1 }
 0x1df   :  { %v1109_v24 = vpop.f32.mrb[130].mxu0  ;;  %v1429_v25 = vpop.f32.mrb[130].mxu1 }
 0x1e0   :  { %1545 = vst [vmem:[%s3263_s2 + $0x208] sm:$0xff] %v1109_v24  ;;  %v2017_v26 = vpop.f32.mrb[131].mxu0  ;;  %1625 = vst [vmem:[%s3263_s2 + $0x488] sm:$0xff] %v1429_v25  ;;  %v2177_v27 = vpop.f32.mrb[131].mxu1 }
 0x1e5   :  { %v1114_v28 = vpop.f32.mrb[132].mxu0  ;;  %v1434_v29 = vpop.f32.mrb[132].mxu1 }
 0x1e6   :  { %1546 = vst [vmem:[%s3263_s2 + $0x210] sm:$0xff] %v1114_v28  ;;  %v2020_v30 = vpop.f32.mrb[133].mxu0  ;;  %1626 = vst [vmem:[%s3263_s2 + $0x490] sm:$0xff] %v1434_v29  ;;  %v2180_v31 = vpop.f32.mrb[133].mxu1 }
 0x1e7   :  { %v1117_v32 = vpop.f32.mrb[134].mxu0  ;;  %v1437_v33 = vpop.f32.mrb[134].mxu1 }
 0x1e8   :  { %1547 = vst [vmem:[%s3263_s2 + $0x218] sm:$0xff] %v1117_v32  ;;  %v2021_v34 = vpop.f32.mrb[135].mxu0  ;;  %1627 = vst [vmem:[%s3263_s2 + $0x498] sm:$0xff] %v1437_v33  ;;  %v2181_v35 = vpop.f32.mrb[135].mxu1 }
 0x1ed   :  { %v1122_v36 = vpop.f32.mrb[136].mxu0  ;;  %v1442_v37 = vpop.f32.mrb[136].mxu1 }
 0x1ee   :  { %1548 = vst [vmem:[%s3263_s2 + $0x220] sm:$0xff] %v1122_v36  ;;  %v2024_v38 = vpop.f32.mrb[137].mxu0  ;;  %1628 = vst [vmem:[%s3263_s2 + $0x4a0] sm:$0xff] %v1442_v37  ;;  %v2184_v39 = vpop.f32.mrb[137].mxu1 }
 0x1ef   :  { %v1125_v40 = vpop.f32.mrb[138].mxu0  ;;  %v1445_v41 = vpop.f32.mrb[138].mxu1 }
 0x1f0   :  { %1549 = vst [vmem:[%s3263_s2 + $0x228] sm:$0xff] %v1125_v40  ;;  %v2025_v42 = vpop.f32.mrb[139].mxu0  ;;  %1629 = vst [vmem:[%s3263_s2 + $0x4a8] sm:$0xff] %v1445_v41  ;;  %v2185_v43 = vpop.f32.mrb[139].mxu1 }
 0x1f5   :  { %v1130_v44 = vpop.f32.mrb[140].mxu0  ;;  %v1450_v45 = vpop.f32.mrb[140].mxu1 }
 0x1f6   :  { %1550 = vst [vmem:[%s3263_s2 + $0x230] sm:$0xff] %v1130_v44  ;;  %v2028_v46 = vpop.f32.mrb[141].mxu0  ;;  %1630 = vst [vmem:[%s3263_s2 + $0x4b0] sm:$0xff] %v1450_v45  ;;  %v2188_v47 = vpop.f32.mrb[141].mxu1 }
 0x1f7   :  { %v1133_v48 = vpop.f32.mrb[142].mxu0  ;;  %v1453_v49 = vpop.f32.mrb[142].mxu1 }
 0x1f8   :  { %1551 = vst [vmem:[%s3263_s2 + $0x238] sm:$0xff] %v1133_v48  ;;  %v2029_v50 = vpop.f32.mrb[143].mxu0  ;;  %1631 = vst [vmem:[%s3263_s2 + $0x4b8] sm:$0xff] %v1453_v49  ;;  %v2189_v51 = vpop.f32.mrb[143].mxu1 }
 0x1fd   :  { %v1138_v52 = vpop.f32.mrb[144].mxu0  ;;  %v1458_v53 = vpop.f32.mrb[144].mxu1 }
 0x1fe   :  { %1552 = vst [vmem:[%s3263_s2 + $0x240] sm:$0xff] %v1138_v52  ;;  %v2032_v54 = vpop.f32.mrb[145].mxu0  ;;  %1632 = vst [vmem:[%s3263_s2 + $0x4c0] sm:$0xff] %v1458_v53  ;;  %v2192_v55 = vpop.f32.mrb[145].mxu1 }
 0x1ff   :  { %v1141_v56 = vpop.f32.mrb[146].mxu0  ;;  %v1461_v57 = vpop.f32.mrb[146].mxu1 }
 0x200   :  { %1553 = vst [vmem:[%s3263_s2 + $0x248] sm:$0xff] %v1141_v56  ;;  %v2033_v0 = vpop.f32.mrb[147].mxu0  ;;  %1633 = vst [vmem:[%s3263_s2 + $0x4c8] sm:$0xff] %v1461_v57  ;;  %v2193_v58 = vpop.f32.mrb[147].mxu1 }
 0x205   :  { %v1146_v59 = vpop.f32.mrb[148].mxu0  ;;  %v1466_v60 = vpop.f32.mrb[148].mxu1 }
 0x206   :  { %1554 = vst [vmem:[%s3263_s2 + $0x250] sm:$0xff] %v1146_v59  ;;  %v2036_v61 = vpop.f32.mrb[149].mxu0  ;;  %1634 = vst [vmem:[%s3263_s2 + $0x4d0] sm:$0xff] %v1466_v60  ;;  %v2196_v62 = vpop.f32.mrb[149].mxu1 }
 0x207   :  { %v1149_v63 = vpop.f32.mrb[150].mxu0  ;;  %v1469_v1 = vpop.f32.mrb[150].mxu1 }
 0x208   :  { %1555 = vst [vmem:[%s3263_s2 + $0x258] sm:$0xff] %v1149_v63  ;;  %v2037_v2 = vpop.f32.mrb[151].mxu0  ;;  %1635 = vst [vmem:[%s3263_s2 + $0x4d8] sm:$0xff] %v1469_v1  ;;  %v2197_v3 = vpop.f32.mrb[151].mxu1 }
 0x20d   :  { %v1154_v4 = vpop.f32.mrb[152].mxu0  ;;  %v1474_v5 = vpop.f32.mrb[152].mxu1 }
 0x20e   :  { %1556 = vst [vmem:[%s3263_s2 + $0x260] sm:$0xff] %v1154_v4  ;;  %v2040_v6 = vpop.f32.mrb[153].mxu0  ;;  %1636 = vst [vmem:[%s3263_s2 + $0x4e0] sm:$0x3] %v1474_v5  ;;  %v2200_v7 = vpop.f32.mrb[153].mxu1 }
 0x20f   :  { %v1157_v8 = vpop.f32.mrb[154].mxu0  ;;  %v1477_v9 = vpop.f32.mrb[154].mxu1 }
 0x210   :  { %1557 = vst [vmem:[%s3263_s2 + $0x268] sm:$0xff] %v1157_v8  ;;  %v2041_v10 = vpop.f32.mrb[155].mxu0  ;;  %v2201_v11 = vpop.f32.mrb[155].mxu1 }
 0x215   :  { %v1162_v12 = vpop.f32.mrb[156].mxu0 }
 0x216   :  { %1558 = vst [vmem:[%s3263_s2 + $0x270] sm:$0xff] %v1162_v12  ;;  %v2044_v13 = vpop.f32.mrb[157].mxu0 }
 0x217   :  { %v1165_v14 = vpop.f32.mrb[158].mxu0 }
 0x218   :  { %1559 = vst [vmem:[%s3263_s2 + $0x278] sm:$0xff] %v1165_v14  ;;  %v2045_v15 = vpop.f32.mrb[159].mxu0 }

</bundles_post_ra>
